<compile_context>
chip_gen: v7x
topology: tpu7x:2x2x1
jax: 0.10.0
libtpu: 0.0.40
codegen_flags: <defaults>
</compile_context>

<pallas_src>
import functools
import math

import jax
import jax.numpy as jnp
from jax.experimental import pallas as pl
from jax.experimental.pallas import tpu as pltpu

_INV_SQRT2 = 1.0 / math.sqrt(2.0)
_SQRT_2_OVER_PI = math.sqrt(2.0 / math.pi)


def _round_up(n, m):
    return ((n + m - 1) // m) * m


def _vmem_capacity_bytes():
    """Per-TensorCore VMEM capacity; conservative 64 MiB fallback (v7x)."""
    try:
        info = pltpu.get_tpu_info()
        cap = getattr(info, "vmem_capacity_bytes", None)
        if cap:
            return int(cap)
    except Exception:
        pass
    return 64 * 1024 * 1024


def _gelu(h, approx):
    if approx:
        # tanh-approx GELU: one EUP tanh per element (EUP slot is otherwise
        # idle), reduces VALU pressure on v6e/v7x.  Deviates slightly
        # (<~3e-3) from nn.GELU()'s exact erf.
        return 0.5 * h * (1.0 + jnp.tanh(
            _SQRT_2_OVER_PI * (h + 0.044715 * h * h * h)))
    # Exact erf GELU (matches nn.GELU() default).
    return 0.5 * h * (1.0 + jax.lax.erf(h * _INV_SQRT2))


# --------------------------------------------------------------------------
# Path A: weights fully VMEM-resident.  Grid = (M/tm,), "parallel".
# --------------------------------------------------------------------------
def _mlp_resident_kernel(x_ref, w1_ref, w2_ref, o_ref, *, approx_gelu):
    # Cast the activation row tile in-kernel (avoids a wrapper-side HBM pass).
    x = x_ref[...].astype(w1_ref.dtype)
    # c_fc: (tm, C) @ (C, H) -> (tm, H); bf16 operands, f32 accumulation.
    h = jnp.dot(x, w1_ref[...], preferred_element_type=jnp.float32)
    h = _gelu(h, approx_gelu)
    # c_proj: (tm, H) @ (H, C) -> (tm, C).
    y = jnp.dot(h.astype(w2_ref.dtype), w2_ref[...],
                preferred_element_type=jnp.float32)
    o_ref[...] = y.astype(o_ref.dtype)


# --------------------------------------------------------------------------
# Path B: hidden dim tiled (large C only).  Grid = (M/tm, H/th),
# ("parallel", "arbitrary") with an f32 VMEM accumulator.
# --------------------------------------------------------------------------
def _mlp_tiled_kernel(x_ref, w1_ref, w2_ref, o_ref, acc_ref, *, approx_gelu):
    j = pl.program_id(1)

    @pl.when(j == 0)
    def _init():
        acc_ref[...] = jnp.zeros_like(acc_ref)

    x = x_ref[...].astype(w1_ref.dtype)
    h = jnp.dot(x, w1_ref[...], preferred_element_type=jnp.float32)
    h = _gelu(h, approx_gelu)
    acc_ref[...] += jnp.dot(h.astype(w2_ref.dtype), w2_ref[...],
                            preferred_element_type=jnp.float32)

    @pl.when(j == pl.num_programs(1) - 1)
    def _done():
        o_ref[...] = acc_ref[...].astype(o_ref.dtype)


def mlp_forward(x, w_fc_t, w_proj_t, *, tm=512, th=512,
                compute_dtype=jnp.bfloat16, approx_gelu=False, out_dtype=None):
    """y = gelu(x @ W1) @ W2.

    x:        (B, T, C)
    w_fc_t:   (C, 4C)  = c_fc.weight.T   (ideally already in compute_dtype)
    w_proj_t: (4C, C)  = c_proj.weight.T (ideally already in compute_dtype)
    """
    B, T, C = x.shape
    H = w_fc_t.shape[1]
    assert w_fc_t.shape == (C, H) and w_proj_t.shape == (H, C)
    assert C % 128 == 0, "n_embd must be a multiple of 128 for dense lanes"
    assert H % 128 == 0

    out_dtype = x.dtype if out_dtype is None else out_dtype
    M = B * T

    # Weights should be carried in the compute dtype between calls; casting
    # here is a one-off fallback (extra HBM read+write of both matrices).
    if w_fc_t.dtype != compute_dtype:
        w_fc_t = w_fc_t.astype(compute_dtype)
    if w_proj_t.dtype != compute_dtype:
        w_proj_t = w_proj_t.astype(compute_dtype)

    wbytes = jnp.dtype(compute_dtype).itemsize
    xbytes = jnp.dtype(x.dtype).itemsize
    obytes = jnp.dtype(out_dtype).itemsize
    cap = _vmem_capacity_bytes()

    # Resident-weight path whenever both weights (double-buffer-counted) fit
    # comfortably in VMEM; otherwise tile the hidden dimension.
    resident_weight_bytes = 2 * (2 * C * H * wbytes)
    use_resident = resident_weight_bytes <= int(0.4 * cap)

    if not use_resident:
        th = min(th, H)
        assert H % th == 0 and th % 128 == 0

    # Row tile: primary knob.  Cap so there are always >= 2 row tiles when
    # M allows it (v7x has 2 TensorCores sharing the "parallel" axis).
    two_tile_cap = max(8, _round_up(-(-M // 2), 8))
    tm = max(8, _round_up(min(tm, two_tile_cap), 8))

    def _vmem_needed(tm_):
        if use_resident:
            w_buf = resident_weight_bytes
            acc = 0
            th_live = H
        else:
            w_buf = 3 * (2 * C * th * wbytes)      # Buffered(3) weight tiles
            acc = tm_ * C * 4                       # f32 accumulator scratch
            th_live = th
        return (2 * tm_ * C * xbytes                # x tiles (double-buffered)
                + 2 * tm_ * C * obytes              # out tiles
                + w_buf + acc
                + tm_ * th_live * (4 + wbytes)      # live f32 + bf16 h
                + tm_ * C * 4)                      # live f32 matmul result

    # Auto-shrink tm against the per-generation VMEM budget (64 MiB on v7x,
    # 128 MiB on v5e/v6e).
    while tm > 64 and _vmem_needed(tm) > int(0.7 * cap):
        tm = max(64, _round_up(tm // 2, 8))

    vmem_limit = min(max(int(1.25 * _vmem_needed(tm)), 16 * 1024 * 1024),
                     int(0.9 * cap))

    # Round rows up to a tile multiple (tiny pad, e.g. 300 -> 304).
    M_pad = _round_up(M, tm)
    x2d = x.reshape(M, C)
    if M_pad != M:
        x2d = jnp.pad(x2d, ((0, M_pad - M), (0, 0)))

    if use_resident:
        grid = (M_pad // tm,)
        kernel = functools.partial(_mlp_resident_kernel,
                                   approx_gelu=approx_gelu)
        cost = pl.CostEstimate(
            flops=4 * M_pad * C * H,                 # two GEMMs
            transcendentals=M_pad * H,               # gelu per hidden element
            bytes_accessed=(M_pad * C * xbytes       # x (read once)
                            + 2 * C * H * wbytes     # weights (read once)
                            + M_pad * C * obytes))   # output
        out2d = pl.pallas_call(
            kernel,
            out_shape=jax.ShapeDtypeStruct((M_pad, C), out_dtype),
            grid_spec=pltpu.PrefetchScalarGridSpec(
                num_scalar_prefetch=0,
                grid=grid,
                in_specs=[
                    pl.BlockSpec((tm, C), lambda i: (i, 0)),  # row tile of x
                    pl.BlockSpec((C, H), lambda i: (0, 0)),   # resident c_fc
                    pl.BlockSpec((H, C), lambda i: (0, 0)),   # resident c_proj
                ],
                out_specs=pl.BlockSpec((tm, C), lambda i: (i, 0)),
            ),
            compiler_params=pltpu.CompilerParams(
                dimension_semantics=("parallel",),
                vmem_limit_bytes=vmem_limit),
            cost_estimate=cost,
        )(x2d, w_fc_t, w_proj_t)
    else:
        grid = (M_pad // tm, H // th)
        kernel = functools.partial(_mlp_tiled_kernel, approx_gelu=approx_gelu)
        cost = pl.CostEstimate(
            flops=4 * M_pad * C * H,
            transcendentals=M_pad * H,
            bytes_accessed=(M_pad * C * xbytes
                            + (M_pad // tm) * 2 * C * H * wbytes  # per row tile
                            + M_pad * C * obytes))
        out2d = pl.pallas_call(
            kernel,
            out_shape=jax.ShapeDtypeStruct((M_pad, C), out_dtype),
            grid_spec=pltpu.PrefetchScalarGridSpec(
                num_scalar_prefetch=0,
                grid=grid,
                in_specs=[
                    pl.BlockSpec((tm, C), lambda i, j: (i, 0)),
                    pl.BlockSpec((C, th), lambda i, j: (0, j),
                                 pipeline_mode=pl.Buffered(3)),
                    pl.BlockSpec((th, C), lambda i, j: (j, 0),
                                 pipeline_mode=pl.Buffered(3)),
                ],
                out_specs=pl.BlockSpec((tm, C), lambda i, j: (i, 0)),
                scratch_shapes=[pltpu.VMEM((tm, C), jnp.float32)],
            ),
            compiler_params=pltpu.CompilerParams(
                dimension_semantics=("parallel", "arbitrary"),
                vmem_limit_bytes=vmem_limit),
            cost_estimate=cost,
        )(x2d, w_fc_t, w_proj_t)

    # TODO(synk): training-mode dropout (p=0.2) would use pltpu.prng_seed +
    # pltpu.prng_random_bits to build a keep-mask; eval mode is identity.

    if M_pad != M:
        out2d = out2d[:M]
    return out2d.reshape(B, T, C)


def mlp_reference(x, w_fc_t, w_proj_t):
    """Pure-JAX f32 reference: gelu(x @ W1) @ W2 (exact erf GELU)."""
    h = x.astype(jnp.float32) @ w_fc_t.astype(jnp.float32)
    h = 0.5 * h * (1.0 + jax.lax.erf(h * _INV_SQRT2))
    return h @ w_proj_t.astype(jnp.float32)


if __name__ == "__main__":
    # Shapes consistent with the module: n_embd=384, H = 4*n_embd, seq <= 300.
    # M = B*T = 300 exercises the ragged row-tile path (padded to 304, two
    # 152-row tiles -> both v7x TensorCores get work, ~1% pad waste).
    B, T, C = 2, 150, 384
    H = 4 * C

    key = jax.random.PRNGKey(0)
    kx, k1, k2 = jax.random.split(key, 3)

    x = jax.random.normal(kx, (B, T, C), dtype=jnp.float32)

    # nn.Linear-style U(-1/sqrt(fan_in), 1/sqrt(fan_in)), stored transposed as
    # (in_features, out_features).
    w_fc_f32 = jax.random.uniform(k1, (C, H), dtype=jnp.float32,
                                  minval=-1.0 / math.sqrt(C),
                                  maxval=1.0 / math.sqrt(C))
    w_proj_f32 = jax.random.uniform(k2, (H, C), dtype=jnp.float32,
                                    minval=-1.0 / math.sqrt(H),
                                    maxval=1.0 / math.sqrt(H))

    # Carry weights in the compute dtype (one-time cast, reused every call).
    w_fc_t = w_fc_f32.astype(jnp.bfloat16)
    w_proj_t = w_proj_f32.astype(jnp.bfloat16)

    y = mlp_forward(x, w_fc_t, w_proj_t)
    y = jax.block_until_ready(y)

    # Reference uses the same (bf16-quantized) weights upcast to f32, so the
    # comparison isolates the kernel's bf16-operand / f32-accumulate path.
    y_ref = mlp_reference(x, w_fc_t, w_proj_t)

    assert y.shape == (B, T, C)
    assert y.dtype == x.dtype
    # bf16 matmul operands & intermediate (f32 accumulation) => looser
    # tolerance than a pure-f32 comparison; a precision choice, not a bug.
    assert jnp.allclose(y, y_ref, atol=3e-2, rtol=3e-2), "mismatch vs reference"

    print("KERNEL_OK")
</pallas_src>

<mosaic_0001>
module attributes {stable_mosaic.version = 11 : i64} {
  func.func @_mlp_resident_kernel(%arg0: i32, %arg1: memref<152x384xf32, #tpu.memory_space<vmem>>, %arg2: memref<384x1536xbf16, #tpu.memory_space<vmem>>, %arg3: memref<1536x384xbf16, #tpu.memory_space<vmem>>, %arg4: memref<152x384xf32, #tpu.memory_space<vmem>>) attributes {dimension_semantics = [#tpu.dimension_semantics<parallel>], iteration_bounds = array<i64: 2>, scalar_prefetch = 0 : i64, scratch_operands = 0 : i64, tpu.core_type = #tpu.core_type<tc>, window_params = [{transform_indices = @transform_0, window_bounds = array<i64: 152, 384>}, {pipeline_mode = #tpu.pipeline_mode<synchronous>, transform_indices = @transform_1, window_bounds = array<i64: 384, 1536>}, {pipeline_mode = #tpu.pipeline_mode<synchronous>, transform_indices = @transform_2, window_bounds = array<i64: 1536, 384>}, {transform_indices = @transform_3, window_bounds = array<i64: 152, 384>}]} {
    %c0 = arith.constant 0 : index
    %c0_0 = arith.constant 0 : index
    %0 = vector.load %arg1[%c0, %c0_0] : memref<152x384xf32, #tpu.memory_space<vmem>>, vector<152x384xf32>
    %1 = arith.truncf %0 : vector<152x384xf32> to vector<152x384xbf16>
    %c0_1 = arith.constant 0 : index
    %c0_2 = arith.constant 0 : index
    %2 = vector.load %arg2[%c0_1, %c0_2] : memref<384x1536xbf16, #tpu.memory_space<vmem>>, vector<384x1536xbf16>
    %cst = arith.constant dense<0.000000e+00> : vector<152x1536xf32>
    %3 = tpu.matmul %1, %2, %cst {dimension_numbers = #tpu.dot_dimension_numbers<[1], [0], [0], [1], [0, 0, 1, 1], [], []>} : vector<152x384xbf16>, vector<384x1536xbf16>, vector<152x1536xf32> -> vector<152x1536xf32>
    %cst_3 = arith.constant 5.000000e-01 : f32
    %4 = vector.broadcast %cst_3 : f32 to vector<152x1536xf32>
    %5 = arith.mulf %4, %3 : vector<152x1536xf32>
    %cst_4 = arith.constant 0.707106769 : f32
    %6 = vector.broadcast %cst_4 : f32 to vector<152x1536xf32>
    %7 = arith.mulf %3, %6 : vector<152x1536xf32>
    %8 = math.erf %7 : vector<152x1536xf32>
    %cst_5 = arith.constant 1.000000e+00 : f32
    %9 = vector.broadcast %cst_5 : f32 to vector<152x1536xf32>
    %10 = arith.addf %9, %8 : vector<152x1536xf32>
    %11 = arith.mulf %5, %10 : vector<152x1536xf32>
    %12 = arith.truncf %11 : vector<152x1536xf32> to vector<152x1536xbf16>
    %c0_6 = arith.constant 0 : index
    %c0_7 = arith.constant 0 : index
    %13 = vector.load %arg3[%c0_6, %c0_7] : memref<1536x384xbf16, #tpu.memory_space<vmem>>, vector<1536x384xbf16>
    %cst_8 = arith.constant dense<0.000000e+00> : vector<152x384xf32>
    %14 = tpu.matmul %12, %13, %cst_8 {dimension_numbers = #tpu.dot_dimension_numbers<[1], [0], [0], [1], [0, 0, 1, 1], [], []>} : vector<152x1536xbf16>, vector<1536x384xbf16>, vector<152x384xf32> -> vector<152x384xf32>
    %c0_9 = arith.constant 0 : index
    %c0_10 = arith.constant 0 : index
    %15 = vector.load %arg4[%c0_9, %c0_10] : memref<152x384xf32, #tpu.memory_space<vmem>>, vector<152x384xf32>
    tpu.vector_store %arg4[%c0_9, %c0_10], %14 {strides = array<i32>} : memref<152x384xf32, #tpu.memory_space<vmem>>, vector<152x384xf32>,
    return
  }
  func.func @transform_0(%arg0: i32) -> (i32, i32) {
    %c0_i32 = arith.constant 0 : i32
    %c0_i32_0 = arith.constant 0 : i32
    return %arg0, %c0_i32 : i32, i32
  }
  func.func @transform_1(%arg0: i32) -> (i32, i32) {
    %c0_i32 = arith.constant 0 : i32
    %c0_i32_0 = arith.constant 0 : i32
    %c0_i32_1 = arith.constant 0 : i32
    return %c0_i32, %c0_i32_0 : i32, i32
  }
  func.func @transform_2(%arg0: i32) -> (i32, i32) {
    %c0_i32 = arith.constant 0 : i32
    %c0_i32_0 = arith.constant 0 : i32
    %c0_i32_1 = arith.constant 0 : i32
    return %c0_i32, %c0_i32_0 : i32, i32
  }
  func.func @transform_3(%arg0: i32) -> (i32, i32) {
    %c0_i32 = arith.constant 0 : i32
    %c0_i32_0 = arith.constant 0 : i32
    return %arg0, %c0_i32 : i32, i32
  }
}

</mosaic_0001>

<bundles_post_ra>
// kernel: tpu_custom_call.1
= control target key start
LH: loop header
LB: loop body
LE: loop exit
PB: predicated region body
PF: predicated region fallthrough
CT: control target
= control target key end

     0   :  { %8 = vsyncpa [#allocation3], 0  ;;  %s14708_s0 = inlined_call_operand.hbm [shape: f32[304,384], index: 0, kind: input, shape index: {}]   ;;  %s14709_s1 = inlined_call_operand.hbm [shape: bf16[384,1536], index: 1, kind: input, shape index: {}]   ;;  %s14710_s2 = inlined_call_operand.hbm [shape: bf16[1536,384], index: 2, kind: input, shape index: {}]   ;;  %s14711_s3 = inlined_call_operand.hbm [shape: f32[304,384], index: 3, kind: output, shape index: {}]  }
   0x1   :  { %10 = vsyncpa [#allocation3 + $0x1], 0 }
   0x2   :  { %11 = vsyncpa [#allocation6], 0 }
   0x3   :  { %12 = vsyncpa [#allocation4], 0 }
   0x4   :  { %14 = vsyncpa [#allocation4 + $0x1], 0  ;;  %s11440_s12 = smov 0   ;;  %s11442_s13 = smov 0  }
   0x5   :  { %s11444_s14 = smov 0   ;;  %s11446_s15 = smov 0  }
   0x6 LB: > { %s11461_s16 = sadd.s32 4294967295, %s11405_s15   ;;  %s8411_s17 = sadd.s32 4294967294, %s11405_s15   ;;  %s11405_s15 = sphi %s11446_s15, %s15320_s15   ;;  %s11401_s14 = sphi %s11444_s14, %s15319_s14   ;;  %s11397_s13 = sphi %s11442_s13, %s15318_s13   ;;  %s11393_s12 = sphi %s11440_s12, %s15317_s12  }
   0x7   : > { %p40_p0 = scmp.ne.s32.totalorder %s11397_s13, %s11393_s12  ;;  %p14712_p1 = scmp.eq.s32.totalorder %s11461_s16, 0 }
   0x8   : > { %p112_p3 = scmp.eq.s32.totalorder %s8411_s17, 1  ;;  %p8412_p5 = scmp.ge.s32.totalorder %s11405_s15, 1 }
   0x9   : > { %p11470_p4 = por %p14712_p1, %p40_p0  ;;  %p119_p7 = scmp.lt.s32.totalorder %s11405_s15, 3 }
   0xa   : > { %p11475_p6 = por %p112_p3, %p40_p0  ;;  %s11407_s21 = smov [#allocation5]  }
   0xb   : > { %s14817_s18 = scalar_select %p11470_p4, 1, 0 }
   0xc   : > { %s14818_s19 = scalar_select %p11475_p6, 1, 0 }
   0xd   : > { %p11480_p8 = pnand %p8412_p5, %p119_p7  ;;  %s131_s22 = sshll.u32 %s11407_s21, 4  ;;  %s11484_s22 = int_to_ptr.vmem [resolvable:$true] %s131_s22 }
   0xe   : > { %s11408_s24 = smov [#allocation7]   ;;  %s11249_s28 = scalar_lea.hbm %s14709_s1, 36864 }
   0xf   : > { %p9911_p9 = pneg %p11480_p8  ;;  %s144_s25 = sshll.u32 %s11408_s24, 4  ;;  %s11495_s25 = int_to_ptr.vmem [resolvable:$true] %s144_s25 }
  0x10   : > { %p11250_p12 = scmp.ne.s32.totalorder %s14709_s1, %s11249_s28  ;;  %p11256_p5 = scmp.lt.u32.totalorder %s11249_s28, %s14709_s1 }
  0x11   : > { %p11491_p11 = pnand %p9911_p9, %p14712_p1 }
  0x13   : > { %p11251_p13 = pneg %p11491_p11 }
  0x15   : > { %p11252_p0 = pnand %p11251_p13, %p11250_p12 }
  0x17   : > { %p11253_p3 = pneg %p11252_p0 }
  0x19   : > { %p11258_p7 = pnand %p11256_p5, %p11253_p3 }
  0x1b   : > { %11261 = shalt.err (!%p11258_p7)
}
  0x1c   : > { %s11262_s6 = scalar_lea.vmem %s11484_s22, 36864  ;;  %p11270_p2 = scmp.lt.s32.totalorder %s11484_s22, %s11484_s22 }
  0x1d   : > { %p11263_p9 = scmp.ne.s32.totalorder %s11484_s22, %s11262_s6  ;;  %p11271_p12 = scmp.lt.s32.totalorder %s11262_s6, %s11262_s6 }
  0x1f   : > { %p11265_p10 = pnand %p11263_p9, %p11251_p13  ;;  %p11272_p0 = por %p11271_p12, %p11270_p2 }
  0x21   : > { %p11266_p1 = pneg %p11265_p10 }
  0x23   : > { %p11273_p6 = pnand %p11272_p0, %p11266_p1 }
  0x25   : > { %11276 = shalt.err (!%p11273_p6)
}
  0x26   : > { %s11409_s7 = smov 768   ;;  %s11410_s8 = smov 48  }
  0x27   : > { %9914 = dma.hbm_to_vmem [thread:$0]  (!%p11491_p11), %s14709_s1, 36864, %s11484_s22, [#allocation6], %s11409_s7, %s11409_s7, %s11410_s8  }
  0x28   : > { %s11277_s21 = scalar_lea.hbm %s14710_s2, 36864 }
  0x29   : > { %p11278_p2 = scmp.ne.s32.totalorder %s14710_s2, %s11277_s21  ;;  %p11284_p10 = scmp.lt.u32.totalorder %s11277_s21, %s14710_s2 }
  0x2b   : > { %p11280_p1 = pnand %p11278_p2, %p11251_p13 }
  0x2d   : > { %p11281_p6 = pneg %p11280_p1 }
  0x2f   : > { %p11286_p3 = pnand %p11284_p10, %p11281_p6 }
  0x31   : > { %11289 = shalt.err (!%p11286_p3)
}
  0x32   : > { %s11290_s22 = scalar_lea.vmem %s11495_s25, 36864  ;;  %p11298_p12 = scmp.lt.s32.totalorder %s11495_s25, %s11495_s25 }
  0x33   : > { %p11291_p5 = scmp.ne.s32.totalorder %s11495_s25, %s11290_s22  ;;  %p11299_p0 = scmp.lt.s32.totalorder %s11290_s22, %s11290_s22 }
  0x35   : > { %p11293_p7 = pnand %p11291_p5, %p11251_p13  ;;  %p11300_p2 = por %p11299_p0, %p11298_p12 }
  0x37   : > { %p11294_p9 = pneg %p11293_p7 }
  0x39   : > { %p11301_p1 = pnand %p11300_p2, %p11294_p9 }
  0x3b   : > { %11304 = shalt.err (!%p11301_p1)
}
  0x3c   : > { %s11411_s29 = smov 192   ;;  %s11412_s30 = smov 12  }
  0x3d   : > { %9917 = dma.hbm_to_vmem [thread:$0]  (!%p11491_p11), %s14710_s2, 36864, %s11495_s25, [#allocation6], %s11411_s29, %s11411_s29, %s11412_s30  }
  0x3e   : > { %s11550_s6 = sadd.s32 1, %s11405_s15   ;;  %s27_s8 = sadd.s32 1, %s11401_s14 }
  0x3f   : > { %s24_s7 = ssub.s32 %s11405_s15, %s11550_s6  ;;  %p34_p6 = scmp.ne.s32.totalorder %s11401_s14, %s11397_s13 }
  0x40   : > { %p25_p13 = scmp.eq.s32.totalorder %s24_s7, 0  ;;  %p35_p10 = scmp.eq.s32.totalorder %s11405_s15, 0 }
  0x41   : > { %p9928_p3 = scmp.lt.s32.totalorder %s11405_s15, 2  ;;  %p14821_p7 = scmp.eq.s32.totalorder %s11461_s16, 1 }
  0x42   : > { %s11560_s9 = scalar_select %p25_p13, %s11401_s14, %s27_s8  }
  0x43   : > { %p36_p5 = por %p35_p10, %p34_p6  ;;  %p11564_p9 = por %p14821_p7, %p34_p6 }
  0x44   : > { %s158_s23 = sand.u32 1, %s11401_s14   ;;  %s9929_s11 = smul.u32 7296, %s11405_s15 }
  0x45   : > { %s14822_s10 = scalar_select %p11564_p9, 1, 0 }
  0x46   : > { %s9895_s25 = smul.u32 456, %s158_s23  ;;  %s11573_s24 = scalar_lea.hbm %s14708_s0, %s9929_s11 }
  0x47   : > { %p11575_p11 = pnand %p9928_p3, %p36_p5  ;;  %s11581_s22 = scalar_lea.sflag [#allocation3], %s158_s23 }
  0x48   : > { %s162_s27 = scalar_lea.vmem [#allocation2], %s9895_s25  ;;  %s11305_s29 = scalar_lea.hbm %s11573_s24, 7296 }
  0x49   : > { %s170_s28 = sshll.u32 %s162_s27, 4  ;;  %p11306_p12 = scmp.ne.s32.totalorder %s11573_s24, %s11305_s29  ;;  %s11579_s28 = int_to_ptr.vmem [resolvable:$true] %s170_s28 }
  0x4a   : > { %p11307_p0 = pneg %p11575_p11  ;;  %s11310_s5 = scalar_lea.hbm %s14708_s0, 14592 }
  0x4b   : > { %p11311_p13 = scmp.lt.u32.totalorder %s11573_s24, %s14708_s0  ;;  %p11312_p6 = scmp.lt.u32.totalorder %s11310_s5, %s11305_s29 }
  0x4c   : > { %p11308_p2 = pnand %p11307_p0, %p11306_p12  ;;  %p11314_p3 = scmp.lt.u32.totalorder %s11305_s29, %s11573_s24 }
  0x4d   : > { %p11313_p10 = por %p11312_p6, %p11311_p13 }
  0x4e   : > { %p11309_p1 = pneg %p11308_p2 }
  0x4f   : > { %p11315_p5 = por %p11314_p3, %p11313_p10 }
  0x51   : > { %p11316_p7 = pnand %p11315_p5, %p11309_p1 }
  0x53   : > { %11319 = shalt.err (!%p11316_p7)
}
  0x54   : > { %s11320_s23 = scalar_lea.vmem %s11579_s28, 7296  ;;  %s11413_s11 = smov [#allocation2]  }
  0x55   : > { %p11321_p12 = scmp.ne.s32.totalorder %s11579_s28, %s11320_s23  ;;  %s11325_s25 = sshll.u32 %s11413_s11, 4  ;;  %s11326_s25 = int_to_ptr.vmem [resolvable:$false] %s11325_s25 }
  0x56   : > { %s11327_s17 = scalar_lea.vmem %s11326_s25, 14592  ;;  %p11328_p4 = scmp.lt.s32.totalorder %s11579_s28, %s11326_s25 }
  0x57   : > { %p11323_p2 = pnand %p11321_p12, %p11307_p0  ;;  %p11329_p13 = scmp.lt.s32.totalorder %s11327_s17, %s11320_s23 }
  0x59   : > { %p11324_p9 = pneg %p11323_p2  ;;  %p11330_p6 = por %p11329_p13, %p11328_p4 }
  0x5b   : > { %p11331_p10 = pnand %p11330_p6, %p11324_p9 }
  0x5d   : > { %11334 = shalt.err (!%p11331_p10)
}
  0x5e   : > { %s11414_s21 = smov 384   ;;  %s11415_s27 = smov 24  }
  0x5f   : > { %9921 = dma.hbm_to_vmem [thread:$0]  (!%p11575_p11), %s11573_s24, 7296, %s11579_s28, %s11581_s22, %s11414_s21, %s11414_s21, %s11415_s27  }
  0x60   : > { %182 = sbr.rel (%p11480_p8) target bundleno = 1373 (0x55d), region = 32 }
  0x67   : > { %s11612_s29 = sand.u32 1, %s11397_s13   ;;  %p14824_p4 = scmp.ne.s32.totalorder %s14817_s18, 0 }
  0x68   : > { %s9897_s30 = smul.u32 456, %s11612_s29  ;;  %s185_s4 = scalar_lea.sflag [#allocation3], %s11612_s29 }
  0x6a   : > { %s11618_s5 = scalar_lea.vmem [#allocation2], %s9897_s30 }
  0x6b   : > { %11380 = dma.done.wait (%p14824_p4), %s185_s4, 7296  }
  0x6c   : > { %11382 = vsyncadd (%p14824_p4), %s185_s4, 4294960000  ;;  %p14825_p9 = scmp.eq.s32.totalorder %s11461_s16, 0 }
  0x6e   : > { %11384 = dma.done.wait (%p14825_p9), [#allocation6], 73728   ;;  %p14826_p8 = pmov %p14825_p9 }
  0x6f   : > { %v9977_v0 = vld [vmem:[#allocation5 + $0x4] ss:$48 sps:$4 sm:$0xff]   ;;  %v9979_v1 = vld [vmem:[#allocation5 + $0xc] ss:$48 sps:$4 sm:$0xff]   ;;  %v9981_v2 = vld [vmem:[#allocation5] ss:$48 sps:$4 sm:$0xff]  }
  0x70   : > { %11386 = vsyncadd (%p14826_p8), [#allocation6], 4294893568  ;;  %2037 = vmatprep.subr.bf16.mxu0 %v9977_v0  ;;  %v9982_v3 = vld [vmem:[#allocation5 + $0x8] ss:$48 sps:$4 sm:$0xff]   ;;  %2299 = vmatprep.subr.bf16.mxu1 %v9979_v1  ;;  %v9983_v4 = vld [vmem:[#allocation5 + $0x64] ss:$48 sps:$4 sm:$0xff]  }
  0x71   : > { %2038 = vmatpush1.bf16.msra.mxu0 %v9981_v2  ;;  %2300 = vmatpush1.bf16.msra.mxu1 %v9982_v3  ;;  %v9985_v5 = vld [vmem:[#allocation5 + $0x6c] ss:$48 sps:$4 sm:$0xff]   ;;  %v9987_v6 = vld [vmem:[#allocation5 + $0x60] ss:$48 sps:$4 sm:$0xff]   ;;  %v9988_v7 = vld [vmem:[#allocation5 + $0x68] ss:$48 sps:$4 sm:$0xff]  }
  0x72   : > { %2039 = vmatprep.subr.bf16.mxu0 %v9983_v4  ;;  %2301 = vmatprep.subr.bf16.mxu1 %v9985_v5  ;;  %v9989_v8 = vld [vmem:[#allocation5 + $0xc4] ss:$48 sps:$4 sm:$0xff]   ;;  %v9991_v9 = vld [vmem:[#allocation5 + $0xcc] ss:$48 sps:$4 sm:$0xff]   ;;  %v9993_v10 = vld [vmem:[#allocation5 + $0xc0] ss:$48 sps:$4 sm:$0xff]  }
  0x73   : > { %v9994_v11 = vld [vmem:[#allocation5 + $0xc8] ss:$48 sps:$4 sm:$0xff]   ;;  %v9995_v12 = vld [vmem:[#allocation5 + $0x124] ss:$48 sps:$4 sm:$0xff]   ;;  %v9997_v13 = vld [vmem:[#allocation5 + $0x12c] ss:$48 sps:$4 sm:$0xff]  }
  0x74   : > { %v9999_v14 = vld [vmem:[#allocation5 + $0x120] ss:$48 sps:$4 sm:$0xff]   ;;  %v10000_v15 = vld [vmem:[#allocation5 + $0x128] ss:$48 sps:$4 sm:$0xff]   ;;  %v10001_v16 = vld [vmem:[#allocation5 + $0x184] ss:$48 sps:$4 sm:$0xff]  }
  0x75   : > { %2040 = vmatpush1.bf16.msra.mxu0 %v9987_v6  ;;  %2302 = vmatpush1.bf16.msra.mxu1 %v9988_v7  ;;  %v10003_v17 = vld [vmem:[#allocation5 + $0x18c] ss:$48 sps:$4 sm:$0xff]   ;;  %v10005_v18 = vld [vmem:[#allocation5 + $0x180] ss:$48 sps:$4 sm:$0xff]   ;;  %v10006_v19 = vld [vmem:[#allocation5 + $0x188] ss:$48 sps:$4 sm:$0xff]  }
  0x76   : > { %2041 = vmatprep.subr.bf16.mxu0 %v9989_v8  ;;  %2303 = vmatprep.subr.bf16.mxu1 %v9991_v9  ;;  %v10007_v20 = vld [vmem:[#allocation5 + $0x1e4] ss:$48 sps:$4 sm:$0xff]   ;;  %v10009_v21 = vld [vmem:[#allocation5 + $0x1ec] ss:$48 sps:$4 sm:$0xff]   ;;  %v10011_v22 = vld [vmem:[#allocation5 + $0x1e0] ss:$48 sps:$4 sm:$0xff]  }
  0x77   : > { %v10012_v23 = vld [vmem:[#allocation5 + $0x1e8] ss:$48 sps:$4 sm:$0xff]   ;;  %v10013_v24 = vld [vmem:[#allocation5 + $0x244] ss:$48 sps:$4 sm:$0xff]   ;;  %v10015_v25 = vld [vmem:[#allocation5 + $0x24c] ss:$48 sps:$4 sm:$0xff]  }
  0x78   : > { %v10017_v26 = vld [vmem:[#allocation5 + $0x240] ss:$48 sps:$4 sm:$0xff]   ;;  %v10018_v27 = vld [vmem:[#allocation5 + $0x248] ss:$48 sps:$4 sm:$0xff]   ;;  %v10019_v28 = vld [vmem:[#allocation5 + $0x2a4] ss:$48 sps:$4 sm:$0xff]  }
  0x79   : > { %2042 = vmatpush1.bf16.msra.mxu0 %v9993_v10  ;;  %2304 = vmatpush1.bf16.msra.mxu1 %v9994_v11  ;;  %v10021_v29 = vld [vmem:[#allocation5 + $0x2ac] ss:$48 sps:$4 sm:$0xff]   ;;  %v10023_v30 = vld [vmem:[#allocation5 + $0x2a0] ss:$48 sps:$4 sm:$0xff]   ;;  %v10024_v31 = vld [vmem:[#allocation5 + $0x2a8] ss:$48 sps:$4 sm:$0xff]  }
  0x7a   : > { %2043 = vmatprep.subr.bf16.mxu0 %v9995_v12  ;;  %2305 = vmatprep.subr.bf16.mxu1 %v9997_v13  ;;  %v10025_v32 = vld [vmem:[#allocation5 + $0x304] ss:$48 sps:$4 sm:$0xff]   ;;  %v10027_v33 = vld [vmem:[#allocation5 + $0x30c] ss:$48 sps:$4 sm:$0xff]   ;;  %v10029_v34 = vld [vmem:[#allocation5 + $0x300] ss:$48 sps:$4 sm:$0xff]  }
  0x7b   : > { %v10030_v35 = vld [vmem:[#allocation5 + $0x308] ss:$48 sps:$4 sm:$0xff]   ;;  %v10031_v36 = vld [vmem:[#allocation5 + $0x364] ss:$48 sps:$4 sm:$0xff]   ;;  %v10033_v37 = vld [vmem:[#allocation5 + $0x36c] ss:$48 sps:$4 sm:$0xff]  }
  0x7c   : > { %v10035_v38 = vld [vmem:[#allocation5 + $0x360] ss:$48 sps:$4 sm:$0xff]   ;;  %v10036_v39 = vld [vmem:[#allocation5 + $0x368] ss:$48 sps:$4 sm:$0xff]   ;;  %v10037_v40 = vld [vmem:[#allocation5 + $0x3c4] ss:$48 sps:$4 sm:$0xff]  }
  0x7d   : > { %2044 = vmatpush1.bf16.msra.mxu0 %v9999_v14  ;;  %2306 = vmatpush1.bf16.msra.mxu1 %v10000_v15  ;;  %v10039_v41 = vld [vmem:[#allocation5 + $0x3cc] ss:$48 sps:$4 sm:$0xff]   ;;  %v10041_v42 = vld [vmem:[#allocation5 + $0x3c0] ss:$48 sps:$4 sm:$0xff]   ;;  %v10042_v43 = vld [vmem:[#allocation5 + $0x3c8] ss:$48 sps:$4 sm:$0xff]  }
  0x7e   : > { %2045 = vmatprep.subr.bf16.mxu0 %v10001_v16  ;;  %2307 = vmatprep.subr.bf16.mxu1 %v10003_v17  ;;  %v10043_v44 = vld [vmem:[#allocation5 + $0x424] ss:$48 sps:$4 sm:$0xff]   ;;  %v10045_v45 = vld [vmem:[#allocation5 + $0x42c] ss:$48 sps:$4 sm:$0xff]   ;;  %v10047_v47 = vld [vmem:[#allocation5 + $0x420] ss:$48 sps:$4 sm:$0xff]  }
  0x7f   : > { %v223_v46 = vld [vmem:[%s11618_s5 + $0x8] sm:$0xff]  ;;  %v226_v49 = vld [vmem:[%s11618_s5 + $0x20] sm:$0xff]  ;;  %v225_v4 = vld [vmem:[%s11618_s5 + $0x18] sm:$0xff]  ;;  %s14579_s18 = scalar_lea.vmem [#allocation8], %s9897_s30  ;;  %s9932_s20 = smul.u32 7296, %s11461_s16 }
  0x80   : > { %v10048_v48 = vld [vmem:[#allocation5 + $0x428] ss:$48 sps:$4 sm:$0xff]   ;;  %v10049_v50 = vld [vmem:[#allocation5 + $0x484] ss:$48 sps:$4 sm:$0xff]   ;;  %v11630_v51 = vpack.c.bf16 %v226_v49, %v223_v46  ;;  %v10051_v52 = vld [vmem:[#allocation5 + $0x48c] ss:$48 sps:$4 sm:$0xff]  }
  0x81   : > { %2046 = vmatpush1.bf16.msra.mxu0 %v10005_v18  ;;  %2308 = vmatpush1.bf16.msra.mxu1 %v10006_v19  ;;  %v10053_v53 = vld [vmem:[#allocation5 + $0x480] ss:$48 sps:$4 sm:$0xff]   ;;  %v10054_v54 = vld [vmem:[#allocation5 + $0x488] ss:$48 sps:$4 sm:$0xff]   ;;  %v10055_v55 = vld [vmem:[#allocation5 + $0x4e4] ss:$48 sps:$4 sm:$0xff]   ;;  %s14660_s16 = scalar_lea.hbm %s14711_s3, %s9932_s20 }
  0x82   : > { %2047 = vmatprep.subr.bf16.mxu0 %v10007_v20  ;;  %2309 = vmatprep.subr.bf16.mxu1 %v10009_v21  ;;  %v10057_v56 = vld [vmem:[#allocation5 + $0x4ec] ss:$48 sps:$4 sm:$0xff]   ;;  %v10059_v57 = vld [vmem:[#allocation5 + $0x4e0] ss:$48 sps:$4 sm:$0xff]   ;;  %v10060_v58 = vld [vmem:[#allocation5 + $0x4e8] ss:$48 sps:$4 sm:$0xff]  }
  0x83   : > { %2069 = vmatprep.mubr.bf16.mxu0 %v11630_v51  ;;  %2331 = vmatprep.mubr.bf16.mxu1 %v11630_v51  ;;  %v10061_v59 = vld [vmem:[#allocation5 + $0x544] ss:$48 sps:$4 sm:$0xff]   ;;  %v10063_v60 = vld [vmem:[#allocation5 + $0x54c] ss:$48 sps:$4 sm:$0xff]   ;;  %v10065_v61 = vld [vmem:[#allocation5 + $0x540] ss:$48 sps:$4 sm:$0xff]  }
  0x84   : > { %v10066_v62 = vld [vmem:[#allocation5 + $0x548] ss:$48 sps:$4 sm:$0xff]   ;;  %v10067_v63 = vld [vmem:[#allocation5 + $0x5a4] ss:$48 sps:$4 sm:$0xff]   ;;  %v10069_v0 = vld [vmem:[#allocation5 + $0x5ac] ss:$48 sps:$4 sm:$0xff]  }
  0x85   : > { %2048 = vmatpush1.bf16.msra.mxu0 %v10011_v22  ;;  %2310 = vmatpush1.bf16.msra.mxu1 %v10012_v23  ;;  %v10071_v1 = vld [vmem:[#allocation5 + $0x5a0] ss:$48 sps:$4 sm:$0xff]   ;;  %v10072_v2 = vld [vmem:[#allocation5 + $0x5a8] ss:$48 sps:$4 sm:$0xff]   ;;  %v10075_v5 = vld [vmem:[#allocation5 + $0x60c] ss:$48 sps:$4 sm:$0xff]  }
  0x86   : > { %2049 = vmatprep.subr.bf16.mxu0 %v10013_v24  ;;  %2311 = vmatprep.subr.bf16.mxu1 %v10015_v25  ;;  %v222_v3 = vld [vmem:[%s11618_s5] sm:$0xff]  ;;  %v229_v7 = vld [vmem:[%s11618_s5 + $0x38] sm:$0xff]  ;;  %v232_v8 = vld [vmem:[%s11618_s5 + $0x50] sm:$0xff]  ;;  %s8319_s24 = sshll.u32 %s14579_s18, 4  ;;  %s8305_s22 = scalar_lea.sflag [#allocation4], %s11612_s29  ;;  %s14663_s24 = int_to_ptr.vmem [resolvable:$true] %s8319_s24 }
  0x87   : > { %v10078_v6 = vld [vmem:[#allocation5 + $0x604] ss:$48 sps:$4 sm:$0xff]   ;;  %v11638_v9 = vpack.c.bf16 %v225_v4, %v222_v3  ;;  %v10073_v10 = vld [vmem:[#allocation5 + $0x608] ss:$48 sps:$4 sm:$0xff]   ;;  %v10076_v11 = vld [vmem:[#allocation5 + $0x600] ss:$48 sps:$4 sm:$0xff]   ;;  %v11640_v12 = vpack.c.bf16 %v232_v8, %v229_v7 }
  0x88   : > { %v228_v13 = vld [vmem:[%s11618_s5 + $0x30] sm:$0xff]  ;;  %v231_v14 = vld [vmem:[%s11618_s5 + $0x48] sm:$0xff]  ;;  %v238_v20 = vld [vmem:[%s11618_s5 + $0x80] sm:$0xff]  ;;  %s11335_s7 = scalar_lea.vmem %s14663_s24, 7296  ;;  %p15314_p0 = scmp.ne.s32.totalorder %s14822_s10, 0 }
  0x89   : > { %2050 = vmatpush1.bf16.msra.mxu0 %v10017_v26  ;;  %2312 = vmatpush1.bf16.msra.mxu1 %v10018_v27  ;;  %v10081_v15 = vld [vmem:[#allocation5 + $0x66c] ss:$48 sps:$4 sm:$0xff]   ;;  %v10084_v16 = vld [vmem:[#allocation5 + $0x664] ss:$48 sps:$4 sm:$0xff]   ;;  %v10079_v17 = vld [vmem:[#allocation5 + $0x668] ss:$48 sps:$4 sm:$0xff]   ;;  %v11650_v23 = vpack.c.bf16 %v231_v14, %v228_v13  ;;  %p11336_p11 = scmp.ne.s32.totalorder %s14663_s24, %s11335_s7 }
  0x8a   : > { %2051 = vmatprep.subr.bf16.mxu0 %v10019_v28  ;;  %2313 = vmatprep.subr.bf16.mxu1 %v10021_v29  ;;  %v10082_v18 = vld [vmem:[#allocation5 + $0x660] ss:$48 sps:$4 sm:$0xff]   ;;  %v10087_v21 = vld [vmem:[#allocation5 + $0x6cc] ss:$48 sps:$4 sm:$0xff]   ;;  %v10090_v22 = vld [vmem:[#allocation5 + $0x6c4] ss:$48 sps:$4 sm:$0xff]  }
  0x8b   : > { %v235_v19 = vld [vmem:[%s11618_s5 + $0x68] sm:$0xff]  ;;  %v234_v27 = vld [vmem:[%s11618_s5 + $0x60] sm:$0xff]  ;;  %v252_v4 = vld [vmem:[%s11618_s5 + $0xf0] sm:$0xff]  ;;  %p11337_p1 = pnand %p11336_p11, %p15314_p0  ;;  %s11417_s8 = smov [#allocation8]  }
  0x8c   : > { %v11652_v24 = vpack.c.bf16 %v238_v20, %v235_v19  ;;  %v10085_v25 = vld [vmem:[#allocation5 + $0x6c8] ss:$48 sps:$4 sm:$0xff]   ;;  %v10088_v26 = vld [vmem:[#allocation5 + $0x6c0] ss:$48 sps:$4 sm:$0xff]   ;;  %v10093_v28 = vld [vmem:[#allocation5 + $0x72c] ss:$48 sps:$4 sm:$0xff]  }
  0x8d   : > { %2052 = vmatpush1.bf16.msra.mxu0 %v10023_v30  ;;  %2314 = vmatpush1.bf16.msra.mxu1 %v10024_v31  ;;  %v10096_v29 = vld [vmem:[#allocation5 + $0x724] ss:$48 sps:$4 sm:$0xff]   ;;  %v10111_v49 = vld [vmem:[#allocation5 + $0x84c] ss:$48 sps:$4 sm:$0xff]   ;;  %p11338_p3 = pneg %p11337_p1  ;;  %s11339_s23 = sshll.u32 %s11417_s8, 4  ;;  %s11340_s23 = int_to_ptr.vmem [resolvable:$false] %s11339_s23 }
  0x8e   : > { %2053 = vmatprep.subr.bf16.mxu0 %v10025_v32  ;;  %2315 = vmatprep.subr.bf16.mxu1 %v10027_v33  ;;  %v237_v30 = vld [vmem:[%s11618_s5 + $0x78] sm:$0xff]  ;;  %v244_v32 = vld [vmem:[%s11618_s5 + $0xb0] sm:$0xff]  ;;  %v250_v46 = vld [vmem:[%s11618_s5 + $0xe0] sm:$0xff]  ;;  %s11341_s11 = scalar_lea.vmem %s11340_s23, 14592  ;;  %p11342_p5 = scmp.lt.s32.totalorder %s14663_s24, %s11340_s23 }
  0x8f   : > { %v241_v31 = vld [vmem:[%s11618_s5 + $0x98] sm:$0xff]  ;;  %v262_v7 = vld [vmem:[%s11618_s5 + $0x140] sm:$0xff]  ;;  %v267_v19 = vld [vmem:[%s11618_s5 + $0x168] sm:$0xff]  ;;  %p11343_p7 = scmp.lt.s32.totalorder %s11341_s11, %s11335_s7 }
  0x90   : > { %v10091_v33 = vld [vmem:[#allocation5 + $0x728] ss:$48 sps:$4 sm:$0xff]  }
  0x91   : > { %2054 = vmatpush1.bf16.msra.mxu0 %v10029_v34  ;;  %2316 = vmatpush1.bf16.msra.mxu1 %v10030_v35  ;;  %v10094_v34 = vld [vmem:[#allocation5 + $0x720] ss:$48 sps:$4 sm:$0xff]   ;;  %v10099_v35 = vld [vmem:[#allocation5 + $0x78c] ss:$48 sps:$4 sm:$0xff]   ;;  %p11344_p12 = por %p11343_p7, %p11342_p5 }
  0x92   : > { %2055 = vmatprep.subr.bf16.mxu0 %v10031_v36  ;;  %2317 = vmatprep.subr.bf16.mxu1 %v10033_v37  ;;  %v10102_v36 = vld [vmem:[#allocation5 + $0x784] ss:$48 sps:$4 sm:$0xff]   ;;  %v11662_v37 = vpack.c.bf16 %v237_v30, %v234_v27 }
  0x93   : > { %v261_v13 = vld [vmem:[%s11618_s5 + $0x138] sm:$0xff]  ;;  %v271_v20 = vld [vmem:[%s11618_s5 + $0x188] sm:$0xff]  ;;  %p11345_p2 = pnand %p11344_p12, %p11338_p3 }
  0x94   : > { %v265_v14 = vld [vmem:[%s11618_s5 + $0x158] sm:$0xff] }
  0x95   : > { %2056 = vmatpush1.bf16.msra.mxu0 %v10035_v38  ;;  %2318 = vmatpush1.bf16.msra.mxu1 %v10036_v39  ;;  %v11664_v38 = vpack.c.bf16 %v244_v32, %v241_v31  ;;  %v10097_v39 = vld [vmem:[#allocation5 + $0x788] ss:$48 sps:$4 sm:$0xff]  }
  0x96   : > { %2057 = vmatprep.subr.bf16.mxu0 %v10037_v40  ;;  %2319 = vmatprep.subr.bf16.mxu1 %v10039_v41  ;;  %v10100_v40 = vld [vmem:[#allocation5 + $0x780] ss:$48 sps:$4 sm:$0xff]   ;;  %v10105_v41 = vld [vmem:[#allocation5 + $0x7ec] ss:$48 sps:$4 sm:$0xff]  }
  0x97   : > { %v273_v27 = vld [vmem:[%s11618_s5 + $0x198] sm:$0xff]  ;;  %v276_v31 = vld [vmem:[%s11618_s5 + $0x1b0] sm:$0xff] }
  0x98   : > { %v11742_v32 = vpack.c.bf16 %v276_v31, %v276_v31  ;;  %v10163_v31 = vld [vmem:[#allocation5 + $0x2b8] ss:$48 sps:$4 sm:$0xff]  }
  0x99   : > { %2058 = vmatpush1.bf16.msra.mxu0 %v10041_v42  ;;  %2320 = vmatpush1.bf16.msra.mxu1 %v10042_v43  ;;  %v240_v42 = vld [vmem:[%s11618_s5 + $0x90] sm:$0xff]  ;;  %v243_v43 = vld [vmem:[%s11618_s5 + $0xa8] sm:$0xff] }
  0x9a   : > { %2059 = vmatprep.subr.bf16.mxu0 %v10043_v44  ;;  %2321 = vmatprep.subr.bf16.mxu1 %v10045_v45  ;;  %v10108_v44 = vld [vmem:[#allocation5 + $0x7e4] ss:$48 sps:$4 sm:$0xff]   ;;  %14831 = vst [vmem:[#allocation16_spill] sm:$0xff] %v11742_v32 }
  0x9b   : > { %v247_v45 = vld [vmem:[%s11618_s5 + $0xc8] sm:$0xff] }
  0x9d   : > { %2060 = vmatpush1.bf16.msra.mxu0 %v10047_v47  ;;  %2322 = vmatpush1.bf16.msra.mxu1 %v10048_v48  ;;  %v10103_v47 = vld [vmem:[#allocation5 + $0x7e8] ss:$48 sps:$4 sm:$0xff]   ;;  %v10106_v48 = vld [vmem:[#allocation5 + $0x7e0] ss:$48 sps:$4 sm:$0xff]  }
  0x9e   : > { %2061 = vmatprep.subr.bf16.mxu0 %v10049_v50  ;;  %2323 = vmatprep.subr.bf16.mxu1 %v10051_v52  ;;  %v10114_v50 = vld [vmem:[#allocation5 + $0x844] ss:$48 sps:$4 sm:$0xff]   ;;  %v11674_v52 = vpack.c.bf16 %v243_v43, %v240_v42  ;;  %v10127_v43 = vld [vmem:[#allocation5 + $0x78] ss:$48 sps:$4 sm:$0xff]  }
  0x9f   : > { %v10132_v42 = vld [vmem:[#allocation5 + $0x74] ss:$48 sps:$4 sm:$0xff]  }
  0xa1   : > { %2062 = vmatpush1.bf16.msra.mxu0 %v10053_v53  ;;  %2324 = vmatpush1.bf16.msra.mxu1 %v10054_v54  ;;  %v11676_v53 = vpack.c.bf16 %v250_v46, %v247_v45  ;;  %v10109_v54 = vld [vmem:[#allocation5 + $0x848] ss:$48 sps:$4 sm:$0xff]   ;;  %v10130_v46 = vld [vmem:[#allocation5 + $0x70] ss:$48 sps:$4 sm:$0xff]  }
  0xa2   : > { %2063 = vmatprep.subr.bf16.mxu0 %v10055_v55  ;;  %2325 = vmatprep.subr.bf16.mxu1 %v10057_v56  ;;  %v10112_v55 = vld [vmem:[#allocation5 + $0x840] ss:$48 sps:$4 sm:$0xff]  }
  0xa3   : > { %v246_v56 = vld [vmem:[%s11618_s5 + $0xc0] sm:$0xff]  ;;  %v233_v45 = vld [vmem:[%s11618_s5 + $0x58] sm:$0xff] }
  0xa5   : > { %2064 = vmatpush1.bf16.msra.mxu0 %v10059_v57  ;;  %2326 = vmatpush1.bf16.msra.mxu1 %v10060_v58  ;;  %v249_v57 = vld [vmem:[%s11618_s5 + $0xd8] sm:$0xff] }
  0xa6   : > { %2065 = vmatprep.subr.bf16.mxu0 %v10061_v59  ;;  %2327 = vmatprep.subr.bf16.mxu1 %v10063_v60  ;;  %v10117_v58 = vld [vmem:[#allocation5 + $0x8ac] ss:$48 sps:$4 sm:$0xff]   ;;  %v10120_v59 = vld [vmem:[#allocation5 + $0x8a4] ss:$48 sps:$4 sm:$0xff]  }
  0xa7   : > { %v253_v60 = vld [vmem:[%s11618_s5 + $0xf8] sm:$0xff] }
  0xa9   : > { %2066 = vmatpush1.bf16.msra.mxu0 %v10065_v61  ;;  %2328 = vmatpush1.bf16.msra.mxu1 %v10066_v62  ;;  %v256_v61 = vld [vmem:[%s11618_s5 + $0x110] sm:$0xff] }
  0xaa   : > { %2067 = vmatprep.subr.bf16.mxu0 %v10067_v63  ;;  %2329 = vmatprep.subr.bf16.mxu1 %v10069_v0  ;;  %v10115_v62 = vld [vmem:[#allocation5 + $0x8a8] ss:$48 sps:$4 sm:$0xff]   ;;  %v10118_v63 = vld [vmem:[#allocation5 + $0x8a0] ss:$48 sps:$4 sm:$0xff]   ;;  %v10123_v0 = vld [vmem:[#allocation5 + $0x1c] ss:$48 sps:$4 sm:$0xff]   ;;  %v11688_v3 = vpack.c.bf16 %v256_v61, %v253_v60 }
  0xab   : > { %v10142_v60 = vld [vmem:[#allocation5 + $0x130] ss:$48 sps:$4 sm:$0xff]   ;;  %v10147_v61 = vld [vmem:[#allocation5 + $0x19c] ss:$48 sps:$4 sm:$0xff]  }
  0xad   : > { %2068 = vmatpush1.bf16.msra.mxu0 %v10071_v1  ;;  %2330 = vmatpush1.bf16.msra.mxu1 %v10072_v2  ;;  %v10126_v1 = vld [vmem:[#allocation5 + $0x14] ss:$48 sps:$4 sm:$0xff]   ;;  %v11686_v2 = vpack.c.bf16 %v249_v57, %v246_v56  ;;  %v10139_v57 = vld [vmem:[#allocation5 + $0x138] ss:$48 sps:$4 sm:$0xff]  }
  0xae   : > { %2430 = vmatprep.subr.bf16.mxu1 %v10075_v5  ;;  %2168 = vmatprep.subr.bf16.mxu0 %v10078_v6  ;;  %v255_v5 = vld [vmem:[%s11618_s5 + $0x108] sm:$0xff] }
  0xaf   : > { %v259_v6 = vld [vmem:[%s11618_s5 + $0x128] sm:$0xff]  ;;  %v11698_v8 = vpack.c.bf16 %v255_v5, %v252_v4 }
  0xb0   : > { %2070 = vmatmul.mubr.bf16.vlgmr.msra.gmra.mrb[0].mxu0 %v11638_v9  ;;  %2332 = vmatmul.mubr.bf16.vlgmr.msra.gmra.mrb[0].mxu1 %v11638_v9  ;;  %v10144_v56 = vld [vmem:[#allocation5 + $0x134] ss:$48 sps:$4 sm:$0xff]   ;;  %v10153_v4 = vld [vmem:[#allocation5 + $0x1fc] ss:$48 sps:$4 sm:$0xff]  }
  0xb1   : > { %2431 = vmatpush1.bf16.msra.mxu1 %v10073_v10  ;;  %2169 = vmatpush1.bf16.msra.mxu0 %v10076_v11  ;;  %v11700_v10 = vpack.c.bf16 %v262_v7, %v259_v6  ;;  %v258_v11 = vld [vmem:[%s11618_s5 + $0x120] sm:$0xff]  ;;  %v245_v7 = vld [vmem:[%s11618_s5 + $0xb8] sm:$0xff] }
  0xb2   : > { %2079 = vmatprep.mubr.bf16.mxu0 %v11640_v12  ;;  %2341 = vmatprep.mubr.bf16.mxu1 %v11640_v12  ;;  %v10156_v5 = vld [vmem:[#allocation5 + $0x1f4] ss:$48 sps:$4 sm:$0xff]  }
  0xb3   : > { %2432 = vmatprep.subr.bf16.mxu1 %v10081_v15  ;;  %2170 = vmatprep.subr.bf16.mxu0 %v10084_v16  ;;  %v268_v15 = vld [vmem:[%s11618_s5 + $0x170] sm:$0xff]  ;;  %v11710_v16 = vpack.c.bf16 %v261_v13, %v258_v11  ;;  %v242_v6 = vld [vmem:[%s11618_s5 + $0xa0] sm:$0xff] }
  0xb4   : > { %v10151_v11 = vld [vmem:[#allocation5 + $0x1f8] ss:$48 sps:$4 sm:$0xff]   ;;  %v10154_v13 = vld [vmem:[#allocation5 + $0x1f0] ss:$48 sps:$4 sm:$0xff]  }
  0xb5   : > { %2433 = vmatpush1.bf16.msra.mxu1 %v10079_v17  ;;  %2171 = vmatpush1.bf16.msra.mxu0 %v10082_v18  ;;  %v11712_v17 = vpack.c.bf16 %v268_v15, %v265_v14  ;;  %v264_v18 = vld [vmem:[%s11618_s5 + $0x150] sm:$0xff] }
  0xb6   : > { %2434 = vmatprep.subr.bf16.mxu1 %v10087_v21  ;;  %2172 = vmatprep.subr.bf16.mxu0 %v10090_v22  ;;  %v274_v21 = vld [vmem:[%s11618_s5 + $0x1a0] sm:$0xff]  ;;  %v11722_v22 = vpack.c.bf16 %v267_v19, %v264_v18  ;;  %v11774_v18 = vpack.c.bf16 %v245_v7, %v242_v6 }
  0xb7   : > { %v10159_v14 = vld [vmem:[#allocation5 + $0x25c] ss:$48 sps:$4 sm:$0xff]   ;;  %v10162_v15 = vld [vmem:[#allocation5 + $0x254] ss:$48 sps:$4 sm:$0xff]   ;;  %v10157_v19 = vld [vmem:[#allocation5 + $0x258] ss:$48 sps:$4 sm:$0xff]  }
  0xb8   : > { %2080 = vmatmul.mubr.bf16.gmra.mrb[4].mxu0 %v11650_v23  ;;  %2342 = vmatmul.mubr.bf16.gmra.mrb[4].mxu1 %v11650_v23  ;;  %14827 = vst [vmem:[#allocation12_spill] sm:$0xff] %v11722_v22  ;;  %14835 = vst [vmem:[#allocation20_spill] sm:$0xff] %v11774_v18  ;;  %v10193_v6 = vld [vmem:[#allocation5 + $0x498] ss:$48 sps:$4 sm:$0xff]   ;;  %v10196_v7 = vld [vmem:[#allocation5 + $0x490] ss:$48 sps:$4 sm:$0xff]  }
  0xb9   : > { %2089 = vmatprep.mubr.bf16.mxu0 %v11652_v24  ;;  %2351 = vmatprep.mubr.bf16.mxu1 %v11652_v24 }
  0xba   : > { %2435 = vmatpush1.bf16.msra.mxu1 %v10085_v25  ;;  %2173 = vmatpush1.bf16.msra.mxu0 %v10088_v26  ;;  %v11724_v25 = vpack.c.bf16 %v274_v21, %v271_v20  ;;  %v270_v26 = vld [vmem:[%s11618_s5 + $0x180] sm:$0xff] }
  0xbb   : > { %2436 = vmatprep.subr.bf16.mxu1 %v10093_v28  ;;  %2174 = vmatprep.subr.bf16.mxu0 %v10096_v29  ;;  %v277_v28 = vld [vmem:[%s11618_s5 + $0x1b8] sm:$0xff]  ;;  %v11733_v29 = vpack.c.bf16 %v273_v27, %v270_v26  ;;  %v248_v27 = vld [vmem:[%s11618_s5 + $0xd0] sm:$0xff] }
  0xbc   : > { %14828 = vst [vmem:[#allocation13_spill] sm:$0xff] %v11724_v25  ;;  %v11735_v30 = vpack.c.bf16 %v277_v28, %v277_v28  ;;  %v10160_v20 = vld [vmem:[#allocation5 + $0x250] ss:$48 sps:$4 sm:$0xff]   ;;  %v10165_v21 = vld [vmem:[#allocation5 + $0x2bc] ss:$48 sps:$4 sm:$0xff]  }
  0xbd   : > { %14829 = vst [vmem:[#allocation14_spill] sm:$0xff] %v11733_v29  ;;  %v10168_v26 = vld [vmem:[#allocation5 + $0x2b4] ss:$48 sps:$4 sm:$0xff]  }
  0xbe   : > { %2437 = vmatpush1.bf16.msra.mxu1 %v10091_v33  ;;  %2175 = vmatpush1.bf16.msra.mxu0 %v10094_v34  ;;  %14830 = vst [vmem:[#allocation15_spill] sm:$0xff] %v11735_v30  ;;  %v224_v33 = vld [vmem:[%s11618_s5 + $0x10] sm:$0xff]  ;;  %v14715_v34 = vmov 0   ;;  %v251_v28 = vld [vmem:[%s11618_s5 + $0xe8] sm:$0xff] }
  0xbf   : > { %2438 = vmatprep.subr.bf16.mxu1 %v10099_v35  ;;  %2176 = vmatprep.subr.bf16.mxu0 %v10102_v36  ;;  %v227_v35 = vld [vmem:[%s11618_s5 + $0x28] sm:$0xff] }
  0xc0   : > { %2090 = vmatmul.mubr.bf16.gmra.mrb[8].mxu0 %v11662_v37  ;;  %2352 = vmatmul.mubr.bf16.gmra.mrb[8].mxu1 %v11662_v37  ;;  %v10121_v36 = vld [vmem:[#allocation5 + $0x18] ss:$48 sps:$4 sm:$0xff]  }
  0xc1   : > { %2099 = vmatprep.mubr.bf16.mxu0 %v11664_v38  ;;  %2361 = vmatprep.mubr.bf16.mxu1 %v11664_v38 }
  0xc2   : > { %2439 = vmatpush1.bf16.msra.mxu1 %v10097_v39  ;;  %2177 = vmatpush1.bf16.msra.mxu0 %v10100_v40  ;;  %v10124_v39 = vld [vmem:[#allocation5 + $0x10] ss:$48 sps:$4 sm:$0xff]   ;;  %v11750_v40 = vpack.c.bf16 %v227_v35, %v224_v33  ;;  %v10171_v35 = vld [vmem:[#allocation5 + $0x31c] ss:$48 sps:$4 sm:$0xff]  }
  0xc3   : > { %2440 = vmatprep.subr.bf16.mxu1 %v10105_v41  ;;  %2178 = vmatprep.subr.bf16.mxu0 %v10108_v44  ;;  %v10129_v41 = vld [vmem:[#allocation5 + $0x7c] ss:$48 sps:$4 sm:$0xff]   ;;  %v10166_v33 = vld [vmem:[#allocation5 + $0x2b0] ss:$48 sps:$4 sm:$0xff]  }
  0xc4   : > { %14832 = vst [vmem:[#allocation17_spill] sm:$0xff] %v11750_v40  ;;  %v230_v44 = vld [vmem:[%s11618_s5 + $0x40] sm:$0xff] }
  0xc6   : > { %2441 = vmatpush1.bf16.msra.mxu1 %v10103_v47  ;;  %2179 = vmatpush1.bf16.msra.mxu0 %v10106_v48  ;;  %v10135_v47 = vld [vmem:[#allocation5 + $0xdc] ss:$48 sps:$4 sm:$0xff]   ;;  %v10138_v48 = vld [vmem:[#allocation5 + $0xd4] ss:$48 sps:$4 sm:$0xff]  }
  0xc7   : > { %2442 = vmatprep.subr.bf16.mxu1 %v10111_v49  ;;  %2180 = vmatprep.subr.bf16.mxu0 %v10114_v50  ;;  %v10133_v49 = vld [vmem:[#allocation5 + $0xd8] ss:$48 sps:$4 sm:$0xff]   ;;  %v11758_v50 = vpack.c.bf16 %v233_v45, %v230_v44  ;;  %v10180_v44 = vld [vmem:[#allocation5 + $0x374] ss:$48 sps:$4 sm:$0xff]  }
  0xc8   : > { %2100 = vmatmul.mubr.bf16.gmra.mrb[12].mxu0 %v11674_v52  ;;  %2362 = vmatmul.mubr.bf16.gmra.mrb[12].mxu1 %v11674_v52  ;;  %v254_v45 = vld [vmem:[%s11618_s5 + $0x100] sm:$0xff] }
  0xc9   : > { %2109 = vmatprep.mubr.bf16.mxu0 %v11676_v53  ;;  %2371 = vmatprep.mubr.bf16.mxu1 %v11676_v53  ;;  %14833 = vst [vmem:[#allocation18_spill] sm:$0xff] %v11758_v50 }
  0xca   : > { %2443 = vmatpush1.bf16.msra.mxu1 %v10109_v54  ;;  %2181 = vmatpush1.bf16.msra.mxu0 %v10112_v55  ;;  %v10136_v54 = vld [vmem:[#allocation5 + $0xd0] ss:$48 sps:$4 sm:$0xff]   ;;  %v10141_v55 = vld [vmem:[#allocation5 + $0x13c] ss:$48 sps:$4 sm:$0xff]  }
  0xcb   : > { %2444 = vmatprep.subr.bf16.mxu1 %v10117_v58  ;;  %2182 = vmatprep.subr.bf16.mxu0 %v10120_v59  ;;  %v236_v58 = vld [vmem:[%s11618_s5 + $0x70] sm:$0xff]  ;;  %v239_v59 = vld [vmem:[%s11618_s5 + $0x88] sm:$0xff] }
  0xce   : > { %2445 = vmatpush1.bf16.msra.mxu1 %v10115_v62  ;;  %2183 = vmatpush1.bf16.msra.mxu0 %v10118_v63  ;;  %v10150_v62 = vld [vmem:[#allocation5 + $0x194] ss:$48 sps:$4 sm:$0xff]   ;;  %v10145_v63 = vld [vmem:[#allocation5 + $0x198] ss:$48 sps:$4 sm:$0xff]  }
  0xcf   : > { %2823 = vmatprep.subr.bf16.mxu1 %v10123_v0  ;;  %2561 = vmatprep.subr.bf16.mxu0 %v10126_v1  ;;  %v11766_v0 = vpack.c.bf16 %v239_v59, %v236_v58  ;;  %v10148_v1 = vld [vmem:[#allocation5 + $0x190] ss:$48 sps:$4 sm:$0xff]   ;;  %v10189_v58 = vld [vmem:[#allocation5 + $0x43c] ss:$48 sps:$4 sm:$0xff]   ;;  %v10192_v59 = vld [vmem:[#allocation5 + $0x434] ss:$48 sps:$4 sm:$0xff]  }
  0xd0   : > { %2110 = vmatmul.mubr.bf16.gmra.mrb[16].mxu0 %v11686_v2  ;;  %2372 = vmatmul.mubr.bf16.gmra.mrb[16].mxu1 %v11686_v2 }
  0xd1   : > { %2119 = vmatprep.mubr.bf16.mxu0 %v11688_v3  ;;  %2381 = vmatprep.mubr.bf16.mxu1 %v11688_v3  ;;  %14834 = vst [vmem:[#allocation19_spill] sm:$0xff] %v11766_v0 }
  0xd8   : > { %2120 = vmatmul.mubr.bf16.gmra.mrb[20].mxu0 %v11698_v8  ;;  %2382 = vmatmul.mubr.bf16.gmra.mrb[20].mxu1 %v11698_v8 }
  0xd9   : > { %2129 = vmatprep.mubr.bf16.mxu0 %v11700_v10  ;;  %2391 = vmatprep.mubr.bf16.mxu1 %v11700_v10 }
  0xe0   : > { %2130 = vmatmul.mubr.bf16.gmra.mrb[24].mxu0 %v11710_v16  ;;  %2392 = vmatmul.mubr.bf16.gmra.mrb[24].mxu1 %v11710_v16 }
  0xe1   : > { %2139 = vmatprep.mubr.bf16.mxu0 %v11712_v17  ;;  %2401 = vmatprep.mubr.bf16.mxu1 %v11712_v17 }
  0xe8   : > { %2140 = vmatmul.mubr.bf16.gmra.mrb[28].mxu0 %v11722_v22  ;;  %2402 = vmatmul.mubr.bf16.gmra.mrb[28].mxu1 %v11722_v22 }
  0xe9   : > { %2149 = vmatprep.mubr.bf16.mxu0 %v11724_v25  ;;  %2411 = vmatprep.mubr.bf16.mxu1 %v11724_v25 }
  0xf0   : > { %2150 = vmatmul.mubr.bf16.gmra.mrb[32].mxu0 %v11733_v29  ;;  %2412 = vmatmul.mubr.bf16.gmra.mrb[32].mxu1 %v11733_v29 }
  0xf1   : > { %2159 = vmatprep.mubr.bf16.mxu0 %v11735_v30  ;;  %2421 = vmatprep.mubr.bf16.mxu1 %v11735_v30 }
  0xf8   : > { %2160 = vmatmul.mubr.bf16.gmra.mrb[36].mxu0 %v11742_v32  ;;  %2422 = vmatmul.mubr.bf16.gmra.mrb[36].mxu1 %v11742_v32 }
  0xf9   : > { %2200 = vmatprep.mubr.bf16.mxu0 %v14715_v34  ;;  %2462 = vmatprep.mubr.bf16.mxu1 %v14715_v34 }
 0x100   : > { %2201 = vmatmul.mubr.bf16.vlgmr.msra.gmra.mrb[0].mxu0 %v11750_v40  ;;  %2463 = vmatmul.mubr.bf16.vlgmr.msra.gmra.mrb[0].mxu1 %v11750_v40 }
 0x101   : > { %2824 = vmatpush1.bf16.msra.mxu1 %v10121_v36  ;;  %2562 = vmatpush1.bf16.msra.mxu0 %v10124_v39  ;;  %v10174_v36 = vld [vmem:[#allocation5 + $0x314] ss:$48 sps:$4 sm:$0xff]   ;;  %v11782_v39 = vpack.c.bf16 %v251_v28, %v248_v27  ;;  %v10205_v28 = vld [vmem:[#allocation5 + $0x558] ss:$48 sps:$4 sm:$0xff]  }
 0x102   : > { %2825 = vmatprep.subr.bf16.mxu1 %v10129_v41  ;;  %2210 = vmatprep.mubr.bf16.mxu0 %v14715_v34  ;;  %v10169_v41 = vld [vmem:[#allocation5 + $0x318] ss:$48 sps:$4 sm:$0xff]  }
 0x103   : > { %2472 = vmatprep.mubr.bf16.mxu1 %v14715_v34  ;;  %2563 = vmatprep.subr.bf16.mxu0 %v10132_v42  ;;  %14836 = vst [vmem:[#allocation21_spill] sm:$0xff] %v11782_v39  ;;  %v10172_v42 = vld [vmem:[#allocation5 + $0x310] ss:$48 sps:$4 sm:$0xff]  }
 0x105   : > { %2826 = vmatpush1.bf16.msra.mxu1 %v10127_v43  ;;  %2564 = vmatpush1.bf16.msra.mxu0 %v10130_v46  ;;  %v10177_v43 = vld [vmem:[#allocation5 + $0x37c] ss:$48 sps:$4 sm:$0xff]  }
 0x106   : > { %2827 = vmatprep.subr.bf16.mxu1 %v10135_v47  ;;  %2565 = vmatprep.subr.bf16.mxu0 %v10138_v48  ;;  %v257_v46 = vld [vmem:[%s11618_s5 + $0x118] sm:$0xff] }
 0x107   : > { %v10175_v47 = vld [vmem:[#allocation5 + $0x378] ss:$48 sps:$4 sm:$0xff]   ;;  %v10178_v48 = vld [vmem:[#allocation5 + $0x370] ss:$48 sps:$4 sm:$0xff]  }
 0x108   : > { %2211 = vmatmul.mubr.bf16.gmra.mrb[4].mxu0 %v11758_v50  ;;  %2473 = vmatmul.mubr.bf16.gmra.mrb[4].mxu1 %v11758_v50 }
 0x109   : > { %2828 = vmatpush1.bf16.msra.mxu1 %v10133_v49  ;;  %2220 = vmatprep.mubr.bf16.mxu0 %v14715_v34  ;;  %v10183_v49 = vld [vmem:[#allocation5 + $0x3dc] ss:$48 sps:$4 sm:$0xff]  }
 0x10a   : > { %2482 = vmatprep.mubr.bf16.mxu1 %v14715_v34  ;;  %2566 = vmatpush1.bf16.msra.mxu0 %v10136_v54  ;;  %v10186_v54 = vld [vmem:[#allocation5 + $0x3d4] ss:$48 sps:$4 sm:$0xff]  }
 0x10b   : > { %2829 = vmatprep.subr.bf16.mxu1 %v10141_v55  ;;  %2567 = vmatprep.subr.bf16.mxu0 %v10144_v56  ;;  %v11790_v55 = vpack.c.bf16 %v257_v46, %v254_v45  ;;  %v10181_v56 = vld [vmem:[#allocation5 + $0x3d8] ss:$48 sps:$4 sm:$0xff]   ;;  %v10222_v45 = vld [vmem:[#allocation5 + $0x614] ss:$48 sps:$4 sm:$0xff]  }
 0x10d   : > { %2830 = vmatpush1.bf16.msra.mxu1 %v10139_v57  ;;  %14837 = vst [vmem:[#allocation22_spill] sm:$0xff] %v11790_v55  ;;  %v10184_v57 = vld [vmem:[#allocation5 + $0x3d0] ss:$48 sps:$4 sm:$0xff]  }
 0x10e   : > { %2568 = vmatpush1.bf16.msra.mxu0 %v10142_v60  ;;  %2831 = vmatprep.subr.bf16.mxu1 %v10147_v61  ;;  %v260_v60 = vld [vmem:[%s11618_s5 + $0x130] sm:$0xff]  ;;  %v263_v61 = vld [vmem:[%s11618_s5 + $0x148] sm:$0xff] }
 0x10f   : > { %2569 = vmatprep.subr.bf16.mxu0 %v10150_v62  ;;  %v10187_v62 = vld [vmem:[#allocation5 + $0x438] ss:$48 sps:$4 sm:$0xff]  }
 0x110   : > { %2221 = vmatmul.mubr.bf16.gmra.mrb[8].mxu0 %v11766_v0  ;;  %2483 = vmatmul.mubr.bf16.gmra.mrb[8].mxu1 %v11766_v0 }
 0x111   : > { %2832 = vmatpush1.bf16.msra.mxu1 %v10145_v63  ;;  %2230 = vmatprep.mubr.bf16.mxu0 %v14715_v34  ;;  %v10190_v63 = vld [vmem:[#allocation5 + $0x430] ss:$48 sps:$4 sm:$0xff]  }
 0x112   : > { %2492 = vmatprep.mubr.bf16.mxu1 %v14715_v34  ;;  %2570 = vmatpush1.bf16.msra.mxu0 %v10148_v1  ;;  %v10195_v1 = vld [vmem:[#allocation5 + $0x49c] ss:$48 sps:$4 sm:$0xff]  }
 0x113   : > { %2833 = vmatprep.subr.bf16.mxu1 %v10153_v4  ;;  %2571 = vmatprep.subr.bf16.mxu0 %v10156_v5  ;;  %v10198_v4 = vld [vmem:[#allocation5 + $0x494] ss:$48 sps:$4 sm:$0xff]   ;;  %v11798_v5 = vpack.c.bf16 %v263_v61, %v260_v60  ;;  %v10231_v60 = vld [vmem:[#allocation5 + $0x6dc] ss:$48 sps:$4 sm:$0xff]  }
 0x114   : > { %v10234_v61 = vld [vmem:[#allocation5 + $0x6d4] ss:$48 sps:$4 sm:$0xff]  }
 0x115   : > { %2834 = vmatpush1.bf16.msra.mxu1 %v10151_v11  ;;  %14838 = vst [vmem:[#allocation23_spill] sm:$0xff] %v11798_v5  ;;  %v10201_v11 = vld [vmem:[#allocation5 + $0x4fc] ss:$48 sps:$4 sm:$0xff]  }
 0x116   : > { %2572 = vmatpush1.bf16.msra.mxu0 %v10154_v13  ;;  %2835 = vmatprep.subr.bf16.mxu1 %v10159_v14  ;;  %v10204_v13 = vld [vmem:[#allocation5 + $0x4f4] ss:$48 sps:$4 sm:$0xff]  }
 0x117   : > { %2573 = vmatprep.subr.bf16.mxu0 %v10162_v15  ;;  %v266_v14 = vld [vmem:[%s11618_s5 + $0x160] sm:$0xff]  ;;  %v269_v15 = vld [vmem:[%s11618_s5 + $0x178] sm:$0xff] }
 0x118   : > { %2231 = vmatmul.mubr.bf16.gmra.mrb[12].mxu0 %v11774_v18  ;;  %2493 = vmatmul.mubr.bf16.gmra.mrb[12].mxu1 %v11774_v18  ;;  %v11806_v27 = vpack.c.bf16 %v269_v15, %v266_v14  ;;  %v10241_v14 = vld [vmem:[#allocation5 + $0x798] ss:$48 sps:$4 sm:$0xff]   ;;  %v10244_v15 = vld [vmem:[#allocation5 + $0x790] ss:$48 sps:$4 sm:$0xff]  }
 0x119   : > { %2240 = vmatprep.mubr.bf16.mxu0 %v14715_v34  ;;  %2502 = vmatprep.mubr.bf16.mxu1 %v14715_v34 }
 0x11a   : > { %2836 = vmatpush1.bf16.msra.mxu1 %v10157_v19  ;;  %2574 = vmatpush1.bf16.msra.mxu0 %v10160_v20  ;;  %v10199_v19 = vld [vmem:[#allocation5 + $0x4f8] ss:$48 sps:$4 sm:$0xff]   ;;  %v10202_v20 = vld [vmem:[#allocation5 + $0x4f0] ss:$48 sps:$4 sm:$0xff]   ;;  %14839 = vst [vmem:[#allocation24_spill] sm:$0xff] %v11806_v27 }
 0x11b   : > { %2837 = vmatprep.subr.bf16.mxu1 %v10165_v21  ;;  %2575 = vmatprep.subr.bf16.mxu0 %v10168_v26  ;;  %v10207_v21 = vld [vmem:[#allocation5 + $0x55c] ss:$48 sps:$4 sm:$0xff]   ;;  %v10210_v26 = vld [vmem:[#allocation5 + $0x554] ss:$48 sps:$4 sm:$0xff]  }
 0x11e   : > { %2838 = vmatpush1.bf16.msra.mxu1 %v10163_v31  ;;  %2576 = vmatpush1.bf16.msra.mxu0 %v10166_v33  ;;  %v10208_v31 = vld [vmem:[#allocation5 + $0x550] ss:$48 sps:$4 sm:$0xff]   ;;  %v10213_v33 = vld [vmem:[#allocation5 + $0x5bc] ss:$48 sps:$4 sm:$0xff]  }
 0x11f   : > { %2839 = vmatprep.subr.bf16.mxu1 %v10171_v35  ;;  %2577 = vmatprep.subr.bf16.mxu0 %v10174_v36  ;;  %v10216_v35 = vld [vmem:[#allocation5 + $0x5b4] ss:$48 sps:$4 sm:$0xff]  }
 0x120   : > { %2241 = vmatmul.mubr.bf16.gmra.mrb[16].mxu0 %v11782_v39  ;;  %2503 = vmatmul.mubr.bf16.gmra.mrb[16].mxu1 %v11782_v39  ;;  %v272_v36 = vld [vmem:[%s11618_s5 + $0x190] sm:$0xff] }
 0x121   : > { %2250 = vmatprep.mubr.bf16.mxu0 %v14715_v34  ;;  %2512 = vmatprep.mubr.bf16.mxu1 %v14715_v34 }
 0x122   : > { %2840 = vmatpush1.bf16.msra.mxu1 %v10169_v41  ;;  %2578 = vmatpush1.bf16.msra.mxu0 %v10172_v42  ;;  %v275_v41 = vld [vmem:[%s11618_s5 + $0x1a8] sm:$0xff] }
 0x123   : > { %2841 = vmatprep.subr.bf16.mxu1 %v10177_v43  ;;  %2579 = vmatprep.subr.bf16.mxu0 %v10180_v44  ;;  %v10211_v42 = vld [vmem:[#allocation5 + $0x5b8] ss:$48 sps:$4 sm:$0xff]   ;;  %v10214_v43 = vld [vmem:[#allocation5 + $0x5b0] ss:$48 sps:$4 sm:$0xff]   ;;  %v10219_v44 = vld [vmem:[#allocation5 + $0x61c] ss:$48 sps:$4 sm:$0xff]   ;;  %v11814_v46 = vpack.c.bf16 %v275_v41, %v272_v36 }
 0x124   : > { %v10261_v36 = vld [vmem:[#allocation5 + $0x8bc] ss:$48 sps:$4 sm:$0xff]   ;;  %v10264_v41 = vld [vmem:[#allocation5 + $0x8b4] ss:$48 sps:$4 sm:$0xff]  }
 0x125   : > { %14840 = vst [vmem:[#allocation25_spill] sm:$0xff] %v11814_v46 }
 0x126   : > { %2842 = vmatpush1.bf16.msra.mxu1 %v10175_v47  ;;  %2580 = vmatpush1.bf16.msra.mxu0 %v10178_v48  ;;  %v278_v47 = vld [vmem:[%s11618_s5 + $0x1c0] sm:$0xff] }
 0x127   : > { %2843 = vmatprep.subr.bf16.mxu1 %v10183_v49  ;;  %2581 = vmatprep.subr.bf16.mxu0 %v10186_v54  ;;  %v11821_v48 = vpack.c.bf16 %v278_v47, %v278_v47  ;;  %v10217_v49 = vld [vmem:[#allocation5 + $0x618] ss:$48 sps:$4 sm:$0xff]   ;;  %v10220_v54 = vld [vmem:[#allocation5 + $0x610] ss:$48 sps:$4 sm:$0xff]  }
 0x128   : > { %2251 = vmatmul.mubr.bf16.gmra.mrb[20].mxu0 %v11790_v55  ;;  %2513 = vmatmul.mubr.bf16.gmra.mrb[20].mxu1 %v11790_v55  ;;  %v10265_v47 = vld [vmem:[#allocation5 + $0x28] ss:$48 sps:$4 sm:$0xff]  }
 0x129   : > { %2260 = vmatprep.mubr.bf16.mxu0 %v14715_v34  ;;  %2522 = vmatprep.mubr.bf16.mxu1 %v14715_v34  ;;  %14841 = vst [vmem:[#allocation26_spill] sm:$0xff] %v11821_v48 }
 0x12a   : > { %2844 = vmatpush1.bf16.msra.mxu1 %v10181_v56  ;;  %2582 = vmatpush1.bf16.msra.mxu0 %v10184_v57  ;;  %v10225_v56 = vld [vmem:[#allocation5 + $0x67c] ss:$48 sps:$4 sm:$0xff]   ;;  %v10228_v57 = vld [vmem:[#allocation5 + $0x674] ss:$48 sps:$4 sm:$0xff]  }
 0x12b   : > { %2845 = vmatprep.subr.bf16.mxu1 %v10189_v58  ;;  %2583 = vmatprep.subr.bf16.mxu0 %v10192_v59  ;;  %v10223_v58 = vld [vmem:[#allocation5 + $0x678] ss:$48 sps:$4 sm:$0xff]   ;;  %v10226_v59 = vld [vmem:[#allocation5 + $0x670] ss:$48 sps:$4 sm:$0xff]  }
 0x12e   : > { %2846 = vmatpush1.bf16.msra.mxu1 %v10187_v62  ;;  %2584 = vmatpush1.bf16.msra.mxu0 %v10190_v63  ;;  %v10229_v62 = vld [vmem:[#allocation5 + $0x6d8] ss:$48 sps:$4 sm:$0xff]   ;;  %v10232_v63 = vld [vmem:[#allocation5 + $0x6d0] ss:$48 sps:$4 sm:$0xff]  }
 0x12f   : > { %2847 = vmatprep.subr.bf16.mxu1 %v10195_v1  ;;  %2585 = vmatprep.subr.bf16.mxu0 %v10198_v4  ;;  %v10237_v1 = vld [vmem:[#allocation5 + $0x73c] ss:$48 sps:$4 sm:$0xff]   ;;  %v10240_v4 = vld [vmem:[#allocation5 + $0x734] ss:$48 sps:$4 sm:$0xff]  }
 0x130   : > { %2261 = vmatmul.mubr.bf16.gmra.mrb[24].mxu0 %v11798_v5  ;;  %2523 = vmatmul.mubr.bf16.gmra.mrb[24].mxu1 %v11798_v5 }
 0x131   : > { %2270 = vmatprep.mubr.bf16.mxu0 %v14715_v34  ;;  %2532 = vmatprep.mubr.bf16.mxu1 %v14715_v34 }
 0x132   : > { %2848 = vmatpush1.bf16.msra.mxu1 %v10193_v6  ;;  %2586 = vmatpush1.bf16.msra.mxu0 %v10196_v7  ;;  %v10235_v6 = vld [vmem:[#allocation5 + $0x738] ss:$48 sps:$4 sm:$0xff]   ;;  %v10238_v7 = vld [vmem:[#allocation5 + $0x730] ss:$48 sps:$4 sm:$0xff]  }
 0x133   : > { %2849 = vmatprep.subr.bf16.mxu1 %v10201_v11  ;;  %2587 = vmatprep.subr.bf16.mxu0 %v10204_v13  ;;  %v10243_v11 = vld [vmem:[#allocation5 + $0x79c] ss:$48 sps:$4 sm:$0xff]   ;;  %v10246_v13 = vld [vmem:[#allocation5 + $0x794] ss:$48 sps:$4 sm:$0xff]  }
 0x136   : > { %2850 = vmatpush1.bf16.msra.mxu1 %v10199_v19  ;;  %2588 = vmatpush1.bf16.msra.mxu0 %v10202_v20  ;;  %v10249_v19 = vld [vmem:[#allocation5 + $0x7fc] ss:$48 sps:$4 sm:$0xff]   ;;  %v10252_v20 = vld [vmem:[#allocation5 + $0x7f4] ss:$48 sps:$4 sm:$0xff]  }
 0x137   : > { %2851 = vmatprep.subr.bf16.mxu1 %v10207_v21  ;;  %2589 = vmatprep.subr.bf16.mxu0 %v10210_v26  ;;  %v10247_v21 = vld [vmem:[#allocation5 + $0x7f8] ss:$48 sps:$4 sm:$0xff]   ;;  %v10250_v26 = vld [vmem:[#allocation5 + $0x7f0] ss:$48 sps:$4 sm:$0xff]  }
 0x138   : > { %2271 = vmatmul.mubr.bf16.gmra.mrb[28].mxu0 %v11806_v27  ;;  %2533 = vmatmul.mubr.bf16.gmra.mrb[28].mxu1 %v11806_v27 }
 0x139   : > { %2280 = vmatprep.mubr.bf16.mxu0 %v14715_v34  ;;  %2542 = vmatprep.mubr.bf16.mxu1 %v14715_v34 }
 0x13a   : > { %2852 = vmatpush1.bf16.msra.mxu1 %v10205_v28  ;;  %2590 = vmatpush1.bf16.msra.mxu0 %v10208_v31  ;;  %v10255_v28 = vld [vmem:[#allocation5 + $0x85c] ss:$48 sps:$4 sm:$0xff]   ;;  %v10258_v31 = vld [vmem:[#allocation5 + $0x854] ss:$48 sps:$4 sm:$0xff]  }
 0x13b   : > { %2853 = vmatprep.subr.bf16.mxu1 %v10213_v33  ;;  %2591 = vmatprep.subr.bf16.mxu0 %v10216_v35  ;;  %v10253_v33 = vld [vmem:[#allocation5 + $0x858] ss:$48 sps:$4 sm:$0xff]   ;;  %v10256_v35 = vld [vmem:[#allocation5 + $0x850] ss:$48 sps:$4 sm:$0xff]  }
 0x13e   : > { %2854 = vmatpush1.bf16.msra.mxu1 %v10211_v42  ;;  %2592 = vmatpush1.bf16.msra.mxu0 %v10214_v43  ;;  %v10259_v42 = vld [vmem:[#allocation5 + $0x8b8] ss:$48 sps:$4 sm:$0xff]   ;;  %v10262_v43 = vld [vmem:[#allocation5 + $0x8b0] ss:$48 sps:$4 sm:$0xff]  }
 0x13f   : > { %2954 = vmatprep.subr.bf16.mxu1 %v10219_v44  ;;  %2692 = vmatprep.subr.bf16.mxu0 %v10222_v45  ;;  %v10267_v44 = vld [vmem:[#allocation5 + $0x2c] ss:$48 sps:$4 sm:$0xff]   ;;  %v10270_v45 = vld [vmem:[#allocation5 + $0x24] ss:$48 sps:$4 sm:$0xff]  }
 0x140   : > { %2281 = vmatmul.mubr.bf16.gmra.mrb[32].mxu0 %v11814_v46  ;;  %2543 = vmatmul.mubr.bf16.gmra.mrb[32].mxu1 %v11814_v46 }
 0x141   : > { %2290 = vmatprep.mubr.bf16.mxu0 %v14715_v34  ;;  %2552 = vmatprep.mubr.bf16.mxu1 %v14715_v34 }
 0x148   : > { %2291 = vmatmul.mubr.bf16.gmra.mrb[36].mxu0 %v11821_v48  ;;  %2553 = vmatmul.mubr.bf16.gmra.mrb[36].mxu1 %v11821_v48 }
 0x149   : > { %2593 = vmatprep.mubr.bf16.mxu0 %v11630_v51  ;;  %2855 = vmatprep.mubr.bf16.mxu1 %v11630_v51 }
 0x150   : > { %2594 = vmatmul.mubr.bf16.vlgmr.msra.gmra.mrb[40].mxu0 %v11638_v9  ;;  %2856 = vmatmul.mubr.bf16.vlgmr.msra.gmra.mrb[40].mxu1 %v11638_v9 }
 0x151   : > { %2955 = vmatpush1.bf16.msra.mxu1 %v10217_v49  ;;  %2693 = vmatpush1.bf16.msra.mxu0 %v10220_v54  ;;  %v10268_v49 = vld [vmem:[#allocation5 + $0x20] ss:$48 sps:$4 sm:$0xff]   ;;  %v10273_v54 = vld [vmem:[#allocation5 + $0x8c] ss:$48 sps:$4 sm:$0xff]  }
 0x152   : > { %2603 = vmatprep.mubr.bf16.mxu0 %v11640_v12  ;;  %2865 = vmatprep.mubr.bf16.mxu1 %v11640_v12 }
 0x153   : > { %2956 = vmatprep.subr.bf16.mxu1 %v10225_v56  ;;  %2694 = vmatprep.subr.bf16.mxu0 %v10228_v57  ;;  %v10276_v56 = vld [vmem:[#allocation5 + $0x84] ss:$48 sps:$4 sm:$0xff]   ;;  %v10271_v57 = vld [vmem:[#allocation5 + $0x88] ss:$48 sps:$4 sm:$0xff]  }
 0x155   : > { %2957 = vmatpush1.bf16.msra.mxu1 %v10223_v58  ;;  %2695 = vmatpush1.bf16.msra.mxu0 %v10226_v59  ;;  %v10274_v58 = vld [vmem:[#allocation5 + $0x80] ss:$48 sps:$4 sm:$0xff]   ;;  %v10279_v59 = vld [vmem:[#allocation5 + $0xec] ss:$48 sps:$4 sm:$0xff]  }
 0x156   : > { %2958 = vmatprep.subr.bf16.mxu1 %v10231_v60  ;;  %2696 = vmatprep.subr.bf16.mxu0 %v10234_v61  ;;  %v10282_v60 = vld [vmem:[#allocation5 + $0xe4] ss:$48 sps:$4 sm:$0xff]   ;;  %v10277_v61 = vld [vmem:[#allocation5 + $0xe8] ss:$48 sps:$4 sm:$0xff]  }
 0x158   : > { %2604 = vmatmul.mubr.bf16.gmra.mrb[44].mxu0 %v11650_v23  ;;  %2866 = vmatmul.mubr.bf16.gmra.mrb[44].mxu1 %v11650_v23 }
 0x159   : > { %2613 = vmatprep.mubr.bf16.mxu0 %v11652_v24  ;;  %2875 = vmatprep.mubr.bf16.mxu1 %v11652_v24 }
 0x15a   : > { %2959 = vmatpush1.bf16.msra.mxu1 %v10229_v62  ;;  %2697 = vmatpush1.bf16.msra.mxu0 %v10232_v63  ;;  %v10280_v62 = vld [vmem:[#allocation5 + $0xe0] ss:$48 sps:$4 sm:$0xff]   ;;  %v10285_v63 = vld [vmem:[#allocation5 + $0x14c] ss:$48 sps:$4 sm:$0xff]  }
 0x15b   : > { %2960 = vmatprep.subr.bf16.mxu1 %v10237_v1  ;;  %2698 = vmatprep.subr.bf16.mxu0 %v10240_v4  ;;  %v10288_v1 = vld [vmem:[#allocation5 + $0x144] ss:$48 sps:$4 sm:$0xff]   ;;  %v10283_v4 = vld [vmem:[#allocation5 + $0x148] ss:$48 sps:$4 sm:$0xff]  }
 0x15e   : > { %2961 = vmatpush1.bf16.msra.mxu1 %v10235_v6  ;;  %2699 = vmatpush1.bf16.msra.mxu0 %v10238_v7  ;;  %v10286_v6 = vld [vmem:[#allocation5 + $0x140] ss:$48 sps:$4 sm:$0xff]   ;;  %v10291_v7 = vld [vmem:[#allocation5 + $0x1ac] ss:$48 sps:$4 sm:$0xff]  }
 0x15f   : > { %2962 = vmatprep.subr.bf16.mxu1 %v10243_v11  ;;  %2700 = vmatprep.subr.bf16.mxu0 %v10246_v13  ;;  %v10289_v11 = vld [vmem:[#allocation5 + $0x1a8] ss:$48 sps:$4 sm:$0xff]   ;;  %v10294_v13 = vld [vmem:[#allocation5 + $0x1a4] ss:$48 sps:$4 sm:$0xff]  }
 0x160   : > { %2614 = vmatmul.mubr.bf16.gmra.mrb[48].mxu0 %v11662_v37  ;;  %2876 = vmatmul.mubr.bf16.gmra.mrb[48].mxu1 %v11662_v37 }
 0x161   : > { %2623 = vmatprep.mubr.bf16.mxu0 %v11664_v38  ;;  %2885 = vmatprep.mubr.bf16.mxu1 %v11664_v38 }
 0x162   : > { %2963 = vmatpush1.bf16.msra.mxu1 %v10241_v14  ;;  %2701 = vmatpush1.bf16.msra.mxu0 %v10244_v15  ;;  %v10292_v14 = vld [vmem:[#allocation5 + $0x1a0] ss:$48 sps:$4 sm:$0xff]   ;;  %v10297_v15 = vld [vmem:[#allocation5 + $0x20c] ss:$48 sps:$4 sm:$0xff]  }
 0x163   : > { %2964 = vmatprep.subr.bf16.mxu1 %v10249_v19  ;;  %2702 = vmatprep.subr.bf16.mxu0 %v10252_v20  ;;  %v10300_v19 = vld [vmem:[#allocation5 + $0x204] ss:$48 sps:$4 sm:$0xff]   ;;  %v10295_v20 = vld [vmem:[#allocation5 + $0x208] ss:$48 sps:$4 sm:$0xff]  }
 0x166   : > { %2965 = vmatpush1.bf16.msra.mxu1 %v10247_v21  ;;  %2703 = vmatpush1.bf16.msra.mxu0 %v10250_v26  ;;  %v10298_v21 = vld [vmem:[#allocation5 + $0x200] ss:$48 sps:$4 sm:$0xff]   ;;  %v10303_v26 = vld [vmem:[#allocation5 + $0x26c] ss:$48 sps:$4 sm:$0xff]  }
 0x167   : > { %2966 = vmatprep.subr.bf16.mxu1 %v10255_v28  ;;  %2704 = vmatprep.subr.bf16.mxu0 %v10258_v31  ;;  %v10306_v28 = vld [vmem:[#allocation5 + $0x264] ss:$48 sps:$4 sm:$0xff]   ;;  %v10301_v31 = vld [vmem:[#allocation5 + $0x268] ss:$48 sps:$4 sm:$0xff]  }
 0x168   : > { %2624 = vmatmul.mubr.bf16.gmra.mrb[52].mxu0 %v11674_v52  ;;  %2886 = vmatmul.mubr.bf16.gmra.mrb[52].mxu1 %v11674_v52 }
 0x169   : > { %2633 = vmatprep.mubr.bf16.mxu0 %v11676_v53  ;;  %2895 = vmatprep.mubr.bf16.mxu1 %v11676_v53 }
 0x16a   : > { %2967 = vmatpush1.bf16.msra.mxu1 %v10253_v33  ;;  %2705 = vmatpush1.bf16.msra.mxu0 %v10256_v35  ;;  %v10304_v33 = vld [vmem:[#allocation5 + $0x260] ss:$48 sps:$4 sm:$0xff]   ;;  %v10309_v35 = vld [vmem:[#allocation5 + $0x2cc] ss:$48 sps:$4 sm:$0xff]  }
 0x16b   : > { %2968 = vmatprep.subr.bf16.mxu1 %v10261_v36  ;;  %2706 = vmatprep.subr.bf16.mxu0 %v10264_v41  ;;  %v10312_v36 = vld [vmem:[#allocation5 + $0x2c4] ss:$48 sps:$4 sm:$0xff]   ;;  %v10307_v41 = vld [vmem:[#allocation5 + $0x2c8] ss:$48 sps:$4 sm:$0xff]  }
 0x16e   : > { %2969 = vmatpush1.bf16.msra.mxu1 %v10259_v42  ;;  %2707 = vmatpush1.bf16.msra.mxu0 %v10262_v43  ;;  %v10310_v42 = vld [vmem:[#allocation5 + $0x2c0] ss:$48 sps:$4 sm:$0xff]   ;;  %v10315_v43 = vld [vmem:[#allocation5 + $0x32c] ss:$48 sps:$4 sm:$0xff]  }
 0x16f   : > { %3347 = vmatprep.subr.bf16.mxu1 %v10267_v44  ;;  %3085 = vmatprep.subr.bf16.mxu0 %v10270_v45  ;;  %v10318_v44 = vld [vmem:[#allocation5 + $0x324] ss:$48 sps:$4 sm:$0xff]   ;;  %v10313_v45 = vld [vmem:[#allocation5 + $0x328] ss:$48 sps:$4 sm:$0xff]  }
 0x170   : > { %2634 = vmatmul.mubr.bf16.gmra.mrb[56].mxu0 %v11686_v2  ;;  %2896 = vmatmul.mubr.bf16.gmra.mrb[56].mxu1 %v11686_v2 }
 0x171   : > { %2643 = vmatprep.mubr.bf16.mxu0 %v11688_v3  ;;  %2905 = vmatprep.mubr.bf16.mxu1 %v11688_v3 }
 0x178   : > { %2644 = vmatmul.mubr.bf16.gmra.mrb[60].mxu0 %v11698_v8  ;;  %2906 = vmatmul.mubr.bf16.gmra.mrb[60].mxu1 %v11698_v8 }
 0x179   : > { %2653 = vmatprep.mubr.bf16.mxu0 %v11700_v10  ;;  %2915 = vmatprep.mubr.bf16.mxu1 %v11700_v10 }
 0x180   : > { %2654 = vmatmul.mubr.bf16.gmra.mrb[64].mxu0 %v11710_v16  ;;  %2916 = vmatmul.mubr.bf16.gmra.mrb[64].mxu1 %v11710_v16 }
 0x181   : > { %2663 = vmatprep.mubr.bf16.mxu0 %v11712_v17  ;;  %2925 = vmatprep.mubr.bf16.mxu1 %v11712_v17 }
 0x188   : > { %2664 = vmatmul.mubr.bf16.gmra.mrb[68].mxu0 %v11722_v22  ;;  %2926 = vmatmul.mubr.bf16.gmra.mrb[68].mxu1 %v11722_v22 }
 0x189   : > { %2673 = vmatprep.mubr.bf16.mxu0 %v11724_v25  ;;  %2935 = vmatprep.mubr.bf16.mxu1 %v11724_v25 }
 0x190   : > { %2674 = vmatmul.mubr.bf16.gmra.mrb[72].mxu0 %v11733_v29  ;;  %2936 = vmatmul.mubr.bf16.gmra.mrb[72].mxu1 %v11733_v29 }
 0x191   : > { %2683 = vmatprep.mubr.bf16.mxu0 %v11735_v30  ;;  %2945 = vmatprep.mubr.bf16.mxu1 %v11735_v30 }
 0x198   : > { %2684 = vmatmul.mubr.bf16.gmra.mrb[76].mxu0 %v11742_v32  ;;  %2946 = vmatmul.mubr.bf16.gmra.mrb[76].mxu1 %v11742_v32 }
 0x199   : > { %2724 = vmatprep.mubr.bf16.mxu0 %v14715_v34  ;;  %2986 = vmatprep.mubr.bf16.mxu1 %v14715_v34 }
 0x1a0   : > { %2725 = vmatmul.mubr.bf16.vlgmr.msra.gmra.mrb[40].mxu0 %v11750_v40  ;;  %2987 = vmatmul.mubr.bf16.vlgmr.msra.gmra.mrb[40].mxu1 %v11750_v40 }
 0x1a1   : > { %3348 = vmatpush1.bf16.msra.mxu1 %v10265_v47  ;;  %3086 = vmatpush1.bf16.msra.mxu0 %v10268_v49  ;;  %v10316_v47 = vld [vmem:[#allocation5 + $0x320] ss:$48 sps:$4 sm:$0xff]   ;;  %v10321_v49 = vld [vmem:[#allocation5 + $0x38c] ss:$48 sps:$4 sm:$0xff]  }
 0x1a2   : > { %3349 = vmatprep.subr.bf16.mxu1 %v10273_v54  ;;  %2734 = vmatprep.mubr.bf16.mxu0 %v14715_v34  ;;  %v10324_v54 = vld [vmem:[#allocation5 + $0x384] ss:$48 sps:$4 sm:$0xff]  }
 0x1a3   : > { %2996 = vmatprep.mubr.bf16.mxu1 %v14715_v34  ;;  %3087 = vmatprep.subr.bf16.mxu0 %v10276_v56  ;;  %v10319_v56 = vld [vmem:[#allocation5 + $0x388] ss:$48 sps:$4 sm:$0xff]  }
 0x1a5   : > { %3350 = vmatpush1.bf16.msra.mxu1 %v10271_v57  ;;  %3088 = vmatpush1.bf16.msra.mxu0 %v10274_v58  ;;  %v10322_v57 = vld [vmem:[#allocation5 + $0x380] ss:$48 sps:$4 sm:$0xff]   ;;  %v10327_v58 = vld [vmem:[#allocation5 + $0x3ec] ss:$48 sps:$4 sm:$0xff]  }
 0x1a6   : > { %3351 = vmatprep.subr.bf16.mxu1 %v10279_v59  ;;  %3089 = vmatprep.subr.bf16.mxu0 %v10282_v60  ;;  %v10330_v59 = vld [vmem:[#allocation5 + $0x3e4] ss:$48 sps:$4 sm:$0xff]   ;;  %v10325_v60 = vld [vmem:[#allocation5 + $0x3e8] ss:$48 sps:$4 sm:$0xff]  }
 0x1a8   : > { %2735 = vmatmul.mubr.bf16.gmra.mrb[44].mxu0 %v11758_v50  ;;  %2997 = vmatmul.mubr.bf16.gmra.mrb[44].mxu1 %v11758_v50 }
 0x1a9   : > { %3352 = vmatpush1.bf16.msra.mxu1 %v10277_v61  ;;  %2744 = vmatprep.mubr.bf16.mxu0 %v14715_v34  ;;  %v10328_v61 = vld [vmem:[#allocation5 + $0x3e0] ss:$48 sps:$4 sm:$0xff]  }
 0x1aa   : > { %3006 = vmatprep.mubr.bf16.mxu1 %v14715_v34  ;;  %3090 = vmatpush1.bf16.msra.mxu0 %v10280_v62  ;;  %v10333_v62 = vld [vmem:[#allocation5 + $0x44c] ss:$48 sps:$4 sm:$0xff]  }
 0x1ab   : > { %3353 = vmatprep.subr.bf16.mxu1 %v10285_v63  ;;  %3091 = vmatprep.subr.bf16.mxu0 %v10288_v1  ;;  %v10336_v63 = vld [vmem:[#allocation5 + $0x444] ss:$48 sps:$4 sm:$0xff]   ;;  %v10331_v1 = vld [vmem:[#allocation5 + $0x448] ss:$48 sps:$4 sm:$0xff]  }
 0x1ad   : > { %3354 = vmatpush1.bf16.msra.mxu1 %v10283_v4  ;;  %v10334_v4 = vld [vmem:[#allocation5 + $0x440] ss:$48 sps:$4 sm:$0xff]  }
 0x1ae   : > { %3092 = vmatpush1.bf16.msra.mxu0 %v10286_v6  ;;  %3355 = vmatprep.subr.bf16.mxu1 %v10291_v7  ;;  %v10339_v6 = vld [vmem:[#allocation5 + $0x4ac] ss:$48 sps:$4 sm:$0xff]   ;;  %v10342_v7 = vld [vmem:[#allocation5 + $0x4a4] ss:$48 sps:$4 sm:$0xff]  }
 0x1af   : > { %3093 = vmatprep.subr.bf16.mxu0 %v10294_v13  ;;  %v10340_v13 = vld [vmem:[#allocation5 + $0x4a0] ss:$48 sps:$4 sm:$0xff]  }
 0x1b0   : > { %2745 = vmatmul.mubr.bf16.gmra.mrb[48].mxu0 %v11766_v0  ;;  %3007 = vmatmul.mubr.bf16.gmra.mrb[48].mxu1 %v11766_v0 }
 0x1b1   : > { %3356 = vmatpush1.bf16.msra.mxu1 %v10289_v11  ;;  %2754 = vmatprep.mubr.bf16.mxu0 %v14715_v34  ;;  %v10337_v11 = vld [vmem:[#allocation5 + $0x4a8] ss:$48 sps:$4 sm:$0xff]  }
 0x1b2   : > { %3016 = vmatprep.mubr.bf16.mxu1 %v14715_v34  ;;  %3094 = vmatpush1.bf16.msra.mxu0 %v10292_v14  ;;  %v10345_v14 = vld [vmem:[#allocation5 + $0x50c] ss:$48 sps:$4 sm:$0xff]  }
 0x1b3   : > { %3357 = vmatprep.subr.bf16.mxu1 %v10297_v15  ;;  %3095 = vmatprep.subr.bf16.mxu0 %v10300_v19  ;;  %v10348_v15 = vld [vmem:[#allocation5 + $0x504] ss:$48 sps:$4 sm:$0xff]   ;;  %v10343_v19 = vld [vmem:[#allocation5 + $0x508] ss:$48 sps:$4 sm:$0xff]  }
 0x1b5   : > { %3358 = vmatpush1.bf16.msra.mxu1 %v10295_v20  ;;  %v10346_v20 = vld [vmem:[#allocation5 + $0x500] ss:$48 sps:$4 sm:$0xff]  }
 0x1b6   : > { %3096 = vmatpush1.bf16.msra.mxu0 %v10298_v21  ;;  %3359 = vmatprep.subr.bf16.mxu1 %v10303_v26 }
 0x1b7   : > { %3097 = vmatprep.subr.bf16.mxu0 %v10306_v28  ;;  %v10351_v28 = vld [vmem:[#allocation5 + $0x56c] ss:$48 sps:$4 sm:$0xff]  }
 0x1b8   : > { %2755 = vmatmul.mubr.bf16.gmra.mrb[52].mxu0 %v11774_v18  ;;  %3017 = vmatmul.mubr.bf16.gmra.mrb[52].mxu1 %v11774_v18 }
 0x1b9   : > { %2764 = vmatprep.mubr.bf16.mxu0 %v14715_v34  ;;  %3026 = vmatprep.mubr.bf16.mxu1 %v14715_v34 }
 0x1ba   : > { %3360 = vmatpush1.bf16.msra.mxu1 %v10301_v31  ;;  %3098 = vmatpush1.bf16.msra.mxu0 %v10304_v33  ;;  %v10354_v31 = vld [vmem:[#allocation5 + $0x564] ss:$48 sps:$4 sm:$0xff]  }
 0x1bb   : > { %3361 = vmatprep.subr.bf16.mxu1 %v10309_v35  ;;  %3099 = vmatprep.subr.bf16.mxu0 %v10312_v36 }
 0x1be   : > { %3362 = vmatpush1.bf16.msra.mxu1 %v10307_v41  ;;  %3100 = vmatpush1.bf16.msra.mxu0 %v10310_v42  ;;  %v10349_v42 = vld [vmem:[#allocation5 + $0x568] ss:$48 sps:$4 sm:$0xff]  }
 0x1bf   : > { %3363 = vmatprep.subr.bf16.mxu1 %v10315_v43  ;;  %3101 = vmatprep.subr.bf16.mxu0 %v10318_v44 }
 0x1c0   : > { %2765 = vmatmul.mubr.bf16.gmra.mrb[56].mxu0 %v11782_v39  ;;  %3027 = vmatmul.mubr.bf16.gmra.mrb[56].mxu1 %v11782_v39 }
 0x1c1   : > { %2774 = vmatprep.mubr.bf16.mxu0 %v14715_v34  ;;  %3036 = vmatprep.mubr.bf16.mxu1 %v14715_v34 }
 0x1c2   : > { %3364 = vmatpush1.bf16.msra.mxu1 %v10313_v45  ;;  %3102 = vmatpush1.bf16.msra.mxu0 %v10316_v47  ;;  %v10352_v45 = vld [vmem:[#allocation5 + $0x560] ss:$48 sps:$4 sm:$0xff]   ;;  %v10357_v47 = vld [vmem:[#allocation5 + $0x5cc] ss:$48 sps:$4 sm:$0xff]  }
 0x1c3   : > { %3365 = vmatprep.subr.bf16.mxu1 %v10321_v49  ;;  %3103 = vmatprep.subr.bf16.mxu0 %v10324_v54 }
 0x1c6   : > { %3366 = vmatpush1.bf16.msra.mxu1 %v10319_v56  ;;  %3104 = vmatpush1.bf16.msra.mxu0 %v10322_v57  ;;  %v10360_v56 = vld [vmem:[#allocation5 + $0x5c4] ss:$48 sps:$4 sm:$0xff]  }
 0x1c7   : > { %3367 = vmatprep.subr.bf16.mxu1 %v10327_v58  ;;  %3105 = vmatprep.subr.bf16.mxu0 %v10330_v59 }
 0x1c8   : > { %2775 = vmatmul.mubr.bf16.gmra.mrb[60].mxu0 %v11790_v55  ;;  %3037 = vmatmul.mubr.bf16.gmra.mrb[60].mxu1 %v11790_v55 }
 0x1c9   : > { %2784 = vmatprep.mubr.bf16.mxu0 %v14715_v34  ;;  %3046 = vmatprep.mubr.bf16.mxu1 %v14715_v34 }
 0x1ca   : > { %3368 = vmatpush1.bf16.msra.mxu1 %v10325_v60  ;;  %3106 = vmatpush1.bf16.msra.mxu0 %v10328_v61  ;;  %v10355_v60 = vld [vmem:[#allocation5 + $0x5c8] ss:$48 sps:$4 sm:$0xff]   ;;  %v10358_v61 = vld [vmem:[#allocation5 + $0x5c0] ss:$48 sps:$4 sm:$0xff]  }
 0x1cb   : > { %3369 = vmatprep.subr.bf16.mxu1 %v10333_v62  ;;  %3107 = vmatprep.subr.bf16.mxu0 %v10336_v63 }
 0x1ce   : > { %3370 = vmatpush1.bf16.msra.mxu1 %v10331_v1  ;;  %3108 = vmatpush1.bf16.msra.mxu0 %v10334_v4  ;;  %v10363_v1 = vld [vmem:[#allocation5 + $0x62c] ss:$48 sps:$4 sm:$0xff]   ;;  %v10366_v4 = vld [vmem:[#allocation5 + $0x624] ss:$48 sps:$4 sm:$0xff]  }
 0x1cf   : > { %3371 = vmatprep.subr.bf16.mxu1 %v10339_v6  ;;  %3109 = vmatprep.subr.bf16.mxu0 %v10342_v7 }
 0x1d0   : > { %2785 = vmatmul.mubr.bf16.gmra.mrb[64].mxu0 %v11798_v5  ;;  %3047 = vmatmul.mubr.bf16.gmra.mrb[64].mxu1 %v11798_v5 }
 0x1d1   : > { %2794 = vmatprep.mubr.bf16.mxu0 %v14715_v34  ;;  %3056 = vmatprep.mubr.bf16.mxu1 %v14715_v34 }
 0x1d2   : > { %3372 = vmatpush1.bf16.msra.mxu1 %v10337_v11  ;;  %3110 = vmatpush1.bf16.msra.mxu0 %v10340_v13 }
 0x1d3   : > { %v2202_v21 = vpop.f32.mrb[0].mxu0  ;;  %v2464_v26 = vpop.f32.mrb[0].mxu1  ;;  %3373 = vmatprep.subr.bf16.mxu1 %v10345_v14  ;;  %3111 = vmatprep.subr.bf16.mxu0 %v10348_v15 }
 0x1d4   : > { %v3837_v33 = vmul.f32 0.70710677, %v2202_v21  ;;  %v3839_v35 = vmul.f32 0.70710677, %v2464_v26  ;;  %v2204_v36 = vpop.f32.mrb[1].mxu0  ;;  %v2466_v41 = vpop.f32.mrb[1].mxu1 }
 0x1d5   : > { %v2206_v43 = vpop.f32.mrb[2].mxu0  ;;  %v2468_v44 = vpop.f32.mrb[2].mxu1  ;;  %v3838_v59 = vmul.f32 0.70710677, %v2204_v36  ;;  %v3840_v15 = vmul.f32 0.70710677, %v2466_v41 }
 0x1d6   : > { %10793 = verf.f32 %v3837_v33  ;;  %3374 = vmatpush1.bf16.msra.mxu1 %v10343_v19  ;;  %3112 = vmatpush1.bf16.msra.mxu0 %v10346_v20  ;;  %v3849_v49 = vmul.f32 0.70710677, %v2206_v43  ;;  %v2208_v54 = vpop.f32.mrb[3].mxu0  ;;  %v3851_v57 = vmul.f32 0.70710677, %v2468_v44  ;;  %v2470_v58 = vpop.f32.mrb[3].mxu1 }
 0x1d7   : > { %10795 = verf.f32 %v3839_v35  ;;  %3375 = vmatprep.subr.bf16.mxu1 %v10351_v28  ;;  %3113 = vmatprep.subr.bf16.mxu0 %v10354_v31  ;;  %v3850_v6 = vmul.f32 0.70710677, %v2208_v54  ;;  %v3609_v28 = vmul.f32 0.5, %v2202_v21  ;;  %v3852_v31 = vmul.f32 0.70710677, %v2470_v58 }
 0x1d8   : > { %2795 = vmatmul.mubr.bf16.gmra.mrb[68].mxu0 %v11806_v27  ;;  %3057 = vmatmul.mubr.bf16.gmra.mrb[68].mxu1 %v11806_v27  ;;  %10797 = verf.f32 %v3849_v49 }
 0x1d9   : > { %2804 = vmatprep.mubr.bf16.mxu0 %v14715_v34  ;;  %3066 = vmatprep.mubr.bf16.mxu1 %v14715_v34  ;;  %10799 = verf.f32 %v3851_v57  ;;  %v3621_v57 = vmul.f32 0.5, %v2206_v43 }
 0x1da   : > { %3376 = vmatpush1.bf16.msra.mxu1 %v10349_v42  ;;  %3114 = vmatpush1.bf16.msra.mxu0 %v10352_v45  ;;  %10801 = verf.f32 %v3838_v59  ;;  %v3611_v42 = vmul.f32 0.5, %v2464_v26  ;;  %v11909_v45 = vmul.f32 0.5, %v2204_v36  ;;  %v3623_v26 = vmul.f32 0.5, %v2468_v44 }
 0x1db   : > { %v2212_v62 = vpop.f32.mrb[4].mxu0  ;;  %v2474_v63 = vpop.f32.mrb[4].mxu1  ;;  %3377 = vmatprep.subr.bf16.mxu1 %v10357_v47  ;;  %3115 = vmatprep.subr.bf16.mxu0 %v10360_v56  ;;  %10803 = verf.f32 %v3850_v6  ;;  %v11913_v56 = vmul.f32 0.5, %v2466_v41  ;;  %v11917_v36 = vmul.f32 0.5, %v2208_v54 }
 0x1dc   : > { %v2214_v7 = vpop.f32.mrb[5].mxu0  ;;  %v11899_v11 = vpop.f32.mrb[5].mxu1  ;;  %v3861_v13 = vmul.f32 0.70710677, %v2212_v62  ;;  %v3863_v21 = vmul.f32 0.70710677, %v2474_v63 }
 0x1dd   : > { %v11901_v14 = vpop.f32.mrb[6].mxu0  ;;  %v11903_v19 = vpop.f32.mrb[6].mxu1  ;;  %v3862_v47 = vmul.f32 0.70710677, %v2214_v7  ;;  %14842 = vst [vmem:[#allocation27_spill] sm:$0xff] %v11913_v56 }
 0x1de   : > { %v11905_v20 = vpop.f32.mrb[7].mxu0  ;;  %3378 = vmatpush1.bf16.msra.mxu1 %v10355_v60  ;;  %3116 = vmatpush1.bf16.msra.mxu0 %v10358_v61  ;;  %v11907_v33 = vpop.f32.mrb[7].mxu1  ;;  %10805 = verf.f32 %v3861_v13  ;;  %v3873_v59 = vmul.f32 0.70710677, %v11901_v14  ;;  %v11920_v61 = vmul.f32 0.5, %v2470_v58  ;;  %v11925_v13 = vmul.f32 0.5, %v2212_v62 }
 0x1df   : > { %3478 = vmatprep.subr.bf16.mxu1 %v10363_v1  ;;  %3216 = vmatprep.subr.bf16.mxu0 %v10366_v4  ;;  %10807 = verf.f32 %v3840_v15  ;;  %v3874_v41 = vmul.f32 0.70710677, %v11905_v20  ;;  %v3864_v44 = vmul.f32 0.70710677, %v11899_v11  ;;  %v11938_v62 = vmul.f32 0.5, %v2214_v7 }
 0x1e0   : > { %v10794_v35 = vpop.eup %10793  ;;  %2805 = vmatmul.mubr.bf16.gmra.mrb[72].mxu0 %v11814_v46  ;;  %3067 = vmatmul.mubr.bf16.gmra.mrb[72].mxu1 %v11814_v46  ;;  %14843 = vst [vmem:[#allocation28_spill] sm:$0xff] %v11920_v61  ;;  %10809 = verf.f32 %v3852_v31 }
 0x1e1   : > { %v10796_v49 = vpop.eup %10795  ;;  %2814 = vmatprep.mubr.bf16.mxu0 %v14715_v34  ;;  %3076 = vmatprep.mubr.bf16.mxu1 %v14715_v34  ;;  %v4293_v60 = vadd.f32 1.0, %v10794_v35  ;;  %10811 = verf.f32 %v3862_v47  ;;  %v11932_v34 = vmul.f32 0.5, %v2474_v63  ;;  %v3875_v47 = vmul.f32 0.70710677, %v11903_v19 }
 0x1e2   : > { %v10798_v4 = vpop.eup %10797  ;;  %v4295_v6 = vadd.f32 1.0, %v10796_v49  ;;  %10813 = verf.f32 %v3863_v21  ;;  %v3876_v21 = vmul.f32 0.70710677, %v11907_v33 }
 0x1e3   : > { %v2222_v1 = vpop.f32.mrb[8].mxu0  ;;  %v11923_v43 = vpop.f32.mrb[8].mxu1  ;;  %v4305_v58 = vadd.f32 1.0, %v10798_v4  ;;  %14844 = vst [vmem:[#allocation29_spill] sm:$0xff] %v11932_v34  ;;  %10815 = verf.f32 %v3873_v59  ;;  %v4521_v4 = vmul.f32 %v4293_v60, %v3609_v28  ;;  %v11952_v59 = vmul.f32 0.5, %v11899_v11 }
 0x1e4   : > { %v11928_v54 = vpop.f32.mrb[9].mxu0  ;;  %v11930_v15 = vpop.f32.mrb[9].mxu1  ;;  %v3885_v31 = vmul.f32 0.70710677, %v2222_v1  ;;  %10817 = verf.f32 %v3874_v41  ;;  %v4523_v18 = vmul.f32 %v4295_v6, %v3611_v42  ;;  %v3887_v28 = vmul.f32 0.70710677, %v11923_v43 }
 0x1e5   : > { %v10800_v35 = vpop.eup %10799  ;;  %v11934_v46 = vpop.f32.mrb[10].mxu0  ;;  %v4533_v63 = vmul.f32 %v4305_v58, %v3621_v57  ;;  %10819 = verf.f32 %v3864_v44  ;;  %14846 = vst [vmem:[#allocation31_spill] sm:$0xff] %v11952_v59  ;;  %v3888_v60 = vmul.f32 0.70710677, %v11930_v15  ;;  %v11961_v6 = vmul.f32 0.5, %v11901_v14 }
 0x1e6   : > { %v11936_v27 = vpop.f32.mrb[10].mxu1  ;;  %v4307_v49 = vadd.f32 1.0, %v10800_v35  ;;  %v11941_v5 = vpop.f32.mrb[11].mxu0  ;;  %v3886_v35 = vmul.f32 0.70710677, %v11928_v54  ;;  %10821 = verf.f32 %v3885_v31  ;;  %v11964_v11 = vmul.f32 0.5, %v11903_v19 }
 0x1e7   : > { %v11943_v55 = vpop.f32.mrb[11].mxu1  ;;  %v10802_v39 = vpop.eup %10801  ;;  %v11949_v7 = vpack.c.bf16 %v4533_v63, %v4521_v4  ;;  %10823 = verf.f32 %v3875_v47  ;;  %v3897_v44 = vmul.f32 0.70710677, %v11934_v46  ;;  %v11974_v31 = vmul.f32 0.5, %v11905_v20 }
 0x1e8   : > { %v4535_v0 = vmul.f32 %v4307_v49, %v3623_v26  ;;  %2815 = vmatmul.mubr.bf16.gmra.mrb[76].mxu0 %v11821_v48  ;;  %3077 = vmatmul.mubr.bf16.gmra.mrb[76].mxu1 %v11821_v48  ;;  %v10804_v42 = vpop.eup %10803  ;;  %v4294_v57 = vadd.f32 1.0, %v10802_v39  ;;  %14848 = vst [vmem:[#allocation33_spill] sm:$0xff] %v11964_v11  ;;  %10825 = verf.f32 %v3876_v21  ;;  %v10361_v39 = vld [vmem:[#allocation5 + $0x628] ss:$48 sps:$4 sm:$0xff]   ;;  %v11977_v14 = vmul.f32 0.5, %v11907_v33 }
 0x1e9   : > { %14845 = vst [vmem:[#allocation30_spill] sm:$0xff] %v11949_v7  ;;  %3117 = vmatprep.mubr.bf16.mxu0 %v11630_v51  ;;  %3379 = vmatprep.mubr.bf16.mxu1 %v11630_v51  ;;  %v10806_v41 = vpop.eup %10805  ;;  %10827 = verf.f32 %v3886_v35  ;;  %v3899_v19 = vmul.f32 0.70710677, %v11936_v27  ;;  %v4306_v4 = vadd.f32 1.0, %v10804_v42  ;;  %v11984_v63 = vmul.f32 0.5, %v2222_v1 }
 0x1ea   : > { %v11957_v26 = vpack.c.bf16 %v4535_v0, %v4523_v18  ;;  %v10364_v0 = vld [vmem:[#allocation5 + $0x620] ss:$48 sps:$4 sm:$0xff]   ;;  %v11971_v18 = vpop.eup %10807  ;;  %14849 = vst [vmem:[#allocation34_spill] sm:$0xff] %v11977_v14  ;;  %10829 = verf.f32 %v3887_v28  ;;  %v3898_v21 = vmul.f32 0.70710677, %v11941_v5  ;;  %v11992_v35 = vmul.f32 %v4294_v57, %v11909_v45 }
 0x1eb   : > { %v11967_v58 = vpop.f32.mrb[12].mxu0  ;;  %v11969_v51 = vpop.f32.mrb[12].mxu1  ;;  %v10369_v7 = vld [vmem:[#allocation5 + $0x68c] ss:$48 sps:$4 sm:$0xff]   ;;  %v4317_v48 = vadd.f32 1.0, %v10806_v41  ;;  %10831 = verf.f32 %v3888_v60  ;;  %v12000_v28 = vmul.f32 0.5, %v11923_v43 }
 0x1ec   : > { %14847 = vst [vmem:[#allocation32_spill] sm:$0xff] %v11957_v26  ;;  %v11980_v49 = vpop.f32.mrb[13].mxu0  ;;  %v11982_v47 = vpop.eup %10809  ;;  %v3900_v50 = vmul.f32 0.70710677, %v11943_v55  ;;  %v10372_v1 = vld [vmem:[#allocation5 + $0x684] ss:$48 sps:$4 sm:$0xff]   ;;  %10833 = verf.f32 %v3897_v44 }
 0x1ed   : > { %v11987_v26 = vpop.f32.mrb[13].mxu1  ;;  %v11989_v20 = vpop.f32.mrb[14].mxu0  ;;  %14851 = vst [vmem:[#allocation36_spill] sm:$0xff] %v12000_v28  ;;  %v12003_v32 = vmul.f32 0.5, %v11928_v54  ;;  %v3909_v30 = vmul.f32 0.70710677, %v11967_v58  ;;  %10835 = verf.f32 %v3899_v19  ;;  %v12020_v28 = vmul.f32 %v4306_v4, %v11917_v36 }
 0x1ee   : > { %v10812_v33 = vpop.eup %10811  ;;  %v11995_v40 = vpop.f32.mrb[14].mxu1  ;;  %v10367_v60 = vld [vmem:[#allocation5 + $0x688] ss:$48 sps:$4 sm:$0xff]   ;;  %v12011_v29 = vmul.f32 0.5, %v11930_v15  ;;  %v12014_v11 = vmul.f32 0.5, %v11934_v46  ;;  %10837 = verf.f32 %v3898_v21  ;;  %v12026_v19 = vmul.f32 %v4317_v48, %v11925_v13 }
 0x1ef   : > { %v11997_v42 = vpop.eup %10813  ;;  %v12006_v45 = vpop.f32.mrb[15].mxu0  ;;  %v3911_v43 = vmul.f32 0.70710677, %v11969_v51  ;;  %v10370_v54 = vld [vmem:[#allocation5 + $0x680] ss:$48 sps:$4 sm:$0xff]   ;;  %v4318_v34 = vadd.f32 1.0, %v10812_v33  ;;  %10839 = verf.f32 %v3900_v50 }
 0x1f0   : > { %14850 = vst [vmem:[#allocation35_spill] sm:$0xff] %v11997_v42  ;;  %v12008_v57 = vpop.f32.mrb[15].mxu1  ;;  %v10816_v41 = vpop.eup %10815  ;;  %14852 = vst [vmem:[#allocation37_spill] sm:$0xff] %v12011_v29  ;;  %3118 = vmatmul.mubr.bf16.vlgmr.msra.gmra.mrb[80].mxu0 %v11638_v9  ;;  %3380 = vmatmul.mubr.bf16.vlgmr.msra.gmra.mrb[80].mxu1 %v11638_v9  ;;  %v3910_v15 = vmul.f32 0.70710677, %v11980_v49  ;;  %v12029_v14 = vmul.f32 0.5, %v11936_v27  ;;  %10841 = verf.f32 %v3909_v30 }
 0x1f1   : > { %v10818_v44 = vpop.eup %10817  ;;  %3479 = vmatpush1.bf16.msra.mxu1 %v10361_v39  ;;  %3217 = vmatpush1.bf16.msra.mxu0 %v10364_v0  ;;  %v10375_v46 = vld [vmem:[#allocation5 + $0x6ec] ss:$48 sps:$4 sm:$0xff]   ;;  %v3912_v9 = vmul.f32 0.70710677, %v11987_v26  ;;  %v10378_v36 = vld [vmem:[#allocation5 + $0x6e4] ss:$48 sps:$4 sm:$0xff]   ;;  %10843 = verf.f32 %v3911_v43 }
 0x1f2   : > { %v12023_v29 = vpop.eup %10819  ;;  %14854 = vst [vmem:[#allocation39_spill] sm:$0xff] %v12029_v14  ;;  %3127 = vmatprep.mubr.bf16.mxu0 %v11640_v12  ;;  %3389 = vmatprep.mubr.bf16.mxu1 %v11640_v12  ;;  %v4329_v39 = vadd.f32 1.0, %v10816_v41  ;;  %v12035_v0 = vmul.f32 0.5, %v11941_v5  ;;  %v3921_v48 = vmul.f32 0.70710677, %v11989_v20  ;;  %v4330_v21 = vadd.f32 1.0, %v10818_v44 }
 0x1f3   : > { %14853 = vst [vmem:[#allocation38_spill] sm:$0xff] %v12023_v29  ;;  %v10822_v4 = vpop.eup %10821  ;;  %v12038_v13 = vpop.f32.mrb[16].mxu0  ;;  %3480 = vmatprep.subr.bf16.mxu1 %v10369_v7  ;;  %3218 = vmatprep.subr.bf16.mxu0 %v10372_v1  ;;  %v12045_v12 = vmul.f32 0.5, %v11943_v55  ;;  %v3923_v33 = vmul.f32 0.70710677, %v11995_v40  ;;  %v12055_v7 = vmul.f32 %v4318_v34, %v11938_v62  ;;  %v12058_v1 = vmul.f32 0.5, %v11967_v58 }
 0x1f4   : > { %v12040_v27 = vpop.f32.mrb[16].mxu1  ;;  %v12042_v50 = vpop.eup %10823  ;;  %v10373_v41 = vld [vmem:[#allocation5 + $0x6e8] ss:$48 sps:$4 sm:$0xff]   ;;  %v10376_v14 = vld [vmem:[#allocation5 + $0x6e0] ss:$48 sps:$4 sm:$0xff]   ;;  %10845 = verf.f32 %v3910_v15  ;;  %v4341_v25 = vadd.f32 1.0, %v10822_v4 }
 0x1f5   : > { %14855 = vst [vmem:[#allocation40_spill] sm:$0xff] %v12042_v50  ;;  %14856 = vst [vmem:[#allocation41_spill] sm:$0xff] %v12045_v12  ;;  %v12048_v5 = vpop.f32.mrb[17].mxu0  ;;  %v12050_v30 = vpop.f32.mrb[17].mxu1  ;;  %v3922_v55 = vmul.f32 0.70710677, %v12006_v45  ;;  %3481 = vmatpush1.bf16.msra.mxu1 %v10367_v60  ;;  %3219 = vmatpush1.bf16.msra.mxu0 %v10370_v54  ;;  %10847 = verf.f32 %v3912_v9  ;;  %v12076_v60 = vmul.f32 %v4329_v39, %v11961_v6 }
 0x1f6   : > { %v12052_v59 = vpop.eup %10825  ;;  %v12061_v43 = vpop.f32.mrb[18].mxu0  ;;  %v10381_v12 = vld [vmem:[#allocation5 + $0x74c] ss:$48 sps:$4 sm:$0xff]   ;;  %v12066_v42 = vmul.f32 0.5, %v11969_v51  ;;  %v3924_v34 = vmul.f32 0.70710677, %v12008_v57  ;;  %3482 = vmatprep.subr.bf16.mxu1 %v10375_v46  ;;  %3220 = vmatprep.subr.bf16.mxu0 %v10378_v36  ;;  %10849 = verf.f32 %v3921_v48 }
 0x1f7   : > { %14857 = vst [vmem:[#allocation42_spill] sm:$0xff] %v12052_v59  ;;  %v12063_v44 = vpop.f32.mrb[18].mxu1  ;;  %v10828_v50 = vpop.eup %10827  ;;  %v12079_v54 = vmul.f32 0.5, %v11980_v49  ;;  %v3933_v51 = vmul.f32 0.70710677, %v12038_v13  ;;  %v12088_v46 = vmul.f32 0.5, %v11987_v26  ;;  %10851 = verf.f32 %v3923_v33 }
 0x1f8   : > { %14858 = vst [vmem:[#allocation43_spill] sm:$0xff] %v12066_v42  ;;  %v12069_v62 = vpop.f32.mrb[19].mxu0  ;;  %v12071_v58 = vpop.f32.mrb[19].mxu1  ;;  %v10384_v9 = vld [vmem:[#allocation5 + $0x744] ss:$48 sps:$4 sm:$0xff]   ;;  %v12085_v42 = vmul.f32 %v4330_v21, %v11974_v31  ;;  %3128 = vmatmul.mubr.bf16.gmra.mrb[84].mxu0 %v11650_v23  ;;  %3390 = vmatmul.mubr.bf16.gmra.mrb[84].mxu1 %v11650_v23  ;;  %v4342_v48 = vadd.f32 1.0, %v10828_v50  ;;  %10853 = verf.f32 %v3922_v55  ;;  %v12102_v33 = vmul.f32 %v4341_v25, %v11984_v63 }
 0x1f9   : > { %v12073_v15 = vpop.eup %10829  ;;  %14861 = vst [vmem:[#allocation46_spill] sm:$0xff] %v12088_v46  ;;  %v3935_v36 = vmul.f32 0.70710677, %v12040_v27  ;;  %v10379_v6 = vld [vmem:[#allocation5 + $0x748] ss:$48 sps:$4 sm:$0xff]   ;;  %3137 = vmatprep.mubr.bf16.mxu0 %v11652_v24  ;;  %3399 = vmatprep.mubr.bf16.mxu1 %v11652_v24  ;;  %v12105_v23 = vmul.f32 0.5, %v11995_v40  ;;  %10855 = verf.f32 %v3924_v34 }
 0x1fa   : > { %14859 = vst [vmem:[#allocation44_spill] sm:$0xff] %v12073_v15  ;;  %v12082_v4 = vpop.eup %10831  ;;  %v10382_v49 = vld [vmem:[#allocation5 + $0x740] ss:$48 sps:$4 sm:$0xff]   ;;  %v12094_v15 = vmul.f32 0.5, %v11989_v20  ;;  %v3934_v31 = vmul.f32 0.70710677, %v12048_v5  ;;  %3483 = vmatpush1.bf16.msra.mxu1 %v10373_v41  ;;  %3221 = vmatpush1.bf16.msra.mxu0 %v10376_v14  ;;  %10857 = verf.f32 %v3933_v51 }
 0x1fb   : > { %14860 = vst [vmem:[#allocation45_spill] sm:$0xff] %v12082_v4  ;;  %v10834_v39 = vpop.eup %10833  ;;  %v10387_v26 = vld [vmem:[#allocation5 + $0x7ac] ss:$48 sps:$4 sm:$0xff]   ;;  %14863 = vst [vmem:[#allocation48_spill] sm:$0xff] %v12105_v23  ;;  %v3936_v20 = vmul.f32 0.70710677, %v12050_v30  ;;  %3484 = vmatprep.subr.bf16.mxu1 %v10381_v12  ;;  %3222 = vmatprep.subr.bf16.mxu0 %v10384_v9  ;;  %10859 = verf.f32 %v3935_v36 }
 0x1fc   : > { %v12099_v21 = vpop.eup %10835  ;;  %v10390_v50 = vld [vmem:[#allocation5 + $0x7a4] ss:$48 sps:$4 sm:$0xff]   ;;  %v12109_v46 = vmul.f32 0.5, %v12006_v45  ;;  %v12112_v24 = vmul.f32 0.5, %v12008_v57  ;;  %v3945_v25 = vmul.f32 0.70710677, %v12061_v43  ;;  %10861 = verf.f32 %v3934_v31 }
 0x1fd   : > { %14862 = vst [vmem:[#allocation47_spill] sm:$0xff] %v12099_v21  ;;  %v10838_v55 = vpop.eup %10837  ;;  %v12115_v63 = vpop.f32.mrb[20].mxu0  ;;  %v4353_v14 = vadd.f32 1.0, %v10834_v39  ;;  %v12122_v41 = vmul.f32 0.5, %v12038_v13  ;;  %v3947_v45 = vmul.f32 0.70710677, %v12063_v44  ;;  %v12128_v21 = vmul.f32 %v4342_v48, %v12003_v32 }
 0x1fe   : > { %14864 = vst [vmem:[#allocation49_spill] sm:$0xff] %v12112_v24  ;;  %v12117_v40 = vpop.f32.mrb[20].mxu1  ;;  %v12119_v34 = vpop.eup %10839  ;;  %v10385_v51 = vld [vmem:[#allocation5 + $0x7a8] ss:$48 sps:$4 sm:$0xff]   ;;  %v10388_v23 = vld [vmem:[#allocation5 + $0x7a0] ss:$48 sps:$4 sm:$0xff]   ;;  %10863 = verf.f32 %v3936_v20  ;;  %3485 = vmatpush1.bf16.msra.mxu1 %v10379_v6  ;;  %3223 = vmatpush1.bf16.msra.mxu0 %v10382_v49 }
 0x1ff   : > { %14865 = vst [vmem:[#allocation50_spill] sm:$0xff] %v12119_v34  ;;  %v12125_v57 = vpop.f32.mrb[21].mxu0  ;;  %v10842_v24 = vpop.eup %10841  ;;  %v12131_v12 = vmul.f32 0.5, %v12040_v27  ;;  %v3946_v9 = vmul.f32 0.70710677, %v12069_v62  ;;  %v4354_v59 = vadd.f32 1.0, %v10838_v55  ;;  %10865 = verf.f32 %v3945_v25  ;;  %3486 = vmatprep.subr.bf16.mxu1 %v10387_v26  ;;  %3224 = vmatprep.subr.bf16.mxu0 %v10390_v50 }
 0x200   : > { %v12134_v39 = vpop.f32.mrb[21].mxu1  ;;  %v12136_v13 = vpop.f32.mrb[22].mxu0  ;;  %v10393_v36 = vld [vmem:[#allocation5 + $0x80c] ss:$48 sps:$4 sm:$0xff]   ;;  %v10396_v34 = vld [vmem:[#allocation5 + $0x804] ss:$48 sps:$4 sm:$0xff]   ;;  %v12160_v6 = vmul.f32 %v4353_v14, %v12014_v11  ;;  %10867 = verf.f32 %v3947_v45  ;;  %3138 = vmatmul.mubr.bf16.gmra.mrb[88].mxu0 %v11662_v37  ;;  %3400 = vmatmul.mubr.bf16.gmra.mrb[88].mxu1 %v11662_v37 }
 0x201   : > { %14866 = vst [vmem:[#allocation51_spill] sm:$0xff] %v12131_v12  ;;  %v12138_v4 = vpop.eup %10843  ;;  %v12141_v61 = vmul.f32 0.5, %v12048_v5  ;;  %v3948_v32 = vmul.f32 0.70710677, %v12071_v58  ;;  %v12144_v27 = vpop.f32.mrb[22].mxu1  ;;  %v12147_v31 = vmul.f32 0.5, %v12050_v30  ;;  %10869 = verf.f32 %v3946_v9  ;;  %3147 = vmatprep.mubr.bf16.mxu0 %v11664_v38  ;;  %3409 = vmatprep.mubr.bf16.mxu1 %v11664_v38 }
 0x202   : > { %14867 = vst [vmem:[#allocation52_spill] sm:$0xff] %v12138_v4  ;;  %v10846_v48 = vpop.eup %10845  ;;  %v12150_v12 = vmul.f32 0.5, %v12061_v43  ;;  %v3957_v55 = vmul.f32 0.70710677, %v12115_v63  ;;  %v12153_v4 = vpop.f32.mrb[23].mxu0  ;;  %v4365_v49 = vadd.f32 1.0, %v10842_v24  ;;  %v12177_v37 = vmul.f32 %v4354_v59, %v12035_v0  ;;  %3487 = vmatpush1.bf16.msra.mxu1 %v10385_v51  ;;  %3225 = vmatpush1.bf16.msra.mxu0 %v10388_v23 }
 0x203   : > { %14868 = vst [vmem:[#allocation53_spill] sm:$0xff] %v12147_v31  ;;  %v12155_v5 = vpop.f32.mrb[23].mxu1  ;;  %v12157_v20 = vpop.eup %10847  ;;  %v3959_v30 = vmul.f32 0.70710677, %v12117_v40  ;;  %v10391_v43 = vld [vmem:[#allocation5 + $0x808] ss:$48 sps:$4 sm:$0xff]   ;;  %10871 = verf.f32 %v3948_v32  ;;  %3488 = vmatprep.subr.bf16.mxu1 %v10393_v36  ;;  %3226 = vmatprep.subr.bf16.mxu0 %v10396_v34 }
 0x204   : > { %14869 = vst [vmem:[#allocation54_spill] sm:$0xff] %v12157_v20  ;;  %v10394_v25 = vld [vmem:[#allocation5 + $0x800] ss:$48 sps:$4 sm:$0xff]   ;;  %v10850_v31 = vpop.eup %10849  ;;  %v12166_v56 = vmul.f32 0.5, %v12063_v44  ;;  %v12169_v26 = vmul.f32 0.5, %v12069_v62  ;;  %v4366_v14 = vadd.f32 1.0, %v10846_v48  ;;  %10873 = verf.f32 %v3957_v55 }
 0x205   : > { %v3958_v11 = vmul.f32 0.70710677, %v12125_v57  ;;  %v10399_v50 = vld [vmem:[#allocation5 + $0x86c] ss:$48 sps:$4 sm:$0xff]   ;;  %v12174_v24 = vpop.eup %10851  ;;  %v3960_v44 = vmul.f32 0.70710677, %v12134_v39  ;;  %v12194_v23 = vmul.f32 %v4365_v49, %v12058_v1  ;;  %10875 = verf.f32 %v3959_v30 }
 0x206   : > { %14870 = vst [vmem:[#allocation55_spill] sm:$0xff] %v12166_v56  ;;  %14871 = vst [vmem:[#allocation56_spill] sm:$0xff] %v12174_v24  ;;  %v10402_v62 = vld [vmem:[#allocation5 + $0x864] ss:$48 sps:$4 sm:$0xff]   ;;  %v10854_v45 = vpop.eup %10853  ;;  %v12181_v9 = vmul.f32 0.5, %v12071_v58  ;;  %v12184_v56 = vmul.f32 0.5, %v12115_v63  ;;  %3489 = vmatpush1.bf16.msra.mxu1 %v10391_v43  ;;  %3227 = vmatpush1.bf16.msra.mxu0 %v10394_v25 }
 0x207   : > { %v3969_v38 = vmul.f32 0.70710677, %v12136_v13  ;;  %v12187_v24 = vpop.f32.mrb[24].mxu0  ;;  %v12189_v59 = vpop.f32.mrb[24].mxu1  ;;  %v4377_v51 = vadd.f32 1.0, %v10850_v31  ;;  %v12203_v36 = vmul.f32 0.5, %v12125_v57  ;;  %10877 = verf.f32 %v3958_v11  ;;  %3490 = vmatprep.subr.bf16.mxu1 %v10399_v50  ;;  %3228 = vmatprep.subr.bf16.mxu0 %v10402_v62 }
 0x208   : > { %14872 = vst [vmem:[#allocation57_spill] sm:$0xff] %v12181_v9  ;;  %v12191_v0 = vpop.eup %10855  ;;  %v3971_v58 = vmul.f32 0.70710677, %v12144_v27  ;;  %v12197_v63 = vpop.f32.mrb[25].mxu0  ;;  %v10397_v32 = vld [vmem:[#allocation5 + $0x868] ss:$48 sps:$4 sm:$0xff]   ;;  %10879 = verf.f32 %v3960_v44  ;;  %3148 = vmatmul.mubr.bf16.gmra.mrb[92].mxu0 %v11674_v52  ;;  %3410 = vmatmul.mubr.bf16.gmra.mrb[92].mxu1 %v11674_v52 }
 0x209   : > { %14873 = vst [vmem:[#allocation58_spill] sm:$0xff] %v12191_v0  ;;  %v10400_v48 = vld [vmem:[#allocation5 + $0x860] ss:$48 sps:$4 sm:$0xff]   ;;  %v10858_v55 = vpop.eup %10857  ;;  %v12200_v9 = vmul.f32 0.5, %v12117_v40  ;;  %v3970_v34 = vmul.f32 0.70710677, %v12153_v4  ;;  %v12213_v0 = vmul.f32 %v4366_v14, %v12079_v54  ;;  %10881 = verf.f32 %v3969_v38  ;;  %3157 = vmatprep.mubr.bf16.mxu0 %v11676_v53  ;;  %3419 = vmatprep.mubr.bf16.mxu1 %v11676_v53 }
 0x20a   : > { %v12206_v1 = vpop.f32.mrb[25].mxu1  ;;  %v12208_v31 = vpop.f32.mrb[26].mxu0  ;;  %v10405_v49 = vld [vmem:[#allocation5 + $0x8cc] ss:$48 sps:$4 sm:$0xff]   ;;  %v4378_v20 = vadd.f32 1.0, %v10854_v45  ;;  %v12219_v22 = vmul.f32 0.5, %v12134_v39  ;;  %v12232_v43 = vmul.f32 %v4377_v51, %v12094_v15  ;;  %10883 = verf.f32 %v3971_v58  ;;  %3491 = vmatpush1.bf16.msra.mxu1 %v10397_v32  ;;  %3229 = vmatpush1.bf16.msra.mxu0 %v10400_v48 }
 0x20b   : > { %14874 = vst [vmem:[#allocation59_spill] sm:$0xff] %v12200_v9  ;;  %v12210_v30 = vpop.eup %10859  ;;  %v3972_v40 = vmul.f32 0.70710677, %v12155_v5  ;;  %v12216_v9 = vpop.f32.mrb[26].mxu1  ;;  %v10408_v57 = vld [vmem:[#allocation5 + $0x8c4] ss:$48 sps:$4 sm:$0xff]   ;;  %10885 = verf.f32 %v3970_v34  ;;  %3492 = vmatprep.subr.bf16.mxu1 %v10405_v49 }
 0x20c   : > { %14875 = vst [vmem:[#allocation60_spill] sm:$0xff] %v12210_v30  ;;  %v10862_v11 = vpop.eup %10861  ;;  %14876 = vst [vmem:[#allocation61_spill] sm:$0xff] %v12219_v22  ;;  %v12222_v29 = vmul.f32 0.5, %v12136_v13  ;;  %v3981_v54 = vmul.f32 0.70710677, %v12187_v24  ;;  %v12225_v14 = vpop.f32.mrb[27].mxu0  ;;  %v12249_v52 = vmul.f32 %v4378_v20, %v12109_v46  ;;  %3230 = vmatprep.subr.bf16.mxu0 %v10408_v57 }
 0x20d   : > { %v12227_v44 = vpop.f32.mrb[27].mxu1  ;;  %v12229_v45 = vpop.eup %10863  ;;  %v4389_v25 = vadd.f32 1.0, %v10858_v55  ;;  %v3983_v39 = vmul.f32 0.70710677, %v12189_v59  ;;  %v10403_v13 = vld [vmem:[#allocation5 + $0x8c8] ss:$48 sps:$4 sm:$0xff]   ;;  %10887 = verf.f32 %v3972_v40 }
 0x20e   : > { %v10406_v38 = vld [vmem:[#allocation5 + $0x8c0] ss:$48 sps:$4 sm:$0xff]   ;;  %v10866_v22 = vpop.eup %10865  ;;  %v12238_v30 = vmul.f32 0.5, %v12144_v27  ;;  %v12241_v50 = vmul.f32 0.5, %v12153_v4  ;;  %v3982_v15 = vmul.f32 0.70710677, %v12197_v63  ;;  %10889 = verf.f32 %v3981_v54  ;;  %3493 = vmatpush1.bf16.msra.mxu1 %v10403_v13 }
 0x20f   : > { %v10409_v62 = vld [vmem:[#allocation7 + $0xc8] ss:$12 sps:$4 sm:$0xff]   ;;  %v12246_v51 = vpop.eup %10867  ;;  %v4390_v58 = vadd.f32 1.0, %v10862_v11  ;;  %v3993_v27 = vmul.f32 0.70710677, %v12208_v31  ;;  %v12253_v34 = vmul.f32 0.5, %v12155_v5  ;;  %v12264_v32 = vmul.f32 %v4389_v25, %v12122_v41  ;;  %3231 = vmatpush1.bf16.msra.mxu0 %v10406_v38 }
 0x210   : > { %14877 = vst [vmem:[#allocation62_spill] sm:$0xff] %v12238_v30  ;;  %14878 = vst [vmem:[#allocation63_spill] sm:$0xff] %v12246_v51  ;;  %v10413_v4 = vld [vmem:[#allocation7 + $0x4] ss:$12 sps:$4 sm:$0xff]   ;;  %v10870_v55 = vpop.eup %10869  ;;  %v12256_v30 = vmul.f32 0.5, %v12187_v24  ;;  %v2272_v51 = vpop.f32.mrb[28].mxu0  ;;  %10891 = verf.f32 %v3983_v39  ;;  %8999 = vmatprep.subr.bf16.mxu1 %v10409_v62  ;;  %3158 = vmatmul.mubr.bf16.gmra.mrb[96].mxu0 %v11686_v2 }
 0x211   : > { %14879 = vst [vmem:[#allocation64_spill] sm:$0xff] %v12253_v34  ;;  %v3994_v53 = vmul.f32 0.70710677, %v12225_v14  ;;  %v12259_v46 = vpop.f32.mrb[28].mxu1  ;;  %v12261_v20 = vpop.eup %10871  ;;  %v4401_v48 = vadd.f32 1.0, %v10866_v22  ;;  %v12267_v24 = vmul.f32 0.5, %v12189_v59  ;;  %10893 = verf.f32 %v3982_v15  ;;  %6789 = vmatprep.subr.bf16.mxu0 %v10413_v4  ;;  %3420 = vmatmul.mubr.bf16.gmra.mrb[96].mxu1 %v11686_v2 }
 0x212   : > { %14880 = vst [vmem:[#allocation65_spill] sm:$0xff] %v12261_v20  ;;  %v4005_v5 = vmul.f32 0.70710677, %v2272_v51  ;;  %v2274_v40 = vpop.f32.mrb[29].mxu0  ;;  %v10874_v11 = vpop.eup %10873  ;;  %v12270_v54 = vmul.f32 0.5, %v12197_v63  ;;  %v12280_v22 = vmul.f32 %v4390_v58, %v12141_v61  ;;  %v4402_v25 = vadd.f32 1.0, %v10870_v55  ;;  %3167 = vmatprep.mubr.bf16.mxu0 %v11688_v3  ;;  %3429 = vmatprep.mubr.bf16.mxu1 %v11688_v3 }
 0x213   : > { %14881 = vst [vmem:[#allocation66_spill] sm:$0xff] %v12267_v24  ;;  %v3984_v49 = vmul.f32 0.70710677, %v12206_v1  ;;  %v12273_v57 = vpop.f32.mrb[29].mxu1  ;;  %v12275_v34 = vpop.f32.mrb[30].mxu0  ;;  %10895 = verf.f32 %v3993_v27  ;;  %v12285_v15 = vmul.f32 0.5, %v12206_v1  ;;  %v12298_v13 = vmul.f32 %v4401_v48, %v12150_v12 }
 0x214   : > { %v12277_v41 = vpop.eup %10875  ;;  %v4006_v39 = vmul.f32 0.70710677, %v2274_v40  ;;  %v12282_v59 = vpop.f32.mrb[30].mxu1  ;;  %v12288_v24 = vmul.f32 0.5, %v12208_v31  ;;  %v3995_v20 = vmul.f32 0.70710677, %v12216_v9  ;;  %10897 = verf.f32 %v3994_v53 }
 0x215   : > { %14882 = vst [vmem:[#allocation67_spill] sm:$0xff] %v12277_v41  ;;  %v10878_v63 = vpop.eup %10877  ;;  %14883 = vst [vmem:[#allocation68_spill] sm:$0xff] %v12285_v15  ;;  %v12291_v41 = vpop.f32.mrb[31].mxu0  ;;  %v4413_v38 = vadd.f32 1.0, %v10874_v11  ;;  %10899 = verf.f32 %v4005_v5  ;;  %v4017_v1 = vmul.f32 0.70710677, %v12275_v34  ;;  %v12315_v55 = vmul.f32 %v4402_v25, %v12169_v26 }
 0x216   : > { %v12293_v61 = vpop.f32.mrb[31].mxu1  ;;  %v12295_v58 = vpop.eup %10879  ;;  %10901 = verf.f32 %v3984_v49  ;;  %v12304_v27 = vmul.f32 0.5, %v12216_v9  ;;  %v12307_v62 = vmul.f32 0.5, %v12225_v14  ;;  %v3996_v4 = vmul.f32 0.70710677, %v12227_v44 }
 0x217   : > { %14884 = vst [vmem:[#allocation69_spill] sm:$0xff] %v12295_v58  ;;  %v10882_v31 = vpop.eup %10881  ;;  %v4414_v2 = vadd.f32 1.0, %v10878_v63  ;;  %10903 = verf.f32 %v4006_v39  ;;  %v4018_v53 = vmul.f32 0.70710677, %v12291_v41  ;;  %v12319_v14 = vmul.f32 0.5, %v12227_v44  ;;  %v2282_v11 = vpop.f32.mrb[32].mxu0 }
 0x218   : > { %14885 = vst [vmem:[#allocation70_spill] sm:$0xff] %v12304_v27  ;;  %v12312_v12 = vpop.eup %10883  ;;  %10905 = verf.f32 %v3995_v20  ;;  %v12321_v48 = vmul.f32 0.5, %v2272_v51  ;;  %v4007_v5 = vmul.f32 0.70710677, %v12259_v46  ;;  %v2544_v3 = vpop.f32.mrb[32].mxu1  ;;  %v12327_v26 = vmul.f32 %v4413_v38, %v12184_v56  ;;  %3168 = vmatmul.mubr.bf16.gmra.mrb[100].mxu0 %v11698_v8 }
 0x219   : > { %14886 = vst [vmem:[#allocation71_spill] sm:$0xff] %v12312_v12  ;;  %v10886_v9 = vpop.eup %10885  ;;  %14887 = vst [vmem:[#allocation72_spill] sm:$0xff] %v12319_v14  ;;  %v4425_v25 = vadd.f32 1.0, %v10882_v31  ;;  %10907 = verf.f32 %v4017_v1  ;;  %v4029_v39 = vmul.f32 0.70710677, %v2282_v11  ;;  %v2284_v63 = vpop.f32.mrb[33].mxu0  ;;  %v12338_v56 = vmul.f32 %v4414_v2, %v12203_v36  ;;  %3430 = vmatmul.mubr.bf16.gmra.mrb[100].mxu1 %v11698_v8  ;;  %3177 = vmatprep.mubr.bf16.mxu0 %v11700_v10 }
 0x21a   : > { %v12324_v49 = vpop.eup %10887  ;;  %10909 = verf.f32 %v3996_v4  ;;  %v12330_v44 = vmul.f32 0.5, %v12259_v46  ;;  %v12332_v51 = vmul.f32 0.5, %v2274_v40  ;;  %v4008_v20 = vmul.f32 0.70710677, %v12273_v57  ;;  %v2546_v14 = vpop.f32.mrb[33].mxu1  ;;  %3439 = vmatprep.mubr.bf16.mxu1 %v11700_v10 }
 0x21b   : > { %14888 = vst [vmem:[#allocation73_spill] sm:$0xff] %v12324_v49  ;;  %v10890_v27 = vpop.eup %10889  ;;  %v2286_v15 = vpop.f32.mrb[34].mxu0  ;;  %v4426_v38 = vadd.f32 1.0, %v10886_v9  ;;  %10911 = verf.f32 %v4018_v53  ;;  %v4030_v1 = vmul.f32 0.70710677, %v2284_v63  ;;  %v12343_v46 = vmul.f32 0.5, %v12273_v57 }
 0x21c   : > { %14889 = vst [vmem:[#allocation74_spill] sm:$0xff] %v12330_v44  ;;  %v12335_v12 = vpop.eup %10891  ;;  %v12340_v31 = vpop.f32.mrb[34].mxu1  ;;  %10913 = verf.f32 %v4007_v5  ;;  %v12346_v40 = vmul.f32 0.5, %v12275_v34  ;;  %v4019_v44 = vmul.f32 0.70710677, %v12282_v59  ;;  %v12354_v2 = vmul.f32 %v4425_v25, %v12222_v29 }
 0x21d   : > { %14890 = vst [vmem:[#allocation75_spill] sm:$0xff] %v12335_v12  ;;  %v10894_v4 = vpop.eup %10893  ;;  %14891 = vst [vmem:[#allocation76_spill] sm:$0xff] %v12343_v46  ;;  %v12349_v49 = vpop.f32.mrb[35].mxu0  ;;  %v4437_v53 = vadd.f32 1.0, %v10890_v27  ;;  %10915 = verf.f32 %v4029_v39  ;;  %v4041_v9 = vmul.f32 0.70710677, %v2286_v15  ;;  %v12368_v27 = vmul.f32 %v4426_v38, %v12241_v50 }
 0x21e   : > { %v12351_v12 = vpop.f32.mrb[35].mxu1  ;;  %v10896_v36 = vpop.eup %10895  ;;  %10917 = verf.f32 %v4008_v20  ;;  %v12359_v34 = vmul.f32 0.5, %v12282_v59  ;;  %v12362_v5 = vmul.f32 0.5, %v12291_v41  ;;  %v4020_v46 = vmul.f32 0.70710677, %v12293_v61 }
 0x21f   : > { %v10898_v57 = vpop.eup %10897  ;;  %v4438_v25 = vadd.f32 1.0, %v10894_v4  ;;  %10919 = verf.f32 %v4030_v1  ;;  %v4042_v8 = vmul.f32 0.70710677, %v12349_v49  ;;  %v4449_v59 = vadd.f32 1.0, %v10896_v36  ;;  %v12380_v10 = vpop.f32.mrb[36].mxu1 }
 0x220   : > { %14892 = vst [vmem:[#allocation77_spill] sm:$0xff] %v12359_v34  ;;  %v10900_v29 = vpop.eup %10899  ;;  %10921 = verf.f32 %v4019_v44  ;;  %v12374_v41 = vmul.f32 0.5, %v12293_v61  ;;  %v12376_v20 = vmul.f32 0.5, %v2282_v11  ;;  %v12378_v34 = vpop.f32.mrb[36].mxu0  ;;  %14896 = vst [vmem:[#allocation81_spill] sm:$0xff] %v12380_v10  ;;  %v4665_v50 = vmul.f32 %v4437_v53, %v12256_v30  ;;  %3178 = vmatmul.mubr.bf16.gmra.mrb[104].mxu0 %v11710_v16 }
 0x221   : > { %v12371_v39 = vpop.eup %10901  ;;  %14895 = vst [vmem:[#allocation80_spill] sm:$0xff] %v12378_v34  ;;  %v12383_v38 = vmul.f32 0.5, %v2544_v3  ;;  %v4031_v1 = vmul.f32 0.70710677, %v2544_v3  ;;  %10923 = verf.f32 %v4041_v9  ;;  %v12385_v4 = vpop.f32.mrb[37].mxu0  ;;  %v4450_v44 = vadd.f32 1.0, %v10898_v57  ;;  %3440 = vmatmul.mubr.bf16.gmra.mrb[104].mxu1 %v11710_v16  ;;  %3187 = vmatprep.mubr.bf16.mxu0 %v11712_v17 }
 0x222   : > { %14893 = vst [vmem:[#allocation78_spill] sm:$0xff] %v12371_v39  ;;  %14894 = vst [vmem:[#allocation79_spill] sm:$0xff] %v12374_v41  ;;  %v10904_v58 = vpop.eup %10903  ;;  %v4461_v61 = vadd.f32 1.0, %v10900_v29  ;;  %10925 = verf.f32 %v4020_v46  ;;  %v12389_v11 = vmul.f32 0.5, %v2284_v63  ;;  %v12391_v41 = vpop.f32.mrb[37].mxu1  ;;  %v4666_v39 = vmul.f32 %v4438_v25, %v12270_v54  ;;  %3449 = vmatprep.mubr.bf16.mxu1 %v11712_v17 }
 0x223   : > { %14897 = vst [vmem:[#allocation82_spill] sm:$0xff] %v12383_v38  ;;  %14898 = vst [vmem:[#allocation83_spill] sm:$0xff] %v12385_v4  ;;  %v12387_v36 = vpop.eup %10905  ;;  %v2296_v34 = vpop.f32.mrb[38].mxu0  ;;  %v12394_v30 = vmul.f32 0.5, %v2546_v14  ;;  %v12396_v53 = vmul.f32 0.70710677, %v2546_v14  ;;  %10927 = verf.f32 %v4042_v8  ;;  %v4677_v57 = vmul.f32 %v4449_v59, %v12288_v24 }
 0x224   : > { %14899 = vst [vmem:[#allocation84_spill] sm:$0xff] %v12391_v41  ;;  %v10908_v10 = vpop.eup %10907  ;;  %v2558_v3 = vpop.f32.mrb[38].mxu1  ;;  %v4462_v29 = vadd.f32 1.0, %v10904_v58  ;;  %v3813_v63 = vmul.f32 0.5, %v2286_v15  ;;  %10929 = verf.f32 %v4031_v1  ;;  %v12402_v34 = vmul.f32 0.70710677, %v12340_v31 }
 0x225   : > { %v12398_v9 = vpop.eup %10909  ;;  %v4473_v46 = vadd.f32 1.0, %v10908_v10  ;;  %v2297_v4 = vpop.f32.mrb[39].mxu0  ;;  %v12408_v54 = vpack.c.bf16 %v12020_v28, %v11992_v35  ;;  %v12412_v24 = vpack.c.bf16 %v12085_v42, %v12055_v7  ;;  %v4678_v58 = vmul.f32 %v4450_v44, %v12307_v62  ;;  %v14901_v8 = vld [vmem:[#allocation38_spill] sm:$0xff]  ;;  %v14903_v10 = vld [vmem:[#allocation27_spill] sm:$0xff] }
 0x226   : > { %v2559_v38 = vpop.f32.mrb[39].mxu1  ;;  %v10912_v41 = vpop.eup %10911  ;;  %v4689_v14 = vmul.f32 %v4461_v61, %v12321_v48  ;;  %v12422_v16 = vpack.c.bf16 %v12076_v60, %v12026_v19  ;;  %v12427_v42 = vpack.c.bf16 %v12177_v37, %v12128_v21  ;;  %v12431_v7 = vpack.c.bf16 %v12160_v6, %v12102_v33  ;;  %v14905_v1 = vld [vmem:[#allocation42_spill] sm:$0xff]  ;;  %v14906_v4 = vld [vmem:[#allocation35_spill] sm:$0xff] }
 0x227   : > { %v12414_v15 = vpop.eup %10913  ;;  %v4474_v25 = vadd.f32 1.0, %v10912_v41  ;;  %v4701_v28 = vmul.f32 %v4473_v46, %v12346_v40  ;;  %v12435_v62 = vpack.c.bf16 %v12249_v52, %v12213_v0  ;;  %v4690_v19 = vmul.f32 %v4462_v29, %v12332_v51  ;;  %v14902_v41 = vld [vmem:[#allocation12_spill] sm:$0xff] }
 0x228   : > { %v10916_v35 = vpop.eup %10915  ;;  %v12443_v40 = vpack.c.bf16 %v12232_v43, %v12194_v23  ;;  %v12447_v33 = vpack.c.bf16 %v12315_v55, %v12280_v22  ;;  %v12451_v6 = vpack.c.bf16 %v12298_v13, %v12264_v32  ;;  %v12455_v37 = vpack.c.bf16 %v12368_v27, %v12338_v56  ;;  %3188 = vmatmul.mubr.bf16.gmra.mrb[108].mxu0 %v14902_v41  ;;  %v14904_v38 = vld [vmem:[#allocation28_spill] sm:$0xff] }
 0x229   : > { %v12437_v17 = vpop.eup %10917  ;;  %v4702_v60 = vmul.f32 %v4474_v25, %v12362_v5  ;;  %v4485_v48 = vadd.f32 1.0, %v10916_v35  ;;  %v12459_v0 = vpack.c.bf16 %v12354_v2, %v12327_v26  ;;  %v3814_v43 = vmul.f32 0.5, %v12349_v49  ;;  %3450 = vmatmul.mubr.bf16.gmra.mrb[108].mxu1 %v14902_v41  ;;  %v14908_v29 = vld [vmem:[#allocation40_spill] sm:$0xff]  ;;  %v14910_v25 = vld [vmem:[#allocation31_spill] sm:$0xff] }
 0x22a   : > { %v10920_v21 = vpop.eup %10919  ;;  %v12464_v51 = vpack.c.bf16 %v4678_v58, %v4666_v39  ;;  %v12466_v22 = vpack.c.bf16 %v4677_v57, %v4665_v50  ;;  %v12470_v13 = vpack.c.bf16 %v4701_v28, %v4689_v14  ;;  %v4296_v56 = vadd.f32 1.0, %v11971_v18  ;;  %v14907_v57 = vld [vmem:[#allocation13_spill] sm:$0xff]  ;;  %v14911_v28 = vld [vmem:[#allocation34_spill] sm:$0xff] }
 0x22b   : > { %v12461_v52 = vpop.eup %10921  ;;  %v4486_v23 = vadd.f32 1.0, %v10920_v21  ;;  %v12468_v32 = vpack.c.bf16 %v4702_v60, %v4690_v19  ;;  %v4308_v5 = vadd.f32 1.0, %v11982_v47  ;;  %v4713_v2 = vmul.f32 %v4485_v48, %v12376_v20  ;;  %3197 = vmatprep.mubr.bf16.mxu0 %v14907_v57  ;;  %3459 = vmatprep.mubr.bf16.mxu1 %v14907_v57  ;;  %v14912_v60 = vld [vmem:[#allocation45_spill] sm:$0xff] }
 0x22c   : > { %v10924_v55 = vpop.eup %10923  ;;  %14900 = vst [vmem:[#allocation85_spill] sm:$0xff] %v12470_v13  ;;  %v4044_v49 = vmul.f32 0.70710677, %v12351_v12  ;;  %v4320_v39 = vadd.f32 1.0, %v14901_v8  ;;  %v4524_v50 = vmul.f32 %v4296_v56, %v14903_v10  ;;  %v4332_v47 = vadd.f32 1.0, %v14905_v1  ;;  %v14923_v1 = vld [vmem:[#allocation47_spill] sm:$0xff] }
 0x22d   : > { %v12474_v26 = vpop.eup %10925  ;;  %v4497_v27 = vadd.f32 1.0, %v10924_v55  ;;  %v4536_v18 = vmul.f32 %v4308_v5, %v14904_v38  ;;  %v4319_v44 = vadd.f32 1.0, %v14906_v4  ;;  %v4714_v20 = vmul.f32 %v4486_v23, %v12389_v11  ;;  %v14915_v55 = vld [vmem:[#allocation33_spill] sm:$0xff] }
 0x22e   : > { %v10928_v59 = vpop.eup %10927  ;;  %v4331_v46 = vadd.f32 1.0, %v14908_v29  ;;  %v4548_v35 = vmul.f32 %v4320_v39, %v14910_v25  ;;  %v4560_v19 = vmul.f32 %v4332_v47, %v14911_v28  ;;  %v4344_v48 = vadd.f32 1.0, %v14912_v60  ;;  %v14922_v38 = vld [vmem:[#allocation41_spill] sm:$0xff]  ;;  %v14924_v47 = vld [vmem:[#allocation54_spill] sm:$0xff]  ;;  %v14929_v29 = vld [vmem:[#allocation36_spill] sm:$0xff] }
 0x22f   : > { %v4725_v61 = vmul.f32 %v4497_v27, %v3813_v63  ;;  %v4498_v3 = vadd.f32 1.0, %v10928_v59  ;;  %v12489_v58 = vpop.eup %10929  ;;  %v12491_v14 = vpack.c.bf16 %v4536_v18, %v4524_v50  ;;  %v14914_v63 = vld [vmem:[#allocation29_spill] sm:$0xff]  ;;  %10931 = verf.f32 %v12396_v53  ;;  %v14917_v27 = vld [vmem:[#allocation50_spill] sm:$0xff]  ;;  %v14918_v59 = vld [vmem:[#allocation44_spill] sm:$0xff] }
 0x230   : > { %v4547_v23 = vmul.f32 %v4319_v44, %v14914_v63  ;;  %v4559_v56 = vmul.f32 %v4331_v46, %v14915_v55  ;;  %v12501_v5 = vpack.c.bf16 %v4560_v19, %v4548_v35  ;;  %v4356_v8 = vadd.f32 1.0, %v14917_v27  ;;  %v14930_v25 = vld [vmem:[#allocation39_spill] sm:$0xff]  ;;  %v14931_v28 = vld [vmem:[#allocation56_spill] sm:$0xff] }
 0x231   : > { %14909 = vst [vmem:[#allocation38_spill] sm:$0xff] %v12491_v14  ;;  %v4726_v21 = vmul.f32 %v4498_v3, %v3814_v43  ;;  %v12496_v11 = vpack.c.bf16 %v4725_v61, %v4713_v2  ;;  %v4343_v41 = vadd.f32 1.0, %v14918_v59  ;;  %v12506_v39 = vmul.f32 0.5, %v12340_v31  ;;  %v14921_v2 = vld [vmem:[#allocation37_spill] sm:$0xff]  ;;  %v14925_v31 = vld [vmem:[#allocation58_spill] sm:$0xff]  ;;  %v14935_v63 = vld [vmem:[#allocation43_spill] sm:$0xff] }
 0x232   : > { %14916 = vst [vmem:[#allocation27_spill] sm:$0xff] %v12501_v5  ;;  %10933 = verf.f32 %v4044_v49  ;;  %v12510_v43 = vpack.c.bf16 %v4559_v56, %v4547_v23  ;;  %v4572_v50 = vmul.f32 %v4344_v48, %v14921_v2  ;;  %v4584_v18 = vmul.f32 %v4356_v8, %v14922_v38  ;;  %v14926_v49 = vld [vmem:[#allocation52_spill] sm:$0xff]  ;;  %v14927_v3 = vld [vmem:[#allocation14_spill] sm:$0xff]  ;;  %v14934_v48 = vld [vmem:[#allocation49_spill] sm:$0xff] }
 0x233   : > { %14913 = vst [vmem:[#allocation12_spill] sm:$0xff] %v12496_v11  ;;  %v12508_v10 = vpack.c.bf16 %v4726_v21, %v4714_v20  ;;  %v4355_v53 = vadd.f32 1.0, %v14923_v1  ;;  %v4368_v4 = vadd.f32 1.0, %v14924_v47  ;;  %10935 = verf.f32 %v12402_v34  ;;  %3198 = vmatmul.mubr.bf16.gmra.mrb[112].mxu0 %v14927_v3  ;;  %3460 = vmatmul.mubr.bf16.gmra.mrb[112].mxu1 %v14927_v3  ;;  %v14932_v34 = vld [vmem:[#allocation15_spill] sm:$0xff]  ;;  %v14937_v27 = vld [vmem:[#allocation48_spill] sm:$0xff]  ;;  %v14938_v59 = vld [vmem:[#allocation65_spill] sm:$0xff] }
 0x234   : > { %14920 = vst [vmem:[#allocation42_spill] sm:$0xff] %v12510_v43  ;;  %v12518_v44 = vmul.f32 0.5, %v12351_v12  ;;  %v4380_v61 = vadd.f32 1.0, %v14925_v31  ;;  %v4367_v20 = vadd.f32 1.0, %v14926_v49  ;;  %v12524_v57 = vpack.c.bf16 %v4584_v18, %v4572_v50  ;;  %3207 = vmatprep.mubr.bf16.mxu0 %v14932_v34  ;;  %3469 = vmatprep.mubr.bf16.mxu1 %v14932_v34  ;;  %v14933_v12 = vld [vmem:[#allocation46_spill] sm:$0xff]  ;;  %v14939_v2 = vld [vmem:[#allocation60_spill] sm:$0xff] }
 0x235   : > { %14919 = vst [vmem:[#allocation28_spill] sm:$0xff] %v12508_v10  ;;  %v4571_v46 = vmul.f32 %v4343_v41, %v14929_v29  ;;  %v4583_v35 = vmul.f32 %v4355_v53, %v14930_v25  ;;  %v4379_v19 = vadd.f32 1.0, %v14931_v28  ;;  %v4596_v60 = vmul.f32 %v4368_v4, %v14933_v12  ;;  %v14941_v18 = vld [vmem:[#allocation53_spill] sm:$0xff]  ;;  %v14942_v53 = vld [vmem:[#allocation63_spill] sm:$0xff] }
 0x236   : > { %14928 = vst [vmem:[#allocation35_spill] sm:$0xff] %v12524_v57  ;;  %v4608_v21 = vmul.f32 %v4380_v61, %v14934_v48  ;;  %v4595_v23 = vmul.f32 %v4367_v20, %v14935_v63  ;;  %v4392_v55 = vadd.f32 1.0, %v12229_v45  ;;  %v4404_v41 = vadd.f32 1.0, %v14938_v59  ;;  %v14943_v4 = vld [vmem:[#allocation69_spill] sm:$0xff]  ;;  %v14946_v20 = vld [vmem:[#allocation51_spill] sm:$0xff] }
 0x237   : > { %v12535_v56 = vpack.c.bf16 %v4583_v35, %v4571_v46  ;;  %v4607_v8 = vmul.f32 %v4379_v19, %v14937_v27  ;;  %v4391_v50 = vadd.f32 1.0, %v14939_v2  ;;  %v4403_v47 = vadd.f32 1.0, %v14942_v53  ;;  %v14945_v49 = vld [vmem:[#allocation57_spill] sm:$0xff]  ;;  %v14948_v25 = vld [vmem:[#allocation55_spill] sm:$0xff]  ;;  %v14954_v27 = vld [vmem:[#allocation78_spill] sm:$0xff] }
 0x238   : > { %v12540_v38 = vpack.c.bf16 %v4608_v21, %v4596_v60  ;;  %v4620_v1 = vmul.f32 %v4392_v55, %v14941_v18  ;;  %v4416_v31 = vadd.f32 1.0, %v14943_v4  ;;  %v4632_v45 = vmul.f32 %v4404_v41, %v14945_v49  ;;  %v14947_v29 = vld [vmem:[#allocation73_spill] sm:$0xff]  ;;  %v14950_v34 = vld [vmem:[#allocation67_spill] sm:$0xff]  ;;  %v14953_v55 = vld [vmem:[#allocation64_spill] sm:$0xff] }
 0x239   : > { %14936 = vst [vmem:[#allocation13_spill] sm:$0xff] %v12535_v56  ;;  %v12545_v61 = vpack.c.bf16 %v4607_v8, %v4595_v23  ;;  %v4619_v3 = vmul.f32 %v4391_v50, %v14946_v20  ;;  %v4428_v46 = vadd.f32 1.0, %v14947_v29  ;;  %v4631_v35 = vmul.f32 %v4403_v47, %v14948_v25  ;;  %v14949_v28 = vld [vmem:[#allocation61_spill] sm:$0xff]  ;;  %v14951_v60 = vld [vmem:[#allocation71_spill] sm:$0xff]  ;;  %v10932_v21 = vpop.eup %10931  ;;  %v14957_v53 = vld [vmem:[#allocation62_spill] sm:$0xff] }
 0x23a   : > { %14940 = vst [vmem:[#allocation40_spill] sm:$0xff] %v12540_v38  ;;  %v4644_v19 = vmul.f32 %v4416_v31, %v14949_v28  ;;  %v4415_v12 = vadd.f32 1.0, %v14950_v34  ;;  %v4427_v48 = vadd.f32 1.0, %v14951_v60  ;;  %v12554_v63 = vpack.c.bf16 %v4632_v45, %v4620_v1  ;;  %v14956_v50 = vld [vmem:[#allocation59_spill] sm:$0xff]  ;;  %v14959_v49 = vld [vmem:[#allocation16_spill] sm:$0xff]  ;;  %v14965_v28 = vld [vmem:[#allocation66_spill] sm:$0xff] }
 0x23b   : > { %14944 = vst [vmem:[#allocation31_spill] sm:$0xff] %v12545_v61  ;;  %v4656_v23 = vmul.f32 %v4428_v46, %v14953_v55  ;;  %v4440_v8 = vadd.f32 1.0, %v14954_v27  ;;  %v4452_v59 = vadd.f32 1.0, %v12398_v9  ;;  %v12559_v2 = vpack.c.bf16 %v4631_v35, %v4619_v3  ;;  %v14958_v4 = vld [vmem:[#allocation75_spill] sm:$0xff]  ;;  %3208 = vmatmul.mubr.bf16.gmra.mrb[116].mxu0 %v14959_v49  ;;  %3470 = vmatmul.mubr.bf16.gmra.mrb[116].mxu1 %v14959_v49  ;;  %v14961_v45 = vld [vmem:[#allocation68_spill] sm:$0xff] }
 0x23c   : > { %14952 = vst [vmem:[#allocation34_spill] sm:$0xff] %v12554_v63  ;;  %v10934_v41 = vpop.eup %10933  ;;  %v4643_v18 = vmul.f32 %v4415_v12, %v14956_v50  ;;  %v4655_v47 = vmul.f32 %v4427_v48, %v14957_v53  ;;  %v4439_v31 = vadd.f32 1.0, %v14958_v4  ;;  %v14962_v29 = vld [vmem:[#allocation72_spill] sm:$0xff]  ;;  %v4451_v9 = vadd.f32 1.0, %v12387_v36  ;;  %v14967_v48 = vld [vmem:[#allocation70_spill] sm:$0xff] }
 0x23d   : > { %14955 = vst [vmem:[#allocation45_spill] sm:$0xff] %v12559_v2  ;;  %v12566_v1 = vpack.c.bf16 %v4656_v23, %v4644_v19  ;;  %v4668_v20 = vmul.f32 %v4440_v8, %v14961_v45  ;;  %v4680_v46 = vmul.f32 %v4452_v59, %v14962_v29  ;;  %v10936_v3 = vpop.eup %10935  ;;  %v14963_v25 = vmov 0   ;;  %v14968_v27 = vld [vmem:[#allocation76_spill] sm:$0xff]  ;;  %v14969_v59 = vld [vmem:[#allocation79_spill] sm:$0xff]  ;;  %v14971_v4 = vld [vmem:[#allocation74_spill] sm:$0xff] }
 0x23e   : > { %3248 = vmatprep.mubr.bf16.mxu0 %v14963_v25  ;;  %3510 = vmatprep.mubr.bf16.mxu1 %v14963_v25  ;;  %v12573_v35 = vpack.c.bf16 %v4655_v47, %v4643_v18  ;;  %v4667_v34 = vmul.f32 %v4439_v31, %v14965_v28  ;;  %v4464_v12 = vadd.f32 1.0, %v12437_v17  ;;  %v4476_v19 = vadd.f32 1.0, %v12474_v26  ;;  %v14972_v31 = vld [vmem:[#allocation77_spill] sm:$0xff]  ;;  %v10410_v45 = vld [vmem:[#allocation7 + $0x8] ss:$12 sps:$4 sm:$0xff]  }
 0x23f   : > { %14960 = vst [vmem:[#allocation29_spill] sm:$0xff] %v12566_v1  ;;  %v12578_v60 = vpack.c.bf16 %v4680_v46, %v4668_v20  ;;  %v4679_v55 = vmul.f32 %v4451_v9, %v14967_v48  ;;  %v4463_v23 = vadd.f32 1.0, %v12414_v15  ;;  %v4475_v36 = vadd.f32 1.0, %v12461_v52  ;;  %v10411_v20 = vld [vmem:[#allocation7] ss:$12 sps:$4 sm:$0xff]  }
 0x240   : > { %14964 = vst [vmem:[#allocation33_spill] sm:$0xff] %v12573_v35  ;;  %v4692_v8 = vmul.f32 %v4464_v12, %v14968_v27  ;;  %v4704_v50 = vmul.f32 %v4476_v19, %v14969_v59  ;;  %v4488_v18 = vadd.f32 1.0, %v10932_v21  ;;  %v4500_v53 = vadd.f32 1.0, %v10934_v41  ;;  %v10416_v21 = vld [vmem:[#allocation7 + $0x1c] ss:$12 sps:$4 sm:$0xff]  }
 0x241   : > { %14966 = vst [vmem:[#allocation50_spill] sm:$0xff] %v12578_v60  ;;  %v12585_v47 = vpack.c.bf16 %v4679_v55, %v4667_v34  ;;  %v4691_v17 = vmul.f32 %v4463_v23, %v14971_v4  ;;  %v4703_v26 = vmul.f32 %v4475_v36, %v14972_v31  ;;  %v4487_v49 = vadd.f32 1.0, %v12489_v58  ;;  %v10417_v41 = vld [vmem:[#allocation7 + $0xe0] ss:$12 sps:$4 sm:$0xff]   ;;  %v14977_v58 = vld [vmem:[#allocation17_spill] sm:$0xff] }
 0x242   : > { %v12590_v29 = vpack.c.bf16 %v4704_v50, %v4692_v8  ;;  %v4716_v15 = vmul.f32 %v4488_v18, %v12394_v30  ;;  %v4728_v52 = vmul.f32 %v4500_v53, %v12518_v44  ;;  %v4499_v46 = vadd.f32 1.0, %v10936_v3  ;;  %v14976_v34 = vld [vmem:[#allocation82_spill] sm:$0xff]  ;;  %v10424_v36 = vld [vmem:[#allocation7 + $0x4c] ss:$12 sps:$4 sm:$0xff]   ;;  %v10433_v27 = vld [vmem:[#allocation7 + $0x110] ss:$12 sps:$4 sm:$0xff]  }
 0x243   : > { %14970 = vst [vmem:[#allocation44_spill] sm:$0xff] %v12585_v47  ;;  %v12594_v9 = vpack.c.bf16 %v4703_v26, %v4691_v17  ;;  %v4715_v12 = vmul.f32 %v4487_v49, %v14976_v34  ;;  %3249 = vmatmul.mubr.bf16.vlgmr.msra.gmra.mrb[80].mxu0 %v14977_v58  ;;  %3511 = vmatmul.mubr.bf16.vlgmr.msra.gmra.mrb[80].mxu1 %v14977_v58  ;;  %v10414_v30 = vld [vmem:[#allocation7 + $0x18] ss:$12 sps:$4 sm:$0xff]   ;;  %v10418_v48 = vld [vmem:[#allocation7 + $0x20] ss:$12 sps:$4 sm:$0xff]  }
 0x244   : > { %14973 = vst [vmem:[#allocation37_spill] sm:$0xff] %v12590_v29  ;;  %v12596_v28 = vpack.c.bf16 %v4728_v52, %v4716_v15  ;;  %v4727_v19 = vmul.f32 %v4499_v46, %v12506_v39  ;;  %9000 = vmatpush3.bf16.msra.mxu1 %v10410_v45  ;;  %6790 = vmatpush1.bf16.msra.mxu0 %v10411_v20  ;;  %v10421_v3 = vld [vmem:[#allocation7 + $0x34] ss:$12 sps:$4 sm:$0xff]   ;;  %v10425_v55 = vld [vmem:[#allocation7 + $0xf8] ss:$12 sps:$4 sm:$0xff]   ;;  %v14980_v49 = vld [vmem:[#allocation19_spill] sm:$0xff] }
 0x245   : > { %14974 = vst [vmem:[#allocation41_spill] sm:$0xff] %v12594_v9  ;;  %3258 = vmatprep.mubr.bf16.mxu0 %v14963_v25  ;;  %3520 = vmatprep.mubr.bf16.mxu1 %v14963_v25  ;;  %v10419_v39 = vld [vmem:[#allocation7 + $0x30] ss:$12 sps:$4 sm:$0xff]   ;;  %v10426_v23 = vld [vmem:[#allocation7 + $0x38] ss:$12 sps:$4 sm:$0xff]  }
 0x246   : > { %14975 = vst [vmem:[#allocation47_spill] sm:$0xff] %v12596_v28  ;;  %v12602_v44 = vpack.c.bf16 %v4727_v19, %v4715_v12  ;;  %6791 = vmatprep.subr.bf16.mxu0 %v10416_v21  ;;  %9001 = vmatprep.subr.bf16.mxu1 %v10417_v41  ;;  %v14979_v8 = vld [vmem:[#allocation18_spill] sm:$0xff]  ;;  %v10422_v59 = vld [vmem:[#allocation7 + $0x48] ss:$12 sps:$4 sm:$0xff]   ;;  %v10434_v50 = vld [vmem:[#allocation7 + $0x50] ss:$12 sps:$4 sm:$0xff]  }
 0x247   : > { %v10429_v18 = vld [vmem:[#allocation7 + $0x64] ss:$12 sps:$4 sm:$0xff]   ;;  %v10441_v53 = vld [vmem:[#allocation7 + $0x128] ss:$12 sps:$4 sm:$0xff]   ;;  %v10427_v4 = vld [vmem:[#allocation7 + $0x60] ss:$12 sps:$4 sm:$0xff]  }
 0x248   : > { %14978 = vst [vmem:[#allocation54_spill] sm:$0xff] %v12602_v44  ;;  %6792 = vmatpush1.bf16.msra.mxu0 %v10414_v30  ;;  %9002 = vmatpush3.bf16.msra.mxu1 %v10418_v48  ;;  %v10442_v17 = vld [vmem:[#allocation7 + $0x68] ss:$12 sps:$4 sm:$0xff]   ;;  %v10449_v26 = vld [vmem:[#allocation7 + $0x140] ss:$12 sps:$4 sm:$0xff]   ;;  %v14990_v9 = vld [vmem:[#allocation25_spill] sm:$0xff] }
 0x249   : > { %6793 = vmatprep.subr.bf16.mxu0 %v10421_v3  ;;  %9003 = vmatprep.subr.bf16.mxu1 %v10425_v55  ;;  %v10432_v31 = vld [vmem:[#allocation7 + $0x7c] ss:$12 sps:$4 sm:$0xff]   ;;  %v10430_v45 = vld [vmem:[#allocation7 + $0x78] ss:$12 sps:$4 sm:$0xff]   ;;  %v10450_v20 = vld [vmem:[#allocation7 + $0x80] ss:$12 sps:$4 sm:$0xff]  }
 0x24a   : > { %v10437_v15 = vld [vmem:[#allocation7 + $0x94] ss:$12 sps:$4 sm:$0xff]   ;;  %v10457_v52 = vld [vmem:[#allocation7 + $0x158] ss:$12 sps:$4 sm:$0xff]   ;;  %v10435_v46 = vld [vmem:[#allocation7 + $0x90] ss:$12 sps:$4 sm:$0xff]  }
 0x24b   : > { %3259 = vmatmul.mubr.bf16.gmra.mrb[84].mxu0 %v14979_v8  ;;  %3521 = vmatmul.mubr.bf16.gmra.mrb[84].mxu1 %v14979_v8  ;;  %v10458_v21 = vld [vmem:[#allocation7 + $0x98] ss:$12 sps:$4 sm:$0xff]   ;;  %v10465_v34 = vld [vmem:[#allocation7 + $0x170] ss:$12 sps:$4 sm:$0xff]   ;;  %v10438_v19 = vld [vmem:[#allocation7 + $0xa8] ss:$12 sps:$4 sm:$0xff]  }
 0x24c   : > { %3268 = vmatprep.mubr.bf16.mxu0 %v14963_v25  ;;  %3530 = vmatprep.mubr.bf16.mxu1 %v14963_v25  ;;  %v10440_v41 = vld [vmem:[#allocation7 + $0xac] ss:$12 sps:$4 sm:$0xff]   ;;  %v14981_v12 = vld [vmem:[#allocation20_spill] sm:$0xff]  ;;  %v10448_v55 = vld [vmem:[#allocation7 + $0xdc] ss:$12 sps:$4 sm:$0xff]  }
 0x24d   : > { %6794 = vmatpush1.bf16.msra.mxu0 %v10419_v39  ;;  %9004 = vmatpush3.bf16.msra.mxu1 %v10426_v23  ;;  %v10466_v58 = vld [vmem:[#allocation7 + $0xb0] ss:$12 sps:$4 sm:$0xff]   ;;  %v10473_v48 = vld [vmem:[#allocation7 + $0x248] ss:$12 sps:$4 sm:$0xff]   ;;  %v10443_v3 = vld [vmem:[#allocation7 + $0xc0] ss:$12 sps:$4 sm:$0xff]  }
 0x24e   : > { %6795 = vmatprep.subr.bf16.mxu0 %v10424_v36  ;;  %9005 = vmatprep.subr.bf16.mxu1 %v10433_v27  ;;  %v10445_v30 = vld [vmem:[#allocation7 + $0xc4] ss:$12 sps:$4 sm:$0xff]   ;;  %v14982_v39 = vld [vmem:[#allocation21_spill] sm:$0xff]  ;;  %v10453_v36 = vld [vmem:[#allocation7 + $0xf4] ss:$12 sps:$4 sm:$0xff]  }
 0x24f   : > { %v10446_v23 = vld [vmem:[#allocation7 + $0xd8] ss:$12 sps:$4 sm:$0xff]   ;;  %v14983_v27 = vld [vmem:[#allocation80_spill] sm:$0xff] }
 0x250   : > { %v4053_v8 = vmul.f32 0.70710677, %v14983_v27 }
 0x251   : > { %6796 = vmatpush1.bf16.msra.mxu0 %v10422_v59  ;;  %9006 = vmatpush3.bf16.msra.mxu1 %v10434_v50  ;;  %v14984_v59 = vld [vmem:[#allocation83_spill] sm:$0xff] }
 0x252   : > { %6797 = vmatprep.subr.bf16.mxu0 %v10429_v18  ;;  %9007 = vmatprep.subr.bf16.mxu1 %v10441_v53  ;;  %v4054_v50 = vmul.f32 0.70710677, %v14984_v59  ;;  %v10451_v18 = vld [vmem:[#allocation7 + $0xf0] ss:$12 sps:$4 sm:$0xff]   ;;  %v10456_v53 = vld [vmem:[#allocation7 + $0x10c] ss:$12 sps:$4 sm:$0xff]   ;;  %10937 = verf.f32 %v4053_v8 }
 0x253   : > { %3269 = vmatmul.mubr.bf16.gmra.mrb[88].mxu0 %v14980_v49  ;;  %3531 = vmatmul.mubr.bf16.gmra.mrb[88].mxu1 %v14980_v49  ;;  %v10464_v49 = vld [vmem:[#allocation7 + $0x13c] ss:$12 sps:$4 sm:$0xff]  }
 0x254   : > { %3278 = vmatprep.mubr.bf16.mxu0 %v14963_v25  ;;  %3540 = vmatprep.mubr.bf16.mxu1 %v14963_v25  ;;  %10939 = verf.f32 %v4054_v50 }
 0x255   : > { %6798 = vmatpush1.bf16.msra.mxu0 %v10427_v4  ;;  %9008 = vmatpush3.bf16.msra.mxu1 %v10442_v17  ;;  %v14985_v4 = vld [vmem:[#allocation22_spill] sm:$0xff]  ;;  %v10454_v17 = vld [vmem:[#allocation7 + $0x108] ss:$12 sps:$4 sm:$0xff]  }
 0x256   : > { %6799 = vmatprep.subr.bf16.mxu0 %v10432_v31  ;;  %9009 = vmatprep.subr.bf16.mxu1 %v10449_v26  ;;  %v10461_v31 = vld [vmem:[#allocation7 + $0x124] ss:$12 sps:$4 sm:$0xff]   ;;  %v10459_v26 = vld [vmem:[#allocation7 + $0x120] ss:$12 sps:$4 sm:$0xff]  }
 0x259   : > { %6800 = vmatpush1.bf16.msra.mxu0 %v10430_v45  ;;  %9010 = vmatpush3.bf16.msra.mxu1 %v10450_v20  ;;  %v14986_v45 = vld [vmem:[#allocation23_spill] sm:$0xff]  ;;  %v10462_v20 = vld [vmem:[#allocation7 + $0x138] ss:$12 sps:$4 sm:$0xff]  }
 0x25a   : > { %6801 = vmatprep.subr.bf16.mxu0 %v10437_v15  ;;  %9011 = vmatprep.subr.bf16.mxu1 %v10457_v52 }
 0x25b   : > { %3279 = vmatmul.mubr.bf16.gmra.mrb[92].mxu0 %v14981_v12  ;;  %3541 = vmatmul.mubr.bf16.gmra.mrb[92].mxu1 %v14981_v12 }
 0x25c   : > { %3288 = vmatprep.mubr.bf16.mxu0 %v14963_v25  ;;  %3550 = vmatprep.mubr.bf16.mxu1 %v14963_v25  ;;  %v10938_v15 = vpop.eup %10937 }
 0x25d   : > { %6802 = vmatpush1.bf16.msra.mxu0 %v10435_v46  ;;  %9012 = vmatpush3.bf16.msra.mxu1 %v10458_v21  ;;  %v10469_v21 = vld [vmem:[#allocation7 + $0x154] ss:$12 sps:$4 sm:$0xff]  }
 0x25e   : > { %6803 = vmatprep.subr.bf16.mxu0 %v10440_v41  ;;  %9013 = vmatprep.subr.bf16.mxu1 %v10465_v34  ;;  %v10940_v41 = vpop.eup %10939 }
 0x261   : > { %6804 = vmatpush1.bf16.msra.mxu0 %v10438_v19  ;;  %9014 = vmatpush3.bf16.msra.mxu1 %v10466_v58 }
 0x262   : > { %6805 = vmatprep.subr.bf16.mxu0 %v10445_v30  ;;  %9075 = vmatprep.subr.bf16.mxu1 %v10473_v48 }
 0x263   : > { %3289 = vmatmul.mubr.bf16.gmra.mrb[96].mxu0 %v14982_v39  ;;  %3551 = vmatmul.mubr.bf16.gmra.mrb[96].mxu1 %v14982_v39  ;;  %v4509_v39 = vadd.f32 1.0, %v10938_v15 }
 0x264   : > { %3298 = vmatprep.mubr.bf16.mxu0 %v14963_v25  ;;  %3560 = vmatprep.mubr.bf16.mxu1 %v14963_v25 }
 0x265   : > { %6806 = vmatpush1.bf16.msra.mxu0 %v10443_v3  ;;  %v10467_v3 = vld [vmem:[#allocation7 + $0x150] ss:$12 sps:$4 sm:$0xff]  }
 0x266   : > { %6807 = vmatprep.subr.bf16.mxu0 %v10448_v55  ;;  %v10472_v55 = vld [vmem:[#allocation7 + $0x16c] ss:$12 sps:$4 sm:$0xff]  }
 0x269   : > { %6808 = vmatpush1.bf16.msra.mxu0 %v10446_v23  ;;  %v4510_v23 = vadd.f32 1.0, %v10940_v41 }
 0x26a   : > { %6809 = vmatprep.subr.bf16.mxu0 %v10453_v36 }
 0x26b   : > { %3299 = vmatmul.mubr.bf16.gmra.mrb[100].mxu0 %v14985_v4  ;;  %3561 = vmatmul.mubr.bf16.gmra.mrb[100].mxu1 %v14985_v4  ;;  %v3825_v4 = vmul.f32 0.5, %v14983_v27 }
 0x26c   : > { %3308 = vmatprep.mubr.bf16.mxu0 %v14963_v25  ;;  %3570 = vmatprep.mubr.bf16.mxu1 %v14963_v25 }
 0x26d   : > { %6810 = vmatpush1.bf16.msra.mxu0 %v10451_v18 }
 0x26e   : > { %6811 = vmatprep.subr.bf16.mxu0 %v10456_v53  ;;  %v14987_v53 = vld [vmem:[#allocation24_spill] sm:$0xff] }
 0x271   : > { %6812 = vmatpush1.bf16.msra.mxu0 %v10454_v17  ;;  %v3826_v17 = vmul.f32 0.5, %v14984_v59 }
 0x272   : > { %6813 = vmatprep.subr.bf16.mxu0 %v10461_v31 }
 0x273   : > { %3309 = vmatmul.mubr.bf16.gmra.mrb[104].mxu0 %v14986_v45  ;;  %3571 = vmatmul.mubr.bf16.gmra.mrb[104].mxu1 %v14986_v45  ;;  %v2726_v52 = vpop.f32.mrb[40].mxu0  ;;  %v2988_v46 = vpop.f32.mrb[40].mxu1  ;;  %v4738_v45 = vmul.f32 %v4510_v23, %v3826_v17 }
 0x274   : > { %3318 = vmatprep.mubr.bf16.mxu0 %v14963_v25  ;;  %3580 = vmatprep.mubr.bf16.mxu1 %v14963_v25  ;;  %v3841_v34 = vmul.f32 0.70710677, %v2726_v52  ;;  %v3843_v12 = vmul.f32 0.70710677, %v2988_v46  ;;  %v2728_v19 = vpop.f32.mrb[41].mxu0  ;;  %v2990_v58 = vpop.f32.mrb[41].mxu1 }
 0x275   : > { %6814 = vmatpush1.bf16.msra.mxu0 %v10459_v26  ;;  %v2730_v30 = vpop.f32.mrb[42].mxu0  ;;  %v2992_v48 = vpop.f32.mrb[42].mxu1  ;;  %v3842_v31 = vmul.f32 0.70710677, %v2728_v19  ;;  %v10470_v26 = vld [vmem:[#allocation7 + $0x168] ss:$12 sps:$4 sm:$0xff]  }
 0x276   : > { %6815 = vmatprep.subr.bf16.mxu0 %v10464_v49  ;;  %10941 = verf.f32 %v3841_v34  ;;  %v3853_v36 = vmul.f32 0.70710677, %v2730_v30  ;;  %v2732_v8 = vpop.f32.mrb[43].mxu0  ;;  %v3855_v50 = vmul.f32 0.70710677, %v2992_v48  ;;  %v2994_v18 = vpop.f32.mrb[43].mxu1  ;;  %v4737_v49 = vmul.f32 %v4509_v39, %v3825_v4 }
 0x277   : > { %10943 = verf.f32 %v3843_v12  ;;  %v3854_v41 = vmul.f32 0.70710677, %v2732_v8  ;;  %v3613_v39 = vmul.f32 0.5, %v2726_v52  ;;  %v3856_v23 = vmul.f32 0.70710677, %v2994_v18 }
 0x278   : > { %10945 = verf.f32 %v3853_v36  ;;  %v3615_v17 = vmul.f32 0.5, %v2988_v46  ;;  %v12656_v52 = vmul.f32 0.5, %v2990_v58  ;;  %v3625_v29 = vmul.f32 0.5, %v2730_v30 }
 0x279   : > { %6816 = vmatpush1.bf16.msra.mxu0 %v10462_v20  ;;  %10947 = verf.f32 %v3855_v50  ;;  %v12650_v50 = vpack.c.bf16 %v4737_v49, %v4737_v49  ;;  %v3627_v46 = vmul.f32 0.5, %v2992_v48 }
 0x27a   : > { %6817 = vmatprep.subr.bf16.mxu0 %v10469_v21  ;;  %v10477_v21 = vld [vmem:[#allocation7 + $0x184] ss:$12 sps:$4 sm:$0xff]   ;;  %10949 = verf.f32 %v3842_v31  ;;  %v12652_v31 = vmul.f32 0.5, %v2728_v19  ;;  %14991 = vst [vmem:[#allocation14_spill] sm:$0xff] %v12656_v52  ;;  %v12660_v19 = vmul.f32 0.5, %v2732_v8 }
 0x27b   : > { %3319 = vmatmul.mubr.bf16.gmra.mrb[108].mxu0 %v14987_v53  ;;  %3581 = vmatmul.mubr.bf16.gmra.mrb[108].mxu1 %v14987_v53  ;;  %v2736_v20 = vpop.f32.mrb[44].mxu0  ;;  %v2998_v15 = vpop.f32.mrb[44].mxu1  ;;  %v3844_v53 = vmul.f32 0.70710677, %v2990_v58  ;;  %14989 = vst [vmem:[#allocation52_spill] sm:$0xff] %v12650_v50  ;;  %10951 = verf.f32 %v3854_v41  ;;  %v12663_v41 = vmul.f32 0.5, %v2994_v18 }
 0x27c   : > { %3328 = vmatprep.mubr.bf16.mxu0 %v14963_v25  ;;  %3590 = vmatprep.mubr.bf16.mxu1 %v14963_v25  ;;  %v2738_v34 = vpop.f32.mrb[45].mxu0  ;;  %v12638_v27 = vpop.f32.mrb[45].mxu1  ;;  %v3865_v59 = vmul.f32 0.70710677, %v2736_v20  ;;  %v12668_v60 = vmul.f32 0.5, %v2736_v20 }
 0x27d   : > { %6818 = vmatpush1.bf16.msra.mxu0 %v10467_v3  ;;  %v12640_v12 = vpop.f32.mrb[46].mxu0  ;;  %v12642_v44 = vpop.f32.mrb[46].mxu1  ;;  %v3866_v28 = vmul.f32 0.70710677, %v2738_v34  ;;  %14992 = vst [vmem:[#allocation36_spill] sm:$0xff] %v12663_v41  ;;  %v12681_v20 = vmul.f32 0.5, %v2738_v34 }
 0x27e   : > { %6819 = vmatprep.subr.bf16.mxu0 %v10472_v55  ;;  %v12644_v3 = vpop.f32.mrb[47].mxu0  ;;  %v12646_v36 = vpop.f32.mrb[47].mxu1  ;;  %v12648_v55 = vpack.c.bf16 %v4738_v45, %v4738_v45  ;;  %10953 = verf.f32 %v3865_v59  ;;  %v3877_v49 = vmul.f32 0.70710677, %v12640_v12  ;;  %v14994_v34 = vld [vmem:[#allocation26_spill] sm:$0xff]  ;;  %v12695_v57 = vmul.f32 0.5, %v12638_v27 }
 0x27f   : > { %10955 = verf.f32 %v3844_v53 }
 0x280   : > { %14988 = vst [vmem:[#allocation58_spill] sm:$0xff] %v12648_v55  ;;  %v10942_v4 = vpop.eup %10941  ;;  %10957 = verf.f32 %v3856_v23  ;;  %14996 = vst [vmem:[#allocation15_spill] sm:$0xff] %v12695_v57 }
 0x281   : > { %6820 = vmatpush1.bf16.msra.mxu0 %v10470_v26  ;;  %v10944_v26 = vpop.eup %10943  ;;  %v4297_v45 = vadd.f32 1.0, %v10942_v4  ;;  %10959 = verf.f32 %v3866_v28  ;;  %v12675_v4 = vmul.f32 0.5, %v2998_v15  ;;  %v3879_v28 = vmul.f32 0.70710677, %v12642_v44 }
 0x282   : > { %6920 = vmatprep.subr.bf16.mxu0 %v10477_v21  ;;  %v3867_v21 = vmul.f32 0.70710677, %v2998_v15  ;;  %v10946_v59 = vpop.eup %10945  ;;  %v4299_v47 = vadd.f32 1.0, %v10944_v26 }
 0x283   : > { %3329 = vmatmul.mubr.bf16.gmra.mrb[112].mxu0 %v14990_v9  ;;  %3591 = vmatmul.mubr.bf16.gmra.mrb[112].mxu1 %v14990_v9  ;;  %v3878_v9 = vmul.f32 0.70710677, %v12644_v3  ;;  %v2746_v58 = vpop.f32.mrb[48].mxu0  ;;  %v12666_v30 = vpop.f32.mrb[48].mxu1  ;;  %v4309_v18 = vadd.f32 1.0, %v10946_v59  ;;  %14993 = vst [vmem:[#allocation39_spill] sm:$0xff] %v12675_v4  ;;  %v4525_v59 = vmul.f32 %v4297_v45, %v3613_v39 }
 0x284   : > { %3338 = vmatprep.mubr.bf16.mxu0 %v14963_v25  ;;  %3600 = vmatprep.mubr.bf16.mxu1 %v14963_v25  ;;  %v3868_v25 = vmul.f32 0.70710677, %v12638_v27  ;;  %v12671_v48 = vpop.f32.mrb[49].mxu0  ;;  %v12673_v8 = vpop.f32.mrb[49].mxu1  ;;  %10961 = verf.f32 %v3867_v21  ;;  %v3889_v23 = vmul.f32 0.70710677, %v2746_v58  ;;  %v4527_v38 = vmul.f32 %v4299_v47, %v3615_v17 }
 0x285   : > { %v10948_v53 = vpop.eup %10947  ;;  %v12677_v35 = vpop.f32.mrb[50].mxu0  ;;  %10963 = verf.f32 %v3877_v49  ;;  %v4537_v15 = vmul.f32 %v4309_v18, %v3625_v29  ;;  %v3880_v21 = vmul.f32 0.70710677, %v12646_v36  ;;  %v3891_v29 = vmul.f32 0.70710677, %v12666_v30 }
 0x286   : > { %v12679_v1 = vpop.f32.mrb[50].mxu1  ;;  %v4311_v26 = vadd.f32 1.0, %v10948_v53  ;;  %v12684_v2 = vpop.f32.mrb[51].mxu0  ;;  %10965 = verf.f32 %v3878_v9  ;;  %v3890_v53 = vmul.f32 0.70710677, %v12671_v48  ;;  %v12704_v9 = vmul.f32 0.5, %v12640_v12 }
 0x287   : > { %v12686_v63 = vpop.f32.mrb[51].mxu1  ;;  %v10950_v61 = vpop.eup %10949  ;;  %10967 = verf.f32 %v3868_v25  ;;  %v12692_v49 = vpack.c.bf16 %v4537_v15, %v4525_v59  ;;  %v12707_v27 = vmul.f32 0.5, %v12642_v44  ;;  %v3901_v25 = vmul.f32 0.70710677, %v12677_v35 }
 0x288   : > { %v4539_v56 = vmul.f32 %v4311_v26, %v3627_v46  ;;  %10969 = verf.f32 %v3889_v23  ;;  %v10952_v47 = vpop.eup %10951  ;;  %v4298_v39 = vadd.f32 1.0, %v10950_v61  ;;  %v3892_v46 = vmul.f32 0.70710677, %v12673_v8  ;;  %v10474_v23 = vld [vmem:[#allocation7 + $0x188] ss:$12 sps:$4 sm:$0xff]  }
 0x289   : > { %14995 = vst [vmem:[#allocation56_spill] sm:$0xff] %v12692_v49  ;;  %10971 = verf.f32 %v3879_v28  ;;  %v10954_v45 = vpop.eup %10953  ;;  %14998 = vst [vmem:[#allocation49_spill] sm:$0xff] %v12707_v27  ;;  %v3903_v12 = vmul.f32 0.70710677, %v12679_v1  ;;  %v10475_v26 = vld [vmem:[#allocation7 + $0x180] ss:$12 sps:$4 sm:$0xff]  }
 0x28a   : > { %v12700_v17 = vpack.c.bf16 %v4539_v56, %v4527_v38  ;;  %10973 = verf.f32 %v3880_v21  ;;  %v12714_v61 = vpop.eup %10955  ;;  %v12717_v56 = vmul.f32 0.5, %v12644_v3  ;;  %v12720_v38 = vmul.f32 0.5, %v12646_v36  ;;  %v10480_v36 = vld [vmem:[#allocation7 + $0x19c] ss:$12 sps:$4 sm:$0xff]  }
 0x28b   : > { %3339 = vmatmul.mubr.bf16.gmra.mrb[116].mxu0 %v14994_v34  ;;  %3601 = vmatmul.mubr.bf16.gmra.mrb[116].mxu1 %v14994_v34  ;;  %v12710_v18 = vpop.f32.mrb[52].mxu0  ;;  %10975 = verf.f32 %v3890_v53  ;;  %v12725_v28 = vpop.eup %10957  ;;  %v4310_v59 = vadd.f32 1.0, %v10952_v47  ;;  %v12727_v15 = vmul.f32 0.5, %v2746_v58  ;;  %v3902_v21 = vmul.f32 0.70710677, %v12684_v2 }
 0x28c   : > { %6821 = vmatprep.mubr.bf16.mxu0 %v12408_v54  ;;  %7607 = vmatprep.mubr.bf16.mxu1 %v12408_v54  ;;  %14997 = vst [vmem:[#allocation46_spill] sm:$0xff] %v12700_v17  ;;  %v12712_v54 = vpop.f32.mrb[52].mxu1  ;;  %14999 = vst [vmem:[#allocation43_spill] sm:$0xff] %v12720_v38  ;;  %v12723_v44 = vpop.f32.mrb[53].mxu0  ;;  %10977 = verf.f32 %v3891_v29  ;;  %v12735_v17 = vmul.f32 %v4298_v39, %v12652_v31  ;;  %v4321_v49 = vadd.f32 1.0, %v10954_v45  ;;  %v12743_v29 = vmul.f32 0.5, %v12666_v30 }
 0x28d   : > { %15000 = vst [vmem:[#allocation48_spill] sm:$0xff] %v12725_v28  ;;  %v12730_v3 = vpop.f32.mrb[53].mxu1  ;;  %v12732_v34 = vpop.f32.mrb[54].mxu0  ;;  %10979 = verf.f32 %v3892_v46  ;;  %v3904_v43 = vmul.f32 0.70710677, %v12686_v63  ;;  %v12746_v14 = vmul.f32 0.5, %v12671_v48  ;;  %v12763_v27 = vmul.f32 %v4310_v59, %v12660_v19 }
 0x28e   : > { %v10960_v53 = vpop.eup %10959  ;;  %v12738_v5 = vpop.f32.mrb[54].mxu1  ;;  %v10481_v58 = vld [vmem:[#allocation7 + $0x260] ss:$12 sps:$4 sm:$0xff]   ;;  %15002 = vst [vmem:[#allocation60_spill] sm:$0xff] %v12743_v29  ;;  %10981 = verf.f32 %v3901_v25  ;;  %v3913_v50 = vmul.f32 0.70710677, %v12710_v18 }
 0x28f   : > { %v12740_v47 = vpop.eup %10961  ;;  %v12749_v31 = vpop.f32.mrb[55].mxu0  ;;  %v12754_v45 = vmul.f32 0.5, %v12673_v8  ;;  %v12757_v55 = vmul.f32 0.5, %v12677_v35  ;;  %10983 = verf.f32 %v3903_v12  ;;  %v3915_v30 = vmul.f32 0.70710677, %v12712_v54  ;;  %v15004_v29 = vld [vmem:[#allocation30_spill] sm:$0xff] }
 0x290   : > { %15001 = vst [vmem:[#allocation65_spill] sm:$0xff] %v12740_v47  ;;  %v12751_v39 = vpop.f32.mrb[55].mxu1  ;;  %v10964_v46 = vpop.eup %10963  ;;  %v10478_v48 = vld [vmem:[#allocation7 + $0x198] ss:$12 sps:$4 sm:$0xff]   ;;  %v10482_v25 = vld [vmem:[#allocation7 + $0x1a0] ss:$12 sps:$4 sm:$0xff]   ;;  %10985 = verf.f32 %v3902_v21 }
 0x291   : > { %15003 = vst [vmem:[#allocation53_spill] sm:$0xff] %v12754_v45  ;;  %v10966_v11 = vpop.eup %10965  ;;  %v4322_v4 = vadd.f32 1.0, %v10960_v53  ;;  %v3914_v8 = vmul.f32 0.70710677, %v12723_v44  ;;  %v10485_v35 = vld [vmem:[#allocation7 + $0x1b4] ss:$12 sps:$4 sm:$0xff]   ;;  %v12771_v45 = vmul.f32 %v4321_v49, %v12668_v60  ;;  %10987 = verf.f32 %v3904_v43 }
 0x292   : > { %v12768_v12 = vpop.eup %10967  ;;  %v3916_v19 = vmul.f32 0.70710677, %v12730_v3  ;;  %v10489_v59 = vld [vmem:[#allocation7 + $0x278] ss:$12 sps:$4 sm:$0xff]   ;;  %v4333_v53 = vadd.f32 1.0, %v10964_v46  ;;  %v12778_v38 = vmul.f32 0.5, %v12684_v2  ;;  %10989 = verf.f32 %v3913_v50 }
 0x293   : > { %6822 = vmatmul.mubr.bf16.vlgmr.msra.gmra.mrb[120].mxu0 %v15004_v29  ;;  %7608 = vmatmul.mubr.bf16.vlgmr.msra.gmra.mrb[120].mxu1 %v15004_v29  ;;  %15005 = vst [vmem:[#allocation63_spill] sm:$0xff] %v12768_v12  ;;  %v12774_v29 = vmul.f32 0.5, %v12679_v1  ;;  %v10970_v21 = vpop.eup %10969  ;;  %v12781_v57 = vpop.f32.mrb[56].mxu0  ;;  %v4334_v1 = vadd.f32 1.0, %v10966_v11  ;;  %v12788_v49 = vmul.f32 0.5, %v12686_v63  ;;  %10991 = verf.f32 %v3915_v30 }
 0x294   : > { %6831 = vmatprep.mubr.bf16.mxu0 %v12412_v24  ;;  %7615 = vmatprep.mubr.bf16.mxu1 %v12412_v24  ;;  %v3925_v24 = vmul.f32 0.70710677, %v12732_v34  ;;  %v12783_v60 = vpop.f32.mrb[56].mxu1  ;;  %v12785_v43 = vpop.eup %10971  ;;  %v10490_v46 = vld [vmem:[#allocation7 + $0x1b8] ss:$12 sps:$4 sm:$0xff]   ;;  %10993 = verf.f32 %v3914_v8  ;;  %v4345_v10 = vadd.f32 1.0, %v10970_v21 }
 0x295   : > { %15006 = vst [vmem:[#allocation69_spill] sm:$0xff] %v12774_v29  ;;  %9076 = vmatpush3.bf16.msra.mxu1 %v10474_v23  ;;  %6921 = vmatpush1.bf16.msra.mxu0 %v10475_v26  ;;  %15007 = vst [vmem:[#allocation57_spill] sm:$0xff] %v12785_v43  ;;  %v3927_v23 = vmul.f32 0.70710677, %v12738_v5  ;;  %v12791_v2 = vpop.f32.mrb[57].mxu0  ;;  %v12793_v50 = vpop.f32.mrb[57].mxu1  ;;  %10995 = verf.f32 %v3916_v19 }
 0x296   : > { %6922 = vmatprep.subr.bf16.mxu0 %v10480_v36  ;;  %9077 = vmatprep.subr.bf16.mxu1 %v10481_v58  ;;  %15008 = vst [vmem:[#allocation51_spill] sm:$0xff] %v12788_v49  ;;  %v10483_v26 = vld [vmem:[#allocation7 + $0x1b0] ss:$12 sps:$4 sm:$0xff]   ;;  %v12795_v29 = vpop.eup %10973  ;;  %v12798_v36 = vmul.f32 %v4322_v4, %v12681_v20  ;;  %v12801_v58 = vmul.f32 0.5, %v12710_v18  ;;  %v3926_v11 = vmul.f32 0.70710677, %v12749_v31  ;;  %10997 = verf.f32 %v3925_v24 }
 0x297   : > { %15009 = vst [vmem:[#allocation73_spill] sm:$0xff] %v12795_v29  ;;  %v12804_v63 = vpop.f32.mrb[58].mxu0  ;;  %v12806_v30 = vpop.f32.mrb[58].mxu1  ;;  %v10488_v49 = vld [vmem:[#allocation7 + $0x1cc] ss:$12 sps:$4 sm:$0xff]   ;;  %v12809_v47 = vmul.f32 0.5, %v12712_v54  ;;  %v12819_v29 = vmul.f32 %v4333_v53, %v12704_v9  ;;  %10999 = verf.f32 %v3927_v23 }
 0x298   : > { %v10976_v43 = vpop.eup %10975  ;;  %v3928_v4 = vmul.f32 0.70710677, %v12751_v39  ;;  %v12812_v20 = vpop.f32.mrb[59].mxu0  ;;  %v12822_v41 = vmul.f32 0.5, %v12723_v44  ;;  %v3937_v54 = vmul.f32 0.70710677, %v12781_v57  ;;  %11001 = verf.f32 %v3926_v11 }
 0x299   : > { %15010 = vst [vmem:[#allocation55_spill] sm:$0xff] %v12809_v47  ;;  %v12814_v18 = vpop.f32.mrb[59].mxu1  ;;  %6923 = vmatpush1.bf16.msra.mxu0 %v10478_v48  ;;  %9078 = vmatpush3.bf16.msra.mxu1 %v10482_v25  ;;  %v12816_v8 = vpop.eup %10977  ;;  %v10497_v19 = vld [vmem:[#allocation7 + $0x290] ss:$12 sps:$4 sm:$0xff]   ;;  %v12828_v47 = vmul.f32 %v4334_v1, %v12717_v56  ;;  %v12831_v48 = vmul.f32 0.5, %v12730_v3  ;;  %v12845_v1 = vmul.f32 %v4345_v10, %v12727_v15  ;;  %v12852_v11 = vmul.f32 0.5, %v12749_v31 }
 0x29a   : > { %15011 = vst [vmem:[#allocation61_spill] sm:$0xff] %v12816_v8  ;;  %6924 = vmatprep.subr.bf16.mxu0 %v10485_v35  ;;  %9079 = vmatprep.subr.bf16.mxu1 %v10489_v59  ;;  %v12825_v21 = vpop.eup %10979  ;;  %v3939_v9 = vmul.f32 0.70710677, %v12783_v60  ;;  %v10486_v44 = vld [vmem:[#allocation7 + $0x1c8] ss:$12 sps:$4 sm:$0xff]   ;;  %v4346_v35 = vadd.f32 1.0, %v10976_v43  ;;  %11003 = verf.f32 %v3928_v4 }
 0x29b   : > { %15012 = vst [vmem:[#allocation67_spill] sm:$0xff] %v12825_v21  ;;  %15013 = vst [vmem:[#allocation71_spill] sm:$0xff] %v12831_v48  ;;  %6832 = vmatmul.mubr.bf16.gmra.mrb[124].mxu0 %v12422_v16  ;;  %7616 = vmatmul.mubr.bf16.gmra.mrb[124].mxu1 %v12422_v16  ;;  %v10982_v25 = vpop.eup %10981  ;;  %v12837_v59 = vmul.f32 0.5, %v12732_v34  ;;  %v3938_v56 = vmul.f32 0.70710677, %v12791_v2  ;;  %v12848_v16 = vmul.f32 0.5, %v12738_v5  ;;  %11005 = verf.f32 %v3937_v54 }
 0x29c   : > { %6841 = vmatprep.mubr.bf16.mxu0 %v12427_v42  ;;  %7623 = vmatprep.mubr.bf16.mxu1 %v12427_v42  ;;  %v10493_v3 = vld [vmem:[#allocation7 + $0x1e4] ss:$12 sps:$4 sm:$0xff]   ;;  %v12842_v24 = vpop.eup %10983  ;;  %v3940_v34 = vmul.f32 0.70710677, %v12793_v50  ;;  %v10505_v43 = vld [vmem:[#allocation7 + $0x2a8] ss:$12 sps:$4 sm:$0xff]   ;;  %11007 = verf.f32 %v3939_v9  ;;  %v12871_v48 = vmul.f32 %v4346_v35, %v12746_v14 }
 0x29d   : > { %v10498_v53 = vld [vmem:[#allocation7 + $0x1d0] ss:$12 sps:$4 sm:$0xff]   ;;  %15014 = vst [vmem:[#allocation64_spill] sm:$0xff] %v12842_v24  ;;  %15015 = vst [vmem:[#allocation78_spill] sm:$0xff] %v12848_v16  ;;  %6925 = vmatpush1.bf16.msra.mxu0 %v10483_v26  ;;  %9080 = vmatpush3.bf16.msra.mxu1 %v10490_v46  ;;  %v10986_v23 = vpop.eup %10985  ;;  %v12855_v42 = vmul.f32 0.5, %v12751_v39  ;;  %v12858_v15 = vpop.f32.mrb[60].mxu0  ;;  %11009 = verf.f32 %v3938_v56 }
 0x29e   : > { %v3949_v10 = vmul.f32 0.70710677, %v12804_v63  ;;  %v12860_v5 = vpop.f32.mrb[60].mxu1  ;;  %6926 = vmatprep.subr.bf16.mxu0 %v10488_v49  ;;  %9081 = vmatprep.subr.bf16.mxu1 %v10497_v19  ;;  %v12862_v4 = vpop.eup %10987  ;;  %v4357_v26 = vadd.f32 1.0, %v10982_v25  ;;  %v12865_v46 = vmul.f32 0.5, %v12781_v57  ;;  %v12874_v49 = vmul.f32 0.5, %v12783_v60 }
 0x29f   : > { %15016 = vst [vmem:[#allocation59_spill] sm:$0xff] %v12855_v42  ;;  %15017 = vst [vmem:[#allocation62_spill] sm:$0xff] %v12862_v4  ;;  %v3951_v31 = vmul.f32 0.70710677, %v12806_v30  ;;  %v12868_v39 = vpop.f32.mrb[61].mxu0  ;;  %v10990_v42 = vpop.eup %10989  ;;  %v4358_v4 = vadd.f32 1.0, %v10986_v23  ;;  %11011 = verf.f32 %v3940_v34 }
 0x2a0   : > { %v10491_v54 = vld [vmem:[#allocation7 + $0x1e0] ss:$12 sps:$4 sm:$0xff]   ;;  %v10506_v16 = vld [vmem:[#allocation7 + $0x1e8] ss:$12 sps:$4 sm:$0xff]   ;;  %15018 = vst [vmem:[#allocation75_spill] sm:$0xff] %v12874_v49  ;;  %v12877_v25 = vpop.f32.mrb[61].mxu1  ;;  %v12881_v8 = vpop.eup %10991  ;;  %11013 = verf.f32 %v3949_v10 }
 0x2a1   : > { %v3950_v19 = vmul.f32 0.70710677, %v12812_v20  ;;  %v12879_v57 = vpop.f32.mrb[62].mxu0  ;;  %v10496_v9 = vld [vmem:[#allocation7 + $0x1fc] ss:$12 sps:$4 sm:$0xff]   ;;  %15019 = vst [vmem:[#allocation16_spill] sm:$0xff] %v12881_v8  ;;  %6927 = vmatpush1.bf16.msra.mxu0 %v10486_v44  ;;  %9082 = vmatpush3.bf16.msra.mxu1 %v10498_v53  ;;  %v10994_v35 = vpop.eup %10993  ;;  %v12903_v44 = vmul.f32 %v4357_v26, %v12757_v55  ;;  %11015 = verf.f32 %v3951_v31 }
 0x2a2   : > { %v10513_v24 = vld [vmem:[#allocation7 + $0x2c0] ss:$12 sps:$4 sm:$0xff]   ;;  %v12884_v21 = vmul.f32 0.5, %v12791_v2  ;;  %v3952_v14 = vmul.f32 0.70710677, %v12814_v18  ;;  %v12887_v60 = vpop.f32.mrb[62].mxu1  ;;  %6928 = vmatprep.subr.bf16.mxu0 %v10493_v3  ;;  %9083 = vmatprep.subr.bf16.mxu1 %v10505_v43  ;;  %v12900_v34 = vpop.eup %10995 }
 0x2a3   : > { %v12890_v56 = vmul.f32 0.5, %v12793_v50  ;;  %v12893_v49 = vmul.f32 0.5, %v12804_v63  ;;  %v3961_v23 = vmul.f32 0.70710677, %v12858_v15  ;;  %v12896_v8 = vpop.f32.mrb[63].mxu0  ;;  %v12898_v2 = vpop.f32.mrb[63].mxu1  ;;  %6842 = vmatmul.mubr.bf16.gmra.mrb[128].mxu0 %v12431_v7  ;;  %7624 = vmatmul.mubr.bf16.gmra.mrb[128].mxu1 %v12431_v7  ;;  %11017 = verf.f32 %v3950_v19 }
 0x2a4   : > { %15021 = vst [vmem:[#allocation72_spill] sm:$0xff] %v12900_v34  ;;  %v4369_v53 = vadd.f32 1.0, %v10990_v42  ;;  %v3963_v50 = vmul.f32 0.70710677, %v12860_v5  ;;  %v10494_v63 = vld [vmem:[#allocation7 + $0x1f8] ss:$12 sps:$4 sm:$0xff]   ;;  %v10998_v10 = vpop.eup %10997  ;;  %6851 = vmatprep.mubr.bf16.mxu0 %v12435_v62  ;;  %7631 = vmatprep.mubr.bf16.mxu1 %v12435_v62  ;;  %v12920_v7 = vmul.f32 %v4358_v4, %v12778_v38  ;;  %11019 = verf.f32 %v3952_v14 }
 0x2a5   : > { %15020 = vst [vmem:[#allocation68_spill] sm:$0xff] %v12890_v56  ;;  %v12909_v56 = vmul.f32 0.5, %v12806_v30  ;;  %v12912_v3 = vmul.f32 0.5, %v12812_v20  ;;  %v3962_v55 = vmul.f32 0.70710677, %v12868_v39  ;;  %v12917_v26 = vpop.eup %10999  ;;  %v4370_v31 = vadd.f32 1.0, %v10994_v35  ;;  %6929 = vmatpush1.bf16.msra.mxu0 %v10491_v54  ;;  %9084 = vmatpush3.bf16.msra.mxu1 %v10506_v16 }
 0x2a6   : > { %v10501_v43 = vld [vmem:[#allocation7 + $0x214] ss:$12 sps:$4 sm:$0xff]   ;;  %15023 = vst [vmem:[#allocation70_spill] sm:$0xff] %v12917_v26  ;;  %v3964_v30 = vmul.f32 0.70710677, %v12877_v25  ;;  %v11002_v19 = vpop.eup %11001  ;;  %v12927_v62 = vmul.f32 0.5, %v12858_v15  ;;  %11021 = verf.f32 %v3961_v23  ;;  %6930 = vmatprep.subr.bf16.mxu0 %v10496_v9  ;;  %9085 = vmatprep.subr.bf16.mxu1 %v10513_v24  ;;  %v12937_v16 = vmul.f32 %v4369_v53, %v12801_v58 }
 0x2a7   : > { %15022 = vst [vmem:[#allocation66_spill] sm:$0xff] %v12909_v56  ;;  %v10514_v42 = vld [vmem:[#allocation7 + $0x200] ss:$12 sps:$4 sm:$0xff]   ;;  %v10521_v20 = vld [vmem:[#allocation7 + $0x2d8] ss:$12 sps:$4 sm:$0xff]   ;;  %v12924_v56 = vmul.f32 0.5, %v12814_v18  ;;  %v12934_v4 = vpop.eup %11003  ;;  %11023 = verf.f32 %v3963_v50 }
 0x2a8   : > { %v3973_v26 = vmul.f32 0.70710677, %v12879_v57  ;;  %v12930_v34 = vpop.f32.mrb[64].mxu0  ;;  %v12932_v38 = vpop.f32.mrb[64].mxu1  ;;  %15025 = vst [vmem:[#allocation79_spill] sm:$0xff] %v12934_v4  ;;  %v4381_v54 = vadd.f32 1.0, %v10998_v10  ;;  %11025 = verf.f32 %v3962_v55  ;;  %v12956_v4 = vmul.f32 %v4370_v31, %v12822_v41 }
 0x2a9   : > { %15024 = vst [vmem:[#allocation76_spill] sm:$0xff] %v12924_v56  ;;  %v3975_v18 = vmul.f32 0.70710677, %v12887_v60  ;;  %v12940_v15 = vpop.f32.mrb[65].mxu0  ;;  %v10499_v14 = vld [vmem:[#allocation7 + $0x210] ss:$12 sps:$4 sm:$0xff]   ;;  %v11006_v23 = vpop.eup %11005  ;;  %11027 = verf.f32 %v3964_v30  ;;  %6931 = vmatpush1.bf16.msra.mxu0 %v10494_v63  ;;  %9086 = vmatpush3.bf16.msra.mxu1 %v10514_v42 }
 0x2aa   : > { %v10522_v35 = vld [vmem:[#allocation7 + $0x218] ss:$12 sps:$4 sm:$0xff]   ;;  %v12943_v56 = vmul.f32 0.5, %v12860_v5  ;;  %v12946_v9 = vmul.f32 0.5, %v12868_v39  ;;  %v3974_v24 = vmul.f32 0.70710677, %v12896_v8  ;;  %v12953_v10 = vpop.eup %11007  ;;  %11029 = verf.f32 %v3973_v26  ;;  %6932 = vmatprep.subr.bf16.mxu0 %v10501_v43  ;;  %9087 = vmatprep.subr.bf16.mxu1 %v10521_v20 }
 0x2ab   : > { %v12949_v58 = vpop.f32.mrb[65].mxu1  ;;  %v12951_v53 = vpop.f32.mrb[66].mxu0  ;;  %v10504_v50 = vld [vmem:[#allocation7 + $0x22c] ss:$12 sps:$4 sm:$0xff]   ;;  %15027 = vst [vmem:[#allocation77_spill] sm:$0xff] %v12953_v10  ;;  %v4382_v52 = vadd.f32 1.0, %v11002_v19  ;;  %v12975_v63 = vmul.f32 %v4381_v54, %v12837_v59  ;;  %11031 = verf.f32 %v3975_v18  ;;  %6852 = vmatmul.mubr.bf16.gmra.mrb[132].mxu0 %v12443_v40  ;;  %7632 = vmatmul.mubr.bf16.gmra.mrb[132].mxu1 %v12443_v40 }
 0x2ac   : > { %15026 = vst [vmem:[#allocation74_spill] sm:$0xff] %v12943_v56  ;;  %v3976_v5 = vmul.f32 0.70710677, %v12898_v2  ;;  %v12959_v56 = vpop.f32.mrb[66].mxu1  ;;  %v10529_v39 = vld [vmem:[#allocation7 + $0x2f0] ss:$12 sps:$4 sm:$0xff]   ;;  %v11010_v55 = vpop.eup %11009  ;;  %11033 = verf.f32 %v3974_v24  ;;  %6861 = vmatprep.mubr.bf16.mxu0 %v12447_v33  ;;  %7639 = vmatprep.mubr.bf16.mxu1 %v12447_v33 }
 0x2ad   : > { %v12962_v13 = vmul.f32 0.5, %v12877_v25  ;;  %v12965_v12 = vmul.f32 0.5, %v12879_v57  ;;  %v3985_v41 = vmul.f32 0.70710677, %v12930_v34  ;;  %v12968_v31 = vpop.f32.mrb[67].mxu0  ;;  %v12970_v30 = vpop.f32.mrb[67].mxu1  ;;  %v12992_v40 = vmul.f32 %v4382_v52, %v12852_v11  ;;  %6933 = vmatpush1.bf16.msra.mxu0 %v10499_v14  ;;  %9088 = vmatpush3.bf16.msra.mxu1 %v10522_v35 }
 0x2ae   : > { %v12972_v19 = vpop.eup %11011  ;;  %v4393_v42 = vadd.f32 1.0, %v11006_v23  ;;  %v3987_v25 = vmul.f32 0.70710677, %v12932_v38  ;;  %v10502_v57 = vld [vmem:[#allocation7 + $0x228] ss:$12 sps:$4 sm:$0xff]   ;;  %v12984_v43 = vmul.f32 0.5, %v12896_v8  ;;  %11035 = verf.f32 %v3976_v5  ;;  %6934 = vmatprep.subr.bf16.mxu0 %v10504_v50  ;;  %9089 = vmatprep.subr.bf16.mxu1 %v10529_v39 }
 0x2af   : > { %15028 = vst [vmem:[#allocation82_spill] sm:$0xff] %v12962_v13  ;;  %15029 = vst [vmem:[#allocation17_spill] sm:$0xff] %v12972_v19  ;;  %v11014_v26 = vpop.eup %11013  ;;  %v12981_v13 = vmul.f32 0.5, %v12887_v60  ;;  %v3986_v59 = vmul.f32 0.70710677, %v12940_v15  ;;  %v4394_v23 = vadd.f32 1.0, %v11010_v55  ;;  %11037 = verf.f32 %v3985_v41 }
 0x2b0   : > { %v10509_v20 = vld [vmem:[#allocation7 + $0x244] ss:$12 sps:$4 sm:$0xff]   ;;  %v12989_v18 = vpop.eup %11015  ;;  %v3997_v60 = vmul.f32 0.70710677, %v12951_v53  ;;  %v10537_v8 = vld [vmem:[#allocation7 + $0x3c8] ss:$12 sps:$4 sm:$0xff]   ;;  %v13007_v14 = vmul.f32 %v4393_v42, %v12865_v46  ;;  %11039 = verf.f32 %v3987_v25 }
 0x2b1   : > { %15030 = vst [vmem:[#allocation18_spill] sm:$0xff] %v12981_v13  ;;  %v10530_v54 = vld [vmem:[#allocation7 + $0x230] ss:$12 sps:$4 sm:$0xff]   ;;  %15031 = vst [vmem:[#allocation19_spill] sm:$0xff] %v12989_v18  ;;  %v11018_v24 = vpop.eup %11017  ;;  %v12996_v13 = vmul.f32 0.5, %v12898_v2  ;;  %v12999_v33 = vmul.f32 0.5, %v12930_v34  ;;  %11041 = verf.f32 %v3986_v59  ;;  %v13025_v25 = vmul.f32 %v4394_v23, %v12884_v21  ;;  %6935 = vmatpush1.bf16.msra.mxu0 %v10502_v57 }
 0x2b2   : > { %v3998_v18 = vmul.f32 0.70710677, %v12968_v31  ;;  %v2796_v10 = vpop.f32.mrb[68].mxu0  ;;  %v13002_v52 = vpop.f32.mrb[68].mxu1  ;;  %v4405_v35 = vadd.f32 1.0, %v11014_v26  ;;  %v13012_v41 = vmul.f32 0.5, %v12932_v38  ;;  %11043 = verf.f32 %v3997_v60  ;;  %9090 = vmatpush3.bf16.msra.mxu1 %v10530_v54  ;;  %6936 = vmatprep.subr.bf16.mxu0 %v10509_v20 }
 0x2b3   : > { %15032 = vst [vmem:[#allocation20_spill] sm:$0xff] %v12996_v13  ;;  %v13004_v11 = vpop.eup %11019  ;;  %v4009_v2 = vmul.f32 0.70710677, %v2796_v10  ;;  %v13009_v5 = vpop.f32.mrb[69].mxu0  ;;  %v10507_v34 = vld [vmem:[#allocation7 + $0x240] ss:$12 sps:$4 sm:$0xff]   ;;  %9151 = vmatprep.subr.bf16.mxu1 %v10537_v8  ;;  %6862 = vmatmul.mubr.bf16.gmra.mrb[136].mxu0 %v12451_v6 }
 0x2b4   : > { %15033 = vst [vmem:[#allocation21_spill] sm:$0xff] %v13004_v11  ;;  %v11022_v55 = vpop.eup %11021  ;;  %15034 = vst [vmem:[#allocation80_spill] sm:$0xff] %v13012_v41  ;;  %v13015_v13 = vmul.f32 0.5, %v12940_v15  ;;  %v3988_v50 = vmul.f32 0.70710677, %v12949_v58  ;;  %v13018_v39 = vpop.f32.mrb[69].mxu1  ;;  %11045 = verf.f32 %v3998_v18  ;;  %v13044_v57 = vmul.f32 %v4405_v35, %v12893_v49  ;;  %7640 = vmatmul.mubr.bf16.gmra.mrb[136].mxu1 %v12451_v6  ;;  %6871 = vmatprep.mubr.bf16.mxu0 %v12455_v37 }
 0x2b5   : > { %v13020_v46 = vpop.f32.mrb[70].mxu0  ;;  %v13022_v42 = vpop.eup %11023  ;;  %v4406_v26 = vadd.f32 1.0, %v11018_v24  ;;  %v4010_v38 = vmul.f32 0.70710677, %v13009_v5  ;;  %v10512_v15 = vld [vmem:[#allocation7 + $0x25c] ss:$12 sps:$4 sm:$0xff]   ;;  %11047 = verf.f32 %v4009_v2  ;;  %7647 = vmatprep.mubr.bf16.mxu1 %v12455_v37  ;;  %6937 = vmatpush1.bf16.msra.mxu0 %v10507_v34 }
 0x2b6   : > { %15035 = vst [vmem:[#allocation83_spill] sm:$0xff] %v13022_v42  ;;  %v13028_v41 = vpop.f32.mrb[70].mxu1  ;;  %v11026_v59 = vpop.eup %11025  ;;  %v13031_v11 = vmul.f32 0.5, %v12949_v58  ;;  %v13034_v19 = vmul.f32 0.5, %v12951_v53  ;;  %v3999_v42 = vmul.f32 0.70710677, %v12959_v56  ;;  %11049 = verf.f32 %v3988_v50  ;;  %6938 = vmatprep.subr.bf16.mxu0 %v10512_v15 }
 0x2b7   : > { %v13037_v21 = vpop.f32.mrb[71].mxu0  ;;  %v13039_v23 = vpop.f32.mrb[71].mxu1  ;;  %v4417_v54 = vadd.f32 1.0, %v11022_v55  ;;  %v4021_v58 = vmul.f32 0.70710677, %v13020_v46  ;;  %v13050_v18 = vmul.f32 0.5, %v12959_v56  ;;  %v13061_v35 = vmul.f32 %v4406_v26, %v12912_v3 }
 0x2b8   : > { %15036 = vst [vmem:[#allocation22_spill] sm:$0xff] %v13031_v11  ;;  %v13041_v60 = vpop.eup %11027  ;;  %v13053_v20 = vmul.f32 0.5, %v12968_v31  ;;  %v4000_v8 = vmul.f32 0.70710677, %v12970_v30  ;;  %v10510_v49 = vld [vmem:[#allocation7 + $0x258] ss:$12 sps:$4 sm:$0xff]   ;;  %11051 = verf.f32 %v4010_v38 }
 0x2b9   : > { %15037 = vst [vmem:[#allocation23_spill] sm:$0xff] %v13041_v60  ;;  %v11030_v53 = vpop.eup %11029  ;;  %15038 = vst [vmem:[#allocation24_spill] sm:$0xff] %v13050_v18  ;;  %v4418_v6 = vadd.f32 1.0, %v11026_v59  ;;  %v4022_v56 = vmul.f32 0.70710677, %v13037_v21  ;;  %11053 = verf.f32 %v3999_v42  ;;  %v13065_v55 = vmul.f32 0.5, %v12970_v30  ;;  %6939 = vmatpush1.bf16.msra.mxu0 %v10510_v49 }
 0x2ba   : > { %v13058_v24 = vpop.eup %11031  ;;  %v10517_v2 = vld [vmem:[#allocation7 + $0x274] ss:$12 sps:$4 sm:$0xff]   ;;  %v13067_v50 = vmul.f32 0.5, %v2796_v10  ;;  %v4011_v37 = vmul.f32 0.70710677, %v13002_v52  ;;  %v2806_v18 = vpop.f32.mrb[72].mxu0  ;;  %v13075_v26 = vmul.f32 %v4417_v54, %v12927_v62  ;;  %11055 = verf.f32 %v4021_v58 }
 0x2bb   : > { %15039 = vst [vmem:[#allocation25_spill] sm:$0xff] %v13058_v24  ;;  %v11034_v31 = vpop.eup %11033  ;;  %15040 = vst [vmem:[#allocation26_spill] sm:$0xff] %v13065_v55  ;;  %v13070_v11 = vpop.f32.mrb[72].mxu1  ;;  %v4429_v34 = vadd.f32 1.0, %v11030_v53  ;;  %v4033_v38 = vmul.f32 0.70710677, %v2806_v18  ;;  %11057 = verf.f32 %v4000_v8  ;;  %v13093_v58 = vmul.f32 %v4418_v6, %v12946_v9  ;;  %6940 = vmatprep.subr.bf16.mxu0 %v10517_v2  ;;  %6872 = vmatmul.mubr.bf16.gmra.mrb[140].mxu0 %v12459_v0 }
 0x2bc   : > { %v13072_v3 = vpop.eup %11035  ;;  %v13077_v42 = vpop.f32.mrb[73].mxu0  ;;  %v10515_v30 = vld [vmem:[#allocation7 + $0x270] ss:$12 sps:$4 sm:$0xff]   ;;  %v13080_v10 = vmul.f32 0.5, %v13002_v52  ;;  %v13083_v55 = vmul.f32 0.5, %v13009_v5  ;;  %v4430_v53 = vadd.f32 1.0, %v11034_v31  ;;  %11059 = verf.f32 %v4022_v56  ;;  %7648 = vmatmul.mubr.bf16.gmra.mrb[140].mxu1 %v12459_v0  ;;  %6881 = vmatprep.mubr.bf16.mxu0 %v12464_v51 }
 0x2bd   : > { %15041 = vst [vmem:[#allocation30_spill] sm:$0xff] %v13072_v3  ;;  %v11038_v59 = vpop.eup %11037  ;;  %v4012_v15 = vmul.f32 0.70710677, %v13018_v39  ;;  %v13086_v24 = vpop.f32.mrb[73].mxu1  ;;  %v4034_v8 = vmul.f32 0.70710677, %v13077_v42  ;;  %11061 = verf.f32 %v4011_v37  ;;  %v13110_v31 = vmul.f32 %v4429_v34, %v12965_v12  ;;  %7655 = vmatprep.mubr.bf16.mxu1 %v12464_v51  ;;  %6941 = vmatpush1.bf16.msra.mxu0 %v10515_v30 }
 0x2be   : > { %15042 = vst [vmem:[#allocation86_spill] sm:$0xff] %v13080_v10  ;;  %v13088_v62 = vpop.f32.mrb[74].mxu0  ;;  %v13090_v54 = vpop.eup %11039  ;;  %v10520_v5 = vld [vmem:[#allocation7 + $0x28c] ss:$12 sps:$4 sm:$0xff]   ;;  %v13099_v3 = vmul.f32 0.5, %v13018_v39  ;;  %v13102_v60 = vmul.f32 0.5, %v13020_v46  ;;  %11063 = verf.f32 %v4033_v38  ;;  %v13125_v38 = vmul.f32 %v4430_v53, %v12984_v43 }
 0x2bf   : > { %15043 = vst [vmem:[#allocation87_spill] sm:$0xff] %v13090_v54  ;;  %v13096_v52 = vpop.f32.mrb[74].mxu1  ;;  %v11042_v10 = vpop.eup %11041  ;;  %v4023_v54 = vmul.f32 0.70710677, %v13028_v41  ;;  %v4441_v49 = vadd.f32 1.0, %v11038_v59  ;;  %11065 = verf.f32 %v4012_v15  ;;  %v13116_v46 = vmul.f32 0.5, %v13028_v41  ;;  %6942 = vmatprep.subr.bf16.mxu0 %v10520_v5 }
 0x2c0   : > { %15044 = vst [vmem:[#allocation88_spill] sm:$0xff] %v13099_v3  ;;  %v13105_v9 = vpop.f32.mrb[75].mxu0  ;;  %v13107_v6 = vpop.f32.mrb[75].mxu1  ;;  %v4045_v37 = vmul.f32 0.70710677, %v13088_v62  ;;  %v13119_v3 = vmul.f32 0.5, %v13037_v21  ;;  %11067 = verf.f32 %v4034_v8 }
 0x2c1   : > { %15045 = vst [vmem:[#allocation89_spill] sm:$0xff] %v13107_v6  ;;  %v11044_v56 = vpop.eup %11043  ;;  %15046 = vst [vmem:[#allocation90_spill] sm:$0xff] %v13116_v46  ;;  %v4024_v2 = vmul.f32 0.70710677, %v13039_v23  ;;  %v10518_v12 = vld [vmem:[#allocation7 + $0x288] ss:$12 sps:$4 sm:$0xff]   ;;  %11069 = verf.f32 %v4023_v54 }
 0x2c2   : > { %v11046_v39 = vpop.eup %11045  ;;  %v4442_v0 = vadd.f32 1.0, %v11042_v10  ;;  %v4046_v59 = vmul.f32 0.70710677, %v13105_v9  ;;  %v10525_v41 = vld [vmem:[#allocation7 + $0x2a4] ss:$12 sps:$4 sm:$0xff]   ;;  %v4453_v21 = vadd.f32 1.0, %v11044_v56  ;;  %v13140_v10 = vmul.f32 %v4441_v49, %v12999_v33  ;;  %6943 = vmatpush1.bf16.msra.mxu0 %v10518_v12 }
 0x2c3   : > { %v11048_v34 = vpop.eup %11047  ;;  %v13131_v46 = vmul.f32 0.5, %v13039_v23  ;;  %v13133_v6 = vmul.f32 0.5, %v2806_v18  ;;  %v13135_v51 = vpop.f32.mrb[76].mxu0  ;;  %v13143_v30 = vmul.f32 0.5, %v13070_v11  ;;  %v4035_v53 = vmul.f32 0.70710677, %v13070_v11  ;;  %6944 = vmatprep.subr.bf16.mxu0 %v10525_v41  ;;  %6882 = vmatmul.mubr.bf16.gmra.mrb[144].mxu0 %v12466_v22 }
 0x2c4   : > { %v13128_v15 = vpop.eup %11049  ;;  %15047 = vst [vmem:[#allocation91_spill] sm:$0xff] %v13135_v51  ;;  %v13137_v28 = vpop.f32.mrb[76].mxu1  ;;  %11071 = verf.f32 %v4045_v37  ;;  %v10523_v23 = vld [vmem:[#allocation7 + $0x2a0] ss:$12 sps:$4 sm:$0xff]   ;;  %v4454_v8 = vadd.f32 1.0, %v11046_v39  ;;  %v4465_v56 = vadd.f32 1.0, %v11048_v34  ;;  %v4670_v51 = vmul.f32 %v4442_v0, %v13015_v13  ;;  %7656 = vmatmul.mubr.bf16.gmra.mrb[144].mxu1 %v12466_v22  ;;  %6891 = vmatprep.mubr.bf16.mxu0 %v12468_v32 }
 0x2c5   : > { %15048 = vst [vmem:[#allocation92_spill] sm:$0xff] %v13137_v28  ;;  %v11052_v43 = vpop.eup %11051  ;;  %15049 = vst [vmem:[#allocation93_spill] sm:$0xff] %v13143_v30  ;;  %v13146_v54 = vpop.f32.mrb[77].mxu0  ;;  %11073 = verf.f32 %v4024_v2  ;;  %v13151_v5 = vmul.f32 0.5, %v13077_v42  ;;  %v13157_v11 = vmul.f32 0.5, %v13086_v24  ;;  %v4681_v42 = vmul.f32 %v4453_v21, %v13034_v19  ;;  %7663 = vmatprep.mubr.bf16.mxu1 %v12468_v32 }
 0x2c6   : > { %15050 = vst [vmem:[#allocation94_spill] sm:$0xff] %v13146_v54  ;;  %v13148_v18 = vpop.eup %11053  ;;  %v13153_v28 = vpop.f32.mrb[77].mxu1  ;;  %v13160_v37 = vmul.f32 0.70710677, %v13086_v24  ;;  %11075 = verf.f32 %v4046_v59  ;;  %v10528_v39 = vld [vmem:[#allocation7 + $0x2bc] ss:$12 sps:$4 sm:$0xff]   ;;  %v13175_v19 = vpack.c.bf16 %v12763_v27, %v12735_v17  ;;  %v4682_v59 = vmul.f32 %v4454_v8, %v13053_v20  ;;  %6945 = vmatpush1.bf16.msra.mxu0 %v10523_v23 }
 0x2c7   : > { %15051 = vst [vmem:[#allocation95_spill] sm:$0xff] %v13153_v28  ;;  %v2820_v33 = vpop.f32.mrb[78].mxu0  ;;  %v11056_v49 = vpop.eup %11055  ;;  %v4466_v34 = vadd.f32 1.0, %v11052_v43  ;;  %11077 = verf.f32 %v4035_v53  ;;  %v13169_v24 = vmul.f32 0.70710677, %v13096_v52  ;;  %v4693_v41 = vmul.f32 %v4465_v56, %v13067_v50  ;;  %6946 = vmatprep.subr.bf16.mxu0 %v10528_v39  ;;  %v15055_v56 = vld [vmem:[#allocation85_spill] sm:$0xff] }
 0x2c8   : > { %v3082_v54 = vpop.f32.mrb[78].mxu1  ;;  %v13162_v2 = vpop.eup %11057  ;;  %v4477_v28 = vadd.f32 1.0, %v11056_v49  ;;  %v13166_v33 = vmul.f32 0.5, %v13088_v62  ;;  %v13179_v62 = vpack.c.bf16 %v12828_v47, %v12798_v36  ;;  %v13189_v22 = vpack.c.bf16 %v12819_v29, %v12771_v45  ;;  %v10526_v47 = vld [vmem:[#allocation7 + $0x2b8] ss:$12 sps:$4 sm:$0xff]   ;;  %v15057_v39 = vld [vmem:[#allocation36_spill] sm:$0xff] }
 0x2c9   : > { %v2821_v13 = vpop.f32.mrb[79].mxu0  ;;  %v3083_v0 = vpop.f32.mrb[79].mxu1  ;;  %v13194_v36 = vpack.c.bf16 %v12920_v7, %v12871_v48  ;;  %v13198_v20 = vpack.c.bf16 %v12903_v44, %v12845_v1  ;;  %v13202_v32 = vpack.c.bf16 %v12992_v40, %v12956_v4  ;;  %v4694_v45 = vmul.f32 %v4466_v34, %v13083_v55  ;;  %v15054_v54 = vld [vmem:[#allocation63_spill] sm:$0xff]  ;;  %v15056_v49 = vld [vmem:[#allocation14_spill] sm:$0xff]  ;;  %v15058_v34 = vld [vmem:[#allocation73_spill] sm:$0xff] }
 0x2ca   : > { %v11060_v30 = vpop.eup %11059  ;;  %v4705_v27 = vmul.f32 %v4477_v28, %v13102_v60  ;;  %v10533_v60 = vld [vmem:[#allocation7 + $0x2d4] ss:$12 sps:$4 sm:$0xff]   ;;  %v13210_v48 = vpack.c.bf16 %v12975_v63, %v12937_v16  ;;  %v13214_v1 = vpack.c.bf16 %v13061_v35, %v13025_v25  ;;  %v13218_v44 = vpack.c.bf16 %v13044_v57, %v13007_v14  ;;  %6947 = vmatpush1.bf16.msra.mxu0 %v10526_v47  ;;  %v10531_v57 = vld [vmem:[#allocation7 + $0x2d0] ss:$12 sps:$4 sm:$0xff]  }
 0x2cb   : > { %v13181_v12 = vpop.eup %11061  ;;  %v4478_v21 = vadd.f32 1.0, %v11060_v30  ;;  %v13222_v4 = vpack.c.bf16 %v13125_v38, %v13093_v58  ;;  %v13226_v40 = vpack.c.bf16 %v13110_v31, %v13075_v26  ;;  %v3818_v63 = vmul.f32 0.5, %v13105_v9  ;;  %v15052_v31 = vld [vmem:[#allocation48_spill] sm:$0xff]  ;;  %v15053_v30 = vld [vmem:[#allocation89_spill] sm:$0xff]  ;;  %6948 = vmatprep.subr.bf16.mxu0 %v10533_v60  ;;  %6892 = vmatmul.mubr.bf16.gmra.mrb[148].mxu0 %v15055_v56  ;;  %v15063_v60 = vld [vmem:[#allocation15_spill] sm:$0xff] }
 0x2cc   : > { %v11064_v17 = vpop.eup %11063  ;;  %v13234_v25 = vpack.c.bf16 %v4681_v42, %v13140_v10  ;;  %v13238_v58 = vpack.c.bf16 %v4705_v27, %v4693_v41  ;;  %v4300_v26 = vadd.f32 1.0, %v12714_v61  ;;  %v4312_v38 = vadd.f32 1.0, %v15052_v31  ;;  %v10536_v10 = vld [vmem:[#allocation7 + $0x2ec] ss:$12 sps:$4 sm:$0xff]   ;;  %7664 = vmatmul.mubr.bf16.gmra.mrb[148].mxu1 %v15055_v56  ;;  %v10541_v31 = vld [vmem:[#allocation7 + $0x304] ss:$12 sps:$4 sm:$0xff]  }
 0x2cd   : > { %v13204_v50 = vpop.eup %11065  ;;  %v4706_v28 = vmul.f32 %v4478_v21, %v13119_v3  ;;  %v4489_v29 = vadd.f32 1.0, %v11064_v17  ;;  %v13231_v3 = vpack.c.bf16 %v4682_v59, %v4670_v51  ;;  %v4048_v53 = vmul.f32 0.70710677, %v15053_v30  ;;  %v15059_v0 = vld [vmem:[#allocation65_spill] sm:$0xff]  ;;  %v15060_v17 = vld [vmem:[#allocation28_spill] sm:$0xff] }
 0x2ce   : > { %v11068_v7 = vpop.eup %11067  ;;  %v4324_v23 = vadd.f32 1.0, %v15054_v54  ;;  %v4528_v61 = vmul.f32 %v4300_v26, %v15056_v49  ;;  %v4540_v42 = vmul.f32 %v4312_v38, %v15057_v39  ;;  %v4336_v13 = vadd.f32 1.0, %v15058_v34  ;;  %6901 = vmatprep.mubr.bf16.mxu0 %v15060_v17  ;;  %7671 = vmatprep.mubr.bf16.mxu1 %v15060_v17  ;;  %v15061_v27 = vld [vmem:[#allocation57_spill] sm:$0xff]  ;;  %v15070_v49 = vld [vmem:[#allocation62_spill] sm:$0xff] }
 0x2cf   : > { %v13228_v55 = vpop.eup %11069  ;;  %v4490_v16 = vadd.f32 1.0, %v11068_v7  ;;  %v13236_v35 = vpack.c.bf16 %v4706_v28, %v4694_v45  ;;  %v4717_v9 = vmul.f32 %v4489_v29, %v13133_v6  ;;  %v4323_v6 = vadd.f32 1.0, %v15059_v0  ;;  %6949 = vmatpush1.bf16.msra.mxu0 %v10531_v57  ;;  %v10534_v28 = vld [vmem:[#allocation7 + $0x2e8] ss:$12 sps:$4 sm:$0xff]  }
 0x2d0   : > { %v11072_v14 = vpop.eup %11071  ;;  %v4335_v47 = vadd.f32 1.0, %v15061_v27  ;;  %v13260_v29 = vpack.c.bf16 %v4540_v42, %v4528_v61  ;;  %v4552_v7 = vmul.f32 %v4324_v23, %v15063_v60  ;;  %6950 = vmatprep.subr.bf16.mxu0 %v10536_v10  ;;  %11079 = verf.f32 %v13160_v37  ;;  %v15071_v23 = vld [vmem:[#allocation61_spill] sm:$0xff]  ;;  %v15075_v37 = vld [vmem:[#allocation64_spill] sm:$0xff] }
 0x2d1   : > { %v13242_v43 = vpop.eup %11073  ;;  %v4501_v51 = vadd.f32 1.0, %v11072_v14  ;;  %v4718_v59 = vmul.f32 %v4490_v16, %v13151_v5  ;;  %v15064_v14 = vld [vmem:[#allocation43_spill] sm:$0xff]  ;;  %v4360_v61 = vadd.f32 1.0, %v15070_v49  ;;  %v4347_v39 = vadd.f32 1.0, %v15071_v23  ;;  %v15073_v10 = vld [vmem:[#allocation53_spill] sm:$0xff]  ;;  %v15081_v60 = vld [vmem:[#allocation60_spill] sm:$0xff] }
 0x2d2   : > { %v11076_v8 = vpop.eup %11075  ;;  %15062 = vst [vmem:[#allocation48_spill] sm:$0xff] %v13260_v29  ;;  %v4564_v26 = vmul.f32 %v4336_v13, %v15064_v14  ;;  %v15065_v5 = vld [vmem:[#allocation67_spill] sm:$0xff]  ;;  %v13275_v42 = vmul.f32 0.5, %v13096_v52  ;;  %11081 = verf.f32 %v4048_v53  ;;  %v13287_v17 = vmul.f32 0.5, %v15053_v30  ;;  %v15082_v14 = vld [vmem:[#allocation69_spill] sm:$0xff]  ;;  %v15090_v23 = vld [vmem:[#allocation78_spill] sm:$0xff] }
 0x2d3   : > { %v4729_v41 = vmul.f32 %v4501_v51, %v13166_v33  ;;  %v4502_v21 = vadd.f32 1.0, %v11076_v8  ;;  %v13258_v45 = vpop.eup %11077  ;;  %v4348_v16 = vadd.f32 1.0, %v15065_v5  ;;  %v15067_v51 = vld [vmem:[#allocation39_spill] sm:$0xff]  ;;  %v15068_v8 = vld [vmem:[#allocation49_spill] sm:$0xff]  ;;  %6951 = vmatpush1.bf16.msra.mxu0 %v10534_v28  ;;  %11083 = verf.f32 %v13169_v24  ;;  %v15083_v5 = vld [vmem:[#allocation70_spill] sm:$0xff] }
 0x2d4   : > { %v4551_v54 = vmul.f32 %v4323_v6, %v15067_v51  ;;  %v4563_v56 = vmul.f32 %v4335_v47, %v15068_v8  ;;  %v13270_v57 = vpack.c.bf16 %v4564_v26, %v4552_v7  ;;  %v15074_v13 = vld [vmem:[#allocation51_spill] sm:$0xff]  ;;  %v4359_v6 = vadd.f32 1.0, %v15075_v37  ;;  %7051 = vmatprep.subr.bf16.mxu0 %v10541_v31  ;;  %v15079_v47 = vld [vmem:[#allocation12_spill] sm:$0xff] }
 0x2d5   : > { %v4730_v33 = vmul.f32 %v4502_v21, %v3818_v63  ;;  %v13265_v38 = vpack.c.bf16 %v4729_v41, %v4717_v9  ;;  %v4576_v34 = vmul.f32 %v4348_v16, %v15073_v10  ;;  %v4588_v0 = vmul.f32 %v4360_v61, %v15074_v13  ;;  %v15076_v41 = vld [vmem:[#allocation72_spill] sm:$0xff]  ;;  %v15077_v52 = vld [vmem:[#allocation79_spill] sm:$0xff]  ;;  %6902 = vmatmul.mubr.bf16.gmra.mrb[152].mxu0 %v15079_v47  ;;  %v15084_v16 = vld [vmem:[#allocation58_spill] sm:$0xff] }
 0x2d6   : > { %15069 = vst [vmem:[#allocation63_spill] sm:$0xff] %v13270_v57  ;;  %v13279_v9 = vpack.c.bf16 %v4563_v56, %v4551_v54  ;;  %v4372_v21 = vadd.f32 1.0, %v15076_v41  ;;  %v4384_v53 = vadd.f32 1.0, %v15077_v52  ;;  %7672 = vmatmul.mubr.bf16.gmra.mrb[152].mxu1 %v15079_v47  ;;  %v4575_v7 = vmul.f32 %v4347_v39, %v15081_v60  ;;  %6911 = vmatprep.mubr.bf16.mxu0 %v15084_v16  ;;  %v15085_v30 = vld [vmem:[#allocation71_spill] sm:$0xff]  ;;  %v15088_v56 = vld [vmem:[#allocation17_spill] sm:$0xff] }
 0x2d7   : > { %15066 = vst [vmem:[#allocation89_spill] sm:$0xff] %v13265_v38  ;;  %v13277_v63 = vpack.c.bf16 %v4730_v33, %v4718_v59  ;;  %v15078_v59 = vld [vmem:[#allocation16_spill] sm:$0xff]  ;;  %v13293_v28 = vpack.c.bf16 %v4588_v0, %v4576_v34  ;;  %v4587_v26 = vmul.f32 %v4359_v6, %v15082_v14  ;;  %v4383_v24 = vadd.f32 1.0, %v15083_v5  ;;  %7679 = vmatprep.mubr.bf16.mxu1 %v15084_v16  ;;  %v15086_v31 = vld [vmem:[#allocation59_spill] sm:$0xff]  ;;  %v15091_v10 = vld [vmem:[#allocation21_spill] sm:$0xff] }
 0x2d8   : > { %15072 = vst [vmem:[#allocation85_spill] sm:$0xff] %v13279_v9  ;;  %v4371_v27 = vadd.f32 1.0, %v15078_v59  ;;  %v4600_v33 = vmul.f32 %v4372_v21, %v15085_v30  ;;  %v4612_v51 = vmul.f32 %v4384_v53, %v15086_v31  ;;  %v15087_v54 = vld [vmem:[#allocation55_spill] sm:$0xff]  ;;  %v4396_v49 = vadd.f32 1.0, %v15088_v56  ;;  %v15092_v13 = vld [vmem:[#allocation77_spill] sm:$0xff]  ;;  %v15094_v6 = vld [vmem:[#allocation68_spill] sm:$0xff] }
 0x2d9   : > { %15080 = vst [vmem:[#allocation14_spill] sm:$0xff] %v13293_v28  ;;  %v13304_v61 = vpack.c.bf16 %v4587_v26, %v4575_v7  ;;  %v4611_v39 = vmul.f32 %v4383_v24, %v15090_v23  ;;  %v4408_v34 = vadd.f32 1.0, %v15091_v10  ;;  %v4395_v0 = vadd.f32 1.0, %v15092_v13  ;;  %v15095_v52 = vld [vmem:[#allocation19_spill] sm:$0xff]  ;;  %v15100_v26 = vld [vmem:[#allocation30_spill] sm:$0xff]  ;;  %v15106_v10 = vld [vmem:[#allocation20_spill] sm:$0xff] }
 0x2da   : > { %v4599_v8 = vmul.f32 %v4371_v27, %v15087_v54  ;;  %v13309_v37 = vpack.c.bf16 %v4612_v51, %v4600_v33  ;;  %v4624_v41 = vmul.f32 %v4396_v49, %v15094_v6  ;;  %v4407_v21 = vadd.f32 1.0, %v15095_v52  ;;  %v15096_v59 = vld [vmem:[#allocation23_spill] sm:$0xff]  ;;  %v15098_v27 = vld [vmem:[#allocation76_spill] sm:$0xff]  ;;  %v15101_v24 = vld [vmem:[#allocation66_spill] sm:$0xff]  ;;  %v11080_v49 = vpop.eup %11079 }
 0x2db   : > { %15089 = vst [vmem:[#allocation36_spill] sm:$0xff] %v13304_v61  ;;  %v4420_v53 = vadd.f32 1.0, %v15096_v59  ;;  %v4636_v60 = vmul.f32 %v4408_v34, %v15098_v27  ;;  %v15099_v7 = vld [vmem:[#allocation75_spill] sm:$0xff]  ;;  %v4432_v5 = vadd.f32 1.0, %v15100_v26  ;;  %v15102_v30 = vld [vmem:[#allocation82_spill] sm:$0xff]  ;;  %v15104_v54 = vld [vmem:[#allocation25_spill] sm:$0xff] }
 0x2dc   : > { %15093 = vst [vmem:[#allocation73_spill] sm:$0xff] %v13309_v37  ;;  %v13314_v47 = vpack.c.bf16 %v4611_v39, %v4599_v8  ;;  %v4623_v14 = vmul.f32 %v4395_v0, %v15099_v7  ;;  %v4635_v16 = vmul.f32 %v4407_v21, %v15101_v24  ;;  %v15103_v33 = vld [vmem:[#allocation83_spill] sm:$0xff]  ;;  %v4431_v56 = vadd.f32 1.0, %v15104_v54  ;;  %v11082_v13 = vpop.eup %11081  ;;  %v15108_v6 = vld [vmem:[#allocation74_spill] sm:$0xff]  ;;  %v15111_v7 = vld [vmem:[#allocation52_spill] sm:$0xff] }
 0x2dd   : > { %v4648_v31 = vmul.f32 %v4420_v53, %v15102_v30  ;;  %v4419_v51 = vadd.f32 1.0, %v15103_v33  ;;  %v13323_v23 = vpack.c.bf16 %v4636_v60, %v4624_v41  ;;  %v4660_v8 = vmul.f32 %v4432_v5, %v15106_v10  ;;  %v15109_v21 = vld [vmem:[#allocation18_spill] sm:$0xff]  ;;  %v15110_v53 = vld [vmem:[#allocation87_spill] sm:$0xff]  ;;  %6912 = vmatmul.mubr.bf16.gmra.mrb[156].mxu0 %v15111_v7  ;;  %v15117_v30 = vld [vmem:[#allocation80_spill] sm:$0xff] }
 0x2de   : > { %15097 = vst [vmem:[#allocation65_spill] sm:$0xff] %v13314_v47  ;;  %v4444_v39 = vadd.f32 1.0, %v13128_v15  ;;  %v4456_v34 = vadd.f32 1.0, %v13162_v2  ;;  %v13328_v0 = vpack.c.bf16 %v4635_v16, %v4623_v14  ;;  %v4659_v59 = vmul.f32 %v4431_v56, %v15109_v21  ;;  %7680 = vmatmul.mubr.bf16.gmra.mrb[156].mxu1 %v15111_v7  ;;  %v15113_v60 = vld [vmem:[#allocation22_spill] sm:$0xff]  ;;  %v11084_v14 = vpop.eup %11083  ;;  %v15119_v56 = vld [vmem:[#allocation24_spill] sm:$0xff] }
 0x2df   : > { %15105 = vst [vmem:[#allocation28_spill] sm:$0xff] %v13323_v23  ;;  %v4647_v52 = vmul.f32 %v4419_v51, %v15108_v6  ;;  %v4443_v27 = vadd.f32 1.0, %v15110_v53  ;;  %v13335_v41 = vpack.c.bf16 %v4660_v8, %v4648_v31  ;;  %v15114_v15 = vld [vmem:[#allocation26_spill] sm:$0xff]  ;;  %v4455_v2 = vadd.f32 1.0, %v13148_v18 }
 0x2e0   : > { %15107 = vst [vmem:[#allocation57_spill] sm:$0xff] %v13328_v0  ;;  %v4672_v26 = vmul.f32 %v4444_v39, %v15113_v60  ;;  %v4684_v5 = vmul.f32 %v4456_v34, %v15114_v15  ;;  %v15115_v24 = vld [vmem:[#allocation38_spill] sm:$0xff]  ;;  %v4468_v51 = vadd.f32 1.0, %v13204_v50  ;;  %v4480_v31 = vadd.f32 1.0, %v13242_v43  ;;  %v15120_v39 = vld [vmem:[#allocation88_spill] sm:$0xff] }
 0x2e1   : > { %15112 = vst [vmem:[#allocation15_spill] sm:$0xff] %v13335_v41  ;;  %6952 = vmatprep.mubr.bf16.mxu0 %v15115_v24  ;;  %7719 = vmatprep.mubr.bf16.mxu1 %v15115_v24  ;;  %v13342_v16 = vpack.c.bf16 %v4659_v59, %v4647_v52  ;;  %v4671_v33 = vmul.f32 %v4443_v27, %v15117_v30  ;;  %v4467_v8 = vadd.f32 1.0, %v13181_v12  ;;  %v4479_v18 = vadd.f32 1.0, %v13228_v55  ;;  %v15122_v53 = vld [vmem:[#allocation86_spill] sm:$0xff]  ;;  %v10538_v15 = vld [vmem:[#allocation7 + $0x308] ss:$12 sps:$4 sm:$0xff]  }
 0x2e2   : > { %v13347_v54 = vpack.c.bf16 %v4684_v5, %v4672_v26  ;;  %v4683_v10 = vmul.f32 %v4455_v2, %v15119_v56  ;;  %v4696_v34 = vmul.f32 %v4468_v51, %v15120_v39  ;;  %v4708_v6 = vmul.f32 %v4480_v31, %v13131_v46  ;;  %v15123_v27 = vld [vmem:[#allocation90_spill] sm:$0xff]  ;;  %v15127_v24 = vld [vmem:[#allocation93_spill] sm:$0xff] }
 0x2e3   : > { %15116 = vst [vmem:[#allocation43_spill] sm:$0xff] %v13342_v16  ;;  %v4492_v52 = vadd.f32 1.0, %v11080_v49  ;;  %v4504_v21 = vadd.f32 1.0, %v11082_v13  ;;  %v4695_v50 = vmul.f32 %v4467_v8, %v15122_v53  ;;  %v4707_v43 = vmul.f32 %v4479_v18, %v15123_v27  ;;  %v10539_v5 = vld [vmem:[#allocation7 + $0x300] ss:$12 sps:$4 sm:$0xff]  }
 0x2e4   : > { %15118 = vst [vmem:[#allocation67_spill] sm:$0xff] %v13347_v54  ;;  %v13354_v59 = vpack.c.bf16 %v4683_v10, %v4671_v33  ;;  %v4491_v7 = vadd.f32 1.0, %v13258_v45  ;;  %v13359_v60 = vpack.c.bf16 %v4708_v6, %v4696_v34  ;;  %v4503_v26 = vadd.f32 1.0, %v11084_v14  ;;  %v10544_v49 = vld [vmem:[#allocation7 + $0x31c] ss:$12 sps:$4 sm:$0xff]   ;;  %v15128_v45 = vld [vmem:[#allocation32_spill] sm:$0xff] }
 0x2e5   : > { %v4720_v12 = vmul.f32 %v4492_v52, %v13157_v11  ;;  %v4732_v55 = vmul.f32 %v4504_v21, %v13287_v17  ;;  %v13363_v46 = vpack.c.bf16 %v4707_v43, %v4695_v50  ;;  %v10545_v13 = vld [vmem:[#allocation7 + $0x3e0] ss:$12 sps:$4 sm:$0xff]   ;;  %6953 = vmatmul.mubr.bf16.vlgmr.msra.gmra.mrb[120].mxu0 %v15128_v45  ;;  %v10542_v14 = vld [vmem:[#allocation7 + $0x318] ss:$12 sps:$4 sm:$0xff]   ;;  %v10561_v18 = vld [vmem:[#allocation7 + $0x410] ss:$12 sps:$4 sm:$0xff]  }
 0x2e6   : > { %15121 = vst [vmem:[#allocation39_spill] sm:$0xff] %v13354_v59  ;;  %15124 = vst [vmem:[#allocation49_spill] sm:$0xff] %v13359_v60  ;;  %v4719_v30 = vmul.f32 %v4491_v7, %v15127_v24  ;;  %v4731_v33 = vmul.f32 %v4503_v26, %v13275_v42  ;;  %7720 = vmatmul.mubr.bf16.vlgmr.msra.gmra.mrb[160].mxu1 %v15128_v45  ;;  %v15129_v11 = vld [vmem:[#allocation27_spill] sm:$0xff]  ;;  %7052 = vmatpush1.bf16.msra.mxu0 %v10539_v5  ;;  %v10549_v31 = vld [vmem:[#allocation7 + $0x334] ss:$12 sps:$4 sm:$0xff]  }
 0x2e7   : > { %15125 = vst [vmem:[#allocation62_spill] sm:$0xff] %v13363_v46  ;;  %v13365_v2 = vpack.c.bf16 %v4732_v55, %v4720_v12  ;;  %6962 = vmatprep.mubr.bf16.mxu0 %v15129_v11  ;;  %7727 = vmatprep.mubr.bf16.mxu1 %v15129_v11  ;;  %v10546_v51 = vld [vmem:[#allocation7 + $0x320] ss:$12 sps:$4 sm:$0xff]   ;;  %v10553_v56 = vld [vmem:[#allocation7 + $0x3f8] ss:$12 sps:$4 sm:$0xff]   ;;  %v15134_v55 = vld [vmem:[#allocation40_spill] sm:$0xff] }
 0x2e8   : > { %v13373_v17 = vpack.c.bf16 %v4731_v33, %v4719_v30  ;;  %9152 = vmatpush3.bf16.msra.mxu1 %v10538_v15  ;;  %7053 = vmatprep.subr.bf16.mxu0 %v10544_v49  ;;  %v10547_v42 = vld [vmem:[#allocation7 + $0x330] ss:$12 sps:$4 sm:$0xff]   ;;  %v10554_v10 = vld [vmem:[#allocation7 + $0x338] ss:$12 sps:$4 sm:$0xff]   ;;  %v15132_v34 = vld [vmem:[#allocation35_spill] sm:$0xff] }
 0x2e9   : > { %15126 = vst [vmem:[#allocation61_spill] sm:$0xff] %v13365_v2  ;;  %9153 = vmatprep.subr.bf16.mxu1 %v10545_v13  ;;  %v10552_v8 = vld [vmem:[#allocation7 + $0x34c] ss:$12 sps:$4 sm:$0xff]   ;;  %v15131_v39 = vld [vmem:[#allocation42_spill] sm:$0xff]  ;;  %v10550_v6 = vld [vmem:[#allocation7 + $0x348] ss:$12 sps:$4 sm:$0xff]  }
 0x2ea   : > { %15130 = vst [vmem:[#allocation53_spill] sm:$0xff] %v13373_v17  ;;  %7054 = vmatpush1.bf16.msra.mxu0 %v10542_v14  ;;  %v10562_v52 = vld [vmem:[#allocation7 + $0x350] ss:$12 sps:$4 sm:$0xff]   ;;  %v10569_v53 = vld [vmem:[#allocation7 + $0x428] ss:$12 sps:$4 sm:$0xff]   ;;  %v15136_v11 = vld [vmem:[#allocation34_spill] sm:$0xff] }
 0x2eb   : > { %7055 = vmatprep.subr.bf16.mxu0 %v10549_v31  ;;  %v10557_v21 = vld [vmem:[#allocation7 + $0x364] ss:$12 sps:$4 sm:$0xff]   ;;  %v10555_v50 = vld [vmem:[#allocation7 + $0x360] ss:$12 sps:$4 sm:$0xff]   ;;  %v10570_v27 = vld [vmem:[#allocation7 + $0x368] ss:$12 sps:$4 sm:$0xff]  }
 0x2ec   : > { %9154 = vmatpush3.bf16.msra.mxu1 %v10546_v51  ;;  %v10560_v43 = vld [vmem:[#allocation7 + $0x37c] ss:$12 sps:$4 sm:$0xff]   ;;  %v10577_v7 = vld [vmem:[#allocation7 + $0x440] ss:$12 sps:$4 sm:$0xff]   ;;  %v10558_v26 = vld [vmem:[#allocation7 + $0x378] ss:$12 sps:$4 sm:$0xff]  }
 0x2ed   : > { %9155 = vmatprep.subr.bf16.mxu1 %v10553_v56  ;;  %6963 = vmatmul.mubr.bf16.gmra.mrb[124].mxu0 %v15131_v39  ;;  %v15133_v12 = vld [vmem:[#allocation13_spill] sm:$0xff]  ;;  %v10578_v15 = vld [vmem:[#allocation7 + $0x380] ss:$12 sps:$4 sm:$0xff]   ;;  %v10566_v14 = vld [vmem:[#allocation7 + $0x3a8] ss:$12 sps:$4 sm:$0xff]  }
 0x2ee   : > { %7728 = vmatmul.mubr.bf16.gmra.mrb[164].mxu1 %v15131_v39  ;;  %6972 = vmatprep.mubr.bf16.mxu0 %v15132_v34  ;;  %v10565_v5 = vld [vmem:[#allocation7 + $0x394] ss:$12 sps:$4 sm:$0xff]   ;;  %v10585_v49 = vld [vmem:[#allocation7 + $0x458] ss:$12 sps:$4 sm:$0xff]   ;;  %v10563_v13 = vld [vmem:[#allocation7 + $0x390] ss:$12 sps:$4 sm:$0xff]  }
 0x2ef   : > { %7735 = vmatprep.mubr.bf16.mxu1 %v15132_v34  ;;  %7056 = vmatpush1.bf16.msra.mxu0 %v10547_v42  ;;  %v10586_v24 = vld [vmem:[#allocation7 + $0x398] ss:$12 sps:$4 sm:$0xff]   ;;  %v10593_v33 = vld [vmem:[#allocation7 + $0x470] ss:$12 sps:$4 sm:$0xff]   ;;  %v15135_v45 = vld [vmem:[#allocation31_spill] sm:$0xff] }
 0x2f0   : > { %9156 = vmatpush3.bf16.msra.mxu1 %v10554_v10  ;;  %7057 = vmatprep.subr.bf16.mxu0 %v10552_v8  ;;  %v10568_v30 = vld [vmem:[#allocation7 + $0x3ac] ss:$12 sps:$4 sm:$0xff]   ;;  %v10594_v51 = vld [vmem:[#allocation7 + $0x3b0] ss:$12 sps:$4 sm:$0xff]   ;;  %v10601_v56 = vld [vmem:[#allocation7 + $0x548] ss:$12 sps:$4 sm:$0xff]  }
 0x2f1   : > { %9157 = vmatprep.subr.bf16.mxu1 %v10561_v18  ;;  %v10573_v31 = vld [vmem:[#allocation7 + $0x3c4] ss:$12 sps:$4 sm:$0xff]   ;;  %v10571_v42 = vld [vmem:[#allocation7 + $0x3c0] ss:$12 sps:$4 sm:$0xff]   ;;  %v10576_v10 = vld [vmem:[#allocation7 + $0x3dc] ss:$12 sps:$4 sm:$0xff]  }
 0x2f2   : > { %v15137_v8 = vld [vmem:[#allocation45_spill] sm:$0xff]  ;;  %v10581_v34 = vld [vmem:[#allocation7 + $0x3f4] ss:$12 sps:$4 sm:$0xff]  }
 0x2f3   : > { %7058 = vmatpush1.bf16.msra.mxu0 %v10550_v6  ;;  %v15138_v18 = vld [vmem:[#allocation29_spill] sm:$0xff] }
 0x2f4   : > { %9158 = vmatpush3.bf16.msra.mxu1 %v10562_v52  ;;  %7059 = vmatprep.subr.bf16.mxu0 %v10557_v21  ;;  %v10574_v39 = vld [vmem:[#allocation7 + $0x3d8] ss:$12 sps:$4 sm:$0xff]   ;;  %v15140_v21 = vld [vmem:[#allocation84_spill] sm:$0xff] }
 0x2f5   : > { %9159 = vmatprep.subr.bf16.mxu1 %v10569_v53  ;;  %6973 = vmatmul.mubr.bf16.gmra.mrb[128].mxu0 %v15133_v12  ;;  %v15139_v6 = vld [vmem:[#allocation81_spill] sm:$0xff]  ;;  %v4056_v53 = vmul.f32 0.70710677, %v15140_v21 }
 0x2f6   : > { %7736 = vmatmul.mubr.bf16.gmra.mrb[168].mxu1 %v15133_v12  ;;  %6982 = vmatprep.mubr.bf16.mxu0 %v15134_v55  ;;  %v4055_v52 = vmul.f32 0.70710677, %v15139_v6  ;;  %v15142_v12 = vld [vmem:[#allocation94_spill] sm:$0xff] }
 0x2f7   : > { %7743 = vmatprep.mubr.bf16.mxu1 %v15134_v55  ;;  %7060 = vmatpush1.bf16.msra.mxu0 %v10555_v50  ;;  %v10579_v50 = vld [vmem:[#allocation7 + $0x3f0] ss:$12 sps:$4 sm:$0xff]   ;;  %v4058_v55 = vmul.f32 0.70710677, %v15142_v12 }
 0x2f8   : > { %9160 = vmatpush3.bf16.msra.mxu1 %v10570_v27  ;;  %7061 = vmatprep.subr.bf16.mxu0 %v10560_v43  ;;  %v15141_v27 = vld [vmem:[#allocation91_spill] sm:$0xff]  ;;  %11085 = verf.f32 %v4055_v52 }
 0x2f9   : > { %9161 = vmatprep.subr.bf16.mxu1 %v10577_v7  ;;  %v4057_v43 = vmul.f32 0.70710677, %v15141_v27  ;;  %v10584_v7 = vld [vmem:[#allocation7 + $0x40c] ss:$12 sps:$4 sm:$0xff]   ;;  %11087 = verf.f32 %v4056_v53 }
 0x2fb   : > { %7062 = vmatpush1.bf16.msra.mxu0 %v10558_v26  ;;  %v15143_v26 = vld [vmem:[#allocation33_spill] sm:$0xff]  ;;  %11089 = verf.f32 %v4057_v43 }
 0x2fc   : > { %9162 = vmatpush3.bf16.msra.mxu1 %v10578_v15  ;;  %7063 = vmatprep.subr.bf16.mxu0 %v10565_v5  ;;  %v15144_v15 = vld [vmem:[#allocation50_spill] sm:$0xff]  ;;  %v10582_v5 = vld [vmem:[#allocation7 + $0x408] ss:$12 sps:$4 sm:$0xff]   ;;  %11091 = verf.f32 %v4058_v55 }
 0x2fd   : > { %9163 = vmatprep.subr.bf16.mxu1 %v10585_v49  ;;  %6983 = vmatmul.mubr.bf16.gmra.mrb[132].mxu0 %v15135_v45  ;;  %v10589_v49 = vld [vmem:[#allocation7 + $0x424] ss:$12 sps:$4 sm:$0xff]  }
 0x2fe   : > { %7744 = vmatmul.mubr.bf16.gmra.mrb[172].mxu1 %v15135_v45  ;;  %6992 = vmatprep.mubr.bf16.mxu0 %v15136_v11  ;;  %v10590_v45 = vld [vmem:[#allocation7 + $0x438] ss:$12 sps:$4 sm:$0xff]  }
 0x2ff   : > { %7751 = vmatprep.mubr.bf16.mxu1 %v15136_v11  ;;  %7064 = vmatpush1.bf16.msra.mxu0 %v10563_v13  ;;  %v10587_v13 = vld [vmem:[#allocation7 + $0x420] ss:$12 sps:$4 sm:$0xff]  }
 0x300   : > { %9164 = vmatpush3.bf16.msra.mxu1 %v10586_v24  ;;  %7065 = vmatprep.subr.bf16.mxu0 %v10568_v30  ;;  %v10592_v24 = vld [vmem:[#allocation7 + $0x43c] ss:$12 sps:$4 sm:$0xff]   ;;  %v15145_v30 = vld [vmem:[#allocation44_spill] sm:$0xff] }
 0x301   : > { %9165 = vmatprep.subr.bf16.mxu1 %v10593_v33  ;;  %v15146_v33 = vld [vmem:[#allocation37_spill] sm:$0xff] }
 0x302   : > { %v11086_v11 = vpop.eup %11085 }
 0x303   : > { %7066 = vmatpush1.bf16.msra.mxu0 %v10566_v14 }
 0x304   : > { %9166 = vmatpush3.bf16.msra.mxu1 %v10594_v51  ;;  %7067 = vmatprep.subr.bf16.mxu0 %v10573_v31  ;;  %v10597_v31 = vld [vmem:[#allocation7 + $0x454] ss:$12 sps:$4 sm:$0xff]  }
 0x305   : > { %9227 = vmatprep.subr.bf16.mxu1 %v10601_v56  ;;  %6993 = vmatmul.mubr.bf16.gmra.mrb[136].mxu0 %v15137_v8  ;;  %v11088_v56 = vpop.eup %11087 }
 0x306   : > { %7752 = vmatmul.mubr.bf16.gmra.mrb[176].mxu1 %v15137_v8  ;;  %7002 = vmatprep.mubr.bf16.mxu0 %v15138_v18  ;;  %v11090_v8 = vpop.eup %11089  ;;  %v4512_v55 = vadd.f32 1.0, %v11088_v56  ;;  %v3829_v56 = vmul.f32 0.5, %v15141_v27 }
 0x307   : > { %7759 = vmatprep.mubr.bf16.mxu1 %v15138_v18  ;;  %7068 = vmatpush1.bf16.msra.mxu0 %v10571_v42 }
 0x308   : > { %7069 = vmatprep.subr.bf16.mxu0 %v10576_v10 }
 0x30b   : > { %7070 = vmatpush1.bf16.msra.mxu0 %v10574_v39 }
 0x30c   : > { %7071 = vmatprep.subr.bf16.mxu0 %v10581_v34  ;;  %v11092_v34 = vpop.eup %11091 }
 0x30d   : > { %7003 = vmatmul.mubr.bf16.gmra.mrb[140].mxu0 %v15143_v26 }
 0x30e   : > { %7760 = vmatmul.mubr.bf16.gmra.mrb[180].mxu1 %v15143_v26  ;;  %7012 = vmatprep.mubr.bf16.mxu0 %v15144_v15  ;;  %v10600_v26 = vld [vmem:[#allocation7 + $0x46c] ss:$12 sps:$4 sm:$0xff]  }
 0x30f   : > { %7767 = vmatprep.mubr.bf16.mxu1 %v15144_v15  ;;  %7072 = vmatpush1.bf16.msra.mxu0 %v10579_v50  ;;  %v10595_v50 = vld [vmem:[#allocation7 + $0x450] ss:$12 sps:$4 sm:$0xff]  }
 0x310   : > { %7073 = vmatprep.subr.bf16.mxu0 %v10584_v7 }
 0x313   : > { %7074 = vmatpush1.bf16.msra.mxu0 %v10582_v5 }
 0x314   : > { %7075 = vmatprep.subr.bf16.mxu0 %v10589_v49  ;;  %v15147_v49 = vld [vmem:[#allocation41_spill] sm:$0xff] }
 0x315   : > { %7013 = vmatmul.mubr.bf16.gmra.mrb[144].mxu0 %v15145_v30 }
 0x316   : > { %7768 = vmatmul.mubr.bf16.gmra.mrb[184].mxu1 %v15145_v30  ;;  %7022 = vmatprep.mubr.bf16.mxu0 %v15146_v33  ;;  %v13403_v14 = vpop.f32.mrb[80].mxu0  ;;  %v13405_v51 = vpop.f32.mrb[80].mxu1  ;;  %v4513_v30 = vadd.f32 1.0, %v11090_v8 }
 0x317   : > { %7775 = vmatprep.mubr.bf16.mxu1 %v15146_v33  ;;  %7076 = vmatpush1.bf16.msra.mxu0 %v10587_v13  ;;  %v3845_v42 = vmul.f32 0.70710677, %v13403_v14  ;;  %v3847_v10 = vmul.f32 0.70710677, %v13405_v51  ;;  %v13409_v18 = vpop.f32.mrb[81].mxu0  ;;  %v13411_v39 = vpop.f32.mrb[81].mxu1 }
 0x318   : > { %7077 = vmatprep.subr.bf16.mxu0 %v10592_v24  ;;  %v13413_v52 = vpop.f32.mrb[82].mxu0  ;;  %v13415_v53 = vpop.f32.mrb[82].mxu1  ;;  %v4511_v13 = vadd.f32 1.0, %v11086_v11  ;;  %v3828_v24 = vmul.f32 0.5, %v15140_v21  ;;  %v4514_v33 = vadd.f32 1.0, %v11092_v34 }
 0x319   : > { %11093 = verf.f32 %v3845_v42  ;;  %v3857_v43 = vmul.f32 0.70710677, %v13413_v52  ;;  %v13418_v7 = vpop.f32.mrb[83].mxu0  ;;  %v3859_v15 = vmul.f32 0.70710677, %v13415_v53  ;;  %v13421_v5 = vpop.f32.mrb[83].mxu1 }
 0x31a   : > { %11095 = verf.f32 %v3847_v10  ;;  %v3830_v42 = vmul.f32 0.5, %v15142_v12  ;;  %v10598_v10 = vld [vmem:[#allocation7 + $0x468] ss:$12 sps:$4 sm:$0xff]   ;;  %v4740_v8 = vmul.f32 %v4512_v55, %v3828_v24  ;;  %v10605_v34 = vld [vmem:[#allocation7 + $0x484] ss:$12 sps:$4 sm:$0xff]  }
 0x31b   : > { %7078 = vmatpush1.bf16.msra.mxu0 %v10590_v45  ;;  %v15148_v45 = vld [vmem:[#allocation47_spill] sm:$0xff]  ;;  %11097 = verf.f32 %v3857_v43  ;;  %v4741_v43 = vmul.f32 %v4513_v30, %v3829_v56  ;;  %v3858_v17 = vmul.f32 0.70710677, %v13418_v7 }
 0x31c   : > { %7079 = vmatprep.subr.bf16.mxu0 %v10597_v31  ;;  %v3827_v31 = vmul.f32 0.5, %v15139_v6  ;;  %11099 = verf.f32 %v3859_v15  ;;  %v3860_v15 = vmul.f32 0.70710677, %v13421_v5  ;;  %v4860_v60 = vpack.c.bf16 %v4740_v8, %v4740_v8 }
 0x31d   : > { %7023 = vmatmul.mubr.bf16.gmra.mrb[148].mxu0 %v15147_v49  ;;  %v3617_v8 = vmul.f32 0.5, %v13403_v14  ;;  %v13472_v14 = vmul.f32 0.5, %v13411_v39 }
 0x31e   : > { %7776 = vmatmul.mubr.bf16.gmra.mrb[188].mxu1 %v15147_v49  ;;  %7032 = vmatprep.mubr.bf16.mxu0 %v15148_v45  ;;  %v3846_v49 = vmul.f32 0.70710677, %v13409_v18  ;;  %v13432_v11 = vpop.f32.mrb[84].mxu0  ;;  %v13434_v21 = vpop.f32.mrb[84].mxu1  ;;  %v4739_v12 = vmul.f32 %v4511_v13, %v3827_v31 }
 0x31f   : > { %7783 = vmatprep.mubr.bf16.mxu1 %v15148_v45  ;;  %7080 = vmatpush1.bf16.msra.mxu0 %v10595_v50  ;;  %v3848_v45 = vmul.f32 0.70710677, %v13411_v39  ;;  %v13437_v6 = vpop.f32.mrb[85].mxu0  ;;  %v13439_v27 = vpop.f32.mrb[85].mxu1  ;;  %v4742_v50 = vmul.f32 %v4514_v33, %v3830_v42  ;;  %v3871_v30 = vmul.f32 0.70710677, %v13434_v21 }
 0x320   : > { %7081 = vmatprep.subr.bf16.mxu0 %v10600_v26  ;;  %v13442_v2 = vpop.f32.mrb[86].mxu0  ;;  %v13445_v46 = vpop.f32.mrb[86].mxu1  ;;  %11101 = verf.f32 %v3846_v49  ;;  %v3869_v26 = vmul.f32 0.70710677, %v13432_v11  ;;  %v15149_v33 = vld [vmem:[#allocation54_spill] sm:$0xff]  ;;  %v4859_v31 = vpack.c.bf16 %v4739_v12, %v4739_v12  ;;  %v13458_v49 = vpack.c.bf16 %v4741_v43, %v4741_v43  ;;  %15152 = vst [vmem:[#allocation72_spill] sm:$0xff] %v13472_v14 }
 0x321   : > { %v13447_v55 = vpop.f32.mrb[87].mxu0  ;;  %v13450_v24 = vpop.f32.mrb[87].mxu1  ;;  %11103 = verf.f32 %v3848_v45  ;;  %v3870_v42 = vmul.f32 0.70710677, %v13437_v6  ;;  %v3872_v45 = vmul.f32 0.70710677, %v13439_v27 }
 0x322   : > { %11105 = verf.f32 %v3858_v17  ;;  %15151 = vst [vmem:[#allocation64_spill] sm:$0xff] %v13458_v49  ;;  %v13464_v12 = vmul.f32 0.5, %v13409_v18  ;;  %v3881_v17 = vmul.f32 0.70710677, %v13442_v2  ;;  %v3882_v16 = vmul.f32 0.70710677, %v13447_v55 }
 0x323   : > { %7082 = vmatpush1.bf16.msra.mxu0 %v10598_v10  ;;  %v11094_v13 = vpop.eup %11093  ;;  %v13456_v10 = vpack.c.bf16 %v4742_v50, %v4742_v50  ;;  %11107 = verf.f32 %v3860_v15  ;;  %v3631_v39 = vmul.f32 0.5, %v13415_v53  ;;  %v3884_v0 = vmul.f32 0.70710677, %v13450_v24 }
 0x324   : > { %7182 = vmatprep.subr.bf16.mxu0 %v10605_v34  ;;  %v11096_v56 = vpop.eup %11095  ;;  %v3619_v34 = vmul.f32 0.5, %v13405_v51  ;;  %v4301_v59 = vadd.f32 1.0, %v11094_v13  ;;  %11109 = verf.f32 %v3869_v26  ;;  %v3883_v51 = vmul.f32 0.70710677, %v13445_v46 }
 0x325   : > { %7033 = vmatmul.mubr.bf16.gmra.mrb[152].mxu0 %v15149_v33  ;;  %15150 = vst [vmem:[#allocation51_spill] sm:$0xff] %v13456_v10  ;;  %v11098_v43 = vpop.eup %11097  ;;  %v4303_v50 = vadd.f32 1.0, %v11096_v56  ;;  %11111 = verf.f32 %v3871_v30  ;;  %v3629_v26 = vmul.f32 0.5, %v13413_v52  ;;  %v13551_v57 = vmul.f32 0.5, %v13450_v24 }
 0x326   : > { %7784 = vmatmul.mubr.bf16.gmra.mrb[192].mxu1 %v15149_v33  ;;  %7042 = vmatprep.mubr.bf16.mxu0 %v4860_v60  ;;  %v13467_v33 = vpop.f32.mrb[88].mxu0  ;;  %v11100_v18 = vpop.eup %11099  ;;  %v4313_v54 = vadd.f32 1.0, %v11098_v43  ;;  %11113 = verf.f32 %v3870_v42  ;;  %v4529_v37 = vmul.f32 %v4301_v59, %v3617_v8 }
 0x327   : > { %7791 = vmatprep.mubr.bf16.mxu1 %v4860_v60  ;;  %v13469_v60 = vpop.f32.mrb[88].mxu1  ;;  %v13475_v15 = vpop.f32.mrb[89].mxu0  ;;  %v4315_v30 = vadd.f32 1.0, %v11100_v18  ;;  %11115 = verf.f32 %v3872_v45  ;;  %v3893_v42 = vmul.f32 0.70710677, %v13467_v33  ;;  %v4531_v43 = vmul.f32 %v4303_v50, %v3619_v34  ;;  %15162 = vst [vmem:[#allocation55_spill] sm:$0xff] %v13551_v57 }
 0x328   : > { %v13477_v13 = vpop.f32.mrb[89].mxu1  ;;  %v13481_v41 = vpop.f32.mrb[90].mxu0  ;;  %v4541_v52 = vmul.f32 %v4313_v54, %v3629_v26  ;;  %11117 = verf.f32 %v3881_v17  ;;  %v3895_v28 = vmul.f32 0.70710677, %v13469_v60  ;;  %v13496_v18 = vmul.f32 0.5, %v13418_v7  ;;  %v15164_v57 = vld [vmem:[#allocation56_spill] sm:$0xff] }
 0x329   : > { %v13483_v56 = vpop.f32.mrb[90].mxu1  ;;  %v13487_v23 = vpop.f32.mrb[91].mxu0  ;;  %v4543_v61 = vmul.f32 %v4315_v30, %v3631_v39  ;;  %11119 = verf.f32 %v3883_v51  ;;  %v3894_v59 = vmul.f32 0.70710677, %v13475_v15  ;;  %v13506_v34 = vmul.f32 0.5, %v13421_v5 }
 0x32a   : > { %v13489_v47 = vpop.f32.mrb[91].mxu1  ;;  %v11102_v53 = vpop.eup %11101  ;;  %v13493_v45 = vpack.c.bf16 %v4541_v52, %v4529_v37  ;;  %11121 = verf.f32 %v3882_v16  ;;  %v3896_v37 = vmul.f32 0.70710677, %v13477_v13  ;;  %v13510_v7 = vmul.f32 0.5, %v13432_v11  ;;  %v10603_v26 = vld [vmem:[#allocation7 + $0x480] ss:$12 sps:$4 sm:$0xff]  }
 0x32b   : > { %v13501_v54 = vpop.eup %11103  ;;  %v13503_v8 = vpack.c.bf16 %v4543_v61, %v4531_v43  ;;  %15156 = vst [vmem:[#allocation60_spill] sm:$0xff] %v13506_v34  ;;  %11123 = verf.f32 %v3884_v0  ;;  %v13513_v16 = vmul.f32 0.5, %v13434_v21  ;;  %v4302_v5 = vadd.f32 1.0, %v11102_v53  ;;  %v10602_v21 = vld [vmem:[#allocation7 + $0x488] ss:$12 sps:$4 sm:$0xff]  }
 0x32c   : > { %15153 = vst [vmem:[#allocation79_spill] sm:$0xff] %v13493_v45  ;;  %15154 = vst [vmem:[#allocation16_spill] sm:$0xff] %v13501_v54  ;;  %11125 = verf.f32 %v3893_v42  ;;  %v13523_v0 = vmul.f32 0.5, %v13437_v6  ;;  %v3907_v11 = vmul.f32 0.70710677, %v13483_v56  ;;  %v13529_v30 = vmul.f32 0.5, %v13439_v27 }
 0x32d   : > { %7043 = vmatmul.mubr.bf16.gmra.mrb[156].mxu0 %v4859_v31  ;;  %15155 = vst [vmem:[#allocation12_spill] sm:$0xff] %v13503_v8  ;;  %15157 = vst [vmem:[#allocation69_spill] sm:$0xff] %v13513_v16  ;;  %11127 = verf.f32 %v3895_v28  ;;  %v13532_v52 = vmul.f32 0.5, %v13442_v2  ;;  %v3906_v42 = vmul.f32 0.70710677, %v13487_v23  ;;  %v13542_v45 = vmul.f32 0.5, %v13445_v46 }
 0x32e   : > { %7792 = vmatmul.mubr.bf16.gmra.mrb[196].mxu1 %v4859_v31  ;;  %7083 = vmatprep.mubr.bf16.mxu0 %v13175_v19  ;;  %v11106_v31 = vpop.eup %11105  ;;  %v13516_v17 = vpop.f32.mrb[92].mxu0  ;;  %15159 = vst [vmem:[#allocation58_spill] sm:$0xff] %v13529_v30  ;;  %11129 = verf.f32 %v3894_v59  ;;  %v10608_v28 = vld [vmem:[#allocation7 + $0x49c] ss:$12 sps:$4 sm:$0xff]   ;;  %v10609_v53 = vld [vmem:[#allocation7 + $0x560] ss:$12 sps:$4 sm:$0xff]  }
 0x32f   : > { %7831 = vmatprep.mubr.bf16.mxu1 %v13175_v19  ;;  %v3905_v19 = vmul.f32 0.70710677, %v13481_v41  ;;  %v13518_v61 = vpop.f32.mrb[92].mxu1  ;;  %v13520_v50 = vpop.eup %11107  ;;  %15161 = vst [vmem:[#allocation59_spill] sm:$0xff] %v13542_v45  ;;  %v13545_v27 = vmul.f32 0.5, %v13447_v55  ;;  %11131 = verf.f32 %v3896_v37  ;;  %v13554_v29 = vmul.f32 0.5, %v13467_v33 }
 0x330   : > { %15158 = vst [vmem:[#allocation70_spill] sm:$0xff] %v13520_v50  ;;  %v13526_v51 = vpop.f32.mrb[93].mxu0  ;;  %v11110_v39 = vpop.eup %11109  ;;  %v3908_v2 = vmul.f32 0.70710677, %v13489_v47  ;;  %v3917_v49 = vmul.f32 0.70710677, %v13516_v17  ;;  %v13564_v37 = vmul.f32 %v4302_v5, %v13464_v12 }
 0x331   : > { %v13535_v43 = vpop.f32.mrb[93].mxu1  ;;  %v13537_v6 = vpop.f32.mrb[94].mxu0  ;;  %11133 = verf.f32 %v3905_v19  ;;  %v4314_v16 = vadd.f32 1.0, %v11106_v31  ;;  %v3919_v24 = vmul.f32 0.70710677, %v13518_v61  ;;  %v13570_v10 = vmul.f32 0.5, %v13469_v60 }
 0x332   : > { %v13539_v8 = vpop.eup %11111  ;;  %v13548_v59 = vpop.f32.mrb[94].mxu1  ;;  %11135 = verf.f32 %v3907_v11  ;;  %v10606_v33 = vld [vmem:[#allocation7 + $0x498] ss:$12 sps:$4 sm:$0xff]   ;;  %v10610_v19 = vld [vmem:[#allocation7 + $0x4a0] ss:$12 sps:$4 sm:$0xff]   ;;  %v13578_v5 = vmul.f32 0.5, %v13475_v15 }
 0x333   : > { %15160 = vst [vmem:[#allocation71_spill] sm:$0xff] %v13539_v8  ;;  %v11114_v9 = vpop.eup %11113  ;;  %v13557_v46 = vpop.f32.mrb[95].mxu0  ;;  %v4325_v8 = vadd.f32 1.0, %v11110_v39  ;;  %15165 = vst [vmem:[#allocation78_spill] sm:$0xff] %v13570_v10  ;;  %11137 = verf.f32 %v3906_v42  ;;  %v10613_v12 = vld [vmem:[#allocation7 + $0x4b4] ss:$12 sps:$4 sm:$0xff]  }
 0x334   : > { %v13559_v45 = vpop.f32.mrb[95].mxu1  ;;  %v13561_v55 = vpop.eup %11115  ;;  %11139 = verf.f32 %v3908_v2  ;;  %v3920_v60 = vmul.f32 0.70710677, %v13535_v43  ;;  %v10617_v11 = vld [vmem:[#allocation7 + $0x578] ss:$12 sps:$4 sm:$0xff]   ;;  %v4326_v42 = vadd.f32 1.0, %v11114_v9 }
 0x335   : > { %15163 = vst [vmem:[#allocation17_spill] sm:$0xff] %v13561_v55  ;;  %7084 = vmatmul.mubr.bf16.vlgmr.msra.gmra.mrb[120].mxu0 %v15164_v57  ;;  %v11118_v30 = vpop.eup %11117  ;;  %v3918_v55 = vmul.f32 0.70710677, %v13526_v51  ;;  %v13585_v10 = vmul.f32 0.5, %v13481_v41  ;;  %11141 = verf.f32 %v3917_v49  ;;  %v3931_v9 = vmul.f32 0.70710677, %v13548_v59 }
 0x336   : > { %7832 = vmatmul.mubr.bf16.vlgmr.msra.gmra.mrb[200].mxu1 %v15164_v57  ;;  %7093 = vmatprep.mubr.bf16.mxu0 %v13179_v62  ;;  %v13575_v31 = vpop.eup %11119  ;;  %v13581_v57 = vmul.f32 0.5, %v13477_v13  ;;  %v13590_v15 = vpop.f32.mrb[96].mxu1  ;;  %11143 = verf.f32 %v3919_v24  ;;  %v10611_v2 = vld [vmem:[#allocation7 + $0x4b0] ss:$12 sps:$4 sm:$0xff]   ;;  %v10616_v24 = vld [vmem:[#allocation7 + $0x4cc] ss:$12 sps:$4 sm:$0xff]   ;;  %v13627_v38 = vmul.f32 %v4326_v42, %v13523_v0 }
 0x337   : > { %7839 = vmatprep.mubr.bf16.mxu1 %v13179_v62  ;;  %15166 = vst [vmem:[#allocation21_spill] sm:$0xff] %v13575_v31  ;;  %9228 = vmatpush3.bf16.msra.mxu1 %v10602_v21  ;;  %v11122_v39 = vpop.eup %11121  ;;  %v3929_v62 = vmul.f32 0.70710677, %v13537_v6  ;;  %v13588_v31 = vpop.f32.mrb[96].mxu0  ;;  %v13595_v21 = vmul.f32 %v4314_v16, %v13496_v18  ;;  %11145 = verf.f32 %v3918_v55  ;;  %v3930_v18 = vmul.f32 0.70710677, %v13557_v46 }
 0x338   : > { %15167 = vst [vmem:[#allocation77_spill] sm:$0xff] %v13581_v57  ;;  %7183 = vmatpush1.bf16.msra.mxu0 %v10603_v26  ;;  %9229 = vmatprep.subr.bf16.mxu1 %v10609_v53  ;;  %v13592_v13 = vpop.eup %11123  ;;  %v13598_v26 = vmul.f32 0.5, %v13483_v56  ;;  %v13601_v41 = vpop.f32.mrb[97].mxu0  ;;  %v10618_v57 = vld [vmem:[#allocation7 + $0x4b8] ss:$12 sps:$4 sm:$0xff]   ;;  %v4337_v53 = vadd.f32 1.0, %v11118_v30  ;;  %11147 = verf.f32 %v3920_v60 }
 0x339   : > { %7184 = vmatprep.subr.bf16.mxu0 %v10608_v28  ;;  %15168 = vst [vmem:[#allocation68_spill] sm:$0xff] %v13592_v13  ;;  %v13603_v49 = vpop.f32.mrb[97].mxu1  ;;  %v11126_v34 = vpop.eup %11125  ;;  %v13606_v28 = vmul.f32 %v4325_v8, %v13510_v7  ;;  %v13616_v13 = vmul.f32 0.5, %v13487_v23  ;;  %v13619_v14 = vmul.f32 0.5, %v13489_v47  ;;  %v3932_v8 = vmul.f32 0.70710677, %v13559_v45 }
 0x33a   : > { %15169 = vst [vmem:[#allocation19_spill] sm:$0xff] %v13598_v26  ;;  %v13609_v16 = vpop.f32.mrb[98].mxu0  ;;  %v13611_v56 = vpop.f32.mrb[98].mxu1  ;;  %11149 = verf.f32 %v3929_v62  ;;  %v3941_v23 = vmul.f32 0.70710677, %v13588_v31  ;;  %v13636_v50 = vmul.f32 0.5, %v13518_v61 }
 0x33b   : > { %v13613_v26 = vpop.eup %11127  ;;  %15171 = vst [vmem:[#allocation76_spill] sm:$0xff] %v13619_v14  ;;  %v13622_v7 = vpop.f32.mrb[99].mxu0  ;;  %9230 = vmatpush3.bf16.msra.mxu1 %v10610_v19  ;;  %v10625_v47 = vld [vmem:[#allocation7 + $0x590] ss:$12 sps:$4 sm:$0xff]   ;;  %v13633_v14 = vmul.f32 0.5, %v13516_v17  ;;  %11151 = verf.f32 %v3931_v9  ;;  %v13650_v62 = vmul.f32 0.5, %v13526_v51 }
 0x33c   : > { %15170 = vst [vmem:[#allocation23_spill] sm:$0xff] %v13613_v26  ;;  %v13624_v30 = vpop.f32.mrb[99].mxu1  ;;  %7185 = vmatpush1.bf16.msra.mxu0 %v10606_v33  ;;  %v11130_v55 = vpop.eup %11129  ;;  %v4338_v26 = vadd.f32 1.0, %v11122_v39  ;;  %9231 = vmatprep.subr.bf16.mxu1 %v10617_v11  ;;  %15173 = vst [vmem:[#allocation30_spill] sm:$0xff] %v13636_v50  ;;  %v3943_v33 = vmul.f32 0.70710677, %v13590_v15  ;;  %11153 = verf.f32 %v3930_v18 }
 0x33d   : > { %7186 = vmatprep.subr.bf16.mxu0 %v10613_v12  ;;  %v13630_v60 = vpop.eup %11131  ;;  %7094 = vmatmul.mubr.bf16.gmra.mrb[124].mxu0 %v13189_v22  ;;  %v10614_v0 = vld [vmem:[#allocation7 + $0x4c8] ss:$12 sps:$4 sm:$0xff]   ;;  %v13642_v12 = vmul.f32 %v4337_v53, %v13532_v52  ;;  %v4349_v11 = vadd.f32 1.0, %v11126_v34  ;;  %v3942_v17 = vmul.f32 0.70710677, %v13601_v41  ;;  %11155 = verf.f32 %v3932_v8 }
 0x33e   : > { %15172 = vst [vmem:[#allocation75_spill] sm:$0xff] %v13630_v60  ;;  %7840 = vmatmul.mubr.bf16.gmra.mrb[204].mxu1 %v13189_v22  ;;  %v11134_v19 = vpop.eup %11133  ;;  %7103 = vmatprep.mubr.bf16.mxu0 %v13194_v36  ;;  %v10621_v61 = vld [vmem:[#allocation7 + $0x4e4] ss:$12 sps:$4 sm:$0xff]   ;;  %v13653_v22 = vmul.f32 0.5, %v13535_v43  ;;  %v3944_v34 = vmul.f32 0.70710677, %v13603_v49  ;;  %v13657_v53 = vmul.f32 %v4338_v26, %v13545_v27  ;;  %11157 = verf.f32 %v3941_v23 }
 0x33f   : > { %7847 = vmatprep.mubr.bf16.mxu1 %v13194_v36  ;;  %v10626_v39 = vld [vmem:[#allocation7 + $0x4d0] ss:$12 sps:$4 sm:$0xff]   ;;  %v13647_v42 = vpop.eup %11135  ;;  %9232 = vmatpush3.bf16.msra.mxu1 %v10618_v57  ;;  %v10633_v52 = vld [vmem:[#allocation7 + $0x5a8] ss:$12 sps:$4 sm:$0xff]   ;;  %v13660_v36 = vmul.f32 0.5, %v13537_v6  ;;  %v13663_v18 = vpop.f32.mrb[100].mxu0  ;;  %11159 = verf.f32 %v3943_v33 }
 0x340   : > { %15174 = vst [vmem:[#allocation66_spill] sm:$0xff] %v13647_v42  ;;  %15175 = vst [vmem:[#allocation82_spill] sm:$0xff] %v13653_v22  ;;  %7187 = vmatpush1.bf16.msra.mxu0 %v10611_v2  ;;  %v11138_v9 = vpop.eup %11137  ;;  %v3953_v51 = vmul.f32 0.70710677, %v13609_v16  ;;  %v13665_v43 = vpop.f32.mrb[100].mxu1  ;;  %9233 = vmatprep.subr.bf16.mxu1 %v10625_v47  ;;  %v4350_v57 = vadd.f32 1.0, %v11130_v55  ;;  %v13676_v22 = vmul.f32 %v4349_v11, %v13554_v29  ;;  %11161 = verf.f32 %v3942_v17 }
 0x341   : > { %7188 = vmatprep.subr.bf16.mxu0 %v10616_v24  ;;  %v13667_v8 = vpop.eup %11139  ;;  %v13670_v2 = vmul.f32 0.5, %v13548_v59  ;;  %v3955_v27 = vmul.f32 0.70710677, %v13611_v56  ;;  %v13673_v6 = vpop.f32.mrb[101].mxu0  ;;  %v10619_v26 = vld [vmem:[#allocation7 + $0x4e0] ss:$12 sps:$4 sm:$0xff]   ;;  %11163 = verf.f32 %v3944_v34 }
 0x342   : > { %15176 = vst [vmem:[#allocation83_spill] sm:$0xff] %v13667_v8  ;;  %v10634_v23 = vld [vmem:[#allocation7 + $0x4e8] ss:$12 sps:$4 sm:$0xff]   ;;  %v11142_v50 = vpop.eup %11141  ;;  %15178 = vst [vmem:[#allocation20_spill] sm:$0xff] %v13676_v22  ;;  %v13679_v24 = vmul.f32 0.5, %v13557_v46  ;;  %v13682_v47 = vpop.f32.mrb[101].mxu1  ;;  %11165 = verf.f32 %v3953_v51  ;;  %v13708_v34 = vmul.f32 %v4350_v57, %v13578_v5 }
 0x343   : > { %15177 = vst [vmem:[#allocation25_spill] sm:$0xff] %v13670_v2  ;;  %v3954_v55 = vmul.f32 0.70710677, %v13622_v7  ;;  %v13684_v59 = vpop.f32.mrb[102].mxu0  ;;  %v10624_v33 = vld [vmem:[#allocation7 + $0x4fc] ss:$12 sps:$4 sm:$0xff]   ;;  %v13686_v42 = vpop.eup %11143  ;;  %9234 = vmatpush3.bf16.msra.mxu1 %v10626_v39  ;;  %11167 = verf.f32 %v3955_v27 }
 0x344   : > { %v10641_v2 = vld [vmem:[#allocation7 + $0x5c0] ss:$12 sps:$4 sm:$0xff]   ;;  %15179 = vst [vmem:[#allocation74_spill] sm:$0xff] %v13686_v42  ;;  %v13689_v8 = vmul.f32 0.5, %v13559_v45  ;;  %v13692_v29 = vmul.f32 0.5, %v13588_v31  ;;  %v13695_v11 = vpop.f32.mrb[102].mxu1  ;;  %7189 = vmatpush1.bf16.msra.mxu0 %v10614_v0  ;;  %v11146_v17 = vpop.eup %11145  ;;  %9235 = vmatprep.subr.bf16.mxu1 %v10633_v52 }
 0x345   : > { %v3956_v46 = vmul.f32 0.70710677, %v13624_v30  ;;  %v4361_v60 = vadd.f32 1.0, %v11134_v19  ;;  %v13698_v54 = vmul.f32 0.5, %v13590_v15  ;;  %v3965_v42 = vmul.f32 0.70710677, %v13663_v18  ;;  %7190 = vmatprep.subr.bf16.mxu0 %v10621_v61  ;;  %v13705_v31 = vpop.eup %11147  ;;  %7104 = vmatmul.mubr.bf16.gmra.mrb[128].mxu0 %v13198_v20 }
 0x346   : > { %15180 = vst [vmem:[#allocation18_spill] sm:$0xff] %v13689_v8  ;;  %v13701_v45 = vpop.f32.mrb[103].mxu0  ;;  %v13703_v8 = vpop.f32.mrb[103].mxu1  ;;  %15183 = vst [vmem:[#allocation22_spill] sm:$0xff] %v13705_v31  ;;  %v13711_v0 = vmul.f32 0.5, %v13601_v41  ;;  %7848 = vmatmul.mubr.bf16.gmra.mrb[208].mxu1 %v13198_v20  ;;  %v4362_v51 = vadd.f32 1.0, %v11138_v9  ;;  %11169 = verf.f32 %v3954_v55  ;;  %7113 = vmatprep.mubr.bf16.mxu0 %v13202_v32 }
 0x347   : > { %15181 = vst [vmem:[#allocation87_spill] sm:$0xff] %v13698_v54  ;;  %15182 = vst [vmem:[#allocation52_spill] sm:$0xff] %v13703_v8  ;;  %v3967_v15 = vmul.f32 0.70710677, %v13665_v43  ;;  %v10622_v19 = vld [vmem:[#allocation7 + $0x4f8] ss:$12 sps:$4 sm:$0xff]   ;;  %v11150_v39 = vpop.eup %11149  ;;  %7855 = vmatprep.mubr.bf16.mxu1 %v13202_v32  ;;  %11171 = verf.f32 %v3956_v46  ;;  %9236 = vmatpush3.bf16.msra.mxu1 %v10634_v23  ;;  %v13729_v54 = vmul.f32 %v4361_v60, %v13585_v10 }
 0x348   : > { %v13717_v61 = vmul.f32 0.5, %v13603_v49  ;;  %v3966_v5 = vmul.f32 0.70710677, %v13673_v6  ;;  %v10629_v41 = vld [vmem:[#allocation7 + $0x514] ss:$12 sps:$4 sm:$0xff]   ;;  %v13722_v57 = vpop.eup %11151  ;;  %v4373_v27 = vadd.f32 1.0, %v11142_v50  ;;  %7191 = vmatpush1.bf16.msra.mxu0 %v10619_v26  ;;  %11173 = verf.f32 %v3965_v42  ;;  %9237 = vmatprep.subr.bf16.mxu1 %v10641_v2 }
 0x349   : > { %v10642_v52 = vld [vmem:[#allocation7 + $0x500] ss:$12 sps:$4 sm:$0xff]   ;;  %15185 = vst [vmem:[#allocation38_spill] sm:$0xff] %v13722_v57  ;;  %v13725_v20 = vmul.f32 0.5, %v13609_v16  ;;  %v3968_v9 = vmul.f32 0.70710677, %v13682_v47  ;;  %v11154_v55 = vpop.eup %11153  ;;  %7192 = vmatprep.subr.bf16.mxu0 %v10624_v33  ;;  %11175 = verf.f32 %v3967_v15  ;;  %v13748_v57 = vmul.f32 %v4362_v51, %v13616_v13 }
 0x34a   : > { %15184 = vst [vmem:[#allocation26_spill] sm:$0xff] %v13717_v61  ;;  %v10649_v49 = vld [vmem:[#allocation7 + $0x5d8] ss:$12 sps:$4 sm:$0xff]   ;;  %15186 = vst [vmem:[#allocation80_spill] sm:$0xff] %v13729_v54  ;;  %v13732_v32 = vmul.f32 0.5, %v13611_v56  ;;  %v13735_v50 = vpop.f32.mrb[104].mxu0  ;;  %v13739_v46 = vpop.eup %11155  ;;  %11177 = verf.f32 %v3966_v5  ;;  %v13761_v31 = vmul.f32 %v4373_v27, %v13633_v14 }
 0x34b   : > { %v3977_v61 = vmul.f32 0.70710677, %v13684_v59  ;;  %v13737_v16 = vpop.f32.mrb[104].mxu1  ;;  %15188 = vst [vmem:[#allocation88_spill] sm:$0xff] %v13739_v46  ;;  %v4374_v26 = vadd.f32 1.0, %v11146_v17  ;;  %v13742_v23 = vmul.f32 0.5, %v13622_v7  ;;  %11179 = verf.f32 %v3968_v9  ;;  %9238 = vmatpush3.bf16.msra.mxu1 %v10642_v52 }
 0x34c   : > { %15187 = vst [vmem:[#allocation24_spill] sm:$0xff] %v13732_v32  ;;  %v3979_v10 = vmul.f32 0.70710677, %v13695_v11  ;;  %v13745_v56 = vpop.f32.mrb[105].mxu0  ;;  %v10627_v60 = vld [vmem:[#allocation7 + $0x510] ss:$12 sps:$4 sm:$0xff]   ;;  %v11158_v32 = vpop.eup %11157  ;;  %7193 = vmatpush1.bf16.msra.mxu0 %v10622_v19  ;;  %9239 = vmatprep.subr.bf16.mxu1 %v10649_v49 }
 0x34d   : > { %v10650_v42 = vld [vmem:[#allocation7 + $0x518] ss:$12 sps:$4 sm:$0xff]   ;;  %v13751_v33 = vmul.f32 0.5, %v13624_v30  ;;  %v3978_v2 = vmul.f32 0.70710677, %v13701_v45  ;;  %v13754_v17 = vpop.f32.mrb[105].mxu1  ;;  %v13758_v46 = vpop.eup %11159  ;;  %11181 = verf.f32 %v3977_v61  ;;  %7194 = vmatprep.subr.bf16.mxu0 %v10629_v41  ;;  %v13780_v19 = vmul.f32 %v4374_v26, %v13650_v62  ;;  %7114 = vmatmul.mubr.bf16.gmra.mrb[132].mxu0 %v13210_v48 }
 0x34e   : > { %v13756_v7 = vpop.f32.mrb[106].mxu0  ;;  %v10632_v15 = vld [vmem:[#allocation7 + $0x52c] ss:$12 sps:$4 sm:$0xff]   ;;  %15190 = vst [vmem:[#allocation90_spill] sm:$0xff] %v13758_v46  ;;  %v13764_v54 = vmul.f32 0.5, %v13663_v18  ;;  %v13767_v30 = vpop.f32.mrb[106].mxu1  ;;  %11183 = verf.f32 %v3979_v10  ;;  %7856 = vmatmul.mubr.bf16.gmra.mrb[212].mxu1 %v13210_v48  ;;  %7123 = vmatprep.mubr.bf16.mxu0 %v13214_v1 }
 0x34f   : > { %15189 = vst [vmem:[#allocation86_spill] sm:$0xff] %v13751_v33  ;;  %v3980_v13 = vmul.f32 0.70710677, %v13703_v8  ;;  %v10657_v51 = vld [vmem:[#allocation7 + $0x5f0] ss:$12 sps:$4 sm:$0xff]   ;;  %v11162_v5 = vpop.eup %11161  ;;  %v4385_v33 = vadd.f32 1.0, %v11150_v39  ;;  %11185 = verf.f32 %v3978_v2  ;;  %7863 = vmatprep.mubr.bf16.mxu1 %v13214_v1  ;;  %9240 = vmatpush3.bf16.msra.mxu1 %v10650_v42 }
 0x350   : > { %v13770_v22 = vmul.f32 0.5, %v13665_v43  ;;  %v3989_v14 = vmul.f32 0.70710677, %v13735_v50  ;;  %v13773_v27 = vpop.f32.mrb[107].mxu0  ;;  %v13775_v18 = vpop.f32.mrb[107].mxu1  ;;  %v13783_v52 = vmul.f32 0.5, %v13673_v6  ;;  %7195 = vmatpush1.bf16.msra.mxu0 %v10627_v60  ;;  %9241 = vmatprep.subr.bf16.mxu1 %v10657_v51 }
 0x351   : > { %v13777_v9 = vpop.eup %11163  ;;  %v3991_v43 = vmul.f32 0.70710677, %v13737_v16  ;;  %v10630_v39 = vld [vmem:[#allocation7 + $0x528] ss:$12 sps:$4 sm:$0xff]   ;;  %v13789_v41 = vmul.f32 0.5, %v13682_v47  ;;  %v4397_v10 = vadd.f32 1.0, %v11158_v32  ;;  %11187 = verf.f32 %v3980_v13  ;;  %7196 = vmatprep.subr.bf16.mxu0 %v10632_v15 }
 0x352   : > { %15191 = vst [vmem:[#allocation93_spill] sm:$0xff] %v13770_v22  ;;  %15192 = vst [vmem:[#allocation32_spill] sm:$0xff] %v13777_v9  ;;  %v11166_v61 = vpop.eup %11165  ;;  %v4386_v22 = vadd.f32 1.0, %v11154_v55  ;;  %v3990_v62 = vmul.f32 0.70710677, %v13745_v56  ;;  %v13797_v48 = vmul.f32 0.5, %v13684_v59  ;;  %11189 = verf.f32 %v3989_v14 }
 0x353   : > { %15193 = vst [vmem:[#allocation27_spill] sm:$0xff] %v13789_v41  ;;  %v10637_v6 = vld [vmem:[#allocation7 + $0x544] ss:$12 sps:$4 sm:$0xff]   ;;  %v13794_v26 = vpop.eup %11167  ;;  %v3992_v55 = vmul.f32 0.70710677, %v13754_v17  ;;  %v13801_v41 = vmul.f32 %v4385_v33, %v13660_v36  ;;  %v13804_v1 = vmul.f32 0.5, %v13695_v11  ;;  %11191 = verf.f32 %v3991_v43 }
 0x354   : > { %v10658_v49 = vld [vmem:[#allocation7 + $0x530] ss:$12 sps:$4 sm:$0xff]   ;;  %15194 = vst [vmem:[#allocation42_spill] sm:$0xff] %v13794_v26  ;;  %v10665_v47 = vld [vmem:[#allocation7 + $0x6c8] ss:$12 sps:$4 sm:$0xff]   ;;  %v11170_v2 = vpop.eup %11169  ;;  %v13807_v32 = vpop.f32.mrb[108].mxu0  ;;  %11193 = verf.f32 %v3990_v62  ;;  %v13833_v43 = vmul.f32 %v4397_v10, %v13692_v29  ;;  %7197 = vmatpush1.bf16.msra.mxu0 %v10630_v39 }
 0x355   : > { %15195 = vst [vmem:[#allocation35_spill] sm:$0xff] %v13801_v41  ;;  %15196 = vst [vmem:[#allocation13_spill] sm:$0xff] %v13804_v1  ;;  %v4001_v26 = vmul.f32 0.70710677, %v13756_v7  ;;  %v13809_v59 = vpop.f32.mrb[108].mxu1  ;;  %v13811_v13 = vpop.eup %11171  ;;  %v4398_v60 = vadd.f32 1.0, %v11162_v5  ;;  %v13820_v1 = vmul.f32 %v4386_v22, %v13679_v24  ;;  %11195 = verf.f32 %v3992_v55  ;;  %9242 = vmatpush3.bf16.msra.mxu1 %v10658_v49  ;;  %7198 = vmatprep.subr.bf16.mxu0 %v10637_v6 }
 0x356   : > { %15197 = vst [vmem:[#allocation40_spill] sm:$0xff] %v13811_v13  ;;  %v13814_v42 = vmul.f32 0.5, %v13701_v45  ;;  %v4003_v36 = vmul.f32 0.70710677, %v13767_v30  ;;  %v13817_v11 = vpop.f32.mrb[109].mxu0  ;;  %v11174_v14 = vpop.eup %11173  ;;  %v13823_v46 = vmul.f32 0.5, %v13735_v50  ;;  %9303 = vmatprep.subr.bf16.mxu1 %v10665_v47  ;;  %7124 = vmatmul.mubr.bf16.gmra.mrb[136].mxu0 %v13218_v44 }
 0x357   : > { %v10635_v33 = vld [vmem:[#allocation7 + $0x540] ss:$12 sps:$4 sm:$0xff]   ;;  %v4002_v15 = vmul.f32 0.70710677, %v13773_v27  ;;  %v13826_v51 = vpop.f32.mrb[109].mxu1  ;;  %v13828_v45 = vpop.f32.mrb[110].mxu0  ;;  %11197 = verf.f32 %v4001_v26  ;;  %v13852_v39 = vmul.f32 %v4398_v60, %v13711_v0  ;;  %7864 = vmatmul.mubr.bf16.gmra.mrb[216].mxu1 %v13218_v44  ;;  %7133 = vmatprep.mubr.bf16.mxu0 %v13222_v4 }
 0x358   : > { %v13830_v5 = vpop.eup %11175  ;;  %15199 = vst [vmem:[#allocation34_spill] sm:$0xff] %v13833_v43  ;;  %v4409_v13 = vadd.f32 1.0, %v11166_v61  ;;  %v4004_v22 = vmul.f32 0.70710677, %v13775_v18  ;;  %v13836_v24 = vpop.f32.mrb[110].mxu1  ;;  %v13839_v9 = vmul.f32 0.5, %v13737_v16  ;;  %11199 = verf.f32 %v4003_v36  ;;  %7871 = vmatprep.mubr.bf16.mxu1 %v13222_v4  ;;  %7199 = vmatpush1.bf16.msra.mxu0 %v10635_v33 }
 0x359   : > { %15198 = vst [vmem:[#allocation31_spill] sm:$0xff] %v13830_v5  ;;  %v10640_v50 = vld [vmem:[#allocation7 + $0x55c] ss:$12 sps:$4 sm:$0xff]   ;;  %v11178_v62 = vpop.eup %11177  ;;  %v13842_v8 = vmul.f32 0.5, %v13745_v56  ;;  %v4013_v29 = vmul.f32 0.70710677, %v13807_v32  ;;  %11201 = verf.f32 %v4002_v15 }
 0x35a   : > { %v13845_v10 = vpop.f32.mrb[111].mxu0  ;;  %v13847_v61 = vpop.f32.mrb[111].mxu1  ;;  %15201 = vst [vmem:[#allocation29_spill] sm:$0xff] %v13852_v39  ;;  %v4410_v49 = vadd.f32 1.0, %v11170_v2  ;;  %v4015_v16 = vmul.f32 0.70710677, %v13809_v59  ;;  %v13866_v2 = vmul.f32 %v4409_v13, %v13725_v20  ;;  %11203 = verf.f32 %v4004_v22  ;;  %7200 = vmatprep.subr.bf16.mxu0 %v10640_v50 }
 0x35b   : > { %v13849_v55 = vpop.eup %11179  ;;  %v4421_v26 = vadd.f32 1.0, %v11174_v14  ;;  %v13858_v5 = vmul.f32 0.5, %v13754_v17  ;;  %v4014_v6 = vmul.f32 0.70710677, %v13817_v11  ;;  %v10638_v0 = vld [vmem:[#allocation7 + $0x558] ss:$12 sps:$4 sm:$0xff]   ;;  %11205 = verf.f32 %v4013_v29 }
 0x35c   : > { %15200 = vst [vmem:[#allocation45_spill] sm:$0xff] %v13849_v55  ;;  %v11182_v56 = vpop.eup %11181  ;;  %15203 = vst [vmem:[#allocation84_spill] sm:$0xff] %v13866_v2  ;;  %v13869_v44 = vmul.f32 0.5, %v13756_v7  ;;  %v4025_v17 = vmul.f32 0.70710677, %v13828_v45  ;;  %v4422_v14 = vadd.f32 1.0, %v11178_v62  ;;  %v13883_v13 = vmul.f32 %v4410_v49, %v13742_v23  ;;  %7201 = vmatpush1.bf16.msra.mxu0 %v10638_v0 }
 0x35d   : > { %v13863_v47 = vpop.eup %11183  ;;  %v10645_v60 = vld [vmem:[#allocation7 + $0x574] ss:$12 sps:$4 sm:$0xff]   ;;  %v13873_v15 = vmul.f32 0.5, %v13767_v30  ;;  %v4026_v4 = vmul.f32 0.70710677, %v13845_v10  ;;  %v13878_v20 = vpop.f32.mrb[112].mxu1  ;;  %11207 = verf.f32 %v4015_v16  ;;  %v13896_v50 = vmul.f32 %v4421_v26, %v13764_v54 }
 0x35e   : > { %15202 = vst [vmem:[#allocation81_spill] sm:$0xff] %v13863_v47  ;;  %v11186_v36 = vpop.eup %11185  ;;  %v13876_v47 = vpop.f32.mrb[112].mxu0  ;;  %15205 = vst [vmem:[#allocation94_spill] sm:$0xff] %v13883_v13  ;;  %v13886_v33 = vmul.f32 0.5, %v13773_v27  ;;  %v13889_v22 = vmul.f32 0.5, %v13775_v18  ;;  %11209 = verf.f32 %v4014_v6  ;;  %v4433_v16 = vadd.f32 1.0, %v11182_v56  ;;  %7202 = vmatprep.subr.bf16.mxu0 %v10645_v60  ;;  %7134 = vmatmul.mubr.bf16.gmra.mrb[140].mxu0 %v13226_v40 }
 0x35f   : > { %v13880_v7 = vpop.eup %11187  ;;  %v13891_v30 = vpop.f32.mrb[113].mxu0  ;;  %v10643_v29 = vld [vmem:[#allocation7 + $0x570] ss:$12 sps:$4 sm:$0xff]   ;;  %15206 = vst [vmem:[#allocation33_spill] sm:$0xff] %v13896_v50  ;;  %v4016_v23 = vmul.f32 0.70710677, %v13826_v51  ;;  %11211 = verf.f32 %v4025_v17  ;;  %v13915_v6 = vmul.f32 %v4422_v14, %v13783_v52  ;;  %7872 = vmatmul.mubr.bf16.gmra.mrb[220].mxu1 %v13226_v40  ;;  %7143 = vmatprep.mubr.bf16.mxu0 %v13231_v3 }
 0x360   : > { %15204 = vst [vmem:[#allocation91_spill] sm:$0xff] %v13880_v7  ;;  %v13893_v62 = vpop.f32.mrb[113].mxu1  ;;  %v11190_v55 = vpop.eup %11189  ;;  %v13899_v7 = vmul.f32 0.5, %v13807_v32  ;;  %v13907_v2 = vmul.f32 0.5, %v13809_v59  ;;  %v4027_v43 = vmul.f32 0.70710677, %v13836_v24  ;;  %11213 = verf.f32 %v4026_v4  ;;  %7879 = vmatprep.mubr.bf16.mxu1 %v13231_v3  ;;  %7203 = vmatpush1.bf16.msra.mxu0 %v10643_v29 }
 0x361   : > { %v13902_v27 = vpop.f32.mrb[114].mxu0  ;;  %v13904_v18 = vpop.f32.mrb[114].mxu1  ;;  %15207 = vst [vmem:[#allocation50_spill] sm:$0xff] %v13915_v6  ;;  %v13918_v50 = vmul.f32 0.5, %v13817_v11  ;;  %v4037_v56 = vmul.f32 0.70710677, %v13876_v47  ;;  %11215 = verf.f32 %v4016_v23 }
 0x362   : > { %v11192_v49 = vpop.eup %11191  ;;  %v13910_v54 = vpop.f32.mrb[115].mxu0  ;;  %v10648_v59 = vld [vmem:[#allocation7 + $0x58c] ss:$12 sps:$4 sm:$0xff]   ;;  %v4434_v13 = vadd.f32 1.0, %v11186_v36  ;;  %v4445_v39 = vadd.f32 1.0, %v11190_v55  ;;  %v13922_v41 = vmul.f32 0.5, %v13826_v51  ;;  %v13934_v55 = vmul.f32 %v4433_v16, %v13797_v48 }
 0x363   : > { %v13912_v26 = vpop.f32.mrb[115].mxu1  ;;  %v11194_v32 = vpop.eup %11193  ;;  %v13925_v0 = vmul.f32 0.5, %v13828_v45  ;;  %v4447_v11 = vadd.f32 1.0, %v11192_v49  ;;  %v4028_v14 = vmul.f32 0.70710677, %v13847_v61  ;;  %v13937_v45 = vmul.f32 0.5, %v13836_v24  ;;  %7204 = vmatprep.subr.bf16.mxu0 %v10648_v59 }
 0x364   : > { %v11196_v17 = vpop.eup %11195  ;;  %15208 = vst [vmem:[#allocation44_spill] sm:$0xff] %v13922_v41  ;;  %v4038_v60 = vmul.f32 0.70710677, %v13891_v30  ;;  %11217 = verf.f32 %v4027_v43  ;;  %v13940_v40 = vmul.f32 0.5, %v13845_v10  ;;  %v10646_v36 = vld [vmem:[#allocation7 + $0x588] ss:$12 sps:$4 sm:$0xff]   ;;  %v13950_v43 = vmul.f32 %v4434_v13, %v13814_v42 }
 0x365   : > { %v11198_v52 = vpop.eup %11197  ;;  %v10653_v4 = vld [vmem:[#allocation7 + $0x5a4] ss:$12 sps:$4 sm:$0xff]   ;;  %v4446_v49 = vadd.f32 1.0, %v11194_v32  ;;  %v4448_v41 = vadd.f32 1.0, %v11196_v17  ;;  %v13943_v6 = vmul.f32 0.5, %v13847_v61  ;;  %11219 = verf.f32 %v4037_v56  ;;  %v13945_v3 = vpop.f32.mrb[116].mxu0  ;;  %7205 = vmatpush1.bf16.msra.mxu0 %v10646_v36 }
 0x366   : > { %v11200_v51 = vpop.eup %11199  ;;  %15209 = vst [vmem:[#allocation37_spill] sm:$0xff] %v13945_v3  ;;  %v13947_v48 = vpop.f32.mrb[116].mxu1  ;;  %v4039_v10 = vmul.f32 0.70710677, %v13878_v20  ;;  %11221 = verf.f32 %v4038_v60  ;;  %v4049_v29 = vmul.f32 0.70710677, %v13902_v27  ;;  %v13959_v56 = vmul.f32 %v4445_v39, %v13823_v46  ;;  %7206 = vmatprep.subr.bf16.mxu0 %v10653_v4  ;;  %7144 = vmatmul.mubr.bf16.gmra.mrb[144].mxu0 %v13234_v25 }
 0x367   : > { %v11202_v23 = vpop.eup %11201  ;;  %15210 = vst [vmem:[#allocation41_spill] sm:$0xff] %v13947_v48  ;;  %v13954_v16 = vpop.f32.mrb[117].mxu0  ;;  %v13962_v17 = vmul.f32 %v4447_v11, %v13839_v9  ;;  %11223 = verf.f32 %v4028_v14  ;;  %v13965_v42 = vmul.f32 0.5, %v13876_v47  ;;  %v10651_v60 = vld [vmem:[#allocation7 + $0x5a0] ss:$12 sps:$4 sm:$0xff]   ;;  %v4457_v3 = vadd.f32 1.0, %v11198_v52  ;;  %7880 = vmatmul.mubr.bf16.gmra.mrb[224].mxu1 %v13234_v25  ;;  %7153 = vmatprep.mubr.bf16.mxu0 %v13236_v35 }
 0x368   : > { %v11204_v24 = vpop.eup %11203  ;;  %15211 = vst [vmem:[#allocation47_spill] sm:$0xff] %v13954_v16  ;;  %v13956_v32 = vpop.f32.mrb[117].mxu1  ;;  %v13968_v16 = vmul.f32 0.5, %v13878_v20  ;;  %11225 = verf.f32 %v4049_v29  ;;  %v13972_v11 = vmul.f32 %v4446_v49, %v13842_v8  ;;  %v4459_v47 = vadd.f32 1.0, %v11200_v51  ;;  %7887 = vmatprep.mubr.bf16.mxu1 %v13236_v35  ;;  %v10654_v25 = vld [vmem:[#allocation7 + $0x5b8] ss:$12 sps:$4 sm:$0xff]  }
 0x369   : > { %15212 = vst [vmem:[#allocation54_spill] sm:$0xff] %v13956_v32  ;;  %v11206_v61 = vpop.eup %11205  ;;  %15213 = vst [vmem:[#allocation56_spill] sm:$0xff] %v13962_v17  ;;  %v3344_v13 = vpop.f32.mrb[118].mxu0  ;;  %v4040_v32 = vmul.f32 0.70710677, %v13893_v62  ;;  %v4458_v14 = vadd.f32 1.0, %v11202_v23  ;;  %v13976_v20 = vmul.f32 %v4448_v41, %v13858_v5  ;;  %11227 = verf.f32 %v4039_v10  ;;  %7207 = vmatpush1.bf16.msra.mxu0 %v10651_v60 }
 0x36a   : > { %v3606_v59 = vpop.f32.mrb[118].mxu1  ;;  %v11208_v48 = vpop.eup %11207  ;;  %v4050_v13 = vmul.f32 0.70710677, %v13910_v54  ;;  %v4460_v17 = vadd.f32 1.0, %v11204_v24  ;;  %v4051_v29 = vmul.f32 0.70710677, %v13904_v18  ;;  %v13985_v41 = vmul.f32 %v4457_v3, %v13869_v44 }
 0x36b   : > { %v3345_v46 = vpop.f32.mrb[119].mxu0  ;;  %v3607_v39 = vpop.f32.mrb[119].mxu1  ;;  %v10656_v59 = vld [vmem:[#allocation7 + $0x5bc] ss:$12 sps:$4 sm:$0xff]   ;;  %v4469_v36 = vadd.f32 1.0, %v11206_v61  ;;  %v4471_v51 = vadd.f32 1.0, %v11208_v48  ;;  %v13991_v48 = vmul.f32 %v4459_v47, %v13873_v15  ;;  %v13994_v24 = vmul.f32 %v4458_v14, %v13886_v33 }
 0x36c   : > { %v11210_v9 = vpop.eup %11209  ;;  %11229 = verf.f32 %v4050_v13  ;;  %v4052_v23 = vmul.f32 0.70710677, %v13912_v26  ;;  %v13988_v4 = vmul.f32 0.5, %v13891_v30  ;;  %v13997_v35 = vmul.f32 0.5, %v13893_v62  ;;  %v9015_v44 = vpop.f32.mrb[120].mxu1  ;;  %7208 = vmatprep.subr.bf16.mxu0 %v10656_v59 }
 0x36d   : > { %v11212_v52 = vpop.eup %11211  ;;  %v4470_v5 = vadd.f32 1.0, %v11210_v9  ;;  %11231 = verf.f32 %v4040_v32  ;;  %v10661_v3 = vld [vmem:[#allocation7 + $0x5d4] ss:$12 sps:$4 sm:$0xff]   ;;  %v14000_v30 = vmul.f32 %v4460_v17, %v13889_v22  ;;  %v3821_v60 = vmul.f32 0.5, %v13902_v27  ;;  %v9016_v15 = vpop.f32.mrb[121].mxu1  ;;  %7209 = vmatpush1.bf16.msra.mxu0 %v10654_v25 }
 0x36e   : > { %v11214_v8 = vpop.eup %11213  ;;  %v4481_v10 = vadd.f32 1.0, %v11212_v52  ;;  %11233 = verf.f32 %v4051_v29  ;;  %v4697_v33 = vmul.f32 %v4469_v36, %v13899_v7  ;;  %v14005_v39 = vmul.f32 %v4471_v51, %v13907_v2  ;;  %v9018_v9 = vpop.f32.mrb[122].mxu1  ;;  %v10659_v59 = vld [vmem:[#allocation7 + $0x5d0] ss:$12 sps:$4 sm:$0xff]   ;;  %7210 = vmatprep.subr.bf16.mxu0 %v10661_v3  ;;  %v10664_v29 = vld [vmem:[#allocation7 + $0x5ec] ss:$12 sps:$4 sm:$0xff]   ;;  %7154 = vmatmul.mubr.bf16.gmra.mrb[148].mxu0 %v13238_v58 }
 0x36f   : > { %v11216_v49 = vpop.eup %11215  ;;  %v4482_v32 = vadd.f32 1.0, %v11214_v8  ;;  %v14008_v62 = vmul.f32 0.5, %v13904_v18  ;;  %11235 = verf.f32 %v4052_v23  ;;  %v4698_v22 = vmul.f32 %v4470_v5, %v13918_v50  ;;  %v9019_v13 = vpop.f32.mrb[123].mxu1  ;;  %7888 = vmatmul.mubr.bf16.gmra.mrb[228].mxu1 %v13238_v58  ;;  %7163 = vmatprep.mubr.bf16.mxu0 %v13277_v63  ;;  %v15215_v58 = vld [vmem:[#allocation80_spill] sm:$0xff] }
 0x370   : > { %v11218_v61 = vpop.eup %11217  ;;  %v4472_v17 = vadd.f32 1.0, %v11216_v49  ;;  %v3822_v14 = vmul.f32 0.5, %v13910_v54  ;;  %v14012_v27 = vadd.f32 %v9016_v15, %v9015_v44  ;;  %v4709_v2 = vmul.f32 %v4481_v10, %v13925_v0  ;;  %7895 = vmatprep.mubr.bf16.mxu1 %v13277_v63  ;;  %v10662_v25 = vld [vmem:[#allocation7 + $0x5e8] ss:$12 sps:$4 sm:$0xff]   ;;  %v15217_v63 = vld [vmem:[#allocation29_spill] sm:$0xff]  ;;  %v15218_v10 = vld [vmem:[#allocation94_spill] sm:$0xff] }
 0x371   : > { %v11220_v46 = vpop.eup %11219  ;;  %v14015_v52 = vadd.f32 1.0, %v11218_v61  ;;  %v14017_v18 = vadd.f32 %v9019_v13, %v9018_v9  ;;  %v14021_v50 = vpack.c.bf16 %v13595_v21, %v13564_v37  ;;  %v4710_v54 = vmul.f32 %v4482_v32, %v13940_v40  ;;  %v15214_v21 = vld [vmem:[#allocation20_spill] sm:$0xff]  ;;  %7211 = vmatpush1.bf16.msra.mxu0 %v10659_v59  ;;  %v9021_v3 = vpop.f32.mrb[124].mxu1  ;;  %v15219_v32 = vld [vmem:[#allocation34_spill] sm:$0xff] }
 0x372   : > { %v11222_v47 = vpop.eup %11221  ;;  %v4493_v36 = vadd.f32 1.0, %v11220_v46  ;;  %v14028_v0 = vpack.c.bf16 %v13657_v53, %v13627_v38  ;;  %v14032_v51 = vpack.c.bf16 %v13642_v12, %v13606_v28  ;;  %v14038_v37 = vpack.c.bf16 %v13748_v57, %v13708_v34  ;;  %v15216_v12 = vld [vmem:[#allocation35_spill] sm:$0xff]  ;;  %7212 = vmatprep.subr.bf16.mxu0 %v10664_v29  ;;  %v10669_v61 = vld [vmem:[#allocation7 + $0x604] ss:$12 sps:$4 sm:$0xff]  }
 0x373   : > { %v11224_v7 = vpop.eup %11223  ;;  %v4494_v23 = vadd.f32 1.0, %v11222_v47  ;;  %v14042_v40 = vpack.c.bf16 %v15215_v58, %v15214_v21  ;;  %v14046_v28 = vpack.c.bf16 %v13820_v1, %v13780_v19  ;;  %v14050_v49 = vpack.c.bf16 %v15216_v12, %v13761_v31  ;;  %v15220_v15 = vld [vmem:[#allocation84_spill] sm:$0xff]  ;;  %v15221_v9 = vld [vmem:[#allocation50_spill] sm:$0xff]  ;;  %v15222_v1 = vld [vmem:[#allocation33_spill] sm:$0xff] }
 0x374   : > { %v11226_v8 = vpop.eup %11225  ;;  %v4484_v53 = vadd.f32 1.0, %v11224_v7  ;;  %v14054_v34 = vpack.c.bf16 %v15218_v10, %v15217_v63  ;;  %v14058_v46 = vpack.c.bf16 %v15220_v15, %v15219_v32  ;;  %v14062_v19 = vpack.c.bf16 %v13950_v43, %v15221_v9  ;;  %v15224_v63 = vld [vmem:[#allocation70_spill] sm:$0xff]  ;;  %v15225_v10 = vld [vmem:[#allocation44_spill] sm:$0xff]  ;;  %v15230_v9 = vld [vmem:[#allocation51_spill] sm:$0xff] }
 0x375   : > { %v4505_v5 = vadd.f32 1.0, %v11226_v8  ;;  %v11228_v38 = vpop.eup %11227  ;;  %v14066_v31 = vpack.c.bf16 %v13934_v55, %v15222_v1  ;;  %v4721_v13 = vmul.f32 %v4493_v36, %v13965_v42  ;;  %v14071_v7 = vpack.c.bf16 %v13994_v24, %v13972_v11  ;;  %7213 = vmatpush1.bf16.msra.mxu0 %v10662_v25  ;;  %v15223_v11 = vld [vmem:[#allocation16_spill] sm:$0xff] }
 0x376   : > { %v11230_v57 = vpop.eup %11229  ;;  %v14075_v29 = vpack.c.bf16 %v13985_v41, %v13959_v56  ;;  %v4722_v43 = vmul.f32 %v4494_v23, %v13988_v4  ;;  %v14080_v55 = vpack.c.bf16 %v4710_v54, %v4698_v22  ;;  %v14082_v21 = vpack.c.bf16 %v4709_v2, %v4697_v33  ;;  %7313 = vmatprep.subr.bf16.mxu0 %v10669_v61  ;;  %v15226_v33 = vld [vmem:[#allocation89_spill] sm:$0xff]  ;;  %v15227_v2 = vld [vmem:[#allocation72_spill] sm:$0xff] }
 0x377   : > { %v4733_v44 = vmul.f32 %v4505_v5, %v3821_v60  ;;  %v11232_v47 = vpop.eup %11231  ;;  %v4506_v59 = vadd.f32 1.0, %v11230_v57  ;;  %v9022_v60 = vpop.f32.mrb[125].mxu1  ;;  %v4304_v24 = vadd.f32 1.0, %v15223_v11  ;;  %v4316_v56 = vadd.f32 1.0, %v15224_v63  ;;  %7164 = vmatmul.mubr.bf16.gmra.mrb[152].mxu0 %v15226_v33  ;;  %7896 = vmatmul.mubr.bf16.gmra.mrb[232].mxu1 %v15226_v33  ;;  %v15228_v25 = vld [vmem:[#allocation60_spill] sm:$0xff]  ;;  %v15237_v11 = vld [vmem:[#allocation75_spill] sm:$0xff] }
 0x378   : > { %v14078_v8 = vadd.f32 %v9022_v60, %v9021_v3  ;;  %v9024_v5 = vpop.f32.mrb[126].mxu1  ;;  %v11234_v42 = vpop.eup %11233  ;;  %v14089_v4 = vmul.f32 %v4472_v17, %v15225_v10  ;;  %v4495_v23 = vadd.f32 1.0, %v11228_v38  ;;  %v4496_v57 = vadd.f32 1.0, %v11232_v47  ;;  %v15229_v3 = vld [vmem:[#allocation17_spill] sm:$0xff]  ;;  %7173 = vmatprep.mubr.bf16.mxu0 %v15230_v9  ;;  %7903 = vmatprep.mubr.bf16.mxu1 %v15230_v9  ;;  %v15238_v63 = vld [vmem:[#allocation83_spill] sm:$0xff] }
 0x379   : > { %v4734_v36 = vmul.f32 %v4506_v59, %v3822_v14  ;;  %v9025_v58 = vpop.f32.mrb[127].mxu1  ;;  %v14084_v12 = vpack.c.bf16 %v4733_v44, %v4721_v13  ;;  %v11236_v41 = vpop.eup %11235  ;;  %v4532_v54 = vmul.f32 %v4304_v24, %v15227_v2  ;;  %v4544_v44 = vmul.f32 %v4316_v56, %v15228_v25  ;;  %v15232_v59 = vld [vmem:[#allocation68_spill] sm:$0xff]  ;;  %v15239_v10 = vld [vmem:[#allocation69_spill] sm:$0xff] }
 0x37a   : > { %v14091_v22 = vadd.f32 %v9025_v58, %v9024_v5  ;;  %v4328_v32 = vadd.f32 1.0, %v15229_v3  ;;  %v4711_v17 = vmul.f32 %v14015_v52, %v13937_v45  ;;  %v4507_v38 = vadd.f32 1.0, %v11234_v42  ;;  %v9027_v52 = vpop.f32.mrb[128].mxu1  ;;  %v15234_v42 = vld [vmem:[#allocation21_spill] sm:$0xff] }
 0x37b   : > { %v14095_v14 = vpack.c.bf16 %v4734_v36, %v4722_v43  ;;  %v3824_v15 = vmul.f32 0.5, %v13912_v26  ;;  %v14107_v61 = vpack.c.bf16 %v14000_v30, %v13976_v20  ;;  %v4712_v1 = vmul.f32 %v4484_v53, %v13943_v6  ;;  %v15233_v43 = vld [vmem:[#allocation71_spill] sm:$0xff]  ;;  %v9028_v20 = vpop.f32.mrb[129].mxu1  ;;  %v15235_v30 = vld [vmem:[#allocation58_spill] sm:$0xff] }
 0x37c   : > { %v4508_v47 = vadd.f32 1.0, %v11236_v41  ;;  %v14110_v13 = vpack.c.bf16 %v4544_v44, %v4532_v54  ;;  %v4340_v60 = vadd.f32 1.0, %v15232_v59  ;;  %v14114_v45 = vmul.f32 %v4495_v23, %v13968_v16  ;;  %v15236_v6 = vld [vmem:[#allocation55_spill] sm:$0xff]  ;;  %v15241_v44 = vld [vmem:[#allocation77_spill] sm:$0xff] }
 0x37d   : > { %15231 = vst [vmem:[#allocation20_spill] sm:$0xff] %v14107_v61  ;;  %v14117_v26 = vmul.f32 %v4496_v57, %v13997_v35  ;;  %v4327_v5 = vadd.f32 1.0, %v15233_v43  ;;  %v4339_v36 = vadd.f32 1.0, %v15234_v42  ;;  %v4556_v58 = vmul.f32 %v4328_v32, %v15235_v30  ;;  %v9030_v35 = vpop.f32.mrb[130].mxu1  ;;  %v15240_v57 = vld [vmem:[#allocation59_spill] sm:$0xff]  ;;  %v15242_v32 = vld [vmem:[#allocation76_spill] sm:$0xff] }
 0x37e   : > { %v4568_v53 = vmul.f32 %v4340_v60, %v15236_v6  ;;  %v4352_v24 = vadd.f32 1.0, %v15237_v11  ;;  %v4364_v56 = vadd.f32 1.0, %v15238_v63  ;;  %v14126_v16 = vmul.f32 %v4507_v38, %v14008_v62  ;;  %v9031_v54 = vpop.f32.mrb[131].mxu1  ;;  %v15243_v62 = vld [vmem:[#allocation23_spill] sm:$0xff]  ;;  %v15245_v42 = vld [vmem:[#allocation64_spill] sm:$0xff]  ;;  %v15248_v30 = vld [vmem:[#allocation74_spill] sm:$0xff] }
 0x37f   : > { %v14128_v41 = vadd.f32 %v9028_v20, %v9027_v52  ;;  %v4555_v23 = vmul.f32 %v4327_v5, %v15239_v10  ;;  %v4567_v33 = vmul.f32 %v4339_v36, %v15240_v57  ;;  %v4736_v2 = vmul.f32 %v4508_v47, %v3824_v15  ;;  %v15244_v52 = vld [vmem:[#allocation66_spill] sm:$0xff]  ;;  %7174 = vmatmul.mubr.bf16.gmra.mrb[156].mxu0 %v15245_v42  ;;  %v15247_v36 = vld [vmem:[#allocation88_spill] sm:$0xff] }
 0x380   : > { %v14132_v25 = vpack.c.bf16 %v4568_v53, %v4556_v58  ;;  %v4580_v3 = vmul.f32 %v4352_v24, %v15241_v44  ;;  %v4592_v9 = vmul.f32 %v4364_v56, %v15242_v32  ;;  %v14136_v59 = vadd.f32 %v9031_v54, %v9030_v35  ;;  %7904 = vmatmul.mubr.bf16.gmra.mrb[236].mxu1 %v15245_v42  ;;  %v15246_v47 = vld [vmem:[#allocation22_spill] sm:$0xff]  ;;  %v15249_v6 = vld [vmem:[#allocation52_spill] sm:$0xff]  ;;  %v15252_v56 = vld [vmem:[#allocation19_spill] sm:$0xff] }
 0x381   : > { %v14138_v60 = vpack.c.bf16 %v4567_v33, %v4555_v23  ;;  %v4351_v38 = vadd.f32 1.0, %v15243_v62  ;;  %v4363_v43 = vadd.f32 1.0, %v15244_v52  ;;  %v4376_v5 = vadd.f32 1.0, %v15246_v47  ;;  %v15250_v11 = vld [vmem:[#allocation48_spill] sm:$0xff]  ;;  %v15251_v24 = vld [vmem:[#allocation78_spill] sm:$0xff]  ;;  %v9033_v52 = vpop.f32.mrb[132].mxu1 }
 0x382   : > { %v14144_v15 = vpack.c.bf16 %v4592_v9, %v4580_v3  ;;  %v4388_v20 = vadd.f32 1.0, %v15247_v36  ;;  %v4375_v58 = vadd.f32 1.0, %v15248_v30  ;;  %v3752_v53 = vmul.f32 0.5, %v15249_v6  ;;  %7214 = vmatprep.mubr.bf16.mxu0 %v15250_v11  ;;  %7943 = vmatprep.mubr.bf16.mxu1 %v15250_v11  ;;  %v15253_v10 = vld [vmem:[#allocation56_spill] sm:$0xff]  ;;  %v15255_v57 = vld [vmem:[#allocation82_spill] sm:$0xff] }
 0x383   : > { %v4579_v63 = vmul.f32 %v4351_v38, %v15251_v24  ;;  %v4591_v35 = vmul.f32 %v4363_v43, %v15252_v56  ;;  %v14156_v23 = vpack.c.bf16 %v13991_v48, %v15253_v10  ;;  %v4604_v33 = vmul.f32 %v4376_v5, %v15255_v57  ;;  %v15256_v54 = vld [vmem:[#allocation18_spill] sm:$0xff]  ;;  %v15259_v47 = vld [vmem:[#allocation32_spill] sm:$0xff]  ;;  %v9034_v48 = vpop.f32.mrb[133].mxu1  ;;  %v15262_v5 = vld [vmem:[#allocation25_spill] sm:$0xff] }
 0x384   : > { %v4616_v44 = vmul.f32 %v4388_v20, %v15256_v54  ;;  %v15257_v3 = vld [vmem:[#allocation38_spill] sm:$0xff]  ;;  %v4400_v36 = vadd.f32 1.0, %v15259_v47  ;;  %v14166_v38 = vpack.c.bf16 %v4712_v1, %v14089_v4  ;;  %v14169_v43 = vpack.c.bf16 %v4711_v17, %v14005_v39  ;;  %v15263_v6 = vld [vmem:[#allocation40_spill] sm:$0xff]  ;;  %v15267_v1 = vld [vmem:[#allocation45_spill] sm:$0xff] }
 0x385   : > { %15254 = vst [vmem:[#allocation80_spill] sm:$0xff] %v14156_v23  ;;  %v4387_v32 = vadd.f32 1.0, %v15257_v3  ;;  %v15258_v9 = vld [vmem:[#allocation30_spill] sm:$0xff]  ;;  %v14162_v42 = vpack.c.bf16 %v4591_v35, %v4579_v63  ;;  %v4412_v11 = vadd.f32 1.0, %v15263_v6  ;;  %v14176_v56 = vadd.f32 %v9034_v48, %v9033_v52  ;;  %v9036_v63 = vpop.f32.mrb[134].mxu1 }
 0x386   : > { %v4603_v62 = vmul.f32 %v4375_v58, %v15258_v9  ;;  %15260 = vst [vmem:[#allocation35_spill] sm:$0xff] %v14166_v38  ;;  %15261 = vst [vmem:[#allocation29_spill] sm:$0xff] %v14169_v43  ;;  %v14171_v30 = vpack.c.bf16 %v4616_v44, %v4604_v33  ;;  %v15264_v24 = vld [vmem:[#allocation90_spill] sm:$0xff]  ;;  %v4424_v54 = vadd.f32 1.0, %v15267_v1  ;;  %v9037_v39 = vpop.f32.mrb[135].mxu1  ;;  %v15269_v9 = vld [vmem:[#allocation87_spill] sm:$0xff] }
 0x387   : > { %v4615_v20 = vmul.f32 %v4387_v32, %v15262_v5  ;;  %v4399_v58 = vadd.f32 1.0, %v15264_v24  ;;  %v15265_v35 = vld [vmem:[#allocation26_spill] sm:$0xff]  ;;  %v10666_v17 = vld [vmem:[#allocation7 + $0x608] ss:$12 sps:$4 sm:$0xff]   ;;  %v14186_v52 = vadd.f32 %v9037_v39, %v9036_v63  ;;  %v14197_v63 = vpack.c.bf16 %v4736_v2, %v14117_v26  ;;  %v15281_v26 = vld [vmem:[#allocation13_spill] sm:$0xff] }
 0x388   : > { %v4628_v10 = vmul.f32 %v4400_v36, %v15265_v35  ;;  %v15266_v57 = vld [vmem:[#allocation42_spill] sm:$0xff]  ;;  %v15270_v5 = vld [vmem:[#allocation91_spill] sm:$0xff]  ;;  %v15271_v36 = vld [vmem:[#allocation24_spill] sm:$0xff] }
 0x389   : > { %v4411_v4 = vadd.f32 1.0, %v15266_v57  ;;  %v10667_v3 = vld [vmem:[#allocation7 + $0x600] ss:$12 sps:$4 sm:$0xff]   ;;  %v14181_v33 = vpack.c.bf16 %v4615_v20, %v4603_v62  ;;  %v4627_v47 = vmul.f32 %v4399_v58, %v15269_v9  ;;  %v4436_v6 = vadd.f32 1.0, %v15270_v5  ;;  %v10672_v48 = vld [vmem:[#allocation7 + $0x61c] ss:$12 sps:$4 sm:$0xff]  }
 0x38a   : > { %v15268_v44 = vld [vmem:[#allocation86_spill] sm:$0xff]  ;;  %v15272_v57 = vld [vmem:[#allocation27_spill] sm:$0xff]  ;;  %15276 = vst [vmem:[#allocation94_spill] sm:$0xff] %v14197_v63  ;;  %v9039_v9 = vpop.f32.mrb[136].mxu1 }
 0x38b   : > { %v4640_v32 = vmul.f32 %v4412_v11, %v15268_v44  ;;  %v10673_v24 = vld [vmem:[#allocation7 + $0x6e0] ss:$12 sps:$4 sm:$0xff]   ;;  %v4639_v35 = vmul.f32 %v4411_v4, %v15271_v36  ;;  %v4652_v43 = vmul.f32 %v4424_v54, %v15272_v57  ;;  %v4664_v20 = vmul.f32 %v4436_v6, %v3752_v53  ;;  %v15275_v11 = vld [vmem:[#allocation81_spill] sm:$0xff]  ;;  %v9040_v6 = vpop.f32.mrb[137].mxu1 }
 0x38c   : > { %v15273_v1 = vld [vmem:[#allocation31_spill] sm:$0xff]  ;;  %v15274_v23 = vld [vmem:[#allocation46_spill] sm:$0xff]  ;;  %v4435_v58 = vadd.f32 1.0, %v15275_v11  ;;  %v14205_v54 = vpack.c.bf16 %v14126_v16, %v14114_v45  ;;  %v15280_v44 = vld [vmem:[#allocation93_spill] sm:$0xff]  ;;  %v14213_v45 = vadd.f32 %v9040_v6, %v9039_v9  ;;  %v9042_v16 = vpop.f32.mrb[138].mxu1 }
 0x38d   : > { %v4423_v38 = vadd.f32 1.0, %v15273_v1  ;;  %7215 = vmatmul.mubr.bf16.vlgmr.msra.gmra.mrb[120].mxu0 %v15274_v23  ;;  %7944 = vmatmul.mubr.bf16.vlgmr.msra.gmra.mrb[240].mxu1 %v15274_v23  ;;  %v14193_v62 = vpack.c.bf16 %v4640_v32, %v4628_v10  ;;  %v15277_v39 = vld [vmem:[#allocation63_spill] sm:$0xff]  ;;  %v14201_v4 = vpack.c.bf16 %v4639_v35, %v4627_v47  ;;  %v10670_v23 = vld [vmem:[#allocation7 + $0x618] ss:$12 sps:$4 sm:$0xff]   ;;  %v14207_v53 = vpack.c.bf16 %v4664_v20, %v4652_v43  ;;  %v10677_v5 = vld [vmem:[#allocation7 + $0x634] ss:$12 sps:$4 sm:$0xff]  }
 0x38e   : > { %7224 = vmatprep.mubr.bf16.mxu0 %v15277_v39  ;;  %7951 = vmatprep.mubr.bf16.mxu1 %v15277_v39  ;;  %15278 = vst [vmem:[#allocation34_spill] sm:$0xff] %v14205_v54  ;;  %v10674_v10 = vld [vmem:[#allocation7 + $0x620] ss:$12 sps:$4 sm:$0xff]   ;;  %v4663_v2 = vmul.f32 %v4435_v58, %v15281_v26  ;;  %v10681_v47 = vld [vmem:[#allocation7 + $0x6f8] ss:$12 sps:$4 sm:$0xff]   ;;  %v15285_v6 = vld [vmem:[#allocation36_spill] sm:$0xff] }
 0x38f   : > { %9304 = vmatpush3.bf16.msra.mxu1 %v10666_v17  ;;  %7314 = vmatpush1.bf16.msra.mxu0 %v10667_v3  ;;  %15279 = vst [vmem:[#allocation84_spill] sm:$0xff] %v14207_v53  ;;  %v4651_v32 = vmul.f32 %v4423_v38, %v15280_v44  ;;  %v9043_v17 = vpop.f32.mrb[139].mxu1  ;;  %v10675_v43 = vld [vmem:[#allocation7 + $0x630] ss:$12 sps:$4 sm:$0xff]   ;;  %v10682_v3 = vld [vmem:[#allocation7 + $0x638] ss:$12 sps:$4 sm:$0xff]  }
 0x390   : > { %7315 = vmatprep.subr.bf16.mxu0 %v10672_v48  ;;  %9305 = vmatprep.subr.bf16.mxu1 %v10673_v24  ;;  %v14215_v35 = vadd.f32 %v9043_v17, %v9042_v16  ;;  %v10680_v38 = vld [vmem:[#allocation7 + $0x64c] ss:$12 sps:$4 sm:$0xff]   ;;  %v10689_v48 = vld [vmem:[#allocation7 + $0x710] ss:$12 sps:$4 sm:$0xff]   ;;  %v15284_v57 = vld [vmem:[#allocation14_spill] sm:$0xff]  ;;  %v9045_v11 = vpop.f32.mrb[140].mxu1 }
 0x391   : > { %v14211_v36 = vpack.c.bf16 %v4663_v2, %v4651_v32  ;;  %v15283_v24 = vld [vmem:[#allocation85_spill] sm:$0xff]  ;;  %v10678_v1 = vld [vmem:[#allocation7 + $0x648] ss:$12 sps:$4 sm:$0xff]   ;;  %v10685_v58 = vld [vmem:[#allocation7 + $0x664] ss:$12 sps:$4 sm:$0xff]  }
 0x392   : > { %v10690_v20 = vld [vmem:[#allocation7 + $0x650] ss:$12 sps:$4 sm:$0xff]   ;;  %v10697_v39 = vld [vmem:[#allocation7 + $0x728] ss:$12 sps:$4 sm:$0xff]   ;;  %v10683_v26 = vld [vmem:[#allocation7 + $0x660] ss:$12 sps:$4 sm:$0xff]  }
 0x393   : > { %15282 = vst [vmem:[#allocation50_spill] sm:$0xff] %v14211_v36  ;;  %7316 = vmatpush1.bf16.msra.mxu0 %v10670_v23  ;;  %9306 = vmatpush3.bf16.msra.mxu1 %v10674_v10  ;;  %v9046_v23 = vpop.f32.mrb[141].mxu1  ;;  %v10698_v2 = vld [vmem:[#allocation7 + $0x668] ss:$12 sps:$4 sm:$0xff]   ;;  %v15286_v16 = vld [vmem:[#allocation73_spill] sm:$0xff] }
 0x394   : > { %7317 = vmatprep.subr.bf16.mxu0 %v10677_v5  ;;  %9307 = vmatprep.subr.bf16.mxu1 %v10681_v47  ;;  %v14221_v10 = vadd.f32 %v9046_v23, %v9045_v11  ;;  %v9048_v44 = vpop.f32.mrb[142].mxu1  ;;  %v10688_v5 = vld [vmem:[#allocation7 + $0x67c] ss:$12 sps:$4 sm:$0xff]   ;;  %v10705_v47 = vld [vmem:[#allocation7 + $0x740] ss:$12 sps:$4 sm:$0xff]  }
 0x395   : > { %7225 = vmatmul.mubr.bf16.gmra.mrb[124].mxu0 %v15283_v24  ;;  %7952 = vmatmul.mubr.bf16.gmra.mrb[244].mxu1 %v15283_v24  ;;  %v9049_v32 = vpop.f32.mrb[143].mxu1  ;;  %v10686_v17 = vld [vmem:[#allocation7 + $0x678] ss:$12 sps:$4 sm:$0xff]   ;;  %v10691_v11 = vld [vmem:[#allocation7 + $0x690] ss:$12 sps:$4 sm:$0xff]   ;;  %v15295_v63 = vld [vmem:[#allocation39_spill] sm:$0xff] }
 0x396   : > { %7234 = vmatprep.mubr.bf16.mxu0 %v15284_v57  ;;  %7959 = vmatprep.mubr.bf16.mxu1 %v15284_v57  ;;  %v14223_v9 = vadd.f32 %v9049_v32, %v9048_v44  ;;  %v10696_v23 = vld [vmem:[#allocation7 + $0x6ac] ss:$12 sps:$4 sm:$0xff]   ;;  %v10721_v44 = vld [vmem:[#allocation7 + $0x770] ss:$12 sps:$4 sm:$0xff]  }
 0x397   : > { %7318 = vmatpush1.bf16.msra.mxu0 %v10675_v43  ;;  %9308 = vmatpush3.bf16.msra.mxu1 %v10682_v3  ;;  %v10706_v43 = vld [vmem:[#allocation7 + $0x680] ss:$12 sps:$4 sm:$0xff]   ;;  %v9051_v3 = vpop.f32.mrb[144].mxu1  ;;  %v15287_v32 = vld [vmem:[#allocation65_spill] sm:$0xff] }
 0x398   : > { %7319 = vmatprep.subr.bf16.mxu0 %v10680_v38  ;;  %9309 = vmatprep.subr.bf16.mxu1 %v10689_v48  ;;  %v10693_v38 = vld [vmem:[#allocation7 + $0x694] ss:$12 sps:$4 sm:$0xff]   ;;  %v10713_v48 = vld [vmem:[#allocation7 + $0x758] ss:$12 sps:$4 sm:$0xff]   ;;  %v9052_v24 = vpop.f32.mrb[145].mxu1 }
 0x399   : > { %v14229_v57 = vadd.f32 %v9052_v24, %v9051_v3  ;;  %v10715_v54 = vld [vmem:[#allocation7 + $0x720] ss:$12 sps:$4 sm:$0xff]  }
 0x39a   : > { %v10728_v36 = vld [vmem:[#allocation7 + $0x76c] ss:$12 sps:$4 sm:$0xff]  }
 0x39b   : > { %7320 = vmatpush1.bf16.msra.mxu0 %v10678_v1  ;;  %9310 = vmatpush3.bf16.msra.mxu1 %v10690_v20  ;;  %v9054_v1 = vpop.f32.mrb[146].mxu1 }
 0x39c   : > { %7321 = vmatprep.subr.bf16.mxu0 %v10685_v58  ;;  %9311 = vmatprep.subr.bf16.mxu1 %v10697_v39  ;;  %v9055_v20 = vpop.f32.mrb[147].mxu1  ;;  %v10714_v58 = vld [vmem:[#allocation7 + $0x698] ss:$12 sps:$4 sm:$0xff]  }
 0x39d   : > { %7235 = vmatmul.mubr.bf16.gmra.mrb[128].mxu0 %v15285_v6  ;;  %7960 = vmatmul.mubr.bf16.gmra.mrb[248].mxu1 %v15285_v6  ;;  %v14231_v39 = vadd.f32 %v9055_v20, %v9054_v1  ;;  %v10701_v6 = vld [vmem:[#allocation7 + $0x6c4] ss:$12 sps:$4 sm:$0xff]   ;;  %v10704_v1 = vld [vmem:[#allocation7 + $0x6dc] ss:$12 sps:$4 sm:$0xff]  }
 0x39e   : > { %7244 = vmatprep.mubr.bf16.mxu0 %v15286_v16  ;;  %7967 = vmatprep.mubr.bf16.mxu1 %v15286_v16  ;;  %v10729_v16 = vld [vmem:[#allocation7 + $0x848] ss:$12 sps:$4 sm:$0xff]   ;;  %v15289_v20 = vld [vmem:[#allocation57_spill] sm:$0xff] }
 0x39f   : > { %7322 = vmatpush1.bf16.msra.mxu0 %v10683_v26  ;;  %9312 = vmatpush3.bf16.msra.mxu1 %v10698_v2  ;;  %v15288_v26 = vld [vmem:[#allocation28_spill] sm:$0xff] }
 0x3a0   : > { %7323 = vmatprep.subr.bf16.mxu0 %v10688_v5  ;;  %9313 = vmatprep.subr.bf16.mxu1 %v10705_v47  ;;  %v10694_v2 = vld [vmem:[#allocation7 + $0x6a8] ss:$12 sps:$4 sm:$0xff]   ;;  %v10722_v5 = vld [vmem:[#allocation7 + $0x6b0] ss:$12 sps:$4 sm:$0xff]   ;;  %v9057_v47 = vpop.f32.mrb[148].mxu1 }
 0x3a3   : > { %7324 = vmatpush1.bf16.msra.mxu0 %v10686_v17  ;;  %9314 = vmatpush3.bf16.msra.mxu1 %v10706_v43  ;;  %v9058_v17 = vpop.f32.mrb[149].mxu1 }
 0x3a4   : > { %7325 = vmatprep.subr.bf16.mxu0 %v10693_v38  ;;  %9315 = vmatprep.subr.bf16.mxu1 %v10713_v48  ;;  %v14237_v43 = vadd.f32 %v9058_v17, %v9057_v47  ;;  %v9060_v3 = vpop.f32.mrb[150].mxu1  ;;  %v10699_v48 = vld [vmem:[#allocation7 + $0x6c0] ss:$12 sps:$4 sm:$0xff]  }
 0x3a5   : > { %7245 = vmatmul.mubr.bf16.gmra.mrb[132].mxu0 %v15287_v32  ;;  %7968 = vmatmul.mubr.bf16.gmra.mrb[252].mxu1 %v15287_v32  ;;  %v9061_v38 = vpop.f32.mrb[151].mxu1 }
 0x3a6   : > { %7254 = vmatprep.mubr.bf16.mxu0 %v15288_v26  ;;  %7975 = vmatprep.mubr.bf16.mxu1 %v15288_v26  ;;  %v14239_v24 = vadd.f32 %v9061_v38, %v9060_v3  ;;  %v10712_v3 = vld [vmem:[#allocation7 + $0x70c] ss:$12 sps:$4 sm:$0xff]  }
 0x3a7   : > { %7326 = vmatpush1.bf16.msra.mxu0 %v10691_v11  ;;  %9316 = vmatpush3.bf16.msra.mxu1 %v10714_v58  ;;  %v15290_v11 = vld [vmem:[#allocation15_spill] sm:$0xff]  ;;  %v10702_v58 = vld [vmem:[#allocation7 + $0x6d8] ss:$12 sps:$4 sm:$0xff]  }
 0x3a8   : > { %7327 = vmatprep.subr.bf16.mxu0 %v10696_v23  ;;  %9317 = vmatprep.subr.bf16.mxu1 %v10721_v44  ;;  %v10709_v44 = vld [vmem:[#allocation7 + $0x6f4] ss:$12 sps:$4 sm:$0xff]   ;;  %v15292_v38 = vld [vmem:[#allocation43_spill] sm:$0xff] }
 0x3a9   : > { %v9063_v23 = vpop.f32.mrb[152].mxu1 }
 0x3aa   : > { %v9064_v32 = vpop.f32.mrb[153].mxu1 }
 0x3ab   : > { %7328 = vmatpush1.bf16.msra.mxu0 %v10694_v2  ;;  %9318 = vmatpush3.bf16.msra.mxu1 %v10722_v5  ;;  %v14245_v26 = vadd.f32 %v9064_v32, %v9063_v23  ;;  %v9066_v2 = vpop.f32.mrb[154].mxu1  ;;  %v15291_v5 = vld [vmem:[#allocation95_spill] sm:$0xff]  ;;  %v15294_v23 = vld [vmem:[#allocation92_spill] sm:$0xff] }
 0x3ac   : > { %7329 = vmatprep.subr.bf16.mxu0 %v10701_v6  ;;  %9379 = vmatprep.subr.bf16.mxu1 %v10729_v16  ;;  %v4060_v47 = vmul.f32 0.70710677, %v15291_v5  ;;  %v9067_v6 = vpop.f32.mrb[155].mxu1  ;;  %v10707_v16 = vld [vmem:[#allocation7 + $0x6f0] ss:$12 sps:$4 sm:$0xff]  }
 0x3ad   : > { %7255 = vmatmul.mubr.bf16.gmra.mrb[136].mxu0 %v15289_v20  ;;  %7976 = vmatmul.mubr.bf16.gmra.mrb[0].mxu1 %v15289_v20  ;;  %v14248_v17 = vadd.f32 %v9067_v6, %v9066_v2  ;;  %v4059_v32 = vmul.f32 0.70710677, %v15294_v23 }
 0x3ae   : > { %7264 = vmatprep.mubr.bf16.mxu0 %v15290_v11  ;;  %7983 = vmatprep.mubr.bf16.mxu1 %v15290_v11  ;;  %11237 = verf.f32 %v4060_v47  ;;  %v10717_v11 = vld [vmem:[#allocation7 + $0x724] ss:$12 sps:$4 sm:$0xff]   ;;  %v15296_v47 = vld [vmem:[#allocation49_spill] sm:$0xff] }
 0x3af   : > { %7330 = vmatpush1.bf16.msra.mxu0 %v10699_v48  ;;  %v15293_v48 = vld [vmem:[#allocation67_spill] sm:$0xff]  ;;  %11239 = verf.f32 %v4059_v32 }
 0x3b0   : > { %7331 = vmatprep.subr.bf16.mxu0 %v10704_v1  ;;  %v10710_v1 = vld [vmem:[#allocation7 + $0x708] ss:$12 sps:$4 sm:$0xff]  }
 0x3b1   : > { %v9069_v20 = vpop.f32.mrb[156].mxu1 }
 0x3b3   : > { %7332 = vmatpush1.bf16.msra.mxu0 %v10702_v58  ;;  %v9070_v58 = vpop.f32.mrb[157].mxu1 }
 0x3b4   : > { %7333 = vmatprep.subr.bf16.mxu0 %v10709_v44  ;;  %v14255_v2 = vadd.f32 %v9070_v58, %v9069_v20  ;;  %v9072_v44 = vpop.f32.mrb[158].mxu1 }
 0x3b5   : > { %7265 = vmatmul.mubr.bf16.gmra.mrb[140].mxu0 %v15292_v38  ;;  %7984 = vmatmul.mubr.bf16.gmra.mrb[4].mxu1 %v15292_v38  ;;  %v9073_v6 = vpop.f32.mrb[159].mxu1  ;;  %v10720_v38 = vld [vmem:[#allocation7 + $0x73c] ss:$12 sps:$4 sm:$0xff]  }
 0x3b6   : > { %7274 = vmatprep.mubr.bf16.mxu0 %v15293_v48  ;;  %7991 = vmatprep.mubr.bf16.mxu1 %v15293_v48  ;;  %v10725_v48 = vld [vmem:[#allocation7 + $0x754] ss:$12 sps:$4 sm:$0xff]   ;;  %v10723_v6 = vld [vmem:[#allocation7 + $0x750] ss:$12 sps:$4 sm:$0xff]  }
 0x3b7   : > { %7334 = vmatpush1.bf16.msra.mxu0 %v10707_v16  ;;  %v10718_v16 = vld [vmem:[#allocation7 + $0x738] ss:$12 sps:$4 sm:$0xff]  }
 0x3b8   : > { %7335 = vmatprep.subr.bf16.mxu0 %v10712_v3  ;;  %v11238_v20 = vpop.eup %11237 }
 0x3b9   : > { %v9091_v3 = vpop.f32.mrb[160].mxu1  ;;  %v4516_v32 = vadd.f32 1.0, %v11238_v20 }
 0x3ba   : > { %v9092_v58 = vpop.f32.mrb[161].mxu1 }
 0x3bb   : > { %7336 = vmatpush1.bf16.msra.mxu0 %v10710_v1  ;;  %v9093_v1 = vadd.f32 %v9092_v58, %v9091_v3  ;;  %v9094_v44 = vpop.f32.mrb[162].mxu1  ;;  %v15298_v3 = vld [vmem:[#allocation61_spill] sm:$0xff] }
 0x3bc   : > { %7337 = vmatprep.subr.bf16.mxu0 %v10717_v11  ;;  %v9095_v11 = vpop.f32.mrb[163].mxu1 }
 0x3bd   : > { %7275 = vmatmul.mubr.bf16.gmra.mrb[144].mxu0 %v15295_v63  ;;  %7992 = vmatmul.mubr.bf16.gmra.mrb[8].mxu1 %v15295_v63  ;;  %v14262_v61 = vadd.f32 %v9093_v1, %v14012_v27  ;;  %v9096_v63 = vadd.f32 %v9095_v11, %v9094_v44  ;;  %v10726_v27 = vld [vmem:[#allocation7 + $0x768] ss:$12 sps:$4 sm:$0xff]  }
 0x3be   : > { %7284 = vmatprep.mubr.bf16.mxu0 %v15296_v47  ;;  %7999 = vmatprep.mubr.bf16.mxu1 %v15296_v47  ;;  %v15297_v47 = vld [vmem:[#allocation62_spill] sm:$0xff] }
 0x3bf   : > { %7338 = vmatpush1.bf16.msra.mxu0 %v10715_v54  ;;  %v3832_v54 = vmul.f32 0.5, %v15291_v5 }
 0x3c0   : > { %7339 = vmatprep.subr.bf16.mxu0 %v10720_v38  ;;  %v14268_v38 = vadd.f32 %v9096_v63, %v14017_v18 }
 0x3c1   : > { %v9097_v58 = vpop.f32.mrb[164].mxu1  ;;  %v4744_v20 = vmul.f32 %v4516_v32, %v3832_v54 }
 0x3c2   : > { %v9098_v1 = vpop.f32.mrb[165].mxu1 }
 0x3c3   : > { %7340 = vmatpush1.bf16.msra.mxu0 %v10718_v16  ;;  %v11240_v16 = vpop.eup %11239  ;;  %v9099_v44 = vadd.f32 %v9098_v1, %v9097_v58  ;;  %v9100_v11 = vpop.f32.mrb[166].mxu1  ;;  %v4864_v63 = vpack.c.bf16 %v4744_v20, %v4744_v20 }
 0x3c4   : > { %7341 = vmatprep.subr.bf16.mxu0 %v10725_v48  ;;  %v10733_v48 = vld [vmem:[#allocation7 + $0x784] ss:$12 sps:$4 sm:$0xff]   ;;  %v4515_v53 = vadd.f32 1.0, %v11240_v16 }
 0x3c5   : > { %7285 = vmatmul.mubr.bf16.gmra.mrb[148].mxu0 %v15297_v47  ;;  %8000 = vmatmul.mubr.bf16.gmra.mrb[12].mxu1 %v15297_v47  ;;  %v9101_v47 = vpop.f32.mrb[167].mxu1  ;;  %v14273_v18 = vadd.f32 %v9099_v44, %v14078_v8 }
 0x3c6   : > { %7294 = vmatprep.mubr.bf16.mxu0 %v15298_v3  ;;  %8007 = vmatprep.mubr.bf16.mxu1 %v15298_v3  ;;  %v9102_v5 = vadd.f32 %v9101_v47, %v9100_v11  ;;  %v15299_v3 = vld [vmem:[#allocation53_spill] sm:$0xff] }
 0x3c7   : > { %7342 = vmatpush1.bf16.msra.mxu0 %v10723_v6  ;;  %v3831_v6 = vmul.f32 0.5, %v15294_v23 }
 0x3c8   : > { %7343 = vmatprep.subr.bf16.mxu0 %v10728_v36  ;;  %v14279_v36 = vadd.f32 %v9102_v5, %v14091_v22  ;;  %v10730_v5 = vld [vmem:[#allocation7 + $0x788] ss:$12 sps:$4 sm:$0xff]  }
 0x3c9   : > { %v4743_v32 = vmul.f32 %v4515_v53, %v3831_v6  ;;  %v9103_v54 = vpop.f32.mrb[168].mxu1 }
 0x3cb   : > { %7344 = vmatpush1.bf16.msra.mxu0 %v10726_v27  ;;  %v9104_v27 = vpop.f32.mrb[169].mxu1  ;;  %v4863_v1 = vpack.c.bf16 %v4743_v32, %v4743_v32  ;;  %v10737_v32 = vld [vmem:[#allocation7 + $0x860] ss:$12 sps:$4 sm:$0xff]  }
 0x3cc   : > { %7444 = vmatprep.subr.bf16.mxu0 %v10733_v48  ;;  %v9105_v16 = vadd.f32 %v9104_v27, %v9103_v54  ;;  %v9106_v8 = vpop.f32.mrb[170].mxu1  ;;  %v15300_v54 = vld [vmem:[#allocation79_spill] sm:$0xff] }
 0x3cd   : > { %7295 = vmatmul.mubr.bf16.gmra.mrb[152].mxu0 %v15299_v3  ;;  %8008 = vmatmul.mubr.bf16.gmra.mrb[16].mxu1 %v15299_v3  ;;  %v9107_v58 = vpop.f32.mrb[171].mxu1  ;;  %v10736_v3 = vld [vmem:[#allocation7 + $0x79c] ss:$12 sps:$4 sm:$0xff]   ;;  %v10738_v27 = vld [vmem:[#allocation7 + $0x7a0] ss:$12 sps:$4 sm:$0xff]  }
 0x3ce   : > { %7304 = vmatprep.mubr.bf16.mxu0 %v4864_v63  ;;  %8015 = vmatprep.mubr.bf16.mxu1 %v4864_v63  ;;  %v14282_v20 = vadd.f32 %v9105_v16, %v14128_v41  ;;  %v9108_v23 = vadd.f32 %v9107_v58, %v9106_v8  ;;  %v10731_v63 = vld [vmem:[#allocation7 + $0x780] ss:$12 sps:$4 sm:$0xff]   ;;  %v10745_v8 = vld [vmem:[#allocation7 + $0x878] ss:$12 sps:$4 sm:$0xff]  }
 0x3cf   : > { %v10741_v16 = vld [vmem:[#allocation7 + $0x7b4] ss:$12 sps:$4 sm:$0xff]  }
 0x3d0   : > { %v14285_v48 = vadd.f32 %v9108_v23, %v14136_v59 }
 0x3d1   : > { %v9109_v22 = vpop.f32.mrb[172].mxu1 }
 0x3d2   : > { %v9110_v53 = vpop.f32.mrb[173].mxu1 }
 0x3d3   : > { %v9111_v44 = vadd.f32 %v9110_v53, %v9109_v22  ;;  %v9112_v11 = vpop.f32.mrb[174].mxu1  ;;  %v10746_v53 = vld [vmem:[#allocation7 + $0x7b8] ss:$12 sps:$4 sm:$0xff]  }
 0x3d4   : > { %v9113_v47 = vpop.f32.mrb[175].mxu1 }
 0x3d5   : > { %7305 = vmatmul.mubr.bf16.gmra.mrb[156].mxu0 %v4863_v1  ;;  %8016 = vmatmul.mubr.bf16.gmra.mrb[20].mxu1 %v4863_v1  ;;  %v14290_v41 = vadd.f32 %v9111_v44, %v14176_v56  ;;  %v9114_v6 = vadd.f32 %v9113_v47, %v9112_v11  ;;  %v10744_v11 = vld [vmem:[#allocation7 + $0x7cc] ss:$12 sps:$4 sm:$0xff]   ;;  %v10753_v47 = vld [vmem:[#allocation7 + $0x890] ss:$12 sps:$4 sm:$0xff]  }
 0x3d6   : > { %7345 = vmatprep.mubr.bf16.mxu0 %v14021_v50  ;;  %8055 = vmatprep.mubr.bf16.mxu1 %v14021_v50  ;;  %v10734_v50 = vld [vmem:[#allocation7 + $0x798] ss:$12 sps:$4 sm:$0xff]  }
 0x3d7   : > { %v14295_v59 = vadd.f32 %v9114_v6, %v14186_v52  ;;  %v10739_v52 = vld [vmem:[#allocation7 + $0x7b0] ss:$12 sps:$4 sm:$0xff]  }
 0x3d9   : > { %v9115_v56 = vpop.f32.mrb[176].mxu1 }
 0x3da   : > { %v9116_v58 = vpop.f32.mrb[177].mxu1 }
 0x3db   : > { %v9117_v1 = vadd.f32 %v9116_v58, %v9115_v56  ;;  %v9118_v23 = vpop.f32.mrb[178].mxu1  ;;  %v10762_v56 = vld [vmem:[#allocation7 + $0x7e8] ss:$12 sps:$4 sm:$0xff]   ;;  %v10769_v58 = vld [vmem:[#allocation7 + $0x8c0] ss:$12 sps:$4 sm:$0xff]  }
 0x3dc   : > { %v9119_v22 = vpop.f32.mrb[179].mxu1 }
 0x3dd   : > { %7346 = vmatmul.mubr.bf16.vlgmr.msra.gmra.mrb[120].mxu0 %v15300_v54  ;;  %8056 = vmatmul.mubr.bf16.vlgmr.msra.gmra.mrb[24].mxu1 %v15300_v54  ;;  %v14300_v44 = vadd.f32 %v9117_v1, %v14213_v45  ;;  %v10754_v45 = vld [vmem:[#allocation7 + $0x7d0] ss:$12 sps:$4 sm:$0xff]  }
 0x3de   : > { %7355 = vmatprep.mubr.bf16.mxu0 %v14028_v0  ;;  %8063 = vmatprep.mubr.bf16.mxu1 %v14028_v0  ;;  %v9120_v0 = vadd.f32 %v9119_v22, %v9118_v23  ;;  %v10750_v23 = vld [vmem:[#allocation7 + $0x7f8] ss:$12 sps:$4 sm:$0xff]  }
 0x3df   : > { %9380 = vmatpush3.bf16.msra.mxu1 %v10730_v5  ;;  %7445 = vmatpush1.bf16.msra.mxu0 %v10731_v63  ;;  %v10742_v63 = vld [vmem:[#allocation7 + $0x7c8] ss:$12 sps:$4 sm:$0xff]  }
 0x3e0   : > { %7446 = vmatprep.subr.bf16.mxu0 %v10736_v3  ;;  %9381 = vmatprep.subr.bf16.mxu1 %v10737_v32  ;;  %v14305_v5 = vadd.f32 %v9120_v0, %v14215_v35  ;;  %v10749_v3 = vld [vmem:[#allocation7 + $0x7e4] ss:$12 sps:$4 sm:$0xff]   ;;  %v10761_v32 = vld [vmem:[#allocation7 + $0x8a8] ss:$12 sps:$4 sm:$0xff]   ;;  %v10747_v35 = vld [vmem:[#allocation7 + $0x7e0] ss:$12 sps:$4 sm:$0xff]  }
 0x3e1   : > { %v9121_v6 = vpop.f32.mrb[180].mxu1 }
 0x3e2   : > { %v9122_v54 = vpop.f32.mrb[181].mxu1 }
 0x3e3   : > { %7447 = vmatpush1.bf16.msra.mxu0 %v10734_v50  ;;  %9382 = vmatpush3.bf16.msra.mxu1 %v10738_v27  ;;  %v9123_v50 = vadd.f32 %v9122_v54, %v9121_v6  ;;  %v9124_v27 = vpop.f32.mrb[182].mxu1  ;;  %v10760_v6 = vld [vmem:[#allocation7 + $0x82c] ss:$12 sps:$4 sm:$0xff]   ;;  %v10758_v54 = vld [vmem:[#allocation7 + $0x828] ss:$12 sps:$4 sm:$0xff]  }
 0x3e4   : > { %7448 = vmatprep.subr.bf16.mxu0 %v10741_v16  ;;  %9383 = vmatprep.subr.bf16.mxu1 %v10745_v8  ;;  %v10752_v8 = vld [vmem:[#allocation7 + $0x7fc] ss:$12 sps:$4 sm:$0xff]  }
 0x3e5   : > { %7356 = vmatmul.mubr.bf16.gmra.mrb[124].mxu0 %v14032_v51  ;;  %8064 = vmatmul.mubr.bf16.gmra.mrb[28].mxu1 %v14032_v51  ;;  %v9125_v51 = vpop.f32.mrb[183].mxu1  ;;  %v14310_v16 = vadd.f32 %v9123_v50, %v14221_v10  ;;  %v10770_v10 = vld [vmem:[#allocation7 + $0x800] ss:$12 sps:$4 sm:$0xff]  }
 0x3e6   : > { %7365 = vmatprep.mubr.bf16.mxu0 %v14038_v37  ;;  %8071 = vmatprep.mubr.bf16.mxu1 %v14038_v37  ;;  %v9126_v37 = vadd.f32 %v9125_v51, %v9124_v27  ;;  %v10765_v27 = vld [vmem:[#allocation7 + $0x844] ss:$12 sps:$4 sm:$0xff]  }
 0x3e7   : > { %7449 = vmatpush1.bf16.msra.mxu0 %v10739_v52  ;;  %9384 = vmatpush3.bf16.msra.mxu1 %v10746_v53  ;;  %v10757_v52 = vld [vmem:[#allocation7 + $0x814] ss:$12 sps:$4 sm:$0xff]   ;;  %v10777_v53 = vld [vmem:[#allocation7 + $0x8d8] ss:$12 sps:$4 sm:$0xff]  }
 0x3e8   : > { %7450 = vmatprep.subr.bf16.mxu0 %v10744_v11  ;;  %9385 = vmatprep.subr.bf16.mxu1 %v10753_v47  ;;  %v14315_v1 = vadd.f32 %v9126_v37, %v14223_v9  ;;  %v10755_v9 = vld [vmem:[#allocation7 + $0x810] ss:$12 sps:$4 sm:$0xff]  }
 0x3e9   : > { %v9127_v22 = vpop.f32.mrb[184].mxu1 }
 0x3ea   : > { %v9128_v0 = vpop.f32.mrb[185].mxu1 }
 0x3eb   : > { %7451 = vmatpush1.bf16.msra.mxu0 %v10742_v63  ;;  %9386 = vmatpush3.bf16.msra.mxu1 %v10754_v45  ;;  %v9129_v11 = vadd.f32 %v9128_v0, %v9127_v22  ;;  %v9130_v47 = vpop.f32.mrb[186].mxu1  ;;  %v10778_v63 = vld [vmem:[#allocation7 + $0x818] ss:$12 sps:$4 sm:$0xff]   ;;  %v15301_v0 = vld [vmem:[#allocation47_spill] sm:$0xff] }
 0x3ec   : > { %7452 = vmatprep.subr.bf16.mxu0 %v10749_v3  ;;  %9387 = vmatprep.subr.bf16.mxu1 %v10761_v32  ;;  %v10785_v3 = vld [vmem:[#allocation7 + $0x8f0] ss:$12 sps:$4 sm:$0xff]  }
 0x3ed   : > { %7366 = vmatmul.mubr.bf16.gmra.mrb[128].mxu0 %v14042_v40  ;;  %8072 = vmatmul.mubr.bf16.gmra.mrb[32].mxu1 %v14042_v40  ;;  %v9131_v40 = vpop.f32.mrb[187].mxu1  ;;  %v14320_v45 = vadd.f32 %v9129_v11, %v14229_v57  ;;  %v10786_v57 = vld [vmem:[#allocation7 + $0x830] ss:$12 sps:$4 sm:$0xff]   ;;  %v4062_v11 = vmul.f32 0.70710677, %v15301_v0 }
 0x3ee   : > { %7375 = vmatprep.mubr.bf16.mxu0 %v14046_v28  ;;  %8079 = vmatprep.mubr.bf16.mxu1 %v14046_v28  ;;  %v9132_v28 = vadd.f32 %v9131_v40, %v9130_v47 }
 0x3ef   : > { %7453 = vmatpush1.bf16.msra.mxu0 %v10747_v35  ;;  %9388 = vmatpush3.bf16.msra.mxu1 %v10762_v56  ;;  %11241 = verf.f32 %v4062_v11 }
 0x3f0   : > { %7454 = vmatprep.subr.bf16.mxu0 %v10752_v8  ;;  %9389 = vmatprep.subr.bf16.mxu1 %v10769_v58  ;;  %v14325_v32 = vadd.f32 %v9132_v28, %v14231_v39 }
 0x3f1   : > { %v9133_v50 = vpop.f32.mrb[188].mxu1 }
 0x3f2   : > { %v9134_v51 = vpop.f32.mrb[189].mxu1 }
 0x3f3   : > { %7455 = vmatpush1.bf16.msra.mxu0 %v10750_v23  ;;  %9390 = vmatpush3.bf16.msra.mxu1 %v10770_v10  ;;  %v9135_v35 = vadd.f32 %v9134_v51, %v9133_v50  ;;  %v9136_v56 = vpop.f32.mrb[190].mxu1  ;;  %v10766_v23 = vld [vmem:[#allocation7 + $0x858] ss:$12 sps:$4 sm:$0xff]   ;;  %v10784_v51 = vld [vmem:[#allocation7 + $0x8bc] ss:$12 sps:$4 sm:$0xff]  }
 0x3f4   : > { %7456 = vmatprep.subr.bf16.mxu0 %v10757_v52  ;;  %9391 = vmatprep.subr.bf16.mxu1 %v10777_v53  ;;  %v9137_v37 = vpop.f32.mrb[191].mxu1 }
 0x3f5   : > { %7376 = vmatmul.mubr.bf16.gmra.mrb[132].mxu0 %v14050_v49  ;;  %8080 = vmatmul.mubr.bf16.gmra.mrb[36].mxu1 %v14050_v49  ;;  %v10763_v49 = vld [vmem:[#allocation7 + $0x840] ss:$12 sps:$4 sm:$0xff]   ;;  %v14330_v39 = vadd.f32 %v9135_v35, %v14237_v43  ;;  %v9138_v8 = vadd.f32 %v9137_v37, %v9136_v56 }
 0x3f6   : > { %7385 = vmatprep.mubr.bf16.mxu0 %v14054_v34  ;;  %8087 = vmatprep.mubr.bf16.mxu1 %v14054_v34  ;;  %v10768_v34 = vld [vmem:[#allocation7 + $0x85c] ss:$12 sps:$4 sm:$0xff]   ;;  %v10773_v43 = vld [vmem:[#allocation7 + $0x874] ss:$12 sps:$4 sm:$0xff]  }
 0x3f7   : > { %7457 = vmatpush1.bf16.msra.mxu0 %v10755_v9  ;;  %9392 = vmatpush3.bf16.msra.mxu1 %v10778_v63  ;;  %v14335_v58 = vadd.f32 %v9138_v8, %v14239_v24  ;;  %v10776_v9 = vld [vmem:[#allocation7 + $0x88c] ss:$12 sps:$4 sm:$0xff]   ;;  %v10774_v63 = vld [vmem:[#allocation7 + $0x888] ss:$12 sps:$4 sm:$0xff]  }
 0x3f8   : > { %7458 = vmatprep.subr.bf16.mxu0 %v10760_v6  ;;  %9393 = vmatprep.subr.bf16.mxu1 %v10785_v3  ;;  %v15302_v3 = vld [vmem:[#allocation37_spill] sm:$0xff]  ;;  %v10789_v56 = vld [vmem:[#allocation7 + $0x8d4] ss:$12 sps:$4 sm:$0xff]  }
 0x3f9   : > { %v9139_v10 = vpop.f32.mrb[192].mxu1  ;;  %v11242_v37 = vpop.eup %11241 }
 0x3fa   : > { %v9140_v22 = vpop.f32.mrb[193].mxu1 }
 0x3fb   : > { %7459 = vmatpush1.bf16.msra.mxu0 %v10758_v54  ;;  %9394 = vmatpush3.bf16.msra.mxu1 %v10786_v57  ;;  %v9141_v52 = vadd.f32 %v9140_v22, %v9139_v10  ;;  %v9142_v53 = vpop.f32.mrb[194].mxu1  ;;  %v4061_v54 = vmul.f32 0.70710677, %v15302_v3  ;;  %v4518_v10 = vadd.f32 1.0, %v11242_v37  ;;  %v10792_v22 = vld [vmem:[#allocation7 + $0x8ec] ss:$12 sps:$4 sm:$0xff]  }
 0x3fc   : > { %7460 = vmatprep.subr.bf16.mxu0 %v10765_v27  ;;  %v9143_v47 = vpop.f32.mrb[195].mxu1 }
 0x3fd   : > { %7386 = vmatmul.mubr.bf16.gmra.mrb[136].mxu0 %v14058_v46  ;;  %8088 = vmatmul.mubr.bf16.gmra.mrb[40].mxu1 %v14058_v46  ;;  %v10771_v46 = vld [vmem:[#allocation7 + $0x870] ss:$12 sps:$4 sm:$0xff]   ;;  %v14341_v24 = vadd.f32 %v9141_v52, %v14245_v26  ;;  %v9144_v40 = vadd.f32 %v9143_v47, %v9142_v53  ;;  %11243 = verf.f32 %v4061_v54  ;;  %v10790_v53 = vld [vmem:[#allocation7 + $0x8e8] ss:$12 sps:$4 sm:$0xff]  }
 0x3fe   : > { %7395 = vmatprep.mubr.bf16.mxu0 %v14062_v19  ;;  %8095 = vmatprep.mubr.bf16.mxu1 %v14062_v19  ;;  %v10781_v26 = vld [vmem:[#allocation7 + $0x8a4] ss:$12 sps:$4 sm:$0xff]  }
 0x3ff   : > { %7461 = vmatpush1.bf16.msra.mxu0 %v10763_v49  ;;  %v14346_v19 = vadd.f32 %v9144_v40, %v14248_v17 }
 0x400   : > { %7462 = vmatprep.subr.bf16.mxu0 %v10768_v34 }
 0x401   : > { %v9145_v28 = vpop.f32.mrb[196].mxu1 }
 0x402   : > { %v9146_v6 = vpop.f32.mrb[197].mxu1 }
 0x403   : > { %7463 = vmatpush1.bf16.msra.mxu0 %v10766_v23  ;;  %v9147_v57 = vadd.f32 %v9146_v6, %v9145_v28  ;;  %v9148_v50 = vpop.f32.mrb[198].mxu1  ;;  %v10787_v23 = vld [vmem:[#allocation7 + $0x8d0] ss:$12 sps:$4 sm:$0xff]  }
 0x404   : > { %7464 = vmatprep.subr.bf16.mxu0 %v10773_v43  ;;  %v9149_v27 = vpop.f32.mrb[199].mxu1 }
 0x405   : > { %7396 = vmatmul.mubr.bf16.gmra.mrb[140].mxu0 %v14066_v31  ;;  %8096 = vmatmul.mubr.bf16.gmra.mrb[44].mxu1 %v14066_v31  ;;  %v10779_v31 = vld [vmem:[#allocation7 + $0x8a0] ss:$12 sps:$4 sm:$0xff]   ;;  %v14352_v17 = vadd.f32 %v9147_v57, %v14255_v2 }
 0x406   : > { %7405 = vmatprep.mubr.bf16.mxu0 %v14071_v7  ;;  %8103 = vmatprep.mubr.bf16.mxu1 %v14071_v7  ;;  %v10782_v7 = vld [vmem:[#allocation7 + $0x8b8] ss:$12 sps:$4 sm:$0xff]  }
 0x407   : > { %7465 = vmatpush1.bf16.msra.mxu0 %v10771_v46 }
 0x408   : > { %7466 = vmatprep.subr.bf16.mxu0 %v10776_v9 }
 0x409   : > { %v9167_v35 = vpop.f32.mrb[200].mxu1 }
 0x40a   : > { %v9168_v49 = vpop.f32.mrb[201].mxu1 }
 0x40b   : > { %7467 = vmatpush1.bf16.msra.mxu0 %v10774_v63  ;;  %v9169_v2 = vadd.f32 %v9168_v49, %v9167_v35  ;;  %v9170_v8 = vpop.f32.mrb[202].mxu1 }
 0x40c   : > { %7468 = vmatprep.subr.bf16.mxu0 %v10781_v26  ;;  %v9171_v34 = vpop.f32.mrb[203].mxu1  ;;  %v3833_v26 = vmul.f32 0.5, %v15302_v3 }
 0x40d   : > { %7406 = vmatmul.mubr.bf16.gmra.mrb[144].mxu0 %v14075_v29  ;;  %8104 = vmatmul.mubr.bf16.gmra.mrb[48].mxu1 %v14075_v29  ;;  %v14359_v29 = vadd.f32 %v9169_v2, %v14262_v61  ;;  %v9172_v43 = vadd.f32 %v9171_v34, %v9170_v8  ;;  %v11244_v61 = vpop.eup %11243  ;;  %v15303_v2 = vld [vmem:[#allocation12_spill] sm:$0xff] }
 0x40e   : > { %7415 = vmatprep.mubr.bf16.mxu0 %v14080_v55  ;;  %8111 = vmatprep.mubr.bf16.mxu1 %v14080_v55  ;;  %v3834_v55 = vmul.f32 0.5, %v15301_v0  ;;  %v4517_v63 = vadd.f32 1.0, %v11244_v61 }
 0x40f   : > { %7469 = vmatpush1.bf16.msra.mxu0 %v10779_v31  ;;  %v14365_v52 = vadd.f32 %v9172_v43, %v14268_v38 }
 0x410   : > { %7470 = vmatprep.subr.bf16.mxu0 %v10784_v51  ;;  %v4746_v11 = vmul.f32 %v4518_v10, %v3834_v55  ;;  %v4745_v6 = vmul.f32 %v4517_v63, %v3833_v26 }
 0x411   : > { %v9173_v47 = vpop.f32.mrb[204].mxu1 }
 0x412   : > { %v9174_v46 = vpop.f32.mrb[205].mxu1  ;;  %v4866_v28 = vpack.c.bf16 %v4746_v11, %v4746_v11  ;;  %v4865_v31 = vpack.c.bf16 %v4745_v6, %v4745_v6 }
 0x413   : > { %7471 = vmatpush1.bf16.msra.mxu0 %v10782_v7  ;;  %v9175_v40 = vadd.f32 %v9174_v46, %v9173_v47  ;;  %v9176_v9 = vpop.f32.mrb[206].mxu1 }
 0x414   : > { %7472 = vmatprep.subr.bf16.mxu0 %v10789_v56 }
 0x415   : > { %7416 = vmatmul.mubr.bf16.gmra.mrb[148].mxu0 %v14082_v21  ;;  %8112 = vmatmul.mubr.bf16.gmra.mrb[52].mxu1 %v14082_v21  ;;  %v9177_v21 = vpop.f32.mrb[207].mxu1  ;;  %v14370_v0 = vadd.f32 %v9175_v40, %v14273_v18 }
 0x416   : > { %7425 = vmatprep.mubr.bf16.mxu0 %v14095_v14  ;;  %8119 = vmatprep.mubr.bf16.mxu1 %v14095_v14  ;;  %v9178_v38 = vadd.f32 %v9177_v21, %v9176_v9 }
 0x417   : > { %7473 = vmatpush1.bf16.msra.mxu0 %v10787_v23 }
 0x418   : > { %7474 = vmatprep.subr.bf16.mxu0 %v10792_v22  ;;  %v14376_v14 = vadd.f32 %v9178_v38, %v14279_v36 }
 0x419   : > { %v9179_v54 = vpop.f32.mrb[208].mxu1 }
 0x41a   : > { %v9180_v57 = vpop.f32.mrb[209].mxu1 }
 0x41b   : > { %7475 = vmatpush1.bf16.msra.mxu0 %v10790_v53  ;;  %v9181_v50 = vadd.f32 %v9180_v57, %v9179_v54  ;;  %v9182_v27 = vpop.f32.mrb[210].mxu1  ;;  %v15305_v57 = vld [vmem:[#allocation54_spill] sm:$0xff] }
 0x41c   : > { %v9183_v18 = vpop.f32.mrb[211].mxu1 }
 0x41d   : > { %7426 = vmatmul.mubr.bf16.gmra.mrb[152].mxu0 %v14084_v12  ;;  %8120 = vmatmul.mubr.bf16.gmra.mrb[56].mxu1 %v14084_v12  ;;  %v14379_v51 = vadd.f32 %v9181_v50, %v14282_v20  ;;  %v9184_v3 = vadd.f32 %v9183_v18, %v9182_v27  ;;  %v4064_v50 = vmul.f32 0.70710677, %v15305_v57 }
 0x41e   : > { %7435 = vmatprep.mubr.bf16.mxu0 %v4866_v28  ;;  %8127 = vmatprep.mubr.bf16.mxu1 %v4866_v28 }
 0x41f   : > { %v14382_v12 = vadd.f32 %v9184_v3, %v14285_v48  ;;  %11245 = verf.f32 %v4064_v50 }
 0x421   : > { %v9185_v36 = vpop.f32.mrb[212].mxu1 }
 0x422   : > { %v9186_v7 = vpop.f32.mrb[213].mxu1 }
 0x423   : > { %v9187_v35 = vadd.f32 %v9186_v7, %v9185_v36  ;;  %v9188_v56 = vpop.f32.mrb[214].mxu1  ;;  %v15308_v7 = vld [vmem:[#allocation41_spill] sm:$0xff] }
 0x424   : > { %v9189_v37 = vpop.f32.mrb[215].mxu1 }
 0x425   : > { %7436 = vmatmul.mubr.bf16.gmra.mrb[156].mxu0 %v4865_v31  ;;  %8128 = vmatmul.mubr.bf16.gmra.mrb[60].mxu1 %v4865_v31  ;;  %v14387_v49 = vadd.f32 %v9187_v35, %v14290_v41  ;;  %v9190_v20 = vadd.f32 %v9189_v37, %v9188_v56  ;;  %v15306_v31 = vld [vmem:[#allocation50_spill] sm:$0xff]  ;;  %v4063_v35 = vmul.f32 0.70710677, %v15308_v7 }
 0x426   : > { %7476 = vmatprep.mubr.bf16.mxu0 %v14110_v13  ;;  %8167 = vmatprep.mubr.bf16.mxu1 %v14110_v13 }
 0x427   : > { %v14392_v48 = vadd.f32 %v9190_v20, %v14295_v59  ;;  %11247 = verf.f32 %v4063_v35 }
 0x42a   : > { %v9191_v13 = vpop.f32.mrb[216].mxu1 }
 0x42b   : > { %v9192_v8 = vpop.f32.mrb[217].mxu1 }
 0x42c   : > { %v9193_v34 = vadd.f32 %v9192_v8, %v9191_v13  ;;  %v9194_v23 = vpop.f32.mrb[218].mxu1  ;;  %v11246_v8 = vpop.eup %11245 }
 0x42d   : > { %7477 = vmatmul.mubr.bf16.vlgmr.msra.gmra.mrb[120].mxu0 %v15303_v2  ;;  %8168 = vmatmul.mubr.bf16.vlgmr.msra.gmra.mrb[64].mxu1 %v15303_v2  ;;  %v9195_v10 = vpop.f32.mrb[219].mxu1  ;;  %v15309_v2 = vld [vmem:[#allocation80_spill] sm:$0xff] }
 0x42e   : > { %7486 = vmatprep.mubr.bf16.mxu0 %v14132_v25  ;;  %8175 = vmatprep.mubr.bf16.mxu1 %v14132_v25  ;;  %v14397_v41 = vadd.f32 %v9193_v34, %v14300_v44  ;;  %v9196_v43 = vadd.f32 %v9195_v10, %v9194_v23 }
 0x430   : > { %v14402_v59 = vadd.f32 %v9196_v43, %v14305_v5 }
 0x432   : > { %v9197_v25 = vpop.f32.mrb[220].mxu1 }
 0x433   : > { %v9198_v22 = vpop.f32.mrb[221].mxu1 }
 0x434   : > { %v9199_v55 = vadd.f32 %v9198_v22, %v9197_v25  ;;  %v9200_v53 = vpop.f32.mrb[222].mxu1  ;;  %v4520_v25 = vadd.f32 1.0, %v11246_v8 }
 0x435   : > { %7487 = vmatmul.mubr.bf16.gmra.mrb[124].mxu0 %v14138_v60  ;;  %8176 = vmatmul.mubr.bf16.gmra.mrb[68].mxu1 %v14138_v60  ;;  %v9201_v61 = vpop.f32.mrb[223].mxu1 }
 0x436   : > { %7496 = vmatprep.mubr.bf16.mxu0 %v14144_v15  ;;  %8183 = vmatprep.mubr.bf16.mxu1 %v14144_v15  ;;  %v14407_v44 = vadd.f32 %v9199_v55, %v14310_v16  ;;  %v9202_v11 = vadd.f32 %v9201_v61, %v9200_v53  ;;  %v15311_v55 = vld [vmem:[#allocation29_spill] sm:$0xff]  ;;  %v3836_v53 = vmul.f32 0.5, %v15305_v57 }
 0x438   : > { %v14412_v60 = vadd.f32 %v9202_v11, %v14315_v1  ;;  %v15312_v11 = vld [vmem:[#allocation94_spill] sm:$0xff] }
 0x43a   : > { %v9203_v15 = vpop.f32.mrb[224].mxu1 }
 0x43b   : > { %v9204_v5 = vpop.f32.mrb[225].mxu1 }
 0x43c   : > { %v9205_v47 = vadd.f32 %v9204_v5, %v9203_v15  ;;  %v9206_v46 = vpop.f32.mrb[226].mxu1  ;;  %v11248_v15 = vpop.eup %11247  ;;  %v4748_v5 = vmul.f32 %v4520_v25, %v3836_v53 }
 0x43d   : > { %7497 = vmatmul.mubr.bf16.gmra.mrb[128].mxu0 %v14162_v42  ;;  %8184 = vmatmul.mubr.bf16.gmra.mrb[72].mxu1 %v14162_v42  ;;  %v9207_v40 = vpop.f32.mrb[227].mxu1 }
 0x43e   : > { %7506 = vmatprep.mubr.bf16.mxu0 %v14171_v30  ;;  %8191 = vmatprep.mubr.bf16.mxu1 %v14171_v30  ;;  %v14417_v16 = vadd.f32 %v9205_v47, %v14320_v45  ;;  %v9208_v9 = vadd.f32 %v9207_v40, %v9206_v46 }
 0x440   : > { %v14422_v42 = vadd.f32 %v9208_v9, %v14325_v32  ;;  %v15304_v32 = vld [vmem:[#allocation84_spill] sm:$0xff]  ;;  %v4519_v9 = vadd.f32 1.0, %v11248_v15 }
 0x442   : > { %v9209_v30 = vpop.f32.mrb[228].mxu1 }
 0x443   : > { %v9210_v1 = vpop.f32.mrb[229].mxu1 }
 0x444   : > { %v9211_v63 = vadd.f32 %v9210_v1, %v9209_v30  ;;  %v9212_v21 = vpop.f32.mrb[230].mxu1 }
 0x445   : > { %7507 = vmatmul.mubr.bf16.gmra.mrb[132].mxu0 %v14181_v33  ;;  %8192 = vmatmul.mubr.bf16.gmra.mrb[76].mxu1 %v14181_v33  ;;  %v9213_v38 = vpop.f32.mrb[231].mxu1 }
 0x446   : > { %7516 = vmatprep.mubr.bf16.mxu0 %v14193_v62  ;;  %8199 = vmatprep.mubr.bf16.mxu1 %v14193_v62  ;;  %v14427_v45 = vadd.f32 %v9211_v63, %v14330_v39  ;;  %v9214_v28 = vadd.f32 %v9213_v38, %v9212_v21  ;;  %v4868_v21 = vpack.c.bf16 %v4748_v5, %v4748_v5  ;;  %v15313_v38 = vld [vmem:[#allocation34_spill] sm:$0xff] }
 0x448   : > { %v14432_v33 = vadd.f32 %v9214_v28, %v14335_v58  ;;  %v15307_v58 = vld [vmem:[#allocation20_spill] sm:$0xff] }
 0x44a   : > { %v9215_v62 = vpop.f32.mrb[232].mxu1 }
 0x44b   : > { %v9216_v26 = vpop.f32.mrb[233].mxu1 }
 0x44c   : > { %v9217_v6 = vadd.f32 %v9216_v26, %v9215_v62  ;;  %v9218_v54 = vpop.f32.mrb[234].mxu1 }
 0x44d   : > { %7517 = vmatmul.mubr.bf16.gmra.mrb[136].mxu0 %v14201_v4  ;;  %8200 = vmatmul.mubr.bf16.gmra.mrb[80].mxu1 %v14201_v4  ;;  %v9219_v39 = vpop.f32.mrb[235].mxu1 }
 0x44e   : > { %7526 = vmatprep.mubr.bf16.mxu0 %v15304_v32  ;;  %8207 = vmatprep.mubr.bf16.mxu1 %v15304_v32  ;;  %v14438_v27 = vadd.f32 %v9217_v6, %v14341_v24  ;;  %v9220_v18 = vadd.f32 %v9219_v39, %v9218_v54 }
 0x450   : > { %v14443_v4 = vadd.f32 %v9220_v18, %v14346_v19  ;;  %v15310_v19 = vld [vmem:[#allocation35_spill] sm:$0xff] }
 0x453   : > { %v9221_v3 = vpop.f32.mrb[236].mxu1 }
 0x454   : > { %v9222_v36 = vpop.f32.mrb[237].mxu1 }
 0x455   : > { %7527 = vmatmul.mubr.bf16.gmra.mrb[140].mxu0 %v15306_v31  ;;  %8208 = vmatmul.mubr.bf16.gmra.mrb[84].mxu1 %v15306_v31  ;;  %v9223_v56 = vadd.f32 %v9222_v36, %v9221_v3  ;;  %v9224_v24 = vpop.f32.mrb[238].mxu1 }
 0x456   : > { %7536 = vmatprep.mubr.bf16.mxu0 %v15307_v58  ;;  %8215 = vmatprep.mubr.bf16.mxu1 %v15307_v58  ;;  %v9225_v37 = vpop.f32.mrb[239].mxu1 }
 0x457   : > { %v14449_v20 = vadd.f32 %v9223_v56, %v14352_v17 }
 0x45d   : > { %7537 = vmatmul.mubr.bf16.gmra.mrb[144].mxu0 %v15309_v2  ;;  %8216 = vmatmul.mubr.bf16.gmra.mrb[88].mxu1 %v15309_v2 }
 0x45e   : > { %7546 = vmatprep.mubr.bf16.mxu0 %v15310_v19  ;;  %8223 = vmatprep.mubr.bf16.mxu1 %v15310_v19 }
 0x460   : > { %v9243_v13 = vpop.f32.mrb[240].mxu1 }
 0x461   : > { %v9244_v34 = vpop.f32.mrb[241].mxu1 }
 0x462   : > { %v9245_v23 = vadd.f32 %v9244_v34, %v9243_v13  ;;  %v9246_v10 = vpop.f32.mrb[242].mxu1 }
 0x463   : > { %v9247_v43 = vpop.f32.mrb[243].mxu1 }
 0x464   : > { %v14456_v22 = vadd.f32 %v9245_v23, %v14359_v29  ;;  %v9248_v17 = vadd.f32 %v9247_v43, %v9246_v10 }
 0x465   : > { %7547 = vmatmul.mubr.bf16.gmra.mrb[148].mxu0 %v15311_v55  ;;  %8224 = vmatmul.mubr.bf16.gmra.mrb[92].mxu1 %v15311_v55 }
 0x466   : > { %v14462_v61 = vadd.f32 %v9248_v17, %v14365_v52  ;;  %7556 = vmatprep.mubr.bf16.mxu0 %v15312_v11  ;;  %8231 = vmatprep.mubr.bf16.mxu1 %v15312_v11  ;;  %v3835_v52 = vmul.f32 0.5, %v15308_v7 }
 0x468   : > { %v9249_v47 = vpop.f32.mrb[244].mxu1  ;;  %v4747_v32 = vmul.f32 %v4519_v9, %v3835_v52 }
 0x469   : > { %v9250_v46 = vpop.f32.mrb[245].mxu1 }
 0x46a   : > { %v9251_v29 = vadd.f32 %v9250_v46, %v9249_v47  ;;  %v9252_v40 = vpop.f32.mrb[246].mxu1  ;;  %v4867_v57 = vpack.c.bf16 %v4747_v32, %v4747_v32 }
 0x46b   : > { %v9253_v30 = vpop.f32.mrb[247].mxu1 }
 0x46c   : > { %v14467_v1 = vadd.f32 %v9251_v29, %v14370_v0  ;;  %v9254_v63 = vadd.f32 %v9253_v30, %v9252_v40 }
 0x46d   : > { %7557 = vmatmul.mubr.bf16.gmra.mrb[152].mxu0 %v15313_v38  ;;  %8232 = vmatmul.mubr.bf16.gmra.mrb[96].mxu1 %v15313_v38 }
 0x46e   : > { %v14473_v28 = vadd.f32 %v9254_v63, %v14376_v14  ;;  %7566 = vmatprep.mubr.bf16.mxu0 %v4868_v21  ;;  %8239 = vmatprep.mubr.bf16.mxu1 %v4868_v21 }
 0x470   : > { %v9255_v62 = vpop.f32.mrb[248].mxu1 }
 0x471   : > { %v9256_v26 = vpop.f32.mrb[249].mxu1 }
 0x472   : > { %v9257_v6 = vadd.f32 %v9256_v26, %v9255_v62  ;;  %v9258_v54 = vpop.f32.mrb[250].mxu1 }
 0x473   : > { %v9259_v0 = vpop.f32.mrb[251].mxu1 }
 0x474   : > { %v14476_v50 = vadd.f32 %v9257_v6, %v14379_v51  ;;  %v9260_v39 = vadd.f32 %v9259_v0, %v9258_v54 }
 0x475   : > { %7567 = vmatmul.mubr.bf16.gmra.mrb[156].mxu0 %v4867_v57  ;;  %8240 = vmatmul.mubr.bf16.gmra.mrb[100].mxu1 %v4867_v57 }
 0x476   : > { %v14479_v18 = vadd.f32 %v9260_v39, %v14382_v12 }
 0x478   : > { %v9261_v14 = vpop.f32.mrb[252].mxu1 }
 0x479   : > { %v9262_v31 = vpop.f32.mrb[253].mxu1 }
 0x47a   : > { %v9263_v58 = vadd.f32 %v9262_v31, %v9261_v14  ;;  %v9264_v3 = vpop.f32.mrb[254].mxu1 }
 0x47b   : > { %v9265_v36 = vpop.f32.mrb[255].mxu1 }
 0x47c   : > { %v14482_v7 = vadd.f32 %v9263_v58, %v14387_v49  ;;  %v9266_v35 = vadd.f32 %v9265_v36, %v9264_v3 }
 0x47e   : > { %v14485_v56 = vadd.f32 %v9266_v35, %v14392_v48 }
 0x480   : > { %v9267_v51 = vpop.f32.mrb[0].mxu1 }
 0x481   : > { %v9268_v24 = vpop.f32.mrb[1].mxu1 }
 0x482   : > { %v9269_v37 = vadd.f32 %v9268_v24, %v9267_v51  ;;  %v9270_v2 = vpop.f32.mrb[2].mxu1 }
 0x483   : > { %v9271_v19 = vpop.f32.mrb[3].mxu1 }
 0x484   : > { %v14488_v12 = vadd.f32 %v9269_v37, %v14397_v41  ;;  %v9272_v13 = vadd.f32 %v9271_v19, %v9270_v2 }
 0x486   : > { %v14491_v8 = vadd.f32 %v9272_v13, %v14402_v59 }
 0x488   : > { %v9273_v34 = vpop.f32.mrb[4].mxu1 }
 0x489   : > { %v9274_v23 = vpop.f32.mrb[5].mxu1 }
 0x48a   : > { %v9275_v49 = vadd.f32 %v9274_v23, %v9273_v34  ;;  %v9276_v10 = vpop.f32.mrb[6].mxu1 }
 0x48b   : > { %v9277_v43 = vpop.f32.mrb[7].mxu1 }
 0x48c   : > { %v14494_v48 = vadd.f32 %v9275_v49, %v14407_v44  ;;  %v9278_v25 = vadd.f32 %v9277_v43, %v9276_v10 }
 0x48e   : > { %v14497_v17 = vadd.f32 %v9278_v25, %v14412_v60 }
 0x490   : > { %v9279_v55 = vpop.f32.mrb[8].mxu1 }
 0x491   : > { %v9280_v53 = vpop.f32.mrb[9].mxu1 }
 0x492   : > { %v9281_v41 = vadd.f32 %v9280_v53, %v9279_v55  ;;  %v9282_v11 = vpop.f32.mrb[10].mxu1 }
 0x493   : > { %v9283_v15 = vpop.f32.mrb[11].mxu1 }
 0x494   : > { %v14500_v59 = vadd.f32 %v9281_v41, %v14417_v16  ;;  %v9284_v5 = vadd.f32 %v9283_v15, %v9282_v11 }
 0x496   : > { %v14503_v47 = vadd.f32 %v9284_v5, %v14422_v42 }
 0x498   : > { %v9285_v46 = vpop.f32.mrb[12].mxu1 }
 0x499   : > { %v9286_v29 = vpop.f32.mrb[13].mxu1 }
 0x49a   : > { %v9287_v44 = vadd.f32 %v9286_v29, %v9285_v46  ;;  %v9288_v40 = vpop.f32.mrb[14].mxu1 }
 0x49b   : > { %v9289_v9 = vpop.f32.mrb[15].mxu1 }
 0x49c   : > { %v14506_v60 = vadd.f32 %v9287_v44, %v14427_v45  ;;  %v9290_v30 = vadd.f32 %v9289_v9, %v9288_v40 }
 0x49e   : > { %v14509_v63 = vadd.f32 %v9290_v30, %v14432_v33 }
 0x4a0   : > { %v9291_v21 = vpop.f32.mrb[16].mxu1 }
 0x4a1   : > { %v9292_v52 = vpop.f32.mrb[17].mxu1 }
 0x4a2   : > { %v9293_v16 = vadd.f32 %v9292_v52, %v9291_v21  ;;  %v9294_v38 = vpop.f32.mrb[18].mxu1 }
 0x4a3   : > { %v9295_v32 = vpop.f32.mrb[19].mxu1 }
 0x4a4   : > { %v14512_v42 = vadd.f32 %v9293_v16, %v14438_v27  ;;  %v9296_v62 = vadd.f32 %v9295_v32, %v9294_v38 }
 0x4a6   : > { %v14515_v26 = vadd.f32 %v9296_v62, %v14443_v4 }
 0x4a8   : > { %v9297_v6 = vpop.f32.mrb[20].mxu1 }
 0x4a9   : > { %v9298_v54 = vpop.f32.mrb[21].mxu1 }
 0x4aa   : > { %v9299_v45 = vadd.f32 %v9298_v54, %v9297_v6  ;;  %v9300_v0 = vpop.f32.mrb[22].mxu1 }
 0x4ab   : > { %v9301_v57 = vpop.f32.mrb[23].mxu1 }
 0x4ac   : > { %v14518_v33 = vadd.f32 %v9299_v45, %v14449_v20 }
 0x4b0   : > { %v9319_v39 = vpop.f32.mrb[24].mxu1 }
 0x4b1   : > { %v9320_v14 = vpop.f32.mrb[25].mxu1 }
 0x4b2   : > { %v9321_v31 = vadd.f32 %v9320_v14, %v9319_v39  ;;  %v9322_v58 = vpop.f32.mrb[26].mxu1 }
 0x4b3   : > { %v9323_v3 = vpop.f32.mrb[27].mxu1 }
 0x4b4   : > { %v14521_v27 = vadd.f32 %v9321_v31, %v14456_v22  ;;  %v9324_v36 = vadd.f32 %v9323_v3, %v9322_v58 }
 0x4b6   : > { %v14524_v4 = vadd.f32 %v9324_v36, %v14462_v61 }
 0x4b8   : > { %v9325_v35 = vpop.f32.mrb[28].mxu1 }
 0x4b9   : > { %v9326_v51 = vpop.f32.mrb[29].mxu1 }
 0x4ba   : > { %v9327_v24 = vadd.f32 %v9326_v51, %v9325_v35  ;;  %v9328_v37 = vpop.f32.mrb[30].mxu1 }
 0x4bb   : > { %v9329_v2 = vpop.f32.mrb[31].mxu1 }
 0x4bc   : > { %v14527_v20 = vadd.f32 %v9327_v24, %v14467_v1  ;;  %v9330_v19 = vadd.f32 %v9329_v2, %v9328_v37 }
 0x4be   : > { %v14530_v13 = vadd.f32 %v9330_v19, %v14473_v28 }
 0x4c0   : > { %v9331_v34 = vpop.f32.mrb[32].mxu1 }
 0x4c1   : > { %v9332_v23 = vpop.f32.mrb[33].mxu1 }
 0x4c2   : > { %v9333_v22 = vadd.f32 %v9332_v23, %v9331_v34  ;;  %v9334_v49 = vpop.f32.mrb[34].mxu1 }
 0x4c3   : > { %v9335_v10 = vpop.f32.mrb[35].mxu1 }
 0x4c4   : > { %v14533_v61 = vadd.f32 %v9333_v22, %v14476_v50  ;;  %v9336_v43 = vadd.f32 %v9335_v10, %v9334_v49 }
 0x4c6   : > { %v14536_v25 = vadd.f32 %v9336_v43, %v14479_v18 }
 0x4c8   : > { %v9337_v55 = vpop.f32.mrb[36].mxu1 }
 0x4c9   : > { %v9338_v53 = vpop.f32.mrb[37].mxu1 }
 0x4ca   : > { %v9339_v1 = vadd.f32 %v9338_v53, %v9337_v55  ;;  %v9340_v41 = vpop.f32.mrb[38].mxu1 }
 0x4cb   : > { %v9341_v11 = vpop.f32.mrb[39].mxu1 }
 0x4cc   : > { %v14539_v28 = vadd.f32 %v9339_v1, %v14482_v7  ;;  %v9342_v15 = vadd.f32 %v9341_v11, %v9340_v41 }
 0x4ce   : > { %v14542_v5 = vadd.f32 %v9342_v15, %v14485_v56 }
 0x4d0   : > { %v9343_v46 = vpop.f32.mrb[40].mxu1 }
 0x4d1   : > { %v9344_v29 = vpop.f32.mrb[41].mxu1 }
 0x4d2   : > { %v9345_v50 = vadd.f32 %v9344_v29, %v9343_v46  ;;  %v9346_v44 = vpop.f32.mrb[42].mxu1 }
 0x4d3   : > { %v9347_v40 = vpop.f32.mrb[43].mxu1 }
 0x4d4   : > { %v14545_v18 = vadd.f32 %v9345_v50, %v14488_v12  ;;  %v9348_v9 = vadd.f32 %v9347_v40, %v9346_v44 }
 0x4d6   : > { %v14548_v30 = vadd.f32 %v9348_v9, %v14491_v8 }
 0x4d8   : > { %v9349_v21 = vpop.f32.mrb[44].mxu1 }
 0x4d9   : > { %v9350_v52 = vpop.f32.mrb[45].mxu1 }
 0x4da   : > { %v9351_v7 = vadd.f32 %v9350_v52, %v9349_v21  ;;  %v9352_v16 = vpop.f32.mrb[46].mxu1 }
 0x4db   : > { %v9353_v38 = vpop.f32.mrb[47].mxu1 }
 0x4dc   : > { %v14551_v56 = vadd.f32 %v9351_v7, %v14494_v48  ;;  %v9354_v32 = vadd.f32 %v9353_v38, %v9352_v16 }
 0x4de   : > { %v14554_v62 = vadd.f32 %v9354_v32, %v14497_v17 }
 0x4e0   : > { %v9355_v6 = vpop.f32.mrb[48].mxu1 }
 0x4e1   : > { %v9356_v54 = vpop.f32.mrb[49].mxu1 }
 0x4e2   : > { %v9357_v12 = vadd.f32 %v9356_v54, %v9355_v6  ;;  %v9358_v45 = vpop.f32.mrb[50].mxu1 }
 0x4e3   : > { %v9359_v0 = vpop.f32.mrb[51].mxu1 }
 0x4e4   : > { %v14557_v8 = vadd.f32 %v9357_v12, %v14500_v59  ;;  %v9360_v57 = vadd.f32 %v9359_v0, %v9358_v45 }
 0x4e6   : > { %v14560_v39 = vadd.f32 %v9360_v57, %v14503_v47 }
 0x4e8   : > { %v9361_v14 = vpop.f32.mrb[52].mxu1 }
 0x4e9   : > { %v9362_v31 = vpop.f32.mrb[53].mxu1 }
 0x4ea   : > { %v9363_v48 = vadd.f32 %v9362_v31, %v9361_v14  ;;  %v9364_v58 = vpop.f32.mrb[54].mxu1 }
 0x4eb   : > { %v9365_v3 = vpop.f32.mrb[55].mxu1 }
 0x4ec   : > { %v14563_v17 = vadd.f32 %v9363_v48, %v14506_v60  ;;  %v9366_v36 = vadd.f32 %v9365_v3, %v9364_v58 }
 0x4ee   : > { %v14566_v35 = vadd.f32 %v9366_v36, %v14509_v63 }
 0x4f0   : > { %v9367_v51 = vpop.f32.mrb[56].mxu1 }
 0x4f1   : > { %v9368_v59 = vpop.f32.mrb[57].mxu1 }
 0x4f2   : > { %v9369_v24 = vadd.f32 %v9368_v59, %v9367_v51  ;;  %v9370_v37 = vpop.f32.mrb[58].mxu1 }
 0x4f3   : > { %v9371_v2 = vpop.f32.mrb[59].mxu1 }
 0x4f4   : > { %v14569_v47 = vadd.f32 %v9369_v24, %v14512_v42  ;;  %v9372_v19 = vadd.f32 %v9371_v2, %v9370_v37 }
 0x4f6   : > { %v14572_v34 = vadd.f32 %v9372_v19, %v14515_v26 }
 0x4f8   : > { %v9373_v23 = vpop.f32.mrb[60].mxu1 }
 0x4f9   : > { %v9374_v60 = vpop.f32.mrb[61].mxu1 }
 0x4fa   : > { %v9375_v22 = vadd.f32 %v9374_v60, %v9373_v23  ;;  %v9376_v49 = vpop.f32.mrb[62].mxu1 }
 0x4fb   : > { %v9377_v10 = vpop.f32.mrb[63].mxu1 }
 0x4fc   : > { %v14575_v63 = vadd.f32 %v9375_v22, %v14518_v33 }
 0x500   : > { %v7478_v43 = vpop.f32.mrb[120].mxu0  ;;  %v9395_v55 = vpop.f32.mrb[64].mxu1 }
 0x501   : > { %8247 = vst [vmem:[%s14579_s18] sm:$0xff] %v7478_v43  ;;  %v7480_v42 = vpop.f32.mrb[121].mxu0  ;;  %v9396_v26 = vpop.f32.mrb[65].mxu1 }
 0x502   : > { %8248 = vst [vmem:[%s14579_s18 + $0x8] sm:$0xff] %v7480_v42  ;;  %v9397_v53 = vadd.f32 %v9396_v26, %v9395_v55  ;;  %v7482_v1 = vpop.f32.mrb[122].mxu0  ;;  %v9398_v33 = vpop.f32.mrb[66].mxu1 }
 0x503   : > { %8250 = vst [vmem:[%s14579_s18 + $0x18] sm:$0xff] %v7482_v1  ;;  %v7484_v41 = vpop.f32.mrb[123].mxu0  ;;  %v9399_v11 = vpop.f32.mrb[67].mxu1 }
 0x504   : > { %v8170_v15 = vadd.f32 %v9397_v53, %v14521_v27  ;;  %8251 = vst [vmem:[%s14579_s18 + $0x20] sm:$0xff] %v7484_v41  ;;  %v9400_v46 = vadd.f32 %v9399_v11, %v9398_v33 }
 0x506   : > { %8249 = vst [vmem:[%s14579_s18 + $0x10] sm:$0xff] %v8170_v15  ;;  %v8173_v29 = vadd.f32 %v9400_v46, %v14524_v4 }
 0x508   : > { %8252 = vst [vmem:[%s14579_s18 + $0x28] sm:$0xff] %v8173_v29  ;;  %v7488_v50 = vpop.f32.mrb[124].mxu0  ;;  %v9401_v44 = vpop.f32.mrb[68].mxu1 }
 0x509   : > { %8253 = vst [vmem:[%s14579_s18 + $0x30] sm:$0xff] %v7488_v50  ;;  %v7490_v40 = vpop.f32.mrb[125].mxu0  ;;  %v9402_v9 = vpop.f32.mrb[69].mxu1 }
 0x50a   : > { %8254 = vst [vmem:[%s14579_s18 + $0x38] sm:$0xff] %v7490_v40  ;;  %v9403_v21 = vadd.f32 %v9402_v9, %v9401_v44  ;;  %v7492_v52 = vpop.f32.mrb[126].mxu0  ;;  %v9404_v27 = vpop.f32.mrb[70].mxu1 }
 0x50b   : > { %8256 = vst [vmem:[%s14579_s18 + $0x48] sm:$0xff] %v7492_v52  ;;  %v7494_v7 = vpop.f32.mrb[127].mxu0  ;;  %v9405_v16 = vpop.f32.mrb[71].mxu1 }
 0x50c   : > { %v8178_v4 = vadd.f32 %v9403_v21, %v14527_v20  ;;  %8257 = vst [vmem:[%s14579_s18 + $0x50] sm:$0xff] %v7494_v7  ;;  %v9406_v38 = vadd.f32 %v9405_v16, %v9404_v27 }
 0x50e   : > { %8255 = vst [vmem:[%s14579_s18 + $0x40] sm:$0xff] %v8178_v4  ;;  %v8181_v32 = vadd.f32 %v9406_v38, %v14530_v13 }
 0x510   : > { %8258 = vst [vmem:[%s14579_s18 + $0x58] sm:$0xff] %v8181_v32  ;;  %v7498_v6 = vpop.f32.mrb[128].mxu0  ;;  %v9407_v54 = vpop.f32.mrb[72].mxu1 }
 0x511   : > { %8259 = vst [vmem:[%s14579_s18 + $0x60] sm:$0xff] %v7498_v6  ;;  %v7500_v12 = vpop.f32.mrb[129].mxu0  ;;  %v9408_v45 = vpop.f32.mrb[73].mxu1 }
 0x512   : > { %8260 = vst [vmem:[%s14579_s18 + $0x68] sm:$0xff] %v7500_v12  ;;  %v9409_v0 = vadd.f32 %v9408_v45, %v9407_v54  ;;  %v7502_v57 = vpop.f32.mrb[130].mxu0  ;;  %v9410_v20 = vpop.f32.mrb[74].mxu1 }
 0x513   : > { %8262 = vst [vmem:[%s14579_s18 + $0x78] sm:$0xff] %v7502_v57  ;;  %v7504_v14 = vpop.f32.mrb[131].mxu0  ;;  %v9411_v31 = vpop.f32.mrb[75].mxu1 }
 0x514   : > { %v8186_v13 = vadd.f32 %v9409_v0, %v14533_v61  ;;  %8263 = vst [vmem:[%s14579_s18 + $0x80] sm:$0xff] %v7504_v14  ;;  %v9412_v48 = vadd.f32 %v9411_v31, %v9410_v20 }
 0x516   : > { %8261 = vst [vmem:[%s14579_s18 + $0x70] sm:$0xff] %v8186_v13  ;;  %v8189_v58 = vadd.f32 %v9412_v48, %v14536_v25 }
 0x518   : > { %8264 = vst [vmem:[%s14579_s18 + $0x88] sm:$0xff] %v8189_v58  ;;  %v7508_v3 = vpop.f32.mrb[132].mxu0  ;;  %v9413_v36 = vpop.f32.mrb[76].mxu1 }
 0x519   : > { %8265 = vst [vmem:[%s14579_s18 + $0x90] sm:$0xff] %v7508_v3  ;;  %v7510_v51 = vpop.f32.mrb[133].mxu0  ;;  %v9414_v59 = vpop.f32.mrb[77].mxu1 }
 0x51a   : > { %8266 = vst [vmem:[%s14579_s18 + $0x98] sm:$0xff] %v7510_v51  ;;  %v9415_v24 = vadd.f32 %v9414_v59, %v9413_v36  ;;  %v7512_v37 = vpop.f32.mrb[134].mxu0  ;;  %v9416_v61 = vpop.f32.mrb[78].mxu1 }
 0x51b   : > { %8268 = vst [vmem:[%s14579_s18 + $0xa8] sm:$0xff] %v7512_v37  ;;  %v7514_v2 = vpop.f32.mrb[135].mxu0  ;;  %v9417_v19 = vpop.f32.mrb[79].mxu1 }
 0x51c   : > { %v8194_v25 = vadd.f32 %v9415_v24, %v14539_v28  ;;  %8269 = vst [vmem:[%s14579_s18 + $0xb0] sm:$0xff] %v7514_v2  ;;  %v9418_v23 = vadd.f32 %v9417_v19, %v9416_v61 }
 0x51e   : > { %8267 = vst [vmem:[%s14579_s18 + $0xa0] sm:$0xff] %v8194_v25  ;;  %v8197_v60 = vadd.f32 %v9418_v23, %v14542_v5 }
 0x520   : > { %8270 = vst [vmem:[%s14579_s18 + $0xb8] sm:$0xff] %v8197_v60  ;;  %v7518_v22 = vpop.f32.mrb[136].mxu0  ;;  %v9419_v49 = vpop.f32.mrb[80].mxu1 }
 0x521   : > { %8271 = vst [vmem:[%s14579_s18 + $0xc0] sm:$0xff] %v7518_v22  ;;  %v7520_v10 = vpop.f32.mrb[137].mxu0  ;;  %v9420_v43 = vpop.f32.mrb[81].mxu1 }
 0x522   : > { %8272 = vst [vmem:[%s14579_s18 + $0xc8] sm:$0xff] %v7520_v10  ;;  %v9421_v55 = vadd.f32 %v9420_v43, %v9419_v49  ;;  %v7522_v42 = vpop.f32.mrb[138].mxu0  ;;  %v9422_v28 = vpop.f32.mrb[82].mxu1 }
 0x523   : > { %8274 = vst [vmem:[%s14579_s18 + $0xd8] sm:$0xff] %v7522_v42  ;;  %v7524_v26 = vpop.f32.mrb[139].mxu0  ;;  %v9423_v53 = vpop.f32.mrb[83].mxu1 }
 0x524   : > { %v8202_v5 = vadd.f32 %v9421_v55, %v14545_v18  ;;  %8275 = vst [vmem:[%s14579_s18 + $0xe0] sm:$0xff] %v7524_v26  ;;  %v9424_v1 = vadd.f32 %v9423_v53, %v9422_v28 }
 0x526   : > { %8273 = vst [vmem:[%s14579_s18 + $0xd0] sm:$0xff] %v8202_v5  ;;  %v8205_v33 = vadd.f32 %v9424_v1, %v14548_v30 }
 0x528   : > { %8276 = vst [vmem:[%s14579_s18 + $0xe8] sm:$0xff] %v8205_v33  ;;  %v7528_v41 = vpop.f32.mrb[140].mxu0  ;;  %v9425_v11 = vpop.f32.mrb[84].mxu1 }
 0x529   : > { %8277 = vst [vmem:[%s14579_s18 + $0xf0] sm:$0xff] %v7528_v41  ;;  %v7530_v15 = vpop.f32.mrb[141].mxu0  ;;  %v9426_v46 = vpop.f32.mrb[85].mxu1 }
 0x52a   : > { %8278 = vst [vmem:[%s14579_s18 + $0xf8] sm:$0xff] %v7530_v15  ;;  %v9427_v29 = vadd.f32 %v9426_v46, %v9425_v11  ;;  %v7532_v50 = vpop.f32.mrb[142].mxu0  ;;  %v9428_v18 = vpop.f32.mrb[86].mxu1 }
 0x52b   : > { %8280 = vst [vmem:[%s14579_s18 + $0x108] sm:$0xff] %v7532_v50  ;;  %v7534_v44 = vpop.f32.mrb[143].mxu0  ;;  %v9429_v40 = vpop.f32.mrb[87].mxu1 }
 0x52c   : > { %v8210_v30 = vadd.f32 %v9427_v29, %v14551_v56  ;;  %8281 = vst [vmem:[%s14579_s18 + $0x110] sm:$0xff] %v7534_v44  ;;  %v9430_v9 = vadd.f32 %v9429_v40, %v9428_v18 }
 0x52e   : > { %8279 = vst [vmem:[%s14579_s18 + $0x100] sm:$0xff] %v8210_v30  ;;  %v8213_v21 = vadd.f32 %v9430_v9, %v14554_v62 }
 0x530   : > { %8282 = vst [vmem:[%s14579_s18 + $0x118] sm:$0xff] %v8213_v21  ;;  %v7538_v52 = vpop.f32.mrb[144].mxu0  ;;  %v9431_v27 = vpop.f32.mrb[88].mxu1 }
 0x531   : > { %8283 = vst [vmem:[%s14579_s18 + $0x120] sm:$0xff] %v7538_v52  ;;  %v7540_v7 = vpop.f32.mrb[145].mxu0  ;;  %v9432_v16 = vpop.f32.mrb[89].mxu1 }
 0x532   : > { %8284 = vst [vmem:[%s14579_s18 + $0x128] sm:$0xff] %v7540_v7  ;;  %v9433_v4 = vadd.f32 %v9432_v16, %v9431_v27  ;;  %v7542_v38 = vpop.f32.mrb[146].mxu0  ;;  %v9434_v56 = vpop.f32.mrb[90].mxu1 }
 0x533   : > { %8286 = vst [vmem:[%s14579_s18 + $0x138] sm:$0xff] %v7542_v38  ;;  %v7544_v32 = vpop.f32.mrb[147].mxu0  ;;  %v9435_v6 = vpop.f32.mrb[91].mxu1 }
 0x534   : > { %v8218_v62 = vadd.f32 %v9433_v4, %v14557_v8  ;;  %8287 = vst [vmem:[%s14579_s18 + $0x140] sm:$0xff] %v7544_v32  ;;  %v9436_v54 = vadd.f32 %v9435_v6, %v9434_v56 }
 0x536   : > { %8285 = vst [vmem:[%s14579_s18 + $0x130] sm:$0xff] %v8218_v62  ;;  %v8221_v12 = vadd.f32 %v9436_v54, %v14560_v39 }
 0x538   : > { %8288 = vst [vmem:[%s14579_s18 + $0x148] sm:$0xff] %v8221_v12  ;;  %v7548_v45 = vpop.f32.mrb[148].mxu0  ;;  %v9437_v0 = vpop.f32.mrb[92].mxu1 }
 0x539   : > { %8289 = vst [vmem:[%s14579_s18 + $0x150] sm:$0xff] %v7548_v45  ;;  %v7550_v57 = vpop.f32.mrb[149].mxu0  ;;  %v9438_v20 = vpop.f32.mrb[93].mxu1 }
 0x53a   : > { %8290 = vst [vmem:[%s14579_s18 + $0x158] sm:$0xff] %v7550_v57  ;;  %v9439_v14 = vadd.f32 %v9438_v20, %v9437_v0  ;;  %v7552_v31 = vpop.f32.mrb[150].mxu0  ;;  %v9440_v8 = vpop.f32.mrb[94].mxu1 }
 0x53b   : > { %8292 = vst [vmem:[%s14579_s18 + $0x168] sm:$0xff] %v7552_v31  ;;  %v7554_v13 = vpop.f32.mrb[151].mxu0  ;;  %v9441_v48 = vpop.f32.mrb[95].mxu1 }
 0x53c   : > { %v8226_v39 = vadd.f32 %v9439_v14, %v14563_v17  ;;  %8293 = vst [vmem:[%s14579_s18 + $0x170] sm:$0xff] %v7554_v13  ;;  %v9442_v58 = vadd.f32 %v9441_v48, %v9440_v8 }
 0x53e   : > { %8291 = vst [vmem:[%s14579_s18 + $0x160] sm:$0xff] %v8226_v39  ;;  %v8229_v3 = vadd.f32 %v9442_v58, %v14566_v35 }
 0x540   : > { %8294 = vst [vmem:[%s14579_s18 + $0x178] sm:$0xff] %v8229_v3  ;;  %v7558_v36 = vpop.f32.mrb[152].mxu0  ;;  %v9443_v51 = vpop.f32.mrb[96].mxu1 }
 0x541   : > { %8295 = vst [vmem:[%s14579_s18 + $0x180] sm:$0xff] %v7558_v36  ;;  %v7560_v59 = vpop.f32.mrb[153].mxu0  ;;  %v9444_v24 = vpop.f32.mrb[97].mxu1 }
 0x542   : > { %8296 = vst [vmem:[%s14579_s18 + $0x188] sm:$0xff] %v7560_v59  ;;  %v9445_v37 = vadd.f32 %v9444_v24, %v9443_v51  ;;  %v7562_v61 = vpop.f32.mrb[154].mxu0  ;;  %v9446_v17 = vpop.f32.mrb[98].mxu1 }
 0x543   : > { %8298 = vst [vmem:[%s14579_s18 + $0x198] sm:$0xff] %v7562_v61  ;;  %v7564_v2 = vpop.f32.mrb[155].mxu0  ;;  %v9447_v19 = vpop.f32.mrb[99].mxu1 }
 0x544   : > { %v8234_v35 = vadd.f32 %v9445_v37, %v14569_v47  ;;  %8299 = vst [vmem:[%s14579_s18 + $0x1a0] sm:$0xff] %v7564_v2  ;;  %v9448_v25 = vadd.f32 %v9447_v19, %v9446_v17 }
 0x546   : > { %8297 = vst [vmem:[%s14579_s18 + $0x190] sm:$0xff] %v8234_v35  ;;  %v8237_v23 = vadd.f32 %v9448_v25, %v14572_v34 }
 0x548   : > { %8300 = vst [vmem:[%s14579_s18 + $0x1a8] sm:$0xff] %v8237_v23  ;;  %v7568_v60 = vpop.f32.mrb[156].mxu0  ;;  %v9449_v22 = vpop.f32.mrb[100].mxu1 }
 0x549   : > { %8301 = vst [vmem:[%s14579_s18 + $0x1b0] sm:$0xff] %v7568_v60  ;;  %v7570_v49 = vpop.f32.mrb[157].mxu0  ;;  %v9450_v10 = vpop.f32.mrb[101].mxu1 }
 0x54a   : > { %8302 = vst [vmem:[%s14579_s18 + $0x1b8] sm:$0xff] %v7570_v49  ;;  %v9451_v43 = vadd.f32 %v9450_v10, %v9449_v22  ;;  %v7572_v55 = vpop.f32.mrb[158].mxu0  ;;  %v9452_v47 = vpop.f32.mrb[102].mxu1 }
 0x54b   : > { %v7573_v42 = vpop.f32.mrb[159].mxu0  ;;  %v9453_v28 = vpop.f32.mrb[103].mxu1 }
 0x54c   : > { %v8242_v34 = vadd.f32 %v9451_v43, %v14575_v63 }
 0x54e   : > { %8303 = vst [vmem:[%s14579_s18 + $0x1c0] sm:$0xff] %v8242_v34 }
 0x54f   : > { %11348 = shalt.err (!%p11345_p2)
}
 0x550   : > { %s11349_s25 = scalar_lea.hbm %s14660_s16, 7296  ;;  %s11353_s27 = scalar_lea.hbm %s14711_s3, 14592 }
 0x551   : > { %p11350_p13 = scmp.ne.s32.totalorder %s14660_s16, %s11349_s25  ;;  %p11354_p4 = scmp.lt.u32.totalorder %s14660_s16, %s14711_s3 }
 0x552   : > { %p11355_p9 = scmp.lt.u32.totalorder %s11353_s27, %s11349_s25  ;;  %p11357_p11 = scmp.lt.u32.totalorder %s11349_s25, %s14660_s16 }
 0x553   : > { %p11351_p6 = pnand %p11350_p13, %p15314_p0 }
 0x554   : > { %p11356_p8 = por %p11355_p9, %p11354_p4 }
 0x555   : > { %p11352_p10 = pneg %p11351_p6 }
 0x556   : > { %p11358_p1 = por %p11357_p11, %p11356_p8 }
 0x558   : > { %p11359_p3 = pnand %p11358_p1, %p11352_p10 }
 0x55a   : > { %11362 = shalt.err (!%p11359_p3)
}
 0x55b   : > { %s11418_s5 = smov 384   ;;  %s11419_s18 = smov 24  }
 0x55c   : > { %9909 = dma.vmem_to_hbm [thread:$0]  (%p15314_p0), %s14663_s24, 7296, %s14660_s16, %s8305_s22, %s11418_s5, %s11418_s5, %s11419_s18  }
 0x55d PF: > { %s8334_s20 = sand.u32 1, %s11393_s12   ;;  %p15315_p5 = scmp.ne.s32.totalorder %s14818_s19, 0 }
 0x55e   : > { %p15316_p7 = scmp.ge.s32.totalorder %s11405_s15, 2  ;;  %s8335_s26 = scalar_lea.sflag [#allocation4], %s8334_s20 }
 0x560   : > { %p9923_p12 = pnand %p15316_p7, %p15315_p5 }
 0x562   : > { %11388 = dma.done.wait (!%p9923_p12), %s8335_s26, 7296  }
 0x563   : > { %11390 = vsyncadd (!%p9923_p12), %s8335_s26, 4294960000  ;;  %p17_p2 = scmp.ge.s32.totalorder %s11550_s6, 4   ;;  %s15317_s12 = smov %s11397_s13 }
 0x564   : > { %s15318_s13 = smov %s11401_s14  ;;  %s15319_s14 = smov %s11560_s9 }
 0x565   : > { %s15320_s15 = smov %s11550_s6  ;;  %19 = sbr.rel (!%p17_p2) target bundleno = 6 (0x6), region = 85 }
 0x56c   :  { %8340 = vsyncpa [#allocation3], 1 }
 0x56d   :  { %8342 = vsyncpa [#allocation3 + $0x1], 1 }
 0x56e   :  { %8343 = vsyncpa [#allocation6], 1 }
 0x56f   :  { %8344 = vsyncpa [#allocation4], 1 }
 0x570   :  { %8346 = vsyncpa [#allocation4 + $0x1], 1 }

</bundles_post_ra>
